<compile_context>
chip_gen: v5e
topology: v5e:2x2
jax: 0.10.0
libtpu: 0.0.40
codegen_flags: <defaults>
</compile_context>

<pallas_src>
import jax
import jax.numpy as jnp
from jax.experimental import pallas as pl
from jax.experimental.pallas import tpu as pltpu

HIDDEN = 10

# Lane/sublane-dense tile: (256, 512) f32 = 512 KiB.  With Pallas
# double-buffering the input and output streams this is ~2 MiB of live VMEM,
# comfortably inside the scoped-VMEM defaults on v5e/v6e and v7x (64 MiB
# physical / 32 MiB default scoped).
TILE_R = 256
TILE_C = 512
TILE_ELEMS = TILE_R * TILE_C


def generator_kernel(params_ref, x_ref, o_ref):
    """Elementwise 2-layer MLP on the VPU.

    params_ref: (32,) f32 in SMEM, packed [w1(10), b1(10), w2(10), b2, pad].
    x_ref / o_ref: (TILE_R, TILE_C) f32 VMEM tiles of the (flattened) batch.
    """
    x = x_ref[...]                                      # (TILE_R, TILE_C) f32
    acc = jnp.zeros_like(x) + params_ref[3 * HIDDEN]    # broadcast b2
    # HIDDEN == 10: unrolled at trace time -> straight-line VPU code,
    # scalar params broadcast from SMEM (no vreg waste, no XLU, no MXU).
    for j in range(HIDDEN):
        w1_j = params_ref[j]
        b1_j = params_ref[HIDDEN + j]
        w2_j = params_ref[2 * HIDDEN + j]
        acc = acc + w2_j * jnp.maximum(x * w1_j + b1_j, 0.0)
    o_ref[...] = acc


def generator_forward(x, params):
    """x: (B, 1) f32, params: (32,) f32 packed weights. Returns (B, 1) f32."""
    B = x.shape[0]
    flat = x.reshape(-1).astype(jnp.float32)

    # Pad the batch to a whole number of tiles and reshape so batch occupies
    # both the 128-lane and 8-sublane axes (dense vregs, unmasked stores).
    n_tiles = pl.cdiv(B, TILE_ELEMS)
    padded = n_tiles * TILE_ELEMS
    flat = jnp.pad(flat, (0, padded - B))
    x2d = flat.reshape(n_tiles * TILE_R, TILE_C)

    out2d = pl.pallas_call(
        generator_kernel,
        out_shape=jax.ShapeDtypeStruct((n_tiles * TILE_R, TILE_C), jnp.float32),
        grid=(n_tiles,),
        in_specs=[
            # 31 packed params, resident in SMEM for the whole grid.
            pl.BlockSpec(memory_space=pltpu.MemorySpace.SMEM),
            # Batch stream: lane-dense blocks, auto double-buffered by Pallas.
            pl.BlockSpec((TILE_R, TILE_C), lambda i: (i, 0)),
        ],
        out_specs=pl.BlockSpec((TILE_R, TILE_C), lambda i: (i, 0)),
        compiler_params=pltpu.CompilerParams(
            # Batch steps are independent -> megacore-shardable on v7x,
            # harmless on single-TC v5e/v6e.
            dimension_semantics=("parallel",),
        ),
    )(params, x2d)

    return out2d.reshape(-1)[:B].reshape(B, 1)


def init_params(key):
    """nn.Linear default init: U(-1/sqrt(fan_in), +1/sqrt(fan_in)).

    Packed layout of the returned (32,) vector:
      [0:10)  w1  -- Linear(1,10) weight (column)
      [10:20) b1
      [20:30) w2  -- Linear(10,1) weight (row)
      [30]    b2
      [31]    padding
    """
    k1, k2, k3, k4 = jax.random.split(key, 4)
    bound1 = 1.0                     # linear1: fan_in = 1
    bound2 = 1.0 / jnp.sqrt(10.0)    # linear2: fan_in = 10
    w1 = jax.random.uniform(k1, (HIDDEN,), jnp.float32, -bound1, bound1)
    b1 = jax.random.uniform(k2, (HIDDEN,), jnp.float32, -bound1, bound1)
    w2 = jax.random.uniform(k3, (HIDDEN,), jnp.float32, -bound2, bound2)
    b2 = jax.random.uniform(k4, (1,), jnp.float32, -bound2, bound2)
    params = jnp.concatenate([w1, b1, w2, b2, jnp.zeros((1,), jnp.float32)])
    return params, (w1, b1, w2, b2)


if __name__ == "__main__":
    key = jax.random.PRNGKey(0)
    k_params, k_z = jax.random.split(key)

    params, (w1, b1, w2, b2) = init_params(k_params)

    # z ~ latent input, shape (batch, 1) like the 2d-gaussian GAN generator.
    batch = 8
    z = jax.random.normal(k_z, (batch, 1), dtype=jnp.float32)

    out = generator_forward(z, params)
    out = jax.block_until_ready(out)

    # Plain-JAX reference of the same Linear(1,10) -> ReLU -> Linear(10,1).
    hidden = jnp.maximum(z * w1[None, :] + b1[None, :], 0.0)   # (B, 10)
    ref = hidden @ w2[:, None] + b2                            # (B, 1)

    assert out.shape == (batch, 1)
    assert jnp.allclose(out, ref, atol=1e-5, rtol=1e-5)

    print("KERNEL_OK")
</pallas_src>

<mosaic_0001>
module attributes {stable_mosaic.version = 11 : i64} {
  func.func @generator_kernel(%arg0: i32, %arg1: memref<32xf32, #tpu.memory_space<smem>>, %arg2: memref<256x512xf32, #tpu.memory_space<vmem>>, %arg3: memref<256x512xf32, #tpu.memory_space<vmem>>) attributes {dimension_semantics = [#tpu.dimension_semantics<parallel>], iteration_bounds = array<i64: 1>, scalar_prefetch = 0 : i64, scratch_operands = 0 : i64, tpu.core_type = #tpu.core_type<tc>, window_params = [{transform_indices = @transform_0, window_bounds = array<i64: 32>}, {transform_indices = @transform_1, window_bounds = array<i64: 256, 512>}, {transform_indices = @transform_2, window_bounds = array<i64: 256, 512>}]} {
    %c0 = arith.constant 0 : index
    %c0_0 = arith.constant 0 : index
    %0 = vector.load %arg2[%c0, %c0_0] : memref<256x512xf32, #tpu.memory_space<vmem>>, vector<256x512xf32>
    %cst = arith.constant 0.000000e+00 : f32
    %1 = vector.broadcast %cst : f32 to vector<256x512xf32>
    %c30 = arith.constant 30 : index
    %2 = memref.load %arg1[%c30] : memref<32xf32, #tpu.memory_space<smem>>
    %3 = vector.broadcast %2 : f32 to vector<256x512xf32>
    %4 = arith.addf %1, %3 : vector<256x512xf32>
    %c0_1 = arith.constant 0 : index
    %5 = memref.load %arg1[%c0_1] : memref<32xf32, #tpu.memory_space<smem>>
    %c10 = arith.constant 10 : index
    %6 = memref.load %arg1[%c10] : memref<32xf32, #tpu.memory_space<smem>>
    %c20 = arith.constant 20 : index
    %7 = memref.load %arg1[%c20] : memref<32xf32, #tpu.memory_space<smem>>
    %8 = vector.broadcast %5 : f32 to vector<256x512xf32>
    %9 = arith.mulf %0, %8 : vector<256x512xf32>
    %10 = vector.broadcast %6 : f32 to vector<256x512xf32>
    %11 = arith.addf %9, %10 : vector<256x512xf32>
    %cst_2 = arith.constant 0.000000e+00 : f32
    %12 = vector.broadcast %cst_2 : f32 to vector<256x512xf32>
    %13 = arith.maximumf %11, %12 : vector<256x512xf32>
    %14 = vector.broadcast %7 : f32 to vector<256x512xf32>
    %15 = arith.mulf %14, %13 : vector<256x512xf32>
    %16 = arith.addf %4, %15 : vector<256x512xf32>
    %c1 = arith.constant 1 : index
    %17 = memref.load %arg1[%c1] : memref<32xf32, #tpu.memory_space<smem>>
    %c11 = arith.constant 11 : index
    %18 = memref.load %arg1[%c11] : memref<32xf32, #tpu.memory_space<smem>>
    %c21 = arith.constant 21 : index
    %19 = memref.load %arg1[%c21] : memref<32xf32, #tpu.memory_space<smem>>
    %20 = vector.broadcast %17 : f32 to vector<256x512xf32>
    %21 = arith.mulf %0, %20 : vector<256x512xf32>
    %22 = vector.broadcast %18 : f32 to vector<256x512xf32>
    %23 = arith.addf %21, %22 : vector<256x512xf32>
    %cst_3 = arith.constant 0.000000e+00 : f32
    %24 = vector.broadcast %cst_3 : f32 to vector<256x512xf32>
    %25 = arith.maximumf %23, %24 : vector<256x512xf32>
    %26 = vector.broadcast %19 : f32 to vector<256x512xf32>
    %27 = arith.mulf %26, %25 : vector<256x512xf32>
    %28 = arith.addf %16, %27 : vector<256x512xf32>
    %c2 = arith.constant 2 : index
    %29 = memref.load %arg1[%c2] : memref<32xf32, #tpu.memory_space<smem>>
    %c12 = arith.constant 12 : index
    %30 = memref.load %arg1[%c12] : memref<32xf32, #tpu.memory_space<smem>>
    %c22 = arith.constant 22 : index
    %31 = memref.load %arg1[%c22] : memref<32xf32, #tpu.memory_space<smem>>
    %32 = vector.broadcast %29 : f32 to vector<256x512xf32>
    %33 = arith.mulf %0, %32 : vector<256x512xf32>
    %34 = vector.broadcast %30 : f32 to vector<256x512xf32>
    %35 = arith.addf %33, %34 : vector<256x512xf32>
    %cst_4 = arith.constant 0.000000e+00 : f32
    %36 = vector.broadcast %cst_4 : f32 to vector<256x512xf32>
    %37 = arith.maximumf %35, %36 : vector<256x512xf32>
    %38 = vector.broadcast %31 : f32 to vector<256x512xf32>
    %39 = arith.mulf %38, %37 : vector<256x512xf32>
    %40 = arith.addf %28, %39 : vector<256x512xf32>
    %c3 = arith.constant 3 : index
    %41 = memref.load %arg1[%c3] : memref<32xf32, #tpu.memory_space<smem>>
    %c13 = arith.constant 13 : index
    %42 = memref.load %arg1[%c13] : memref<32xf32, #tpu.memory_space<smem>>
    %c23 = arith.constant 23 : index
    %43 = memref.load %arg1[%c23] : memref<32xf32, #tpu.memory_space<smem>>
    %44 = vector.broadcast %41 : f32 to vector<256x512xf32>
    %45 = arith.mulf %0, %44 : vector<256x512xf32>
    %46 = vector.broadcast %42 : f32 to vector<256x512xf32>
    %47 = arith.addf %45, %46 : vector<256x512xf32>
    %cst_5 = arith.constant 0.000000e+00 : f32
    %48 = vector.broadcast %cst_5 : f32 to vector<256x512xf32>
    %49 = arith.maximumf %47, %48 : vector<256x512xf32>
    %50 = vector.broadcast %43 : f32 to vector<256x512xf32>
    %51 = arith.mulf %50, %49 : vector<256x512xf32>
    %52 = arith.addf %40, %51 : vector<256x512xf32>
    %c4 = arith.constant 4 : index
    %53 = memref.load %arg1[%c4] : memref<32xf32, #tpu.memory_space<smem>>
    %c14 = arith.constant 14 : index
    %54 = memref.load %arg1[%c14] : memref<32xf32, #tpu.memory_space<smem>>
    %c24 = arith.constant 24 : index
    %55 = memref.load %arg1[%c24] : memref<32xf32, #tpu.memory_space<smem>>
    %56 = vector.broadcast %53 : f32 to vector<256x512xf32>
    %57 = arith.mulf %0, %56 : vector<256x512xf32>
    %58 = vector.broadcast %54 : f32 to vector<256x512xf32>
    %59 = arith.addf %57, %58 : vector<256x512xf32>
    %cst_6 = arith.constant 0.000000e+00 : f32
    %60 = vector.broadcast %cst_6 : f32 to vector<256x512xf32>
    %61 = arith.maximumf %59, %60 : vector<256x512xf32>
    %62 = vector.broadcast %55 : f32 to vector<256x512xf32>
    %63 = arith.mulf %62, %61 : vector<256x512xf32>
    %64 = arith.addf %52, %63 : vector<256x512xf32>
    %c5 = arith.constant 5 : index
    %65 = memref.load %arg1[%c5] : memref<32xf32, #tpu.memory_space<smem>>
    %c15 = arith.constant 15 : index
    %66 = memref.load %arg1[%c15] : memref<32xf32, #tpu.memory_space<smem>>
    %c25 = arith.constant 25 : index
    %67 = memref.load %arg1[%c25] : memref<32xf32, #tpu.memory_space<smem>>
    %68 = vector.broadcast %65 : f32 to vector<256x512xf32>
    %69 = arith.mulf %0, %68 : vector<256x512xf32>
    %70 = vector.broadcast %66 : f32 to vector<256x512xf32>
    %71 = arith.addf %69, %70 : vector<256x512xf32>
    %cst_7 = arith.constant 0.000000e+00 : f32
    %72 = vector.broadcast %cst_7 : f32 to vector<256x512xf32>
    %73 = arith.maximumf %71, %72 : vector<256x512xf32>
    %74 = vector.broadcast %67 : f32 to vector<256x512xf32>
    %75 = arith.mulf %74, %73 : vector<256x512xf32>
    %76 = arith.addf %64, %75 : vector<256x512xf32>
    %c6 = arith.constant 6 : index
    %77 = memref.load %arg1[%c6] : memref<32xf32, #tpu.memory_space<smem>>
    %c16 = arith.constant 16 : index
    %78 = memref.load %arg1[%c16] : memref<32xf32, #tpu.memory_space<smem>>
    %c26 = arith.constant 26 : index
    %79 = memref.load %arg1[%c26] : memref<32xf32, #tpu.memory_space<smem>>
    %80 = vector.broadcast %77 : f32 to vector<256x512xf32>
    %81 = arith.mulf %0, %80 : vector<256x512xf32>
    %82 = vector.broadcast %78 : f32 to vector<256x512xf32>
    %83 = arith.addf %81, %82 : vector<256x512xf32>
    %cst_8 = arith.constant 0.000000e+00 : f32
    %84 = vector.broadcast %cst_8 : f32 to vector<256x512xf32>
    %85 = arith.maximumf %83, %84 : vector<256x512xf32>
    %86 = vector.broadcast %79 : f32 to vector<256x512xf32>
    %87 = arith.mulf %86, %85 : vector<256x512xf32>
    %88 = arith.addf %76, %87 : vector<256x512xf32>
    %c7 = arith.constant 7 : index
    %89 = memref.load %arg1[%c7] : memref<32xf32, #tpu.memory_space<smem>>
    %c17 = arith.constant 17 : index
    %90 = memref.load %arg1[%c17] : memref<32xf32, #tpu.memory_space<smem>>
    %c27 = arith.constant 27 : index
    %91 = memref.load %arg1[%c27] : memref<32xf32, #tpu.memory_space<smem>>
    %92 = vector.broadcast %89 : f32 to vector<256x512xf32>
    %93 = arith.mulf %0, %92 : vector<256x512xf32>
    %94 = vector.broadcast %90 : f32 to vector<256x512xf32>
    %95 = arith.addf %93, %94 : vector<256x512xf32>
    %cst_9 = arith.constant 0.000000e+00 : f32
    %96 = vector.broadcast %cst_9 : f32 to vector<256x512xf32>
    %97 = arith.maximumf %95, %96 : vector<256x512xf32>
    %98 = vector.broadcast %91 : f32 to vector<256x512xf32>
    %99 = arith.mulf %98, %97 : vector<256x512xf32>
    %100 = arith.addf %88, %99 : vector<256x512xf32>
    %c8 = arith.constant 8 : index
    %101 = memref.load %arg1[%c8] : memref<32xf32, #tpu.memory_space<smem>>
    %c18 = arith.constant 18 : index
    %102 = memref.load %arg1[%c18] : memref<32xf32, #tpu.memory_space<smem>>
    %c28 = arith.constant 28 : index
    %103 = memref.load %arg1[%c28] : memref<32xf32, #tpu.memory_space<smem>>
    %104 = vector.broadcast %101 : f32 to vector<256x512xf32>
    %105 = arith.mulf %0, %104 : vector<256x512xf32>
    %106 = vector.broadcast %102 : f32 to vector<256x512xf32>
    %107 = arith.addf %105, %106 : vector<256x512xf32>
    %cst_10 = arith.constant 0.000000e+00 : f32
    %108 = vector.broadcast %cst_10 : f32 to vector<256x512xf32>
    %109 = arith.maximumf %107, %108 : vector<256x512xf32>
    %110 = vector.broadcast %103 : f32 to vector<256x512xf32>
    %111 = arith.mulf %110, %109 : vector<256x512xf32>
    %112 = arith.addf %100, %111 : vector<256x512xf32>
    %c9 = arith.constant 9 : index
    %113 = memref.load %arg1[%c9] : memref<32xf32, #tpu.memory_space<smem>>
    %c19 = arith.constant 19 : index
    %114 = memref.load %arg1[%c19] : memref<32xf32, #tpu.memory_space<smem>>
    %c29 = arith.constant 29 : index
    %115 = memref.load %arg1[%c29] : memref<32xf32, #tpu.memory_space<smem>>
    %116 = vector.broadcast %113 : f32 to vector<256x512xf32>
    %117 = arith.mulf %0, %116 : vector<256x512xf32>
    %118 = vector.broadcast %114 : f32 to vector<256x512xf32>
    %119 = arith.addf %117, %118 : vector<256x512xf32>
    %cst_11 = arith.constant 0.000000e+00 : f32
    %120 = vector.broadcast %cst_11 : f32 to vector<256x512xf32>
    %121 = arith.maximumf %119, %120 : vector<256x512xf32>
    %122 = vector.broadcast %115 : f32 to vector<256x512xf32>
    %123 = arith.mulf %122, %121 : vector<256x512xf32>
    %124 = arith.addf %112, %123 : vector<256x512xf32>
    %c0_12 = arith.constant 0 : index
    %c0_13 = arith.constant 0 : index
    %125 = vector.load %arg3[%c0_12, %c0_13] : memref<256x512xf32, #tpu.memory_space<vmem>>, vector<256x512xf32>
    tpu.vector_store %arg3[%c0_12, %c0_13], %124 {strides = array<i32>} : memref<256x512xf32, #tpu.memory_space<vmem>>, vector<256x512xf32>,
    return
  }
  func.func @transform_0(%arg0: i32) -> i32 {
    %c0_i32 = arith.constant 0 : i32
    %c0_i32_0 = arith.constant 0 : i32
    return %c0_i32 : i32
  }
  func.func @transform_1(%arg0: i32) -> (i32, i32) {
    %c0_i32 = arith.constant 0 : i32
    %c0_i32_0 = arith.constant 0 : i32
    return %arg0, %c0_i32 : i32, i32
  }
  func.func @transform_2(%arg0: i32) -> (i32, i32) {
    %c0_i32 = arith.constant 0 : i32
    %c0_i32_0 = arith.constant 0 : i32
    return %arg0, %c0_i32 : i32, i32
  }
}

</mosaic_0001>

<bundles_post_ra>
// kernel: tpu_custom_call.1
= control target key start
LH: loop header
LB: loop body
LE: loop exit
PB: predicated region body
PF: predicated region fallthrough
CT: control target
= control target key end

     0   :  { %7 = vsyncpa [#allocation5], 0  ;;  %s11005_s0 = inlined_call_operand.hbm [shape: f32[32], index: 0, kind: input, shape index: {}]   ;;  %s11006_s1 = inlined_call_operand.hbm [shape: f32[256,512], index: 1, kind: input, shape index: {}]   ;;  %s11007_s2 = inlined_call_operand.hbm [shape: f32[256,512], index: 2, kind: output, shape index: {}]  }
   0x1   :  { %8 = vsyncpa [#allocation3], 0 }
   0x2   :  { %9 = vsyncpa [#allocation4], 0  ;;  %s15_s11 = sshll.u32 %s11005_s0, 4  ;;  %s23_s14 = sshll.u32 %s11006_s1, 4  ;;  %s16_s11 = int_to_ptr.hbm [resolvable:$true] %s15_s11  ;;  %s24_s14 = int_to_ptr.hbm [resolvable:$true] %s23_s14 }
   0x3   :  { %s6881_s15 = smov [#allocation2]   ;;  %s6882_s16 = smov [#allocation6]  }
   0x4   :  { %18 = dma.hbm_to_smem %s16_s11, 16, %s6881_s15, [#allocation5]  }
   0x5   :  { %s25_s17 = sshll.u32 %s6882_s16, 4  ;;  %s6883_s18 = smov 512   ;;  %s26_s17 = int_to_ptr.vmem [resolvable:$true] %s25_s17 }
   0x6   :  { %s6884_s19 = smov 32  }
   0x7   :  { %31 = dma.hbm_to_vmem [thread:$0]  %s24_s14, 16384, %s26_s17, [#allocation3], %s6883_s18, %s6883_s18, %s6884_s19  }
   0x8   :  { %6875 = dma.done.wait [#allocation5], 16  }
   0x9   :  { %6876 = vsyncadd [#allocation5], 4294967280 }
   0xa   :  { %6877 = dma.done.wait [#allocation3], 16384  }
   0xb   :  { %6878 = vsyncadd [#allocation3], 4294950912 }
   0xc   :  { %40 = sfence }
   0xd   :  { %s6780_s0 = sld [smem:[#allocation2 + $0x1e]]  ;;  %v6910_v0 = vld [vmem:[#allocation6] sm:$0xff]  ;;  %v6912_v1 = vld [vmem:[#allocation6 + $0x8] sm:$0xff]  ;;  %v6914_v2 = vld [vmem:[#allocation6 + $0x10] sm:$0xff] }
   0xe   :  { %s172_s20 = sld [smem:[#allocation2]]  ;;  %v6916_v3 = vld [vmem:[#allocation6 + $0x18] sm:$0xff] }
   0xf   :  { %s6781_s1 = sld [smem:[#allocation2 + $0xa]] }
  0x10   :  { %s6782_s21 = sld [smem:[#allocation2 + $0x14]] }
  0x11   :  { %s6783_s22 = sld [smem:[#allocation2 + $0x1]] }
  0x12   :  { %s6784_s23 = sld [smem:[#allocation2 + $0xb]] }
  0x13   :  { %s6785_s24 = sld [smem:[#allocation2 + $0x15]]  ;;  %v6928_v9 = vstv %s6780_s0 }
  0x14   :  { %v6918_v4 = vstv %s172_s20  ;;  %s6786_s25 = sld [smem:[#allocation2 + $0x2]] }
  0x15   :  { %v176_v5 = vmul.f32 %v6918_v4, %v6910_v0  ;;  %v6922_v6 = vstv %s6781_s1  ;;  %s6787_s26 = sld [smem:[#allocation2 + $0xc]]  ;;  %v177_v7 = vmul.f32 %v6918_v4, %v6912_v1  ;;  %v178_v8 = vmul.f32 %v6918_v4, %v6914_v2 }
  0x16   :  { %v6930_v10 = vstv %s6782_s21  ;;  %s6788_s27 = sld [smem:[#allocation2 + $0x16]]  ;;  %v6934_v11 = vmul.f32 %v6918_v4, %v6916_v3  ;;  %s6885_s21 = smov [#allocation7]  }
  0x17   :  { %v305_v12 = vadd.f32 %v6922_v6, %v176_v5  ;;  %v6937_v13 = vstv %s6783_s22  ;;  %s6789_s28 = sld [smem:[#allocation2 + $0x3]]  ;;  %v306_v14 = vadd.f32 %v6922_v6, %v177_v7  ;;  %v6941_v15 = vadd.f32 %v6922_v6, %v178_v8  ;;  %s6764_s22 = sshll.u32 %s6885_s21, 4  ;;  %s6765_s22 = int_to_ptr.vmem [resolvable:$true] %s6764_s22 }
  0x18   :  { %v822_v16 = vmul.f32 %v6937_v13, %v6910_v0  ;;  %v6945_v17 = vstv %s6784_s23  ;;  %s6790_s29 = sld [smem:[#allocation2 + $0xd]]  ;;  %v823_v18 = vmul.f32 %v6937_v13, %v6912_v1  ;;  %v824_v19 = vmul.f32 %v6937_v13, %v6914_v2 }
  0x19   :  { %v433_v20 = vmax.f32 %v305_v12, 0.0  ;;  %v6951_v21 = vstv %s6785_s24  ;;  %s6791_s30 = sld [smem:[#allocation2 + $0x17]]  ;;  %v434_v22 = vmax.f32 %v306_v14, 0.0  ;;  %v435_v23 = vmax.f32 %v6941_v15, 0.0 }
  0x1a   :  { %v951_v24 = vadd.f32 %v6945_v17, %v822_v16  ;;  %v6955_v25 = vstv %s6786_s25  ;;  %s6792_s3 = sld [smem:[#allocation2 + $0x4]]  ;;  %v952_v26 = vadd.f32 %v6945_v17, %v823_v18  ;;  %v6959_v27 = vadd.f32 %v6945_v17, %v824_v19  ;;  %s6766_s25 = sshll.u32 %s11007_s2, 4  ;;  %s6767_s25 = int_to_ptr.hbm [resolvable:$true] %s6766_s25 }
  0x1b   :  { %v562_v28 = vmul.f32 %v6930_v10, %v433_v20  ;;  %v1468_v29 = vmul.f32 %v6955_v25, %v6910_v0  ;;  %v6964_v30 = vstv %s6787_s26  ;;  %s6793_s4 = sld [smem:[#allocation2 + $0xe]]  ;;  %v563_v31 = vmul.f32 %v6930_v10, %v434_v22 }
  0x1c   :  { %v1079_v32 = vmax.f32 %v951_v24, 0.0  ;;  %v6967_v33 = vstv %s6788_s27  ;;  %s6794_s5 = sld [smem:[#allocation2 + $0x18]]  ;;  %v1080_v34 = vmax.f32 %v952_v26, 0.0  ;;  %v1469_v35 = vmul.f32 %v6955_v25, %v6912_v1 }
  0x1d   :  { %v690_v36 = vadd.f32 %v562_v28, %v6928_v9  ;;  %v1597_v37 = vadd.f32 %v6964_v30, %v1468_v29  ;;  %v6973_v38 = vstv %s6789_s28  ;;  %s6795_s6 = sld [smem:[#allocation2 + $0x5]]  ;;  %v691_v39 = vadd.f32 %v563_v31, %v6928_v9 }
  0x1e   :  { %v1208_v40 = vmul.f32 %v6951_v21, %v1079_v32  ;;  %v2114_v41 = vmul.f32 %v6973_v38, %v6910_v0  ;;  %v6979_v42 = vstv %s6790_s29  ;;  %s6796_s7 = sld [smem:[#allocation2 + $0xf]]  ;;  %v1209_v43 = vmul.f32 %v6951_v21, %v1080_v34 }
  0x1f   :  { %v1725_v44 = vmax.f32 %v1597_v37, 0.0  ;;  %v6982_v45 = vstv %s6791_s30  ;;  %s6797_s8 = sld [smem:[#allocation2 + $0x19]]  ;;  %v1598_v46 = vadd.f32 %v6964_v30, %v1469_v35  ;;  %v2115_v47 = vmul.f32 %v6973_v38, %v6912_v1 }
  0x20   :  { %v1336_v48 = vadd.f32 %v1208_v40, %v690_v36  ;;  %v2243_v49 = vadd.f32 %v6979_v42, %v2114_v41  ;;  %v6988_v50 = vstv %s6792_s3  ;;  %s6798_s9 = sld [smem:[#allocation2 + $0x6]]  ;;  %v1337_v51 = vadd.f32 %v1209_v43, %v691_v39 }
  0x21   :  { %v1854_v52 = vmul.f32 %v6967_v33, %v1725_v44  ;;  %v2760_v53 = vmul.f32 %v6988_v50, %v6910_v0  ;;  %v6993_v54 = vstv %s6793_s4  ;;  %s6799_s10 = sld [smem:[#allocation2 + $0x10]]  ;;  %v1726_v55 = vmax.f32 %v1598_v46, 0.0 }
  0x22   :  { %v2371_v56 = vmax.f32 %v2243_v49, 0.0  ;;  %v6995_v57 = vstv %s6794_s5  ;;  %s6800_s11 = sld [smem:[#allocation2 + $0x1a]]  ;;  %v2244_v58 = vadd.f32 %v6979_v42, %v2115_v47  ;;  %v2761_v59 = vmul.f32 %v6988_v50, %v6912_v1 }
  0x23   :  { %v1982_v60 = vadd.f32 %v1854_v52, %v1336_v48  ;;  %v2889_v61 = vadd.f32 %v6993_v54, %v2760_v53  ;;  %v7001_v62 = vstv %s6795_s6  ;;  %s6801_s12 = sld [smem:[#allocation2 + $0x7]]  ;;  %v1855_v63 = vmul.f32 %v6967_v33, %v1726_v55 }
  0x24   :  { %v2500_v5 = vmul.f32 %v6982_v45, %v2371_v56  ;;  %v3406_v7 = vmul.f32 %v7001_v62, %v6910_v0  ;;  %v7007_v8 = vstv %s6796_s7  ;;  %s6802_s13 = sld [smem:[#allocation2 + $0x11]]  ;;  %v2372_v12 = vmax.f32 %v2244_v58, 0.0 }
  0x25   :  { %v3017_v14 = vmax.f32 %v2889_v61, 0.0  ;;  %v7009_v16 = vstv %s6797_s8  ;;  %s6803_s14 = sld [smem:[#allocation2 + $0x1b]]  ;;  %v1983_v18 = vadd.f32 %v1855_v63, %v1337_v51  ;;  %v2890_v19 = vadd.f32 %v6993_v54, %v2761_v59 }
  0x26   :  { %v2628_v20 = vadd.f32 %v2500_v5, %v1982_v60  ;;  %v3535_v22 = vadd.f32 %v7007_v8, %v3406_v7  ;;  %v7013_v24 = vstv %s6798_s9  ;;  %s6804_s15 = sld [smem:[#allocation2 + $0x8]]  ;;  %v2501_v26 = vmul.f32 %v6982_v45, %v2372_v12 }
  0x27   :  { %v3146_v28 = vmul.f32 %v6995_v57, %v3017_v14  ;;  %v4052_v29 = vmul.f32 %v7013_v24, %v6910_v0  ;;  %v7019_v31 = vstv %s6799_s10  ;;  %s6805_s16 = sld [smem:[#allocation2 + $0x12]]  ;;  %v3018_v32 = vmax.f32 %v2890_v19, 0.0 }
  0x28   :  { %v3663_v34 = vmax.f32 %v3535_v22, 0.0  ;;  %v7021_v35 = vstv %s6800_s11  ;;  %s6806_s17 = sld [smem:[#allocation2 + $0x1c]]  ;;  %v2629_v36 = vadd.f32 %v2501_v26, %v1983_v18  ;;  %v3407_v37 = vmul.f32 %v7001_v62, %v6912_v1 }
  0x29   :  { %v3274_v39 = vadd.f32 %v3146_v28, %v2628_v20  ;;  %v4181_v40 = vadd.f32 %v7019_v31, %v4052_v29  ;;  %v7026_v41 = vstv %s6801_s12  ;;  %s6807_s0 = sld [smem:[#allocation2 + $0x9]]  ;;  %v3147_v43 = vmul.f32 %v6995_v57, %v3018_v32 }
  0x2a   :  { %v3792_v44 = vmul.f32 %v7009_v16, %v3663_v34  ;;  %v4698_v46 = vmul.f32 %v7026_v41, %v6910_v0  ;;  %v7032_v47 = vstv %s6802_s13  ;;  %s6808_s20 = sld [smem:[#allocation2 + $0x13]]  ;;  %v3536_v48 = vadd.f32 %v7007_v8, %v3407_v37 }
  0x2b   :  { %v4309_v49 = vmax.f32 %v4181_v40, 0.0  ;;  %v7035_v51 = vstv %s6803_s14  ;;  %s6809_s1 = sld [smem:[#allocation2 + $0x1d]]  ;;  %v3275_v52 = vadd.f32 %v3147_v43, %v2629_v36  ;;  %v4053_v53 = vmul.f32 %v7013_v24, %v6912_v1 }
  0x2c   :  { %v3920_v55 = vadd.f32 %v3792_v44, %v3274_v39  ;;  %v4827_v56 = vadd.f32 %v7032_v47, %v4698_v46  ;;  %v7040_v58 = vstv %s6804_s15  ;;  %v3664_v59 = vmax.f32 %v3536_v48, 0.0 }
  0x2d   :  { %v4438_v60 = vmul.f32 %v7021_v35, %v4309_v49  ;;  %v5344_v61 = vmul.f32 %v7040_v58, %v6910_v0  ;;  %v7045_v63 = vstv %s6805_s16  ;;  %v4182_v5 = vadd.f32 %v7019_v31, %v4053_v53 }
  0x2e   :  { %v4955_v7 = vmax.f32 %v4827_v56, 0.0  ;;  %v7048_v12 = vstv %s6806_s17  ;;  %v3793_v14 = vmul.f32 %v7009_v16, %v3664_v59  ;;  %v4699_v18 = vmul.f32 %v7026_v41, %v6912_v1 }
  0x2f   :  { %v4566_v19 = vadd.f32 %v4438_v60, %v3920_v55  ;;  %v5473_v20 = vadd.f32 %v7045_v63, %v5344_v61  ;;  %v7054_v22 = vstv %s6807_s0  ;;  %v4310_v26 = vmax.f32 %v4182_v5, 0.0 }
  0x30   :  { %v5084_v28 = vmul.f32 %v7035_v51, %v4955_v7  ;;  %v5990_v29 = vmul.f32 %v7054_v22, %v6910_v0  ;;  %v7059_v32 = vstv %s6808_s20  ;;  %v3921_v34 = vadd.f32 %v3793_v14, %v3275_v52 }
  0x31   :  { %v5601_v36 = vmax.f32 %v5473_v20, 0.0  ;;  %v7061_v37 = vstv %s6809_s1  ;;  %v4439_v39 = vmul.f32 %v7021_v35, %v4310_v26  ;;  %v4828_v40 = vadd.f32 %v7032_v47, %v4699_v18 }
  0x32   :  { %v5212_v43 = vadd.f32 %v5084_v28, %v4566_v19  ;;  %v6119_v44 = vadd.f32 %v7059_v32, %v5990_v29  ;;  %v5345_v46 = vmul.f32 %v7040_v58, %v6912_v1  ;;  %v5991_v48 = vmul.f32 %v7054_v22, %v6912_v1 }
  0x33   :  { %v5730_v0 = vmul.f32 %v7048_v12, %v5601_v36  ;;  %v4567_v49 = vadd.f32 %v4439_v39, %v3921_v34  ;;  %v4956_v52 = vmax.f32 %v4828_v40, 0.0  ;;  %v564_v53 = vmul.f32 %v6930_v10, %v435_v23 }
  0x34   :  { %v6247_v55 = vmax.f32 %v6119_v44, 0.0  ;;  %v5474_v56 = vadd.f32 %v7045_v63, %v5345_v46  ;;  %v6120_v59 = vadd.f32 %v7059_v32, %v5991_v48  ;;  %v1081_v60 = vmax.f32 %v6959_v27, 0.0 }
  0x35   :  { %v5858_v61 = vadd.f32 %v5730_v0, %v5212_v43  ;;  %v5085_v5 = vmul.f32 %v7035_v51, %v4956_v52  ;;  %v692_v1 = vadd.f32 %v564_v53, %v6928_v9  ;;  %v1470_v7 = vmul.f32 %v6955_v25, %v6914_v2 }
  0x36   :  { %v6376_v14 = vmul.f32 %v7061_v37, %v6247_v55  ;;  %v5602_v15 = vmax.f32 %v5474_v56, 0.0  ;;  %v6248_v18 = vmax.f32 %v6120_v59, 0.0  ;;  %v1210_v23 = vmul.f32 %v6951_v21, %v1081_v60 }
  0x37   :  { %v5213_v19 = vadd.f32 %v5085_v5, %v4567_v49  ;;  %v1599_v20 = vadd.f32 %v6964_v30, %v1470_v7  ;;  %v2116_v27 = vmul.f32 %v6973_v38, %v6914_v2  ;;  %v2762_v26 = vmul.f32 %v6988_v50, %v6914_v2 }
  0x38   :  { %v6504_v28 = vadd.f32 %v6376_v14, %v5858_v61  ;;  %v5731_v29 = vmul.f32 %v7048_v12, %v5602_v15  ;;  %v6377_v34 = vmul.f32 %v7061_v37, %v6248_v18  ;;  %v1338_v36 = vadd.f32 %v1210_v23, %v692_v1 }
  0x39   :  { %v1727_v39 = vmax.f32 %v1599_v20, 0.0  ;;  %v2245_v40 = vadd.f32 %v6979_v42, %v2116_v27  ;;  %v2891_v43 = vadd.f32 %v6993_v54, %v2762_v26  ;;  %v3408_v44 = vmul.f32 %v7001_v62, %v6914_v2 }
  0x3a   :  { %6632 = vst [vmem:[#allocation7] sm:$0xff] %v6504_v28  ;;  %v5859_v46 = vadd.f32 %v5731_v29, %v5213_v19  ;;  %v4054_v48 = vmul.f32 %v7013_v24, %v6914_v2  ;;  %v4700_v0 = vmul.f32 %v7026_v41, %v6914_v2  ;;  %v5346_v49 = vmul.f32 %v7040_v58, %v6914_v2 }
  0x3b   :  { %v1856_v52 = vmul.f32 %v6967_v33, %v1727_v39  ;;  %v2373_v53 = vmax.f32 %v2245_v40, 0.0  ;;  %v3019_v55 = vmax.f32 %v2891_v43, 0.0  ;;  %v3537_v56 = vadd.f32 %v7007_v8, %v3408_v44 }
  0x3c   :  { %v6505_v59 = vadd.f32 %v6377_v34, %v5859_v46  ;;  %v4183_v60 = vadd.f32 %v7019_v31, %v4054_v48  ;;  %v4829_v61 = vadd.f32 %v7032_v47, %v4700_v0  ;;  %v5475_v5 = vadd.f32 %v7045_v63, %v5346_v49 }
  0x3d   :  { %v1984_v1 = vadd.f32 %v1856_v52, %v1338_v36  ;;  %v2502_v7 = vmul.f32 %v6982_v45, %v2373_v53  ;;  %v3148_v14 = vmul.f32 %v6995_v57, %v3019_v55  ;;  %v3665_v15 = vmax.f32 %v3537_v56, 0.0 }
  0x3e   :  { %6633 = vst [vmem:[#allocation7 + $0x8] sm:$0xff] %v6505_v59  ;;  %v4311_v18 = vmax.f32 %v4183_v60, 0.0  ;;  %v4957_v23 = vmax.f32 %v4829_v61, 0.0  ;;  %v5603_v19 = vmax.f32 %v5475_v5, 0.0  ;;  %v5992_v20 = vmul.f32 %v7054_v22, %v6914_v2 }
  0x3f   :  { %v2630_v27 = vadd.f32 %v2502_v7, %v1984_v1  ;;  %v3794_v26 = vmul.f32 %v7009_v16, %v3665_v15  ;;  %v308_v28 = vadd.f32 %v6922_v6, %v6934_v11  ;;  %v825_v29 = vmul.f32 %v6937_v13, %v6916_v3 }
  0x40   :  { %v4440_v34 = vmul.f32 %v7021_v35, %v4311_v18  ;;  %v5086_v36 = vmul.f32 %v7035_v51, %v4957_v23  ;;  %v5732_v39 = vmul.f32 %v7048_v12, %v5603_v19  ;;  %v6121_v40 = vadd.f32 %v7059_v32, %v5992_v20 }
  0x41   :  { %v3276_v43 = vadd.f32 %v3148_v14, %v2630_v27  ;;  %v436_v44 = vmax.f32 %v308_v28, 0.0  ;;  %v954_v2 = vadd.f32 %v6945_v17, %v825_v29  ;;  %v1471_v46 = vmul.f32 %v6955_v25, %v6916_v3 }
  0x42   :  { %v6249_v48 = vmax.f32 %v6121_v40, 0.0  ;;  %v2117_v11 = vmul.f32 %v6973_v38, %v6916_v3  ;;  %v2763_v0 = vmul.f32 %v6988_v50, %v6916_v3  ;;  %v3409_v49 = vmul.f32 %v7001_v62, %v6916_v3  ;;  %v45_v40 = vld [vmem:[#allocation6 + $0x20] sm:$0xff] }
  0x43   :  { %v3922_v52 = vadd.f32 %v3794_v26, %v3276_v43  ;;  %v565_v53 = vmul.f32 %v6930_v10, %v436_v44  ;;  %v1082_v55 = vmax.f32 %v954_v2, 0.0  ;;  %v1600_v56 = vadd.f32 %v6964_v30, %v1471_v46 }
  0x44   :  { %v6378_v59 = vmul.f32 %v7061_v37, %v6249_v48  ;;  %v2246_v60 = vadd.f32 %v6979_v42, %v2117_v11  ;;  %v2892_v61 = vadd.f32 %v6993_v54, %v2763_v0  ;;  %v3538_v5 = vadd.f32 %v7007_v8, %v3409_v49 }
  0x45   :  { %v4568_v1 = vadd.f32 %v4440_v34, %v3922_v52  ;;  %v693_v7 = vadd.f32 %v565_v53, %v6928_v9  ;;  %v1211_v14 = vmul.f32 %v6951_v21, %v1082_v55  ;;  %v1728_v15 = vmax.f32 %v1600_v56, 0.0 }
  0x46   :  { %v2374_v18 = vmax.f32 %v2246_v60, 0.0  ;;  %v3020_v23 = vmax.f32 %v2892_v61, 0.0  ;;  %v3666_v19 = vmax.f32 %v3538_v5, 0.0  ;;  %v4055_v20 = vmul.f32 %v7013_v24, %v6916_v3 }
  0x47   :  { %v5214_v27 = vadd.f32 %v5086_v36, %v4568_v1  ;;  %v1339_v26 = vadd.f32 %v1211_v14, %v693_v7  ;;  %v1857_v28 = vmul.f32 %v6967_v33, %v1728_v15  ;;  %v4701_v29 = vmul.f32 %v7026_v41, %v6916_v3 }
  0x48   :  { %v2503_v34 = vmul.f32 %v6982_v45, %v2374_v18  ;;  %v3149_v43 = vmul.f32 %v6995_v57, %v3020_v23  ;;  %v3795_v44 = vmul.f32 %v7009_v16, %v3666_v19  ;;  %v4184_v2 = vadd.f32 %v7019_v31, %v4055_v20 }
  0x49   :  { %v5860_v46 = vadd.f32 %v5732_v39, %v5214_v27  ;;  %v1985_v48 = vadd.f32 %v1857_v28, %v1339_v26  ;;  %v4830_v11 = vadd.f32 %v7032_v47, %v4701_v29  ;;  %v5347_v36 = vmul.f32 %v7040_v58, %v6916_v3 }
  0x4a   :  { %v4312_v0 = vmax.f32 %v4184_v2, 0.0  ;;  %v5993_v49 = vmul.f32 %v7054_v22, %v6916_v3  ;;  %v180_v52 = vmul.f32 %v6918_v4, %v45_v40  ;;  %v826_v53 = vmul.f32 %v6937_v13, %v45_v40 }
  0x4b   :  { %v6506_v55 = vadd.f32 %v6378_v59, %v5860_v46  ;;  %v2631_v56 = vadd.f32 %v2503_v34, %v1985_v48  ;;  %v4958_v60 = vmax.f32 %v4830_v11, 0.0  ;;  %v5476_v61 = vadd.f32 %v7045_v63, %v5347_v36 }
  0x4c   :  { %v4441_v39 = vmul.f32 %v7021_v35, %v4312_v0  ;;  %v6122_v5 = vadd.f32 %v7059_v32, %v5993_v49  ;;  %v309_v1 = vadd.f32 %v6922_v6, %v180_v52  ;;  %v955_v7 = vadd.f32 %v6945_v17, %v826_v53 }
  0x4d   :  { %6634 = vst [vmem:[#allocation7 + $0x10] sm:$0xff] %v6506_v55  ;;  %v3277_v14 = vadd.f32 %v3149_v43, %v2631_v56  ;;  %v5087_v3 = vmul.f32 %v7035_v51, %v4958_v60  ;;  %v5604_v15 = vmax.f32 %v5476_v61, 0.0  ;;  %v1472_v18 = vmul.f32 %v6955_v25, %v45_v40 }
  0x4e   :  { %v6250_v59 = vmax.f32 %v6122_v5, 0.0  ;;  %v437_v23 = vmax.f32 %v309_v1, 0.0  ;;  %v1083_v19 = vmax.f32 %v955_v7, 0.0  ;;  %v2118_v20 = vmul.f32 %v6973_v38, %v45_v40 }
  0x4f   :  { %v3923_v27 = vadd.f32 %v3795_v44, %v3277_v14  ;;  %v5733_v26 = vmul.f32 %v7048_v12, %v5604_v15  ;;  %v1601_v28 = vadd.f32 %v6964_v30, %v1472_v18  ;;  %v2764_v29 = vmul.f32 %v6988_v50, %v45_v40  ;;  %v46_v14 = vld [vmem:[#allocation6 + $0x28] sm:$0xff] }
  0x50   :  { %v6379_v34 = vmul.f32 %v7061_v37, %v6250_v59  ;;  %v566_v43 = vmul.f32 %v6930_v10, %v437_v23  ;;  %v1212_v2 = vmul.f32 %v6951_v21, %v1083_v19  ;;  %v2247_v46 = vadd.f32 %v6979_v42, %v2118_v20 }
  0x51   :  { %v4569_v48 = vadd.f32 %v4441_v39, %v3923_v27  ;;  %v1729_v11 = vmax.f32 %v1601_v28, 0.0  ;;  %v2893_v36 = vadd.f32 %v6993_v54, %v2764_v29  ;;  %v3410_v44 = vmul.f32 %v7001_v62, %v45_v40 }
  0x52   :  { %v694_v0 = vadd.f32 %v566_v43, %v6928_v9  ;;  %v2375_v49 = vmax.f32 %v2247_v46, 0.0  ;;  %v4056_v52 = vmul.f32 %v7013_v24, %v45_v40  ;;  %v4702_v53 = vmul.f32 %v7026_v41, %v45_v40 }
  0x53   :  { %v5215_v55 = vadd.f32 %v5087_v3, %v4569_v48  ;;  %v1858_v56 = vmul.f32 %v6967_v33, %v1729_v11  ;;  %v3021_v60 = vmax.f32 %v2893_v36, 0.0  ;;  %v3539_v61 = vadd.f32 %v7007_v8, %v3410_v44 }
  0x54   :  { %v1340_v5 = vadd.f32 %v1212_v2, %v694_v0  ;;  %v2504_v39 = vmul.f32 %v6982_v45, %v2375_v49  ;;  %v4185_v1 = vadd.f32 %v7019_v31, %v4056_v52  ;;  %v4831_v7 = vadd.f32 %v7032_v47, %v4702_v53 }
  0x55   :  { %v5861_v15 = vadd.f32 %v5733_v26, %v5215_v55  ;;  %v3150_v18 = vmul.f32 %v6995_v57, %v3021_v60  ;;  %v3667_v59 = vmax.f32 %v3539_v61, 0.0  ;;  %v5348_v23 = vmul.f32 %v7040_v58, %v45_v40 }
  0x56   :  { %v1986_v3 = vadd.f32 %v1858_v56, %v1340_v5  ;;  %v4313_v19 = vmax.f32 %v4185_v1, 0.0  ;;  %v4959_v20 = vmax.f32 %v4831_v7, 0.0  ;;  %v5994_v27 = vmul.f32 %v7054_v22, %v45_v40 }
  0x57   :  { %v6507_v28 = vadd.f32 %v6379_v34, %v5861_v15  ;;  %v3796_v29 = vmul.f32 %v7009_v16, %v3667_v59  ;;  %v5477_v43 = vadd.f32 %v7045_v63, %v5348_v23  ;;  %v181_v2 = vmul.f32 %v6918_v4, %v46_v14 }
  0x58   :  { %v2632_v46 = vadd.f32 %v2504_v39, %v1986_v3  ;;  %v4442_v26 = vmul.f32 %v7021_v35, %v4313_v19  ;;  %v5088_v48 = vmul.f32 %v7035_v51, %v4959_v20  ;;  %v6123_v11 = vadd.f32 %v7059_v32, %v5994_v27 }
  0x59   :  { %6635 = vst [vmem:[#allocation7 + $0x18] sm:$0xff] %v6507_v28  ;;  %v5605_v36 = vmax.f32 %v5477_v43, 0.0  ;;  %v310_v44 = vadd.f32 %v6922_v6, %v181_v2  ;;  %v827_v40 = vmul.f32 %v6937_v13, %v46_v14  ;;  %v1473_v34 = vmul.f32 %v6955_v25, %v46_v14 }
  0x5a   :  { %v3278_v0 = vadd.f32 %v3150_v18, %v2632_v46  ;;  %v6251_v49 = vmax.f32 %v6123_v11, 0.0  ;;  %v2119_v52 = vmul.f32 %v6973_v38, %v46_v14  ;;  %v2765_v53 = vmul.f32 %v6988_v50, %v46_v14  ;;  %v47_v46 = vld [vmem:[#allocation6 + $0x30] sm:$0xff] }
  0x5b   :  { %v5734_v55 = vmul.f32 %v7048_v12, %v5605_v36  ;;  %v438_v56 = vmax.f32 %v310_v44, 0.0  ;;  %v956_v60 = vadd.f32 %v6945_v17, %v827_v40  ;;  %v1602_v61 = vadd.f32 %v6964_v30, %v1473_v34 }
  0x5c   :  { %v3924_v5 = vadd.f32 %v3796_v29, %v3278_v0  ;;  %v6380_v39 = vmul.f32 %v7061_v37, %v6251_v49  ;;  %v2248_v1 = vadd.f32 %v6979_v42, %v2119_v52  ;;  %v2894_v7 = vadd.f32 %v6993_v54, %v2765_v53 }
  0x5d   :  { %v567_v15 = vmul.f32 %v6930_v10, %v438_v56  ;;  %v1084_v18 = vmax.f32 %v956_v60, 0.0  ;;  %v1730_v59 = vmax.f32 %v1602_v61, 0.0  ;;  %v3411_v23 = vmul.f32 %v7001_v62, %v46_v14 }
  0x5e   :  { %v4570_v3 = vadd.f32 %v4442_v26, %v3924_v5  ;;  %v2376_v19 = vmax.f32 %v2248_v1, 0.0  ;;  %v3022_v20 = vmax.f32 %v2894_v7, 0.0  ;;  %v4057_v27 = vmul.f32 %v7013_v24, %v46_v14 }
  0x5f   :  { %v695_v28 = vadd.f32 %v567_v15, %v6928_v9  ;;  %v1213_v29 = vmul.f32 %v6951_v21, %v1084_v18  ;;  %v1859_v43 = vmul.f32 %v6967_v33, %v1730_v59  ;;  %v3540_v2 = vadd.f32 %v7007_v8, %v3411_v23 }
  0x60   :  { %v5216_v11 = vadd.f32 %v5088_v48, %v4570_v3  ;;  %v2505_v36 = vmul.f32 %v6982_v45, %v2376_v19  ;;  %v3151_v44 = vmul.f32 %v6995_v57, %v3022_v20  ;;  %v4186_v26 = vadd.f32 %v7019_v31, %v4057_v27 }
  0x61   :  { %v1341_v40 = vadd.f32 %v1213_v29, %v695_v28  ;;  %v3668_v34 = vmax.f32 %v3540_v2, 0.0  ;;  %v4703_v0 = vmul.f32 %v7026_v41, %v46_v14  ;;  %v5349_v49 = vmul.f32 %v7040_v58, %v46_v14 }
  0x62   :  { %v5862_v52 = vadd.f32 %v5734_v55, %v5216_v11  ;;  %v4314_v53 = vmax.f32 %v4186_v26, 0.0  ;;  %v5995_v56 = vmul.f32 %v7054_v22, %v46_v14  ;;  %v182_v60 = vmul.f32 %v6918_v4, %v47_v46 }
  0x63   :  { %v1987_v61 = vadd.f32 %v1859_v43, %v1341_v40  ;;  %v3797_v48 = vmul.f32 %v7009_v16, %v3668_v34  ;;  %v4832_v5 = vadd.f32 %v7032_v47, %v4703_v0  ;;  %v5478_v1 = vadd.f32 %v7045_v63, %v5349_v49 }
  0x64   :  { %v6508_v7 = vadd.f32 %v6380_v39, %v5862_v52  ;;  %v4443_v15 = vmul.f32 %v7021_v35, %v4314_v53  ;;  %v6124_v18 = vadd.f32 %v7059_v32, %v5995_v56  ;;  %v311_v59 = vadd.f32 %v6922_v6, %v182_v60 }
  0x65   :  { %v2633_v55 = vadd.f32 %v2505_v36, %v1987_v61  ;;  %v4960_v23 = vmax.f32 %v4832_v5, 0.0  ;;  %v5606_v3 = vmax.f32 %v5478_v1, 0.0  ;;  %v828_v14 = vmul.f32 %v6937_v13, %v47_v46 }
  0x66   :  { %6636 = vst [vmem:[#allocation7 + $0x20] sm:$0xff] %v6508_v7  ;;  %v6252_v19 = vmax.f32 %v6124_v18, 0.0  ;;  %v439_v20 = vmax.f32 %v311_v59, 0.0  ;;  %v1474_v27 = vmul.f32 %v6955_v25, %v47_v46  ;;  %v2120_v28 = vmul.f32 %v6973_v38, %v47_v46 }
  0x67   :  { %v3279_v29 = vadd.f32 %v3151_v44, %v2633_v55  ;;  %v5089_v39 = vmul.f32 %v7035_v51, %v4960_v23  ;;  %v5735_v43 = vmul.f32 %v7048_v12, %v5606_v3  ;;  %v957_v2 = vadd.f32 %v6945_v17, %v828_v14 }
  0x68   :  { %v6381_v11 = vmul.f32 %v7061_v37, %v6252_v19  ;;  %v568_v36 = vmul.f32 %v6930_v10, %v439_v20  ;;  %v1603_v26 = vadd.f32 %v6964_v30, %v1474_v27  ;;  %v2249_v40 = vadd.f32 %v6979_v42, %v2120_v28 }
  0x69   :  { %v3925_v34 = vadd.f32 %v3797_v48, %v3279_v29  ;;  %v1085_v0 = vmax.f32 %v957_v2, 0.0  ;;  %v2766_v49 = vmul.f32 %v6988_v50, %v47_v46  ;;  %v3412_v44 = vmul.f32 %v7001_v62, %v47_v46  ;;  %v48_v29 = vld [vmem:[#allocation6 + $0x38] sm:$0xff] }
  0x6a   :  { %v696_v52 = vadd.f32 %v568_v36, %v6928_v9  ;;  %v1731_v53 = vmax.f32 %v1603_v26, 0.0  ;;  %v2377_v56 = vmax.f32 %v2249_v40, 0.0  ;;  %v4058_v60 = vmul.f32 %v7013_v24, %v47_v46 }
  0x6b   :  { %v4571_v61 = vadd.f32 %v4443_v15, %v3925_v34  ;;  %v1214_v5 = vmul.f32 %v6951_v21, %v1085_v0  ;;  %v2895_v1 = vadd.f32 %v6993_v54, %v2766_v49  ;;  %v3541_v7 = vadd.f32 %v7007_v8, %v3412_v44 }
  0x6c   :  { %v1860_v48 = vmul.f32 %v6967_v33, %v1731_v53  ;;  %v2506_v18 = vmul.f32 %v6982_v45, %v2377_v56  ;;  %v4187_v59 = vadd.f32 %v7019_v31, %v4058_v60  ;;  %v4704_v55 = vmul.f32 %v7026_v41, %v47_v46 }
  0x6d   :  { %v5217_v23 = vadd.f32 %v5089_v39, %v4571_v61  ;;  %v1342_v3 = vadd.f32 %v1214_v5, %v696_v52  ;;  %v3023_v14 = vmax.f32 %v2895_v1, 0.0  ;;  %v3669_v19 = vmax.f32 %v3541_v7, 0.0 }
  0x6e   :  { %v4315_v20 = vmax.f32 %v4187_v59, 0.0  ;;  %v4833_v15 = vadd.f32 %v7032_v47, %v4704_v55  ;;  %v5350_v27 = vmul.f32 %v7040_v58, %v47_v46  ;;  %v5996_v28 = vmul.f32 %v7054_v22, %v47_v46 }
  0x6f   :  { %v5863_v2 = vadd.f32 %v5735_v43, %v5217_v23  ;;  %v1988_v36 = vadd.f32 %v1860_v48, %v1342_v3  ;;  %v3152_v26 = vmul.f32 %v6995_v57, %v3023_v14  ;;  %v3798_v40 = vmul.f32 %v7009_v16, %v3669_v19 }
  0x70   :  { %v4444_v34 = vmul.f32 %v7021_v35, %v4315_v20  ;;  %v4961_v39 = vmax.f32 %v4833_v15, 0.0  ;;  %v5479_v0 = vadd.f32 %v7045_v63, %v5350_v27  ;;  %v6125_v49 = vadd.f32 %v7059_v32, %v5996_v28 }
  0x71   :  { %v6509_v44 = vadd.f32 %v6381_v11, %v5863_v2  ;;  %v2634_v52 = vadd.f32 %v2506_v18, %v1988_v36  ;;  %v183_v53 = vmul.f32 %v6918_v4, %v48_v29  ;;  %v829_v46 = vmul.f32 %v6937_v13, %v48_v29 }
  0x72   :  { %v5090_v43 = vmul.f32 %v7035_v51, %v4961_v39  ;;  %v5607_v56 = vmax.f32 %v5479_v0, 0.0  ;;  %v6253_v60 = vmax.f32 %v6125_v49, 0.0  ;;  %v1475_v61 = vmul.f32 %v6955_v25, %v48_v29 }
  0x73   :  { %6637 = vst [vmem:[#allocation7 + $0x28] sm:$0xff] %v6509_v44  ;;  %v3280_v5 = vadd.f32 %v3152_v26, %v2634_v52  ;;  %v312_v1 = vadd.f32 %v6922_v6, %v183_v53  ;;  %v958_v7 = vadd.f32 %v6945_v17, %v829_v46  ;;  %v2121_v48 = vmul.f32 %v6973_v38, %v48_v29 }
  0x74   :  { %v5736_v11 = vmul.f32 %v7048_v12, %v5607_v56  ;;  %v6382_v18 = vmul.f32 %v7061_v37, %v6253_v60  ;;  %v1604_v59 = vadd.f32 %v6964_v30, %v1475_v61  ;;  %v2767_v55 = vmul.f32 %v6988_v50, %v48_v29 }
  0x75   :  { %v3926_v23 = vadd.f32 %v3798_v40, %v3280_v5  ;;  %v440_v3 = vmax.f32 %v312_v1, 0.0  ;;  %v1086_v14 = vmax.f32 %v958_v7, 0.0  ;;  %v2250_v19 = vadd.f32 %v6979_v42, %v2121_v48 }
  0x76   :  { %v1732_v20 = vmax.f32 %v1604_v59, 0.0  ;;  %v2896_v15 = vadd.f32 %v6993_v54, %v2767_v55  ;;  %v3413_v27 = vmul.f32 %v7001_v62, %v48_v29  ;;  %v4059_v28 = vmul.f32 %v7013_v24, %v48_v29 }
  0x77   :  { %v4572_v2 = vadd.f32 %v4444_v34, %v3926_v23  ;;  %v569_v36 = vmul.f32 %v6930_v10, %v440_v3  ;;  %v1215_v26 = vmul.f32 %v6951_v21, %v1086_v14  ;;  %v2378_v39 = vmax.f32 %v2250_v19, 0.0  ;;  %v49_v34 = vld [vmem:[#allocation6 + $0x40] sm:$0xff] }
  0x78   :  { %v1861_v0 = vmul.f32 %v6967_v33, %v1732_v20  ;;  %v3024_v40 = vmax.f32 %v2896_v15, 0.0  ;;  %v3542_v49 = vadd.f32 %v7007_v8, %v3413_v27  ;;  %v4188_v44 = vadd.f32 %v7019_v31, %v4059_v28 }
  0x79   :  { %v5218_v52 = vadd.f32 %v5090_v43, %v4572_v2  ;;  %v697_v53 = vadd.f32 %v569_v36, %v6928_v9  ;;  %v2507_v46 = vmul.f32 %v6982_v45, %v2378_v39  ;;  %v4705_v56 = vmul.f32 %v7026_v41, %v48_v29 }
  0x7a   :  { %v3153_v60 = vmul.f32 %v6995_v57, %v3024_v40  ;;  %v3670_v61 = vmax.f32 %v3542_v49, 0.0  ;;  %v4316_v5 = vmax.f32 %v4188_v44, 0.0  ;;  %v5351_v1 = vmul.f32 %v7040_v58, %v48_v29 }
  0x7b   :  { %v5864_v7 = vadd.f32 %v5736_v11, %v5218_v52  ;;  %v1343_v48 = vadd.f32 %v1215_v26, %v697_v53  ;;  %v4834_v59 = vadd.f32 %v7032_v47, %v4705_v56  ;;  %v5997_v55 = vmul.f32 %v7054_v22, %v48_v29 }
  0x7c   :  { %v3799_v43 = vmul.f32 %v7009_v16, %v3670_v61  ;;  %v4445_v23 = vmul.f32 %v7021_v35, %v4316_v5  ;;  %v5480_v3 = vadd.f32 %v7045_v63, %v5351_v1  ;;  %v184_v14 = vmul.f32 %v6918_v4, %v49_v34 }
  0x7d   :  { %v6510_v19 = vadd.f32 %v6382_v18, %v5864_v7  ;;  %v1989_v20 = vadd.f32 %v1861_v0, %v1343_v48  ;;  %v4962_v15 = vmax.f32 %v4834_v59, 0.0  ;;  %v6126_v27 = vadd.f32 %v7059_v32, %v5997_v55 }
  0x7e   :  { %v5608_v28 = vmax.f32 %v5480_v3, 0.0  ;;  %v313_v11 = vadd.f32 %v6922_v6, %v184_v14  ;;  %v830_v2 = vmul.f32 %v6937_v13, %v49_v34  ;;  %v1476_v29 = vmul.f32 %v6955_v25, %v49_v34 }
  0x7f   :  { %6638 = vst [vmem:[#allocation7 + $0x30] sm:$0xff] %v6510_v19  ;;  %v2635_v36 = vadd.f32 %v2507_v46, %v1989_v20  ;;  %v5091_v26 = vmul.f32 %v7035_v51, %v4962_v15  ;;  %v6254_v39 = vmax.f32 %v6126_v27, 0.0  ;;  %v2122_v40 = vmul.f32 %v6973_v38, %v49_v34 }
  0x80   :  { %v5737_v18 = vmul.f32 %v7048_v12, %v5608_v28  ;;  %v441_v0 = vmax.f32 %v313_v11, 0.0  ;;  %v959_v49 = vadd.f32 %v6945_v17, %v830_v2  ;;  %v1605_v44 = vadd.f32 %v6964_v30, %v1476_v29 }
  0x81   :  { %v3281_v52 = vadd.f32 %v3153_v60, %v2635_v36  ;;  %v6383_v53 = vmul.f32 %v7061_v37, %v6254_v39  ;;  %v2251_v56 = vadd.f32 %v6979_v42, %v2122_v40  ;;  %v2768_v61 = vmul.f32 %v6988_v50, %v49_v34  ;;  %v50_v39 = vld [vmem:[#allocation6 + $0x48] sm:$0xff] }
  0x82   :  { %v570_v46 = vmul.f32 %v6930_v10, %v441_v0  ;;  %v1087_v5 = vmax.f32 %v959_v49, 0.0  ;;  %v1733_v1 = vmax.f32 %v1605_v44, 0.0  ;;  %v3414_v7 = vmul.f32 %v7001_v62, %v49_v34 }
  0x83   :  { %v3927_v48 = vadd.f32 %v3799_v43, %v3281_v52  ;;  %v2379_v59 = vmax.f32 %v2251_v56, 0.0  ;;  %v2897_v55 = vadd.f32 %v6993_v54, %v2768_v61  ;;  %v4060_v3 = vmul.f32 %v7013_v24, %v49_v34 }
  0x84   :  { %v698_v60 = vadd.f32 %v570_v46, %v6928_v9  ;;  %v1216_v14 = vmul.f32 %v6951_v21, %v1087_v5  ;;  %v1862_v19 = vmul.f32 %v6967_v33, %v1733_v1  ;;  %v3543_v20 = vadd.f32 %v7007_v8, %v3414_v7 }
  0x85   :  { %v4573_v15 = vadd.f32 %v4445_v23, %v3927_v48  ;;  %v2508_v27 = vmul.f32 %v6982_v45, %v2379_v59  ;;  %v3025_v28 = vmax.f32 %v2897_v55, 0.0  ;;  %v4189_v11 = vadd.f32 %v7019_v31, %v4060_v3 }
  0x86   :  { %v1344_v43 = vadd.f32 %v1216_v14, %v698_v60  ;;  %v3671_v2 = vmax.f32 %v3543_v20, 0.0  ;;  %v4706_v29 = vmul.f32 %v7026_v41, %v49_v34  ;;  %v5352_v36 = vmul.f32 %v7040_v58, %v49_v34 }
  0x87   :  { %v5219_v40 = vadd.f32 %v5091_v26, %v4573_v15  ;;  %v3154_v0 = vmul.f32 %v6995_v57, %v3025_v28  ;;  %v4317_v49 = vmax.f32 %v4189_v11, 0.0  ;;  %v5998_v44 = vmul.f32 %v7054_v22, %v49_v34 }
  0x88   :  { %v1990_v52 = vadd.f32 %v1862_v19, %v1344_v43  ;;  %v3800_v23 = vmul.f32 %v7009_v16, %v3671_v2  ;;  %v4835_v56 = vadd.f32 %v7032_v47, %v4706_v29  ;;  %v5481_v61 = vadd.f32 %v7045_v63, %v5352_v36 }
  0x89   :  { %v5865_v46 = vadd.f32 %v5737_v18, %v5219_v40  ;;  %v4446_v5 = vmul.f32 %v7021_v35, %v4317_v49  ;;  %v6127_v1 = vadd.f32 %v7059_v32, %v5998_v44  ;;  %v185_v7 = vmul.f32 %v6918_v4, %v50_v39 }
  0x8a   :  { %v2636_v26 = vadd.f32 %v2508_v27, %v1990_v52  ;;  %v4963_v48 = vmax.f32 %v4835_v56, 0.0  ;;  %v5609_v59 = vmax.f32 %v5481_v61, 0.0  ;;  %v831_v55 = vmul.f32 %v6937_v13, %v50_v39 }
  0x8b   :  { %v6511_v34 = vadd.f32 %v6383_v53, %v5865_v46  ;;  %v6255_v3 = vmax.f32 %v6127_v1, 0.0  ;;  %v314_v60 = vadd.f32 %v6922_v6, %v185_v7  ;;  %v1477_v14 = vmul.f32 %v6955_v25, %v50_v39 }
  0x8c   :  { %v3282_v19 = vadd.f32 %v3154_v0, %v2636_v26  ;;  %v5092_v18 = vmul.f32 %v7035_v51, %v4963_v48  ;;  %v5738_v20 = vmul.f32 %v7048_v12, %v5609_v59  ;;  %v960_v15 = vadd.f32 %v6945_v17, %v831_v55 }
  0x8d   :  { %6639 = vst [vmem:[#allocation7 + $0x38] sm:$0xff] %v6511_v34  ;;  %v6384_v27 = vmul.f32 %v7061_v37, %v6255_v3  ;;  %v442_v28 = vmax.f32 %v314_v60, 0.0  ;;  %v1606_v11 = vadd.f32 %v6964_v30, %v1477_v14  ;;  %v2123_v53 = vmul.f32 %v6973_v38, %v50_v39 }
  0x8e   :  { %v3928_v43 = vadd.f32 %v3800_v23, %v3282_v19  ;;  %v1088_v2 = vmax.f32 %v960_v15, 0.0  ;;  %v2769_v29 = vmul.f32 %v6988_v50, %v50_v39  ;;  %v3415_v36 = vmul.f32 %v7001_v62, %v50_v39  ;;  %v51_v19 = vld [vmem:[#allocation6 + $0x50] sm:$0xff] }
  0x8f   :  { %v571_v40 = vmul.f32 %v6930_v10, %v442_v28  ;;  %v1734_v0 = vmax.f32 %v1606_v11, 0.0  ;;  %v2252_v49 = vadd.f32 %v6979_v42, %v2123_v53  ;;  %v4061_v44 = vmul.f32 %v7013_v24, %v50_v39 }
  0x90   :  { %v4574_v52 = vadd.f32 %v4446_v5, %v3928_v43  ;;  %v1217_v56 = vmul.f32 %v6951_v21, %v1088_v2  ;;  %v2898_v61 = vadd.f32 %v6993_v54, %v2769_v29  ;;  %v3544_v46 = vadd.f32 %v7007_v8, %v3415_v36 }
  0x91   :  { %v699_v23 = vadd.f32 %v571_v40, %v6928_v9  ;;  %v1863_v1 = vmul.f32 %v6967_v33, %v1734_v0  ;;  %v2380_v7 = vmax.f32 %v2252_v49, 0.0  ;;  %v4190_v26 = vadd.f32 %v7019_v31, %v4061_v44 }
  0x92   :  { %v5220_v48 = vadd.f32 %v5092_v18, %v4574_v52  ;;  %v3026_v59 = vmax.f32 %v2898_v61, 0.0  ;;  %v3672_v55 = vmax.f32 %v3544_v46, 0.0  ;;  %v4707_v34 = vmul.f32 %v7026_v41, %v50_v39 }
  0x93   :  { %v1345_v3 = vadd.f32 %v1217_v56, %v699_v23  ;;  %v2509_v5 = vmul.f32 %v6982_v45, %v2380_v7  ;;  %v4318_v60 = vmax.f32 %v4190_v26, 0.0  ;;  %v5353_v14 = vmul.f32 %v7040_v58, %v50_v39 }
  0x94   :  { %v5866_v15 = vadd.f32 %v5738_v20, %v5220_v48  ;;  %v3155_v28 = vmul.f32 %v6995_v57, %v3026_v59  ;;  %v3801_v11 = vmul.f32 %v7009_v16, %v3672_v55  ;;  %v4836_v53 = vadd.f32 %v7032_v47, %v4707_v34 }
  0x95   :  { %v1991_v43 = vadd.f32 %v1863_v1, %v1345_v3  ;;  %v4447_v18 = vmul.f32 %v7021_v35, %v4318_v60  ;;  %v5482_v2 = vadd.f32 %v7045_v63, %v5353_v14  ;;  %v5999_v29 = vmul.f32 %v7054_v22, %v50_v39 }
  0x96   :  { %v6512_v36 = vadd.f32 %v6384_v27, %v5866_v15  ;;  %v4964_v40 = vmax.f32 %v4836_v53, 0.0  ;;  %v186_v0 = vmul.f32 %v6918_v4, %v51_v19  ;;  %v832_v49 = vmul.f32 %v6937_v13, %v51_v19 }
  0x97   :  { %v2637_v20 = vadd.f32 %v2509_v5, %v1991_v43  ;;  %v5610_v44 = vmax.f32 %v5482_v2, 0.0  ;;  %v6128_v52 = vadd.f32 %v7059_v32, %v5999_v29  ;;  %v1478_v56 = vmul.f32 %v6955_v25, %v51_v19 }
  0x98   :  { %6640 = vst [vmem:[#allocation7 + $0x40] sm:$0xff] %v6512_v36  ;;  %v5093_v61 = vmul.f32 %v7035_v51, %v4964_v40  ;;  %v315_v46 = vadd.f32 %v6922_v6, %v186_v0  ;;  %v961_v23 = vadd.f32 %v6945_v17, %v832_v49  ;;  %v2124_v39 = vmul.f32 %v6973_v38, %v51_v19 }
  0x99   :  { %v3283_v27 = vadd.f32 %v3155_v28, %v2637_v20  ;;  %v5739_v1 = vmul.f32 %v7048_v12, %v5610_v44  ;;  %v6256_v7 = vmax.f32 %v6128_v52, 0.0  ;;  %v1607_v26 = vadd.f32 %v6964_v30, %v1478_v56 }
  0x9a   :  { %v443_v48 = vmax.f32 %v315_v46, 0.0  ;;  %v1089_v59 = vmax.f32 %v961_v23, 0.0  ;;  %v2253_v55 = vadd.f32 %v6979_v42, %v2124_v39  ;;  %v2770_v34 = vmul.f32 %v6988_v50, %v51_v19 }
  0x9b   :  { %v3929_v3 = vadd.f32 %v3801_v11, %v3283_v27  ;;  %v6385_v5 = vmul.f32 %v7061_v37, %v6256_v7  ;;  %v1735_v60 = vmax.f32 %v1607_v26, 0.0  ;;  %v3416_v14 = vmul.f32 %v7001_v62, %v51_v19 }
  0x9c   :  { %v572_v15 = vmul.f32 %v6930_v10, %v443_v48  ;;  %v1218_v28 = vmul.f32 %v6951_v21, %v1089_v59  ;;  %v2381_v53 = vmax.f32 %v2253_v55, 0.0  ;;  %v2899_v43 = vadd.f32 %v6993_v54, %v2770_v34 }
  0x9d   :  { %v4575_v2 = vadd.f32 %v4447_v18, %v3929_v3  ;;  %v1864_v29 = vmul.f32 %v6967_v33, %v1735_v60  ;;  %v3545_v36 = vadd.f32 %v7007_v8, %v3416_v14  ;;  %v4062_v40 = vmul.f32 %v7013_v24, %v51_v19  ;;  %v52_v18 = vld [vmem:[#allocation6 + $0x58] sm:$0xff] }
  0x9e   :  { %v700_v11 = vadd.f32 %v572_v15, %v6928_v9  ;;  %v2510_v0 = vmul.f32 %v6982_v45, %v2381_v53  ;;  %v3027_v49 = vmax.f32 %v2899_v43, 0.0  ;;  %v4708_v20 = vmul.f32 %v7026_v41, %v51_v19 }
  0x9f   :  { %v5221_v44 = vadd.f32 %v5093_v61, %v4575_v2  ;;  %v3673_v52 = vmax.f32 %v3545_v36, 0.0  ;;  %v4191_v56 = vadd.f32 %v7019_v31, %v4062_v40  ;;  %v5354_v46 = vmul.f32 %v7040_v58, %v51_v19 }
  0xa0   :  { %v1346_v23 = vadd.f32 %v1218_v28, %v700_v11  ;;  %v3156_v39 = vmul.f32 %v6995_v57, %v3027_v49  ;;  %v4837_v27 = vadd.f32 %v7032_v47, %v4708_v20  ;;  %v6000_v7 = vmul.f32 %v7054_v22, %v51_v19 }
  0xa1   :  { %v5867_v26 = vadd.f32 %v5739_v1, %v5221_v44  ;;  %v3802_v48 = vmul.f32 %v7009_v16, %v3673_v52  ;;  %v4319_v59 = vmax.f32 %v4191_v56, 0.0  ;;  %v5483_v55 = vadd.f32 %v7045_v63, %v5354_v46 }
  0xa2   :  { %v1992_v61 = vadd.f32 %v1864_v29, %v1346_v23  ;;  %v4965_v34 = vmax.f32 %v4837_v27, 0.0  ;;  %v6129_v3 = vadd.f32 %v7059_v32, %v6000_v7  ;;  %v187_v60 = vmul.f32 %v6918_v4, %v52_v18 }
  0xa3   :  { %v6513_v14 = vadd.f32 %v6385_v5, %v5867_v26  ;;  %v4448_v15 = vmul.f32 %v7021_v35, %v4319_v59  ;;  %v5611_v28 = vmax.f32 %v5483_v55, 0.0  ;;  %v833_v53 = vmul.f32 %v6937_v13, %v52_v18 }
  0xa4   :  { %v2638_v43 = vadd.f32 %v2510_v0, %v1992_v61  ;;  %v5094_v19 = vmul.f32 %v7035_v51, %v4965_v34  ;;  %v6257_v1 = vmax.f32 %v6129_v3, 0.0  ;;  %v316_v2 = vadd.f32 %v6922_v6, %v187_v60 }
  0xa5   :  { %6641 = vst [vmem:[#allocation7 + $0x48] sm:$0xff] %v6513_v14  ;;  %v5740_v29 = vmul.f32 %v7048_v12, %v5611_v28  ;;  %v962_v36 = vadd.f32 %v6945_v17, %v833_v53  ;;  %v1479_v40 = vmul.f32 %v6955_v25, %v52_v18  ;;  %v2125_v5 = vmul.f32 %v6973_v38, %v52_v18 }
  0xa6   :  { %v3284_v11 = vadd.f32 %v3156_v39, %v2638_v43  ;;  %v6386_v49 = vmul.f32 %v7061_v37, %v6257_v1  ;;  %v444_v20 = vmax.f32 %v316_v2, 0.0  ;;  %v2771_v0 = vmul.f32 %v6988_v50, %v52_v18  ;;  %v53_v1 = vld [vmem:[#allocation6 + $0x60] sm:$0xff] }
  0xa7   :  { %v1090_v44 = vmax.f32 %v962_v36, 0.0  ;;  %v1608_v52 = vadd.f32 %v6964_v30, %v1479_v40  ;;  %v2254_v56 = vadd.f32 %v6979_v42, %v2125_v5  ;;  %v3417_v46 = vmul.f32 %v7001_v62, %v52_v18 }
  0xa8   :  { %v3930_v23 = vadd.f32 %v3802_v48, %v3284_v11  ;;  %v573_v27 = vmul.f32 %v6930_v10, %v444_v20  ;;  %v2900_v7 = vadd.f32 %v6993_v54, %v2771_v0  ;;  %v4063_v26 = vmul.f32 %v7013_v24, %v52_v18 }
  0xa9   :  { %v1219_v39 = vmul.f32 %v6951_v21, %v1090_v44  ;;  %v1736_v59 = vmax.f32 %v1608_v52, 0.0  ;;  %v2382_v55 = vmax.f32 %v2254_v56, 0.0  ;;  %v3546_v61 = vadd.f32 %v7007_v8, %v3417_v46 }
  0xaa   :  { %v4576_v34 = vadd.f32 %v4448_v15, %v3930_v23  ;;  %v701_v3 = vadd.f32 %v573_v27, %v6928_v9  ;;  %v3028_v60 = vmax.f32 %v2900_v7, 0.0  ;;  %v4192_v14 = vadd.f32 %v7019_v31, %v4063_v26 }
  0xab   :  { %v1865_v48 = vmul.f32 %v6967_v33, %v1736_v59  ;;  %v2511_v28 = vmul.f32 %v6982_v45, %v2382_v55  ;;  %v3674_v53 = vmax.f32 %v3546_v61, 0.0  ;;  %v4709_v43 = vmul.f32 %v7026_v41, %v52_v18 }
  0xac   :  { %v5222_v2 = vadd.f32 %v5094_v19, %v4576_v34  ;;  %v1347_v36 = vadd.f32 %v1219_v39, %v701_v3  ;;  %v3157_v40 = vmul.f32 %v6995_v57, %v3028_v60  ;;  %v4320_v5 = vmax.f32 %v4192_v14, 0.0 }
  0xad   :  { %v3803_v15 = vmul.f32 %v7009_v16, %v3674_v53  ;;  %v4838_v11 = vadd.f32 %v7032_v47, %v4709_v43  ;;  %v5355_v20 = vmul.f32 %v7040_v58, %v52_v18  ;;  %v6001_v0 = vmul.f32 %v7054_v22, %v52_v18 }
  0xae   :  { %v5868_v44 = vadd.f32 %v5740_v29, %v5222_v2  ;;  %v1993_v52 = vadd.f32 %v1865_v48, %v1347_v36  ;;  %v4449_v56 = vmul.f32 %v7021_v35, %v4320_v5  ;;  %v188_v46 = vmul.f32 %v6918_v4, %v53_v1 }
  0xaf   :  { %v4966_v23 = vmax.f32 %v4838_v11, 0.0  ;;  %v5484_v19 = vadd.f32 %v7045_v63, %v5355_v20  ;;  %v6130_v27 = vadd.f32 %v7059_v32, %v6001_v0  ;;  %v834_v7 = vmul.f32 %v6937_v13, %v53_v1 }
  0xb0   :  { %v6514_v26 = vadd.f32 %v6386_v49, %v5868_v44  ;;  %v2639_v39 = vadd.f32 %v2511_v28, %v1993_v52  ;;  %v317_v59 = vadd.f32 %v6922_v6, %v188_v46  ;;  %v1480_v55 = vmul.f32 %v6955_v25, %v53_v1 }
  0xb1   :  { %v5095_v18 = vmul.f32 %v7035_v51, %v4966_v23  ;;  %v5612_v29 = vmax.f32 %v5484_v19, 0.0  ;;  %v6258_v61 = vmax.f32 %v6130_v27, 0.0  ;;  %v963_v34 = vadd.f32 %v6945_v17, %v834_v7 }
  0xb2   :  { %6642 = vst [vmem:[#allocation7 + $0x50] sm:$0xff] %v6514_v26  ;;  %v3285_v3 = vadd.f32 %v3157_v40, %v2639_v39  ;;  %v445_v60 = vmax.f32 %v317_v59, 0.0  ;;  %v1609_v14 = vadd.f32 %v6964_v30, %v1480_v55  ;;  %v2126_v48 = vmul.f32 %v6973_v38, %v53_v1 }
  0xb3   :  { %v5741_v49 = vmul.f32 %v7048_v12, %v5612_v29  ;;  %v6387_v28 = vmul.f32 %v7061_v37, %v6258_v61  ;;  %v1091_v53 = vmax.f32 %v963_v34, 0.0  ;;  %v2772_v43 = vmul.f32 %v6988_v50, %v53_v1  ;;  %v54_v61 = vld [vmem:[#allocation6 + $0x68] sm:$0xff] }
  0xb4   :  { %v3931_v2 = vadd.f32 %v3803_v15, %v3285_v3  ;;  %v574_v36 = vmul.f32 %v6930_v10, %v445_v60  ;;  %v1737_v5 = vmax.f32 %v1609_v14, 0.0  ;;  %v2255_v11 = vadd.f32 %v6979_v42, %v2126_v48 }
  0xb5   :  { %v1220_v40 = vmul.f32 %v6951_v21, %v1091_v53  ;;  %v2901_v20 = vadd.f32 %v6993_v54, %v2772_v43  ;;  %v3418_v0 = vmul.f32 %v7001_v62, %v53_v1  ;;  %v4064_v44 = vmul.f32 %v7013_v24, %v53_v1 }
  0xb6   :  { %v4577_v52 = vadd.f32 %v4449_v56, %v3931_v2  ;;  %v702_v46 = vadd.f32 %v574_v36, %v6928_v9  ;;  %v1866_v23 = vmul.f32 %v6967_v33, %v1737_v5  ;;  %v2383_v19 = vmax.f32 %v2255_v11, 0.0 }
  0xb7   :  { %v3029_v15 = vmax.f32 %v2901_v20, 0.0  ;;  %v3547_v27 = vadd.f32 %v7007_v8, %v3418_v0  ;;  %v4193_v7 = vadd.f32 %v7019_v31, %v4064_v44  ;;  %v4710_v26 = vmul.f32 %v7026_v41, %v53_v1 }
  0xb8   :  { %v5223_v39 = vadd.f32 %v5095_v18, %v4577_v52  ;;  %v1348_v59 = vadd.f32 %v1220_v40, %v702_v46  ;;  %v2512_v55 = vmul.f32 %v6982_v45, %v2383_v19  ;;  %v5356_v29 = vmul.f32 %v7040_v58, %v53_v1 }
  0xb9   :  { %v3158_v56 = vmul.f32 %v6995_v57, %v3029_v15  ;;  %v3675_v34 = vmax.f32 %v3547_v27, 0.0  ;;  %v4321_v3 = vmax.f32 %v4193_v7, 0.0  ;;  %v4839_v60 = vadd.f32 %v7032_v47, %v4710_v26 }
  0xba   :  { %v5869_v14 = vadd.f32 %v5741_v49, %v5223_v39  ;;  %v1994_v48 = vadd.f32 %v1866_v23, %v1348_v59  ;;  %v5485_v53 = vadd.f32 %v7045_v63, %v5356_v29  ;;  %v6002_v43 = vmul.f32 %v7054_v22, %v53_v1 }
  0xbb   :  { %v3804_v18 = vmul.f32 %v7009_v16, %v3675_v34  ;;  %v4450_v2 = vmul.f32 %v7021_v35, %v4321_v3  ;;  %v4967_v36 = vmax.f32 %v4839_v60, 0.0  ;;  %v189_v5 = vmul.f32 %v6918_v4, %v54_v61 }
  0xbc   :  { %v6515_v11 = vadd.f32 %v6387_v28, %v5869_v14  ;;  %v2640_v40 = vadd.f32 %v2512_v55, %v1994_v48  ;;  %v5613_v20 = vmax.f32 %v5485_v53, 0.0  ;;  %v6131_v0 = vadd.f32 %v7059_v32, %v6002_v43 }
  0xbd   :  { %v5096_v44 = vmul.f32 %v7035_v51, %v4967_v36  ;;  %v318_v49 = vadd.f32 %v6922_v6, %v189_v5  ;;  %v835_v52 = vmul.f32 %v6937_v13, %v54_v61  ;;  %v1481_v1 = vmul.f32 %v6955_v25, %v54_v61 }
  0xbe   :  { %6643 = vst [vmem:[#allocation7 + $0x58] sm:$0xff] %v6515_v11  ;;  %v3286_v46 = vadd.f32 %v3158_v56, %v2640_v40  ;;  %v5742_v23 = vmul.f32 %v7048_v12, %v5613_v20  ;;  %v6259_v19 = vmax.f32 %v6131_v0, 0.0  ;;  %v2127_v15 = vmul.f32 %v6973_v38, %v54_v61 }
  0xbf   :  { %v446_v28 = vmax.f32 %v318_v49, 0.0  ;;  %v964_v27 = vadd.f32 %v6945_v17, %v835_v52  ;;  %v1610_v7 = vadd.f32 %v6964_v30, %v1481_v1  ;;  %v2773_v26 = vmul.f32 %v6988_v50, %v54_v61  ;;  %v55_v52 = vld [vmem:[#allocation6 + $0x70] sm:$0xff] }
  0xc0   :  { %v3932_v39 = vadd.f32 %v3804_v18, %v3286_v46  ;;  %v6388_v59 = vmul.f32 %v7061_v37, %v6259_v19  ;;  %v2256_v55 = vadd.f32 %v6979_v42, %v2127_v15  ;;  %v3419_v29 = vmul.f32 %v7001_v62, %v54_v61 }
  0xc1   :  { %v575_v56 = vmul.f32 %v6930_v10, %v446_v28  ;;  %v1092_v34 = vmax.f32 %v964_v27, 0.0  ;;  %v1738_v3 = vmax.f32 %v1610_v7, 0.0  ;;  %v2902_v60 = vadd.f32 %v6993_v54, %v2773_v26 }
  0xc2   :  { %v4578_v14 = vadd.f32 %v4450_v2, %v3932_v39  ;;  %v2384_v48 = vmax.f32 %v2256_v55, 0.0  ;;  %v3548_v53 = vadd.f32 %v7007_v8, %v3419_v29  ;;  %v4065_v43 = vmul.f32 %v7013_v24, %v54_v61 }
  0xc3   :  { %v703_v18 = vadd.f32 %v575_v56, %v6928_v9  ;;  %v1221_v36 = vmul.f32 %v6951_v21, %v1092_v34  ;;  %v1867_v5 = vmul.f32 %v6967_v33, %v1738_v3  ;;  %v3030_v11 = vmax.f32 %v2902_v60, 0.0 }
  0xc4   :  { %v5224_v40 = vadd.f32 %v5096_v44, %v4578_v14  ;;  %v2513_v20 = vmul.f32 %v6982_v45, %v2384_v48  ;;  %v3676_v0 = vmax.f32 %v3548_v53, 0.0  ;;  %v4194_v49 = vadd.f32 %v7019_v31, %v4065_v43 }
  0xc5   :  { %v1349_v2 = vadd.f32 %v1221_v36, %v703_v18  ;;  %v3159_v1 = vmul.f32 %v6995_v57, %v3030_v11  ;;  %v4711_v46 = vmul.f32 %v7026_v41, %v54_v61  ;;  %v5357_v19 = vmul.f32 %v7040_v58, %v54_v61 }
  0xc6   :  { %v5870_v15 = vadd.f32 %v5742_v23, %v5224_v40  ;;  %v3805_v28 = vmul.f32 %v7009_v16, %v3676_v0  ;;  %v4322_v27 = vmax.f32 %v4194_v49, 0.0  ;;  %v6003_v7 = vmul.f32 %v7054_v22, %v54_v61 }
  0xc7   :  { %v1995_v44 = vadd.f32 %v1867_v5, %v1349_v2  ;;  %v4840_v26 = vadd.f32 %v7032_v47, %v4711_v46  ;;  %v5486_v39 = vadd.f32 %v7045_v63, %v5357_v19  ;;  %v190_v55 = vmul.f32 %v6918_v4, %v55_v52 }
  0xc8   :  { %v6516_v29 = vadd.f32 %v6388_v59, %v5870_v15  ;;  %v4451_v56 = vmul.f32 %v7021_v35, %v4322_v27  ;;  %v6132_v34 = vadd.f32 %v7059_v32, %v6003_v7  ;;  %v836_v3 = vmul.f32 %v6937_v13, %v55_v52 }
  0xc9   :  { %v2641_v23 = vadd.f32 %v2513_v20, %v1995_v44  ;;  %v4968_v60 = vmax.f32 %v4840_v26, 0.0  ;;  %v5614_v14 = vmax.f32 %v5486_v39, 0.0  ;;  %v319_v48 = vadd.f32 %v6922_v6, %v190_v55 }
  0xca   :  { %6644 = vst [vmem:[#allocation7 + $0x60] sm:$0xff] %v6516_v29  ;;  %v6260_v61 = vmax.f32 %v6132_v34, 0.0  ;;  %v965_v53 = vadd.f32 %v6945_v17, %v836_v3  ;;  %v1482_v43 = vmul.f32 %v6955_v25, %v55_v52  ;;  %v2128_v18 = vmul.f32 %v6973_v38, %v55_v52 }
  0xcb   :  { %v3287_v59 = vadd.f32 %v3159_v1, %v2641_v23  ;;  %v5097_v36 = vmul.f32 %v7035_v51, %v4968_v60  ;;  %v5743_v5 = vmul.f32 %v7048_v12, %v5614_v14  ;;  %v447_v11 = vmax.f32 %v319_v48, 0.0 }
  0xcc   :  { %v6389_v40 = vmul.f32 %v7061_v37, %v6260_v61  ;;  %v1093_v20 = vmax.f32 %v965_v53, 0.0  ;;  %v1611_v0 = vadd.f32 %v6964_v30, %v1482_v43  ;;  %v2257_v49 = vadd.f32 %v6979_v42, %v2128_v18 }
  0xcd   :  { %v3933_v2 = vadd.f32 %v3805_v28, %v3287_v59  ;;  %v576_v46 = vmul.f32 %v6930_v10, %v447_v11  ;;  %v2774_v19 = vmul.f32 %v6988_v50, %v55_v52  ;;  %v3420_v15 = vmul.f32 %v7001_v62, %v55_v52  ;;  %v56_v59 = vld [vmem:[#allocation6 + $0x78] sm:$0xff] }
  0xce   :  { %v1222_v1 = vmul.f32 %v6951_v21, %v1093_v20  ;;  %v1739_v27 = vmax.f32 %v1611_v0, 0.0  ;;  %v2385_v7 = vmax.f32 %v2257_v49, 0.0  ;;  %v4066_v44 = vmul.f32 %v7013_v24, %v55_v52 }
  0xcf   :  { %v4579_v26 = vadd.f32 %v4451_v56, %v3933_v2  ;;  %v704_v39 = vadd.f32 %v576_v46, %v6928_v9  ;;  %v2903_v55 = vadd.f32 %v6993_v54, %v2774_v19  ;;  %v3549_v29 = vadd.f32 %v7007_v8, %v3420_v15 }
  0xd0   :  { %v1868_v28 = vmul.f32 %v6967_v33, %v1739_v27  ;;  %v2514_v34 = vmul.f32 %v6982_v45, %v2385_v7  ;;  %v4195_v3 = vadd.f32 %v7019_v31, %v4066_v44  ;;  %v4712_v23 = vmul.f32 %v7026_v41, %v55_v52 }
  0xd1   :  { %v5225_v60 = vadd.f32 %v5097_v36, %v4579_v26  ;;  %v1350_v14 = vadd.f32 %v1222_v1, %v704_v39  ;;  %v3031_v48 = vmax.f32 %v2903_v55, 0.0  ;;  %v3677_v61 = vmax.f32 %v3549_v29, 0.0 }
  0xd2   :  { %v4323_v53 = vmax.f32 %v4195_v3, 0.0  ;;  %v4841_v56 = vadd.f32 %v7032_v47, %v4712_v23  ;;  %v5358_v43 = vmul.f32 %v7040_v58, %v55_v52  ;;  %v6004_v18 = vmul.f32 %v7054_v22, %v55_v52 }
  0xd3   :  { %v5871_v11 = vadd.f32 %v5743_v5, %v5225_v60  ;;  %v1996_v20 = vadd.f32 %v1868_v28, %v1350_v14  ;;  %v3160_v0 = vmul.f32 %v6995_v57, %v3031_v48  ;;  %v3806_v49 = vmul.f32 %v7009_v16, %v3677_v61 }
  0xd4   :  { %v4452_v2 = vmul.f32 %v7021_v35, %v4323_v53  ;;  %v4969_v36 = vmax.f32 %v4841_v56, 0.0  ;;  %v5487_v46 = vadd.f32 %v7045_v63, %v5358_v43  ;;  %v6133_v19 = vadd.f32 %v7059_v32, %v6004_v18 }
  0xd5   :  { %v6517_v15 = vadd.f32 %v6389_v40, %v5871_v11  ;;  %v2642_v1 = vadd.f32 %v2514_v34, %v1996_v20  ;;  %v191_v27 = vmul.f32 %v6918_v4, %v56_v59  ;;  %v837_v52 = vmul.f32 %v6937_v13, %v56_v59 }
  0xd6   :  { %v5098_v5 = vmul.f32 %v7035_v51, %v4969_v36  ;;  %v5615_v7 = vmax.f32 %v5487_v46, 0.0  ;;  %v6261_v44 = vmax.f32 %v6133_v19, 0.0  ;;  %v1483_v26 = vmul.f32 %v6955_v25, %v56_v59 }
  0xd7   :  { %6645 = vst [vmem:[#allocation7 + $0x68] sm:$0xff] %v6517_v15  ;;  %v3288_v39 = vadd.f32 %v3160_v0, %v2642_v1  ;;  %v320_v55 = vadd.f32 %v6922_v6, %v191_v27  ;;  %v966_v29 = vadd.f32 %v6945_v17, %v837_v52  ;;  %v2129_v28 = vmul.f32 %v6973_v38, %v56_v59 }
  0xd8   :  { %v5744_v40 = vmul.f32 %v7048_v12, %v5615_v7  ;;  %v6390_v34 = vmul.f32 %v7061_v37, %v6261_v44  ;;  %v1612_v3 = vadd.f32 %v6964_v30, %v1483_v26  ;;  %v2775_v23 = vmul.f32 %v6988_v50, %v56_v59 }
  0xd9   :  { %v3934_v60 = vadd.f32 %v3806_v49, %v3288_v39  ;;  %v448_v14 = vmax.f32 %v320_v55, 0.0  ;;  %v1094_v48 = vmax.f32 %v966_v29, 0.0  ;;  %v2258_v61 = vadd.f32 %v6979_v42, %v2129_v28 }
  0xda   :  { %v1740_v53 = vmax.f32 %v1612_v3, 0.0  ;;  %v2904_v56 = vadd.f32 %v6993_v54, %v2775_v23  ;;  %v3421_v43 = vmul.f32 %v7001_v62, %v56_v59  ;;  %v4067_v18 = vmul.f32 %v7013_v24, %v56_v59 }
  0xdb   :  { %v4580_v11 = vadd.f32 %v4452_v2, %v3934_v60  ;;  %v577_v20 = vmul.f32 %v6930_v10, %v448_v14  ;;  %v1223_v0 = vmul.f32 %v6951_v21, %v1094_v48  ;;  %v2386_v36 = vmax.f32 %v2258_v61, 0.0  ;;  %v57_v2 = vld [vmem:[#allocation6 + $0x80] sm:$0xff] }
  0xdc   :  { %v1869_v46 = vmul.f32 %v6967_v33, %v1740_v53  ;;  %v3032_v49 = vmax.f32 %v2904_v56, 0.0  ;;  %v3550_v19 = vadd.f32 %v7007_v8, %v3421_v43  ;;  %v4196_v15 = vadd.f32 %v7019_v31, %v4067_v18 }
  0xdd   :  { %v5226_v1 = vadd.f32 %v5098_v5, %v4580_v11  ;;  %v705_v27 = vadd.f32 %v577_v20, %v6928_v9  ;;  %v2515_v52 = vmul.f32 %v6982_v45, %v2386_v36  ;;  %v4713_v7 = vmul.f32 %v7026_v41, %v56_v59 }
  0xde   :  { %v3161_v44 = vmul.f32 %v6995_v57, %v3032_v49  ;;  %v3678_v26 = vmax.f32 %v3550_v19, 0.0  ;;  %v4324_v39 = vmax.f32 %v4196_v15, 0.0  ;;  %v5359_v55 = vmul.f32 %v7040_v58, %v56_v59 }
  0xdf   :  { %v5872_v29 = vadd.f32 %v5744_v40, %v5226_v1  ;;  %v1351_v28 = vadd.f32 %v1223_v0, %v705_v27  ;;  %v4842_v3 = vadd.f32 %v7032_v47, %v4713_v7  ;;  %v6005_v23 = vmul.f32 %v7054_v22, %v56_v59 }
  0xe0   :  { %v3807_v5 = vmul.f32 %v7009_v16, %v3678_v26  ;;  %v4453_v60 = vmul.f32 %v7021_v35, %v4324_v39  ;;  %v5488_v14 = vadd.f32 %v7045_v63, %v5359_v55  ;;  %v192_v48 = vmul.f32 %v6918_v4, %v57_v2 }
  0xe1   :  { %v6518_v61 = vadd.f32 %v6390_v34, %v5872_v29  ;;  %v1997_v53 = vadd.f32 %v1869_v46, %v1351_v28  ;;  %v4970_v56 = vmax.f32 %v4842_v3, 0.0  ;;  %v6134_v43 = vadd.f32 %v7059_v32, %v6005_v23 }
  0xe2   :  { %v5616_v18 = vmax.f32 %v5488_v14, 0.0  ;;  %v321_v40 = vadd.f32 %v6922_v6, %v192_v48  ;;  %v838_v11 = vmul.f32 %v6937_v13, %v57_v2  ;;  %v1484_v59 = vmul.f32 %v6955_v25, %v57_v2 }
  0xe3   :  { %6646 = vst [vmem:[#allocation7 + $0x70] sm:$0xff] %v6518_v61  ;;  %v2643_v20 = vadd.f32 %v2515_v52, %v1997_v53  ;;  %v5099_v0 = vmul.f32 %v7035_v51, %v4970_v56  ;;  %v6262_v36 = vmax.f32 %v6134_v43, 0.0  ;;  %v2130_v49 = vmul.f32 %v6973_v38, %v57_v2 }
  0xe4   :  { %v5745_v34 = vmul.f32 %v7048_v12, %v5616_v18  ;;  %v449_v46 = vmax.f32 %v321_v40, 0.0  ;;  %v967_v19 = vadd.f32 %v6945_v17, %v838_v11  ;;  %v1613_v15 = vadd.f32 %v6964_v30, %v1484_v59 }
  0xe5   :  { %v3289_v1 = vadd.f32 %v3161_v44, %v2643_v20  ;;  %v6391_v27 = vmul.f32 %v7061_v37, %v6262_v36  ;;  %v2259_v7 = vadd.f32 %v6979_v42, %v2130_v49  ;;  %v2776_v26 = vmul.f32 %v6988_v50, %v57_v2  ;;  %v58_v36 = vld [vmem:[#allocation6 + $0x88] sm:$0xff] }
  0xe6   :  { %v578_v52 = vmul.f32 %v6930_v10, %v449_v46  ;;  %v1095_v39 = vmax.f32 %v967_v19, 0.0  ;;  %v1741_v55 = vmax.f32 %v1613_v15, 0.0  ;;  %v3422_v29 = vmul.f32 %v7001_v62, %v57_v2 }
  0xe7   :  { %v3935_v28 = vadd.f32 %v3807_v5, %v3289_v1  ;;  %v2387_v3 = vmax.f32 %v2259_v7, 0.0  ;;  %v2905_v23 = vadd.f32 %v6993_v54, %v2776_v26  ;;  %v4068_v14 = vmul.f32 %v7013_v24, %v57_v2 }
  0xe8   :  { %v706_v44 = vadd.f32 %v578_v52, %v6928_v9  ;;  %v1224_v48 = vmul.f32 %v6951_v21, %v1095_v39  ;;  %v1870_v61 = vmul.f32 %v6967_v33, %v1741_v55  ;;  %v3551_v53 = vadd.f32 %v7007_v8, %v3422_v29 }
  0xe9   :  { %v4581_v56 = vadd.f32 %v4453_v60, %v3935_v28  ;;  %v2516_v43 = vmul.f32 %v6982_v45, %v2387_v3  ;;  %v3033_v18 = vmax.f32 %v2905_v23, 0.0  ;;  %v4197_v40 = vadd.f32 %v7019_v31, %v4068_v14 }
  0xea   :  { %v1352_v5 = vadd.f32 %v1224_v48, %v706_v44  ;;  %v3679_v11 = vmax.f32 %v3551_v53, 0.0  ;;  %v4714_v59 = vmul.f32 %v7026_v41, %v57_v2  ;;  %v5360_v20 = vmul.f32 %v7040_v58, %v57_v2 }
  0xeb   :  { %v5227_v49 = vadd.f32 %v5099_v0, %v4581_v56  ;;  %v3162_v46 = vmul.f32 %v6995_v57, %v3033_v18  ;;  %v4325_v19 = vmax.f32 %v4197_v40, 0.0  ;;  %v6006_v15 = vmul.f32 %v7054_v22, %v57_v2 }
  0xec   :  { %v1998_v1 = vadd.f32 %v1870_v61, %v1352_v5  ;;  %v3808_v60 = vmul.f32 %v7009_v16, %v3679_v11  ;;  %v4843_v7 = vadd.f32 %v7032_v47, %v4714_v59  ;;  %v5489_v26 = vadd.f32 %v7045_v63, %v5360_v20 }
  0xed   :  { %v5873_v52 = vadd.f32 %v5745_v34, %v5227_v49  ;;  %v4454_v39 = vmul.f32 %v7021_v35, %v4325_v19  ;;  %v6135_v55 = vadd.f32 %v7059_v32, %v6006_v15  ;;  %v193_v29 = vmul.f32 %v6918_v4, %v58_v36 }
  0xee   :  { %v2644_v0 = vadd.f32 %v2516_v43, %v1998_v1  ;;  %v4971_v28 = vmax.f32 %v4843_v7, 0.0  ;;  %v5617_v3 = vmax.f32 %v5489_v26, 0.0  ;;  %v839_v23 = vmul.f32 %v6937_v13, %v58_v36 }
  0xef   :  { %v6519_v2 = vadd.f32 %v6391_v27, %v5873_v52  ;;  %v6263_v14 = vmax.f32 %v6135_v55, 0.0  ;;  %v322_v44 = vadd.f32 %v6922_v6, %v193_v29  ;;  %v1485_v48 = vmul.f32 %v6955_v25, %v58_v36 }
  0xf0   :  { %v3290_v61 = vadd.f32 %v3162_v46, %v2644_v0  ;;  %v5100_v34 = vmul.f32 %v7035_v51, %v4971_v28  ;;  %v5746_v53 = vmul.f32 %v7048_v12, %v5617_v3  ;;  %v968_v56 = vadd.f32 %v6945_v17, %v839_v23 }
  0xf1   :  { %6647 = vst [vmem:[#allocation7 + $0x78] sm:$0xff] %v6519_v2  ;;  %v6392_v43 = vmul.f32 %v7061_v37, %v6263_v14  ;;  %v450_v18 = vmax.f32 %v322_v44, 0.0  ;;  %v1614_v40 = vadd.f32 %v6964_v30, %v1485_v48  ;;  %v2131_v27 = vmul.f32 %v6973_v38, %v58_v36 }
  0xf2   :  { %v3936_v5 = vadd.f32 %v3808_v60, %v3290_v61  ;;  %v1096_v11 = vmax.f32 %v968_v56, 0.0  ;;  %v2777_v59 = vmul.f32 %v6988_v50, %v58_v36  ;;  %v3423_v20 = vmul.f32 %v7001_v62, %v58_v36  ;;  %v59_v61 = vld [vmem:[#allocation6 + $0x90] sm:$0xff] }
  0xf3   :  { %v579_v49 = vmul.f32 %v6930_v10, %v450_v18  ;;  %v1742_v46 = vmax.f32 %v1614_v40, 0.0  ;;  %v2260_v19 = vadd.f32 %v6979_v42, %v2131_v27  ;;  %v4069_v15 = vmul.f32 %v7013_v24, %v58_v36 }
  0xf4   :  { %v4582_v1 = vadd.f32 %v4454_v39, %v3936_v5  ;;  %v1225_v7 = vmul.f32 %v6951_v21, %v1096_v11  ;;  %v2906_v26 = vadd.f32 %v6993_v54, %v2777_v59  ;;  %v3552_v52 = vadd.f32 %v7007_v8, %v3423_v20 }
  0xf5   :  { %v707_v60 = vadd.f32 %v579_v49, %v6928_v9  ;;  %v1871_v55 = vmul.f32 %v6967_v33, %v1742_v46  ;;  %v2388_v29 = vmax.f32 %v2260_v19, 0.0  ;;  %v4198_v0 = vadd.f32 %v7019_v31, %v4069_v15 }
  0xf6   :  { %v5228_v28 = vadd.f32 %v5100_v34, %v4582_v1  ;;  %v3034_v3 = vmax.f32 %v2906_v26, 0.0  ;;  %v3680_v23 = vmax.f32 %v3552_v52, 0.0  ;;  %v4715_v2 = vmul.f32 %v7026_v41, %v58_v36 }
  0xf7   :  { %v1353_v14 = vadd.f32 %v1225_v7, %v707_v60  ;;  %v2517_v39 = vmul.f32 %v6982_v45, %v2388_v29  ;;  %v4326_v44 = vmax.f32 %v4198_v0, 0.0  ;;  %v5361_v48 = vmul.f32 %v7040_v58, %v58_v36 }
  0xf8   :  { %v5874_v56 = vadd.f32 %v5746_v53, %v5228_v28  ;;  %v3163_v18 = vmul.f32 %v6995_v57, %v3034_v3  ;;  %v3809_v40 = vmul.f32 %v7009_v16, %v3680_v23  ;;  %v4844_v27 = vadd.f32 %v7032_v47, %v4715_v2 }
  0xf9   :  { %v1999_v5 = vadd.f32 %v1871_v55, %v1353_v14  ;;  %v4455_v34 = vmul.f32 %v7021_v35, %v4326_v44  ;;  %v5490_v11 = vadd.f32 %v7045_v63, %v5361_v48  ;;  %v6007_v59 = vmul.f32 %v7054_v22, %v58_v36 }
  0xfa   :  { %v6520_v20 = vadd.f32 %v6392_v43, %v5874_v56  ;;  %v4972_v49 = vmax.f32 %v4844_v27, 0.0  ;;  %v194_v46 = vmul.f32 %v6918_v4, %v59_v61  ;;  %v840_v19 = vmul.f32 %v6937_v13, %v59_v61 }
  0xfb   :  { %v2645_v53 = vadd.f32 %v2517_v39, %v1999_v5  ;;  %v5618_v15 = vmax.f32 %v5490_v11, 0.0  ;;  %v6136_v1 = vadd.f32 %v7059_v32, %v6007_v59  ;;  %v1486_v7 = vmul.f32 %v6955_v25, %v59_v61 }
  0xfc   :  { %6648 = vst [vmem:[#allocation7 + $0x80] sm:$0xff] %v6520_v20  ;;  %v5101_v26 = vmul.f32 %v7035_v51, %v4972_v49  ;;  %v323_v52 = vadd.f32 %v6922_v6, %v194_v46  ;;  %v969_v60 = vadd.f32 %v6945_v17, %v840_v19  ;;  %v2132_v36 = vmul.f32 %v6973_v38, %v59_v61 }
  0xfd   :  { %v3291_v43 = vadd.f32 %v3163_v18, %v2645_v53  ;;  %v5747_v55 = vmul.f32 %v7048_v12, %v5618_v15  ;;  %v6264_v29 = vmax.f32 %v6136_v1, 0.0  ;;  %v1615_v0 = vadd.f32 %v6964_v30, %v1486_v7 }
  0xfe   :  { %v451_v28 = vmax.f32 %v323_v52, 0.0  ;;  %v1097_v3 = vmax.f32 %v969_v60, 0.0  ;;  %v2261_v23 = vadd.f32 %v6979_v42, %v2132_v36  ;;  %v2778_v2 = vmul.f32 %v6988_v50, %v59_v61 }
  0xff   :  { %v3937_v14 = vadd.f32 %v3809_v40, %v3291_v43  ;;  %v6393_v39 = vmul.f32 %v7061_v37, %v6264_v29  ;;  %v1743_v44 = vmax.f32 %v1615_v0, 0.0  ;;  %v3424_v48 = vmul.f32 %v7001_v62, %v59_v61 }
 0x100   :  { %v580_v56 = vmul.f32 %v6930_v10, %v451_v28  ;;  %v1226_v18 = vmul.f32 %v6951_v21, %v1097_v3  ;;  %v2389_v27 = vmax.f32 %v2261_v23, 0.0  ;;  %v2907_v5 = vadd.f32 %v6993_v54, %v2778_v2 }
 0x101   :  { %v4583_v11 = vadd.f32 %v4455_v34, %v3937_v14  ;;  %v1872_v59 = vmul.f32 %v6967_v33, %v1743_v44  ;;  %v3553_v20 = vadd.f32 %v7007_v8, %v3424_v48  ;;  %v4070_v49 = vmul.f32 %v7013_v24, %v59_v61  ;;  %v60_v34 = vld [vmem:[#allocation6 + $0x98] sm:$0xff] }
 0x102   :  { %v708_v40 = vadd.f32 %v580_v56, %v6928_v9  ;;  %v2518_v46 = vmul.f32 %v6982_v45, %v2389_v27  ;;  %v3035_v19 = vmax.f32 %v2907_v5, 0.0  ;;  %v4716_v53 = vmul.f32 %v7026_v41, %v59_v61 }
 0x103   :  { %v5229_v15 = vadd.f32 %v5101_v26, %v4583_v11  ;;  %v3681_v1 = vmax.f32 %v3553_v20, 0.0  ;;  %v4199_v7 = vadd.f32 %v7019_v31, %v4070_v49  ;;  %v5362_v52 = vmul.f32 %v7040_v58, %v59_v61 }
 0x104   :  { %v1354_v60 = vadd.f32 %v1226_v18, %v708_v40  ;;  %v3164_v36 = vmul.f32 %v6995_v57, %v3035_v19  ;;  %v4845_v43 = vadd.f32 %v7032_v47, %v4716_v53  ;;  %v6008_v29 = vmul.f32 %v7054_v22, %v59_v61 }
 0x105   :  { %v5875_v0 = vadd.f32 %v5747_v55, %v5229_v15  ;;  %v3810_v28 = vmul.f32 %v7009_v16, %v3681_v1  ;;  %v4327_v3 = vmax.f32 %v4199_v7, 0.0  ;;  %v5491_v23 = vadd.f32 %v7045_v63, %v5362_v52 }
 0x106   :  { %v2000_v26 = vadd.f32 %v1872_v59, %v1354_v60  ;;  %v4973_v2 = vmax.f32 %v4845_v43, 0.0  ;;  %v6137_v14 = vadd.f32 %v7059_v32, %v6008_v29  ;;  %v195_v44 = vmul.f32 %v6918_v4, %v60_v34 }
 0x107   :  { %v6521_v48 = vadd.f32 %v6393_v39, %v5875_v0  ;;  %v4456_v56 = vmul.f32 %v7021_v35, %v4327_v3  ;;  %v5619_v18 = vmax.f32 %v5491_v23, 0.0  ;;  %v841_v27 = vmul.f32 %v6937_v13, %v60_v34 }
 0x108   :  { %v2646_v5 = vadd.f32 %v2518_v46, %v2000_v26  ;;  %v5102_v61 = vmul.f32 %v7035_v51, %v4973_v2  ;;  %v6265_v55 = vmax.f32 %v6137_v14, 0.0  ;;  %v324_v11 = vadd.f32 %v6922_v6, %v195_v44 }
 0x109   :  { %6649 = vst [vmem:[#allocation7 + $0x88] sm:$0xff] %v6521_v48  ;;  %v5748_v59 = vmul.f32 %v7048_v12, %v5619_v18  ;;  %v970_v20 = vadd.f32 %v6945_v17, %v841_v27  ;;  %v1487_v49 = vmul.f32 %v6955_v25, %v60_v34  ;;  %v2133_v39 = vmul.f32 %v6973_v38, %v60_v34 }
 0x10a   :  { %v3292_v40 = vadd.f32 %v3164_v36, %v2646_v5  ;;  %v6394_v19 = vmul.f32 %v7061_v37, %v6265_v55  ;;  %v452_v53 = vmax.f32 %v324_v11, 0.0  ;;  %v2779_v46 = vmul.f32 %v6988_v50, %v60_v34  ;;  %v61_v55 = vld [vmem:[#allocation6 + $0xa0] sm:$0xff] }
 0x10b   :  { %v1098_v15 = vmax.f32 %v970_v20, 0.0  ;;  %v1616_v1 = vadd.f32 %v6964_v30, %v1487_v49  ;;  %v2262_v7 = vadd.f32 %v6979_v42, %v2133_v39  ;;  %v3425_v52 = vmul.f32 %v7001_v62, %v60_v34 }
 0x10c   :  { %v3938_v60 = vadd.f32 %v3810_v28, %v3292_v40  ;;  %v581_v43 = vmul.f32 %v6930_v10, %v452_v53  ;;  %v2908_v29 = vadd.f32 %v6993_v54, %v2779_v46  ;;  %v4071_v0 = vmul.f32 %v7013_v24, %v60_v34 }
 0x10d   :  { %v1227_v36 = vmul.f32 %v6951_v21, %v1098_v15  ;;  %v1744_v3 = vmax.f32 %v1616_v1, 0.0  ;;  %v2390_v23 = vmax.f32 %v2262_v7, 0.0  ;;  %v3554_v26 = vadd.f32 %v7007_v8, %v3425_v52 }
 0x10e   :  { %v4584_v2 = vadd.f32 %v4456_v56, %v3938_v60  ;;  %v709_v14 = vadd.f32 %v581_v43, %v6928_v9  ;;  %v3036_v44 = vmax.f32 %v2908_v29, 0.0  ;;  %v4200_v48 = vadd.f32 %v7019_v31, %v4071_v0 }
 0x10f   :  { %v1873_v28 = vmul.f32 %v6967_v33, %v1744_v3  ;;  %v2519_v18 = vmul.f32 %v6982_v45, %v2390_v23  ;;  %v3682_v27 = vmax.f32 %v3554_v26, 0.0  ;;  %v4717_v5 = vmul.f32 %v7026_v41, %v60_v34 }
 0x110   :  { %v5230_v11 = vadd.f32 %v5102_v61, %v4584_v2  ;;  %v1355_v20 = vadd.f32 %v1227_v36, %v709_v14  ;;  %v3165_v49 = vmul.f32 %v6995_v57, %v3036_v44  ;;  %v4328_v39 = vmax.f32 %v4200_v48, 0.0 }
 0x111   :  { %v3811_v56 = vmul.f32 %v7009_v16, %v3682_v27  ;;  %v4846_v40 = vadd.f32 %v7032_v47, %v4717_v5  ;;  %v5363_v53 = vmul.f32 %v7040_v58, %v60_v34  ;;  %v6009_v46 = vmul.f32 %v7054_v22, %v60_v34 }
 0x112   :  { %v5876_v15 = vadd.f32 %v5748_v59, %v5230_v11  ;;  %v2001_v1 = vadd.f32 %v1873_v28, %v1355_v20  ;;  %v4457_v7 = vmul.f32 %v7021_v35, %v4328_v39  ;;  %v196_v52 = vmul.f32 %v6918_v4, %v61_v55 }
 0x113   :  { %v4974_v60 = vmax.f32 %v4846_v40, 0.0  ;;  %v5492_v61 = vadd.f32 %v7045_v63, %v5363_v53  ;;  %v6138_v43 = vadd.f32 %v7059_v32, %v6009_v46  ;;  %v842_v29 = vmul.f32 %v6937_v13, %v61_v55 }
 0x114   :  { %v6522_v0 = vadd.f32 %v6394_v19, %v5876_v15  ;;  %v2647_v36 = vadd.f32 %v2519_v18, %v2001_v1  ;;  %v325_v3 = vadd.f32 %v6922_v6, %v196_v52  ;;  %v1488_v23 = vmul.f32 %v6955_v25, %v61_v55 }
 0x115   :  { %v5103_v34 = vmul.f32 %v7035_v51, %v4974_v60  ;;  %v5620_v59 = vmax.f32 %v5492_v61, 0.0  ;;  %v6266_v26 = vmax.f32 %v6138_v43, 0.0  ;;  %v971_v2 = vadd.f32 %v6945_v17, %v842_v29 }
 0x116   :  { %6650 = vst [vmem:[#allocation7 + $0x90] sm:$0xff] %v6522_v0  ;;  %v3293_v14 = vadd.f32 %v3165_v49, %v2647_v36  ;;  %v453_v44 = vmax.f32 %v325_v3, 0.0  ;;  %v1617_v48 = vadd.f32 %v6964_v30, %v1488_v23  ;;  %v2134_v28 = vmul.f32 %v6973_v38, %v61_v55 }
 0x117   :  { %v5749_v19 = vmul.f32 %v7048_v12, %v5620_v59  ;;  %v6395_v18 = vmul.f32 %v7061_v37, %v6266_v26  ;;  %v1099_v27 = vmax.f32 %v971_v2, 0.0  ;;  %v2780_v5 = vmul.f32 %v6988_v50, %v61_v55  ;;  %v62_v26 = vld [vmem:[#allocation6 + $0xa8] sm:$0xff] }
 0x118   :  { %v3939_v11 = vadd.f32 %v3811_v56, %v3293_v14  ;;  %v582_v20 = vmul.f32 %v6930_v10, %v453_v44  ;;  %v1745_v39 = vmax.f32 %v1617_v48, 0.0  ;;  %v2263_v40 = vadd.f32 %v6979_v42, %v2134_v28 }
 0x119   :  { %v1228_v49 = vmul.f32 %v6951_v21, %v1099_v27  ;;  %v2909_v53 = vadd.f32 %v6993_v54, %v2780_v5  ;;  %v3426_v46 = vmul.f32 %v7001_v62, %v61_v55  ;;  %v4072_v15 = vmul.f32 %v7013_v24, %v61_v55 }
 0x11a   :  { %v4585_v1 = vadd.f32 %v4457_v7, %v3939_v11  ;;  %v710_v52 = vadd.f32 %v582_v20, %v6928_v9  ;;  %v1874_v60 = vmul.f32 %v6967_v33, %v1745_v39  ;;  %v2391_v61 = vmax.f32 %v2263_v40, 0.0 }
 0x11b   :  { %v3037_v56 = vmax.f32 %v2909_v53, 0.0  ;;  %v3555_v43 = vadd.f32 %v7007_v8, %v3426_v46  ;;  %v4201_v29 = vadd.f32 %v7019_v31, %v4072_v15  ;;  %v4718_v0 = vmul.f32 %v7026_v41, %v61_v55 }
 0x11c   :  { %v5231_v36 = vadd.f32 %v5103_v34, %v4585_v1  ;;  %v1356_v3 = vadd.f32 %v1228_v49, %v710_v52  ;;  %v2520_v23 = vmul.f32 %v6982_v45, %v2391_v61  ;;  %v5364_v59 = vmul.f32 %v7040_v58, %v61_v55 }
 0x11d   :  { %v3166_v7 = vmul.f32 %v6995_v57, %v3037_v56  ;;  %v3683_v2 = vmax.f32 %v3555_v43, 0.0  ;;  %v4329_v14 = vmax.f32 %v4201_v29, 0.0  ;;  %v4847_v44 = vadd.f32 %v7032_v47, %v4718_v0 }
 0x11e   :  { %v5877_v48 = vadd.f32 %v5749_v19, %v5231_v36  ;;  %v2002_v28 = vadd.f32 %v1874_v60, %v1356_v3  ;;  %v5493_v27 = vadd.f32 %v7045_v63, %v5364_v59  ;;  %v6010_v5 = vmul.f32 %v7054_v22, %v61_v55 }
 0x11f   :  { %v3812_v34 = vmul.f32 %v7009_v16, %v3683_v2  ;;  %v4458_v11 = vmul.f32 %v7021_v35, %v4329_v14  ;;  %v4975_v20 = vmax.f32 %v4847_v44, 0.0  ;;  %v197_v39 = vmul.f32 %v6918_v4, %v62_v26 }
 0x120   :  { %v6523_v40 = vadd.f32 %v6395_v18, %v5877_v48  ;;  %v2648_v49 = vadd.f32 %v2520_v23, %v2002_v28  ;;  %v5621_v53 = vmax.f32 %v5493_v27, 0.0  ;;  %v6139_v46 = vadd.f32 %v7059_v32, %v6010_v5 }
 0x121   :  { %v5104_v15 = vmul.f32 %v7035_v51, %v4975_v20  ;;  %v326_v19 = vadd.f32 %v6922_v6, %v197_v39  ;;  %v843_v1 = vmul.f32 %v6937_v13, %v62_v26  ;;  %v1489_v55 = vmul.f32 %v6955_v25, %v62_v26 }
 0x122   :  { %6651 = vst [vmem:[#allocation7 + $0x98] sm:$0xff] %v6523_v40  ;;  %v3294_v52 = vadd.f32 %v3166_v7, %v2648_v49  ;;  %v5750_v60 = vmul.f32 %v7048_v12, %v5621_v53  ;;  %v6267_v61 = vmax.f32 %v6139_v46, 0.0  ;;  %v2135_v56 = vmul.f32 %v6973_v38, %v62_v26 }
 0x123   :  { %v454_v18 = vmax.f32 %v326_v19, 0.0  ;;  %v972_v43 = vadd.f32 %v6945_v17, %v843_v1  ;;  %v1618_v29 = vadd.f32 %v6964_v30, %v1489_v55  ;;  %v2781_v0 = vmul.f32 %v6988_v50, %v62_v26  ;;  %v63_v1 = vld [vmem:[#allocation6 + $0xb0] sm:$0xff] }
 0x124   :  { %v3940_v36 = vadd.f32 %v3812_v34, %v3294_v52  ;;  %v6396_v3 = vmul.f32 %v7061_v37, %v6267_v61  ;;  %v2264_v23 = vadd.f32 %v6979_v42, %v2135_v56  ;;  %v3427_v59 = vmul.f32 %v7001_v62, %v62_v26 }
 0x125   :  { %v583_v7 = vmul.f32 %v6930_v10, %v454_v18  ;;  %v1100_v2 = vmax.f32 %v972_v43, 0.0  ;;  %v1746_v14 = vmax.f32 %v1618_v29, 0.0  ;;  %v2910_v44 = vadd.f32 %v6993_v54, %v2781_v0 }
 0x126   :  { %v4586_v48 = vadd.f32 %v4458_v11, %v3940_v36  ;;  %v2392_v28 = vmax.f32 %v2264_v23, 0.0  ;;  %v3556_v27 = vadd.f32 %v7007_v8, %v3427_v59  ;;  %v4073_v5 = vmul.f32 %v7013_v24, %v62_v26 }
 0x127   :  { %v711_v34 = vadd.f32 %v583_v7, %v6928_v9  ;;  %v1229_v20 = vmul.f32 %v6951_v21, %v1100_v2  ;;  %v1875_v39 = vmul.f32 %v6967_v33, %v1746_v14  ;;  %v3038_v40 = vmax.f32 %v2910_v44, 0.0 }
 0x128   :  { %v5232_v49 = vadd.f32 %v5104_v15, %v4586_v48  ;;  %v2521_v53 = vmul.f32 %v6982_v45, %v2392_v28  ;;  %v3684_v46 = vmax.f32 %v3556_v27, 0.0  ;;  %v4202_v19 = vadd.f32 %v7019_v31, %v4073_v5 }
 0x129   :  { %v1357_v11 = vadd.f32 %v1229_v20, %v711_v34  ;;  %v3167_v55 = vmul.f32 %v6995_v57, %v3038_v40  ;;  %v4719_v52 = vmul.f32 %v7026_v41, %v62_v26  ;;  %v5365_v61 = vmul.f32 %v7040_v58, %v62_v26 }
 0x12a   :  { %v5878_v56 = vadd.f32 %v5750_v60, %v5232_v49  ;;  %v3813_v18 = vmul.f32 %v7009_v16, %v3684_v46  ;;  %v4330_v43 = vmax.f32 %v4202_v19, 0.0  ;;  %v6011_v29 = vmul.f32 %v7054_v22, %v62_v26 }
 0x12b   :  { %v2003_v15 = vadd.f32 %v1875_v39, %v1357_v11  ;;  %v4848_v0 = vadd.f32 %v7032_v47, %v4719_v52  ;;  %v5494_v36 = vadd.f32 %v7045_v63, %v5365_v61  ;;  %v198_v23 = vmul.f32 %v6918_v4, %v63_v1 }
 0x12c   :  { %v6524_v59 = vadd.f32 %v6396_v3, %v5878_v56  ;;  %v4459_v7 = vmul.f32 %v7021_v35, %v4330_v43  ;;  %v6140_v2 = vadd.f32 %v7059_v32, %v6011_v29  ;;  %v844_v14 = vmul.f32 %v6937_v13, %v63_v1 }
 0x12d   :  { %v2649_v60 = vadd.f32 %v2521_v53, %v2003_v15  ;;  %v4976_v44 = vmax.f32 %v4848_v0, 0.0  ;;  %v5622_v48 = vmax.f32 %v5494_v36, 0.0  ;;  %v327_v28 = vadd.f32 %v6922_v6, %v198_v23 }
 0x12e   :  { %6652 = vst [vmem:[#allocation7 + $0xa0] sm:$0xff] %v6524_v59  ;;  %v6268_v26 = vmax.f32 %v6140_v2, 0.0  ;;  %v973_v27 = vadd.f32 %v6945_v17, %v844_v14  ;;  %v1490_v5 = vmul.f32 %v6955_v25, %v63_v1  ;;  %v2136_v34 = vmul.f32 %v6973_v38, %v63_v1 }
 0x12f   :  { %v3295_v3 = vadd.f32 %v3167_v55, %v2649_v60  ;;  %v5105_v20 = vmul.f32 %v7035_v51, %v4976_v44  ;;  %v5751_v39 = vmul.f32 %v7048_v12, %v5622_v48  ;;  %v455_v40 = vmax.f32 %v327_v28, 0.0 }
 0x130   :  { %v6397_v49 = vmul.f32 %v7061_v37, %v6268_v26  ;;  %v1101_v53 = vmax.f32 %v973_v27, 0.0  ;;  %v1619_v46 = vadd.f32 %v6964_v30, %v1490_v5  ;;  %v2265_v19 = vadd.f32 %v6979_v42, %v2136_v34 }
 0x131   :  { %v3941_v11 = vadd.f32 %v3813_v18, %v3295_v3  ;;  %v584_v52 = vmul.f32 %v6930_v10, %v455_v40  ;;  %v2782_v61 = vmul.f32 %v6988_v50, %v63_v1  ;;  %v3428_v56 = vmul.f32 %v7001_v62, %v63_v1  ;;  %v64_v3 = vld [vmem:[#allocation6 + $0xb8] sm:$0xff] }
 0x132   :  { %v1230_v55 = vmul.f32 %v6951_v21, %v1101_v53  ;;  %v1747_v43 = vmax.f32 %v1619_v46, 0.0  ;;  %v2393_v29 = vmax.f32 %v2265_v19, 0.0  ;;  %v4074_v15 = vmul.f32 %v7013_v24, %v63_v1 }
 0x133   :  { %v4587_v0 = vadd.f32 %v4459_v7, %v3941_v11  ;;  %v712_v36 = vadd.f32 %v584_v52, %v6928_v9  ;;  %v2911_v23 = vadd.f32 %v6993_v54, %v2782_v61  ;;  %v3557_v59 = vadd.f32 %v7007_v8, %v3428_v56 }
 0x134   :  { %v1876_v18 = vmul.f32 %v6967_v33, %v1747_v43  ;;  %v2522_v2 = vmul.f32 %v6982_v45, %v2393_v29  ;;  %v4203_v14 = vadd.f32 %v7019_v31, %v4074_v15  ;;  %v4720_v60 = vmul.f32 %v7026_v41, %v63_v1 }
 0x135   :  { %v5233_v44 = vadd.f32 %v5105_v20, %v4587_v0  ;;  %v1358_v48 = vadd.f32 %v1230_v55, %v712_v36  ;;  %v3039_v28 = vmax.f32 %v2911_v23, 0.0  ;;  %v3685_v26 = vmax.f32 %v3557_v59, 0.0 }
 0x136   :  { %v4331_v27 = vmax.f32 %v4203_v14, 0.0  ;;  %v4849_v7 = vadd.f32 %v7032_v47, %v4720_v60  ;;  %v5366_v5 = vmul.f32 %v7040_v58, %v63_v1  ;;  %v6012_v34 = vmul.f32 %v7054_v22, %v63_v1 }
 0x137   :  { %v5879_v40 = vadd.f32 %v5751_v39, %v5233_v44  ;;  %v2004_v53 = vadd.f32 %v1876_v18, %v1358_v48  ;;  %v3168_v46 = vmul.f32 %v6995_v57, %v3039_v28  ;;  %v3814_v19 = vmul.f32 %v7009_v16, %v3685_v26 }
 0x138   :  { %v4460_v11 = vmul.f32 %v7021_v35, %v4331_v27  ;;  %v4977_v20 = vmax.f32 %v4849_v7, 0.0  ;;  %v5495_v52 = vadd.f32 %v7045_v63, %v5366_v5  ;;  %v6141_v61 = vadd.f32 %v7059_v32, %v6012_v34 }
 0x139   :  { %v6525_v56 = vadd.f32 %v6397_v49, %v5879_v40  ;;  %v2650_v55 = vadd.f32 %v2522_v2, %v2004_v53  ;;  %v199_v43 = vmul.f32 %v6918_v4, %v64_v3  ;;  %v845_v1 = vmul.f32 %v6937_v13, %v64_v3 }
 0x13a   :  { %v5106_v39 = vmul.f32 %v7035_v51, %v4977_v20  ;;  %v5623_v29 = vmax.f32 %v5495_v52, 0.0  ;;  %v6269_v15 = vmax.f32 %v6141_v61, 0.0  ;;  %v1491_v0 = vmul.f32 %v6955_v25, %v64_v3 }
 0x13b   :  { %6653 = vst [vmem:[#allocation7 + $0xa8] sm:$0xff] %v6525_v56  ;;  %v3296_v36 = vadd.f32 %v3168_v46, %v2650_v55  ;;  %v328_v23 = vadd.f32 %v6922_v6, %v199_v43  ;;  %v974_v59 = vadd.f32 %v6945_v17, %v845_v1  ;;  %v2137_v18 = vmul.f32 %v6973_v38, %v64_v3 }
 0x13c   :  { %v5752_v49 = vmul.f32 %v7048_v12, %v5623_v29  ;;  %v6398_v2 = vmul.f32 %v7061_v37, %v6269_v15  ;;  %v1620_v14 = vadd.f32 %v6964_v30, %v1491_v0  ;;  %v2783_v60 = vmul.f32 %v6988_v50, %v64_v3 }
 0x13d   :  { %v3942_v44 = vadd.f32 %v3814_v19, %v3296_v36  ;;  %v456_v48 = vmax.f32 %v328_v23, 0.0  ;;  %v1102_v28 = vmax.f32 %v974_v59, 0.0  ;;  %v2266_v26 = vadd.f32 %v6979_v42, %v2137_v18 }
 0x13e   :  { %v1748_v27 = vmax.f32 %v1620_v14, 0.0  ;;  %v2912_v7 = vadd.f32 %v6993_v54, %v2783_v60  ;;  %v3429_v5 = vmul.f32 %v7001_v62, %v64_v3  ;;  %v4075_v34 = vmul.f32 %v7013_v24, %v64_v3 }
 0x13f   :  { %v4588_v40 = vadd.f32 %v4460_v11, %v3942_v44  ;;  %v585_v53 = vmul.f32 %v6930_v10, %v456_v48  ;;  %v1231_v46 = vmul.f32 %v6951_v21, %v1102_v28  ;;  %v2394_v20 = vmax.f32 %v2266_v26, 0.0  ;;  %v65_v11 = vld [vmem:[#allocation6 + $0xc0] sm:$0xff] }
 0x140   :  { %v1877_v52 = vmul.f32 %v6967_v33, %v1748_v27  ;;  %v3040_v19 = vmax.f32 %v2912_v7, 0.0  ;;  %v3558_v61 = vadd.f32 %v7007_v8, %v3429_v5  ;;  %v4204_v56 = vadd.f32 %v7019_v31, %v4075_v34 }
 0x141   :  { %v5234_v55 = vadd.f32 %v5106_v39, %v4588_v40  ;;  %v713_v43 = vadd.f32 %v585_v53, %v6928_v9  ;;  %v2523_v1 = vmul.f32 %v6982_v45, %v2394_v20  ;;  %v4721_v29 = vmul.f32 %v7026_v41, %v64_v3 }
 0x142   :  { %v3169_v15 = vmul.f32 %v6995_v57, %v3040_v19  ;;  %v3686_v0 = vmax.f32 %v3558_v61, 0.0  ;;  %v4332_v36 = vmax.f32 %v4204_v56, 0.0  ;;  %v5367_v23 = vmul.f32 %v7040_v58, %v64_v3 }
 0x143   :  { %v5880_v59 = vadd.f32 %v5752_v49, %v5234_v55  ;;  %v1359_v18 = vadd.f32 %v1231_v46, %v713_v43  ;;  %v4850_v14 = vadd.f32 %v7032_v47, %v4721_v29  ;;  %v6013_v60 = vmul.f32 %v7054_v22, %v64_v3 }
 0x144   :  { %v3815_v39 = vmul.f32 %v7009_v16, %v3686_v0  ;;  %v4461_v44 = vmul.f32 %v7021_v35, %v4332_v36  ;;  %v5496_v48 = vadd.f32 %v7045_v63, %v5367_v23  ;;  %v200_v28 = vmul.f32 %v6918_v4, %v65_v11 }
 0x145   :  { %v6526_v26 = vadd.f32 %v6398_v2, %v5880_v59  ;;  %v2005_v27 = vadd.f32 %v1877_v52, %v1359_v18  ;;  %v4978_v7 = vmax.f32 %v4850_v14, 0.0  ;;  %v6142_v5 = vadd.f32 %v7059_v32, %v6013_v60 }
 0x146   :  { %v5624_v34 = vmax.f32 %v5496_v48, 0.0  ;;  %v329_v49 = vadd.f32 %v6922_v6, %v200_v28  ;;  %v846_v40 = vmul.f32 %v6937_v13, %v65_v11  ;;  %v1492_v3 = vmul.f32 %v6955_v25, %v65_v11 }
 0x147   :  { %6654 = vst [vmem:[#allocation7 + $0xb0] sm:$0xff] %v6526_v26  ;;  %v2651_v53 = vadd.f32 %v2523_v1, %v2005_v27  ;;  %v5107_v46 = vmul.f32 %v7035_v51, %v4978_v7  ;;  %v6270_v20 = vmax.f32 %v6142_v5, 0.0  ;;  %v2138_v19 = vmul.f32 %v6973_v38, %v65_v11 }
 0x148   :  { %v5753_v2 = vmul.f32 %v7048_v12, %v5624_v34  ;;  %v457_v52 = vmax.f32 %v329_v49, 0.0  ;;  %v975_v61 = vadd.f32 %v6945_v17, %v846_v40  ;;  %v1621_v56 = vadd.f32 %v6964_v30, %v1492_v3 }
 0x149   :  { %v3297_v55 = vadd.f32 %v3169_v15, %v2651_v53  ;;  %v6399_v43 = vmul.f32 %v7061_v37, %v6270_v20  ;;  %v2267_v29 = vadd.f32 %v6979_v42, %v2138_v19  ;;  %v2784_v0 = vmul.f32 %v6988_v50, %v65_v11  ;;  %v66_v20 = vld [vmem:[#allocation6 + $0xc8] sm:$0xff] }
 0x14a   :  { %v586_v1 = vmul.f32 %v6930_v10, %v457_v52  ;;  %v1103_v36 = vmax.f32 %v975_v61, 0.0  ;;  %v1749_v23 = vmax.f32 %v1621_v56, 0.0  ;;  %v3430_v59 = vmul.f32 %v7001_v62, %v65_v11 }
 0x14b   :  { %v3943_v18 = vadd.f32 %v3815_v39, %v3297_v55  ;;  %v2395_v14 = vmax.f32 %v2267_v29, 0.0  ;;  %v2913_v60 = vadd.f32 %v6993_v54, %v2784_v0  ;;  %v4076_v48 = vmul.f32 %v7013_v24, %v65_v11 }
 0x14c   :  { %v714_v15 = vadd.f32 %v586_v1, %v6928_v9  ;;  %v1232_v28 = vmul.f32 %v6951_v21, %v1103_v36  ;;  %v1878_v26 = vmul.f32 %v6967_v33, %v1749_v23  ;;  %v3559_v27 = vadd.f32 %v7007_v8, %v3430_v59 }
 0x14d   :  { %v4589_v7 = vadd.f32 %v4461_v44, %v3943_v18  ;;  %v2524_v5 = vmul.f32 %v6982_v45, %v2395_v14  ;;  %v3041_v34 = vmax.f32 %v2913_v60, 0.0  ;;  %v4205_v49 = vadd.f32 %v7019_v31, %v4076_v48 }
 0x14e   :  { %v1360_v39 = vadd.f32 %v1232_v28, %v714_v15  ;;  %v3687_v40 = vmax.f32 %v3559_v27, 0.0  ;;  %v4722_v3 = vmul.f32 %v7026_v41, %v65_v11  ;;  %v5368_v53 = vmul.f32 %v7040_v58, %v65_v11 }
 0x14f   :  { %v5235_v19 = vadd.f32 %v5107_v46, %v4589_v7  ;;  %v3170_v52 = vmul.f32 %v6995_v57, %v3041_v34  ;;  %v4333_v61 = vmax.f32 %v4205_v49, 0.0  ;;  %v6014_v56 = vmul.f32 %v7054_v22, %v65_v11 }
 0x150   :  { %v2006_v55 = vadd.f32 %v1878_v26, %v1360_v39  ;;  %v3816_v44 = vmul.f32 %v7009_v16, %v3687_v40  ;;  %v4851_v29 = vadd.f32 %v7032_v47, %v4722_v3  ;;  %v5497_v0 = vadd.f32 %v7045_v63, %v5368_v53 }
 0x151   :  { %v5881_v1 = vadd.f32 %v5753_v2, %v5235_v19  ;;  %v4462_v36 = vmul.f32 %v7021_v35, %v4333_v61  ;;  %v6143_v23 = vadd.f32 %v7059_v32, %v6014_v56  ;;  %v201_v59 = vmul.f32 %v6918_v4, %v66_v20 }
 0x152   :  { %v2652_v46 = vadd.f32 %v2524_v5, %v2006_v55  ;;  %v4979_v18 = vmax.f32 %v4851_v29, 0.0  ;;  %v5625_v14 = vmax.f32 %v5497_v0, 0.0  ;;  %v847_v60 = vmul.f32 %v6937_v13, %v66_v20 }
 0x153   :  { %v6527_v11 = vadd.f32 %v6399_v43, %v5881_v1  ;;  %v6271_v48 = vmax.f32 %v6143_v23, 0.0  ;;  %v330_v15 = vadd.f32 %v6922_v6, %v201_v59  ;;  %v1493_v28 = vmul.f32 %v6955_v25, %v66_v20 }
 0x154   :  { %v3298_v26 = vadd.f32 %v3170_v52, %v2652_v46  ;;  %v5108_v2 = vmul.f32 %v7035_v51, %v4979_v18  ;;  %v5754_v27 = vmul.f32 %v7048_v12, %v5625_v14  ;;  %v976_v7 = vadd.f32 %v6945_v17, %v847_v60 }
 0x155   :  { %6655 = vst [vmem:[#allocation7 + $0xb8] sm:$0xff] %v6527_v11  ;;  %v6400_v5 = vmul.f32 %v7061_v37, %v6271_v48  ;;  %v458_v34 = vmax.f32 %v330_v15, 0.0  ;;  %v1622_v49 = vadd.f32 %v6964_v30, %v1493_v28  ;;  %v2139_v43 = vmul.f32 %v6973_v38, %v66_v20 }
 0x156   :  { %v3944_v39 = vadd.f32 %v3816_v44, %v3298_v26  ;;  %v1104_v40 = vmax.f32 %v976_v7, 0.0  ;;  %v2785_v3 = vmul.f32 %v6988_v50, %v66_v20  ;;  %v3431_v53 = vmul.f32 %v7001_v62, %v66_v20  ;;  %v67_v26 = vld [vmem:[#allocation6 + $0xd0] sm:$0xff] }
 0x157   :  { %v587_v19 = vmul.f32 %v6930_v10, %v458_v34  ;;  %v1750_v52 = vmax.f32 %v1622_v49, 0.0  ;;  %v2268_v61 = vadd.f32 %v6979_v42, %v2139_v43  ;;  %v4077_v56 = vmul.f32 %v7013_v24, %v66_v20 }
 0x158   :  { %v4590_v55 = vadd.f32 %v4462_v36, %v3944_v39  ;;  %v1233_v29 = vmul.f32 %v6951_v21, %v1104_v40  ;;  %v2914_v0 = vadd.f32 %v6993_v54, %v2785_v3  ;;  %v3560_v1 = vadd.f32 %v7007_v8, %v3431_v53 }
 0x159   :  { %v715_v44 = vadd.f32 %v587_v19, %v6928_v9  ;;  %v1879_v23 = vmul.f32 %v6967_v33, %v1750_v52  ;;  %v2396_v59 = vmax.f32 %v2268_v61, 0.0  ;;  %v4206_v46 = vadd.f32 %v7019_v31, %v4077_v56 }
 0x15a   :  { %v5236_v18 = vadd.f32 %v5108_v2, %v4590_v55  ;;  %v3042_v14 = vmax.f32 %v2914_v0, 0.0  ;;  %v3688_v60 = vmax.f32 %v3560_v1, 0.0  ;;  %v4723_v11 = vmul.f32 %v7026_v41, %v66_v20 }
 0x15b   :  { %v1361_v48 = vadd.f32 %v1233_v29, %v715_v44  ;;  %v2525_v36 = vmul.f32 %v6982_v45, %v2396_v59  ;;  %v4334_v15 = vmax.f32 %v4206_v46, 0.0  ;;  %v5369_v28 = vmul.f32 %v7040_v58, %v66_v20 }
 0x15c   :  { %v5882_v7 = vadd.f32 %v5754_v27, %v5236_v18  ;;  %v3171_v34 = vmul.f32 %v6995_v57, %v3042_v14  ;;  %v3817_v49 = vmul.f32 %v7009_v16, %v3688_v60  ;;  %v4852_v43 = vadd.f32 %v7032_v47, %v4723_v11 }
 0x15d   :  { %v2007_v39 = vadd.f32 %v1879_v23, %v1361_v48  ;;  %v4463_v2 = vmul.f32 %v7021_v35, %v4334_v15  ;;  %v5498_v40 = vadd.f32 %v7045_v63, %v5369_v28  ;;  %v6015_v3 = vmul.f32 %v7054_v22, %v66_v20 }
 0x15e   :  { %v6528_v53 = vadd.f32 %v6400_v5, %v5882_v7  ;;  %v4980_v19 = vmax.f32 %v4852_v43, 0.0  ;;  %v202_v52 = vmul.f32 %v6918_v4, %v67_v26  ;;  %v848_v61 = vmul.f32 %v6937_v13, %v67_v26 }
 0x15f   :  { %v2653_v27 = vadd.f32 %v2525_v36, %v2007_v39  ;;  %v5626_v56 = vmax.f32 %v5498_v40, 0.0  ;;  %v6144_v55 = vadd.f32 %v7059_v32, %v6015_v3  ;;  %v1494_v29 = vmul.f32 %v6955_v25, %v67_v26 }
 0x160   :  { %6656 = vst [vmem:[#allocation7 + $0xc0] sm:$0xff] %v6528_v53  ;;  %v5109_v0 = vmul.f32 %v7035_v51, %v4980_v19  ;;  %v331_v1 = vadd.f32 %v6922_v6, %v202_v52  ;;  %v977_v44 = vadd.f32 %v6945_v17, %v848_v61  ;;  %v2140_v20 = vmul.f32 %v6973_v38, %v67_v26 }
 0x161   :  { %v3299_v5 = vadd.f32 %v3171_v34, %v2653_v27  ;;  %v5755_v23 = vmul.f32 %v7048_v12, %v5626_v56  ;;  %v6272_v59 = vmax.f32 %v6144_v55, 0.0  ;;  %v1623_v46 = vadd.f32 %v6964_v30, %v1494_v29 }
 0x162   :  { %v459_v18 = vmax.f32 %v331_v1, 0.0  ;;  %v1105_v14 = vmax.f32 %v977_v44, 0.0  ;;  %v2269_v60 = vadd.f32 %v6979_v42, %v2140_v20  ;;  %v2786_v11 = vmul.f32 %v6988_v50, %v67_v26 }
 0x163   :  { %v3945_v48 = vadd.f32 %v3817_v49, %v3299_v5  ;;  %v6401_v36 = vmul.f32 %v7061_v37, %v6272_v59  ;;  %v1751_v15 = vmax.f32 %v1623_v46, 0.0  ;;  %v3432_v28 = vmul.f32 %v7001_v62, %v67_v26 }
 0x164   :  { %v588_v7 = vmul.f32 %v6930_v10, %v459_v18  ;;  %v1234_v34 = vmul.f32 %v6951_v21, %v1105_v14  ;;  %v2397_v43 = vmax.f32 %v2269_v60, 0.0  ;;  %v2915_v39 = vadd.f32 %v6993_v54, %v2786_v11 }
 0x165   :  { %v4591_v40 = vadd.f32 %v4463_v2, %v3945_v48  ;;  %v1880_v3 = vmul.f32 %v6967_v33, %v1751_v15  ;;  %v3561_v53 = vadd.f32 %v7007_v8, %v3432_v28  ;;  %v4078_v19 = vmul.f32 %v7013_v24, %v67_v26  ;;  %v68_v2 = vld [vmem:[#allocation6 + $0xd8] sm:$0xff] }
 0x166   :  { %v716_v49 = vadd.f32 %v588_v7, %v6928_v9  ;;  %v2526_v52 = vmul.f32 %v6982_v45, %v2397_v43  ;;  %v3043_v61 = vmax.f32 %v2915_v39, 0.0  ;;  %v4724_v27 = vmul.f32 %v7026_v41, %v67_v26 }
 0x167   :  { %v5237_v56 = vadd.f32 %v5109_v0, %v4591_v40  ;;  %v3689_v55 = vmax.f32 %v3561_v53, 0.0  ;;  %v4207_v29 = vadd.f32 %v7019_v31, %v4078_v19  ;;  %v5370_v1 = vmul.f32 %v7040_v58, %v67_v26 }
 0x168   :  { %v1362_v44 = vadd.f32 %v1234_v34, %v716_v49  ;;  %v3172_v20 = vmul.f32 %v6995_v57, %v3043_v61  ;;  %v4853_v5 = vadd.f32 %v7032_v47, %v4724_v27  ;;  %v6016_v59 = vmul.f32 %v7054_v22, %v67_v26 }
 0x169   :  { %v5883_v46 = vadd.f32 %v5755_v23, %v5237_v56  ;;  %v3818_v18 = vmul.f32 %v7009_v16, %v3689_v55  ;;  %v4335_v14 = vmax.f32 %v4207_v29, 0.0  ;;  %v5499_v60 = vadd.f32 %v7045_v63, %v5370_v1 }
 0x16a   :  { %v2008_v0 = vadd.f32 %v1880_v3, %v1362_v44  ;;  %v4981_v11 = vmax.f32 %v4853_v5, 0.0  ;;  %v6145_v48 = vadd.f32 %v7059_v32, %v6016_v59  ;;  %v203_v15 = vmul.f32 %v6918_v4, %v68_v2 }
 0x16b   :  { %v6529_v28 = vadd.f32 %v6401_v36, %v5883_v46  ;;  %v4464_v7 = vmul.f32 %v7021_v35, %v4335_v14  ;;  %v5627_v34 = vmax.f32 %v5499_v60, 0.0  ;;  %v849_v43 = vmul.f32 %v6937_v13, %v68_v2 }
 0x16c   :  { %v2654_v39 = vadd.f32 %v2526_v52, %v2008_v0  ;;  %v5110_v26 = vmul.f32 %v7035_v51, %v4981_v11  ;;  %v6273_v23 = vmax.f32 %v6145_v48, 0.0  ;;  %v332_v40 = vadd.f32 %v6922_v6, %v203_v15 }
 0x16d   :  { %6657 = vst [vmem:[#allocation7 + $0xc8] sm:$0xff] %v6529_v28  ;;  %v5756_v3 = vmul.f32 %v7048_v12, %v5627_v34  ;;  %v978_v53 = vadd.f32 %v6945_v17, %v849_v43  ;;  %v1495_v19 = vmul.f32 %v6955_v25, %v68_v2  ;;  %v2141_v36 = vmul.f32 %v6973_v38, %v68_v2 }
 0x16e   :  { %v3300_v49 = vadd.f32 %v3172_v20, %v2654_v39  ;;  %v6402_v61 = vmul.f32 %v7061_v37, %v6273_v23  ;;  %v460_v27 = vmax.f32 %v332_v40, 0.0  ;;  %v2787_v52 = vmul.f32 %v6988_v50, %v68_v2  ;;  %v69_v23 = vld [vmem:[#allocation6 + $0xe0] sm:$0xff] }
 0x16f   :  { %v1106_v56 = vmax.f32 %v978_v53, 0.0  ;;  %v1624_v55 = vadd.f32 %v6964_v30, %v1495_v19  ;;  %v2270_v29 = vadd.f32 %v6979_v42, %v2141_v36  ;;  %v3433_v1 = vmul.f32 %v7001_v62, %v68_v2 }
 0x170   :  { %v3946_v44 = vadd.f32 %v3818_v18, %v3300_v49  ;;  %v589_v5 = vmul.f32 %v6930_v10, %v460_v27  ;;  %v2916_v59 = vadd.f32 %v6993_v54, %v2787_v52  ;;  %v4079_v46 = vmul.f32 %v7013_v24, %v68_v2 }
 0x171   :  { %v1235_v20 = vmul.f32 %v6951_v21, %v1106_v56  ;;  %v1752_v14 = vmax.f32 %v1624_v55, 0.0  ;;  %v2398_v60 = vmax.f32 %v2270_v29, 0.0  ;;  %v3562_v0 = vadd.f32 %v7007_v8, %v3433_v1 }
 0x172   :  { %v4592_v11 = vadd.f32 %v4464_v7, %v3946_v44  ;;  %v717_v48 = vadd.f32 %v589_v5, %v6928_v9  ;;  %v3044_v15 = vmax.f32 %v2916_v59, 0.0  ;;  %v4208_v28 = vadd.f32 %v7019_v31, %v4079_v46 }
 0x173   :  { %v1881_v18 = vmul.f32 %v6967_v33, %v1752_v14  ;;  %v2527_v34 = vmul.f32 %v6982_v45, %v2398_v60  ;;  %v3690_v43 = vmax.f32 %v3562_v0, 0.0  ;;  %v4725_v39 = vmul.f32 %v7026_v41, %v68_v2 }
 0x174   :  { %v5238_v40 = vadd.f32 %v5110_v26, %v4592_v11  ;;  %v1363_v53 = vadd.f32 %v1235_v20, %v717_v48  ;;  %v3173_v19 = vmul.f32 %v6995_v57, %v3044_v15  ;;  %v4336_v36 = vmax.f32 %v4208_v28, 0.0 }
 0x175   :  { %v3819_v7 = vmul.f32 %v7009_v16, %v3690_v43  ;;  %v4854_v49 = vadd.f32 %v7032_v47, %v4725_v39  ;;  %v5371_v27 = vmul.f32 %v7040_v58, %v68_v2  ;;  %v6017_v52 = vmul.f32 %v7054_v22, %v68_v2 }
 0x176   :  { %v5884_v56 = vadd.f32 %v5756_v3, %v5238_v40  ;;  %v2009_v55 = vadd.f32 %v1881_v18, %v1363_v53  ;;  %v4465_v29 = vmul.f32 %v7021_v35, %v4336_v36  ;;  %v204_v1 = vmul.f32 %v6918_v4, %v69_v23 }
 0x177   :  { %v4982_v44 = vmax.f32 %v4854_v49, 0.0  ;;  %v5500_v26 = vadd.f32 %v7045_v63, %v5371_v27  ;;  %v6146_v5 = vadd.f32 %v7059_v32, %v6017_v52  ;;  %v850_v59 = vmul.f32 %v6937_v13, %v69_v23 }
 0x178   :  { %v6530_v46 = vadd.f32 %v6402_v61, %v5884_v56  ;;  %v2655_v20 = vadd.f32 %v2527_v34, %v2009_v55  ;;  %v333_v14 = vadd.f32 %v6922_v6, %v204_v1  ;;  %v1496_v60 = vmul.f32 %v6955_v25, %v69_v23 }
 0x179   :  { %v5111_v2 = vmul.f32 %v7035_v51, %v4982_v44  ;;  %v5628_v3 = vmax.f32 %v5500_v26, 0.0  ;;  %v6274_v0 = vmax.f32 %v6146_v5, 0.0  ;;  %v979_v11 = vadd.f32 %v6945_v17, %v850_v59 }
 0x17a   :  { %6658 = vst [vmem:[#allocation7 + $0xd0] sm:$0xff] %v6530_v46  ;;  %v3301_v48 = vadd.f32 %v3173_v19, %v2655_v20  ;;  %v461_v15 = vmax.f32 %v333_v14, 0.0  ;;  %v1625_v28 = vadd.f32 %v6964_v30, %v1496_v60  ;;  %v2142_v18 = vmul.f32 %v6973_v38, %v69_v23 }
 0x17b   :  { %v5757_v61 = vmul.f32 %v7048_v12, %v5628_v3  ;;  %v6403_v34 = vmul.f32 %v7061_v37, %v6274_v0  ;;  %v1107_v43 = vmax.f32 %v979_v11, 0.0  ;;  %v2788_v39 = vmul.f32 %v6988_v50, %v69_v23  ;;  %v70_v0 = vld [vmem:[#allocation6 + $0xe8] sm:$0xff] }
 0x17c   :  { %v3947_v40 = vadd.f32 %v3819_v7, %v3301_v48  ;;  %v590_v53 = vmul.f32 %v6930_v10, %v461_v15  ;;  %v1753_v36 = vmax.f32 %v1625_v28, 0.0  ;;  %v2271_v49 = vadd.f32 %v6979_v42, %v2142_v18 }
 0x17d   :  { %v1236_v19 = vmul.f32 %v6951_v21, %v1107_v43  ;;  %v2917_v27 = vadd.f32 %v6993_v54, %v2788_v39  ;;  %v3434_v52 = vmul.f32 %v7001_v62, %v69_v23  ;;  %v4080_v56 = vmul.f32 %v7013_v24, %v69_v23 }
 0x17e   :  { %v4593_v55 = vadd.f32 %v4465_v29, %v3947_v40  ;;  %v718_v1 = vadd.f32 %v590_v53, %v6928_v9  ;;  %v1882_v44 = vmul.f32 %v6967_v33, %v1753_v36  ;;  %v2399_v26 = vmax.f32 %v2271_v49, 0.0 }
 0x17f   :  { %v3045_v7 = vmax.f32 %v2917_v27, 0.0  ;;  %v3563_v5 = vadd.f32 %v7007_v8, %v3434_v52  ;;  %v4209_v59 = vadd.f32 %v7019_v31, %v4080_v56  ;;  %v4726_v46 = vmul.f32 %v7026_v41, %v69_v23 }
 0x180   :  { %v5239_v20 = vadd.f32 %v5111_v2, %v4593_v55  ;;  %v1364_v14 = vadd.f32 %v1236_v19, %v718_v1  ;;  %v2528_v60 = vmul.f32 %v6982_v45, %v2399_v26  ;;  %v5372_v3 = vmul.f32 %v7040_v58, %v69_v23 }
 0x181   :  { %v3174_v29 = vmul.f32 %v6995_v57, %v3045_v7  ;;  %v3691_v11 = vmax.f32 %v3563_v5, 0.0  ;;  %v4337_v48 = vmax.f32 %v4209_v59, 0.0  ;;  %v4855_v15 = vadd.f32 %v7032_v47, %v4726_v46 }
 0x182   :  { %v5885_v28 = vadd.f32 %v5757_v61, %v5239_v20  ;;  %v2010_v18 = vadd.f32 %v1882_v44, %v1364_v14  ;;  %v5501_v43 = vadd.f32 %v7045_v63, %v5372_v3  ;;  %v6018_v39 = vmul.f32 %v7054_v22, %v69_v23 }
 0x183   :  { %v3820_v2 = vmul.f32 %v7009_v16, %v3691_v11  ;;  %v4466_v40 = vmul.f32 %v7021_v35, %v4337_v48  ;;  %v4983_v53 = vmax.f32 %v4855_v15, 0.0  ;;  %v205_v36 = vmul.f32 %v6918_v4, %v70_v0 }
 0x184   :  { %v6531_v49 = vadd.f32 %v6403_v34, %v5885_v28  ;;  %v2656_v19 = vadd.f32 %v2528_v60, %v2010_v18  ;;  %v5629_v27 = vmax.f32 %v5501_v43, 0.0  ;;  %v6147_v52 = vadd.f32 %v7059_v32, %v6018_v39 }
 0x185   :  { %v5112_v56 = vmul.f32 %v7035_v51, %v4983_v53  ;;  %v334_v61 = vadd.f32 %v6922_v6, %v205_v36  ;;  %v851_v55 = vmul.f32 %v6937_v13, %v70_v0  ;;  %v1497_v23 = vmul.f32 %v6955_v25, %v70_v0 }
 0x186   :  { %6659 = vst [vmem:[#allocation7 + $0xd8] sm:$0xff] %v6531_v49  ;;  %v3302_v1 = vadd.f32 %v3174_v29, %v2656_v19  ;;  %v5758_v44 = vmul.f32 %v7048_v12, %v5629_v27  ;;  %v6275_v26 = vmax.f32 %v6147_v52, 0.0  ;;  %v2143_v7 = vmul.f32 %v6973_v38, %v70_v0 }
 0x187   :  { %v462_v34 = vmax.f32 %v334_v61, 0.0  ;;  %v980_v5 = vadd.f32 %v6945_v17, %v851_v55  ;;  %v1626_v59 = vadd.f32 %v6964_v30, %v1497_v23  ;;  %v2789_v46 = vmul.f32 %v6988_v50, %v70_v0  ;;  %v71_v55 = vld [vmem:[#allocation6 + $0xf0] sm:$0xff] }
 0x188   :  { %v3948_v20 = vadd.f32 %v3820_v2, %v3302_v1  ;;  %v6404_v14 = vmul.f32 %v7061_v37, %v6275_v26  ;;  %v2272_v60 = vadd.f32 %v6979_v42, %v2143_v7  ;;  %v3435_v3 = vmul.f32 %v7001_v62, %v70_v0 }
 0x189   :  { %v591_v29 = vmul.f32 %v6930_v10, %v462_v34  ;;  %v1108_v11 = vmax.f32 %v980_v5, 0.0  ;;  %v1754_v48 = vmax.f32 %v1626_v59, 0.0  ;;  %v2918_v15 = vadd.f32 %v6993_v54, %v2789_v46 }
 0x18a   :  { %v4594_v28 = vadd.f32 %v4466_v40, %v3948_v20  ;;  %v2400_v18 = vmax.f32 %v2272_v60, 0.0  ;;  %v3564_v43 = vadd.f32 %v7007_v8, %v3435_v3  ;;  %v4081_v39 = vmul.f32 %v7013_v24, %v70_v0 }
 0x18b   :  { %v719_v2 = vadd.f32 %v591_v29, %v6928_v9  ;;  %v1237_v53 = vmul.f32 %v6951_v21, %v1108_v11  ;;  %v1883_v36 = vmul.f32 %v6967_v33, %v1754_v48  ;;  %v3046_v49 = vmax.f32 %v2918_v15, 0.0 }
 0x18c   :  { %v5240_v19 = vadd.f32 %v5112_v56, %v4594_v28  ;;  %v2529_v27 = vmul.f32 %v6982_v45, %v2400_v18  ;;  %v3692_v52 = vmax.f32 %v3564_v43, 0.0  ;;  %v4210_v61 = vadd.f32 %v7019_v31, %v4081_v39 }
 0x18d   :  { %v1365_v40 = vadd.f32 %v1237_v53, %v719_v2  ;;  %v3175_v23 = vmul.f32 %v6995_v57, %v3046_v49  ;;  %v4727_v1 = vmul.f32 %v7026_v41, %v70_v0  ;;  %v5373_v26 = vmul.f32 %v7040_v58, %v70_v0 }
 0x18e   :  { %v5886_v7 = vadd.f32 %v5758_v44, %v5240_v19  ;;  %v3821_v34 = vmul.f32 %v7009_v16, %v3692_v52  ;;  %v4338_v5 = vmax.f32 %v4210_v61, 0.0  ;;  %v6019_v59 = vmul.f32 %v7054_v22, %v70_v0 }
 0x18f   :  { %v2011_v56 = vadd.f32 %v1883_v36, %v1365_v40  ;;  %v4856_v46 = vadd.f32 %v7032_v47, %v4727_v1  ;;  %v5502_v20 = vadd.f32 %v7045_v63, %v5373_v26  ;;  %v206_v60 = vmul.f32 %v6918_v4, %v71_v55 }
 0x190   :  { %v6532_v3 = vadd.f32 %v6404_v14, %v5886_v7  ;;  %v4467_v29 = vmul.f32 %v7021_v35, %v4338_v5  ;;  %v6148_v11 = vadd.f32 %v7059_v32, %v6019_v59  ;;  %v852_v48 = vmul.f32 %v6937_v13, %v71_v55 }
 0x191   :  { %v2657_v44 = vadd.f32 %v2529_v27, %v2011_v56  ;;  %v4984_v15 = vmax.f32 %v4856_v46, 0.0  ;;  %v5630_v28 = vmax.f32 %v5502_v20, 0.0  ;;  %v335_v18 = vadd.f32 %v6922_v6, %v206_v60 }
 0x192   :  { %6660 = vst [vmem:[#allocation7 + $0xe0] sm:$0xff] %v6532_v3  ;;  %v6276_v0 = vmax.f32 %v6148_v11, 0.0  ;;  %v981_v43 = vadd.f32 %v6945_v17, %v852_v48  ;;  %v1498_v39 = vmul.f32 %v6955_v25, %v71_v55  ;;  %v2144_v2 = vmul.f32 %v6973_v38, %v71_v55 }
 0x193   :  { %v3303_v14 = vadd.f32 %v3175_v23, %v2657_v44  ;;  %v5113_v53 = vmul.f32 %v7035_v51, %v4984_v15  ;;  %v5759_v36 = vmul.f32 %v7048_v12, %v5630_v28  ;;  %v463_v49 = vmax.f32 %v335_v18, 0.0 }
 0x194   :  { %v6405_v19 = vmul.f32 %v7061_v37, %v6276_v0  ;;  %v1109_v27 = vmax.f32 %v981_v43, 0.0  ;;  %v1627_v52 = vadd.f32 %v6964_v30, %v1498_v39  ;;  %v2273_v61 = vadd.f32 %v6979_v42, %v2144_v2 }
 0x195   :  { %v3949_v40 = vadd.f32 %v3821_v34, %v3303_v14  ;;  %v592_v1 = vmul.f32 %v6930_v10, %v463_v49  ;;  %v2790_v26 = vmul.f32 %v6988_v50, %v71_v55  ;;  %v3436_v7 = vmul.f32 %v7001_v62, %v71_v55  ;;  %v72_v14 = vld [vmem:[#allocation6 + $0xf8] sm:$0xff] }
 0x196   :  { %v1238_v23 = vmul.f32 %v6951_v21, %v1109_v27  ;;  %v1755_v5 = vmax.f32 %v1627_v52, 0.0  ;;  %v2401_v59 = vmax.f32 %v2273_v61, 0.0  ;;  %v4082_v56 = vmul.f32 %v7013_v24, %v71_v55 }
 0x197   :  { %v4595_v46 = vadd.f32 %v4467_v29, %v3949_v40  ;;  %v720_v20 = vadd.f32 %v592_v1, %v6928_v9  ;;  %v2919_v60 = vadd.f32 %v6993_v54, %v2790_v26  ;;  %v3565_v3 = vadd.f32 %v7007_v8, %v3436_v7 }
 0x198   :  { %v1884_v34 = vmul.f32 %v6967_v33, %v1755_v5  ;;  %v2530_v11 = vmul.f32 %v6982_v45, %v2401_v59  ;;  %v4211_v48 = vadd.f32 %v7019_v31, %v4082_v56  ;;  %v4728_v44 = vmul.f32 %v7026_v41, %v71_v55 }
 0x199   :  { %v5241_v15 = vadd.f32 %v5113_v53, %v4595_v46  ;;  %v1366_v28 = vadd.f32 %v1238_v23, %v720_v20  ;;  %v3047_v18 = vmax.f32 %v2919_v60, 0.0  ;;  %v3693_v0 = vmax.f32 %v3565_v3, 0.0 }
 0x19a   :  { %v4339_v43 = vmax.f32 %v4211_v48, 0.0  ;;  %v4857_v29 = vadd.f32 %v7032_v47, %v4728_v44  ;;  %v5374_v39 = vmul.f32 %v7040_v58, %v71_v55  ;;  %v6020_v2 = vmul.f32 %v7054_v22, %v71_v55 }
 0x19b   :  { %v5887_v49 = vadd.f32 %v5759_v36, %v5241_v15  ;;  %v2012_v27 = vadd.f32 %v1884_v34, %v1366_v28  ;;  %v3176_v52 = vmul.f32 %v6995_v57, %v3047_v18  ;;  %v3822_v61 = vmul.f32 %v7009_v16, %v3693_v0 }
 0x19c   :  { %v4468_v40 = vmul.f32 %v7021_v35, %v4339_v43  ;;  %v4985_v53 = vmax.f32 %v4857_v29, 0.0  ;;  %v5503_v1 = vadd.f32 %v7045_v63, %v5374_v39  ;;  %v6149_v26 = vadd.f32 %v7059_v32, %v6020_v2 }
 0x19d   :  { %v6533_v7 = vadd.f32 %v6405_v19, %v5887_v49  ;;  %v2658_v23 = vadd.f32 %v2530_v11, %v2012_v27  ;;  %v207_v5 = vmul.f32 %v6918_v4, %v72_v14  ;;  %v853_v55 = vmul.f32 %v6937_v13, %v72_v14 }
 0x19e   :  { %v5114_v36 = vmul.f32 %v7035_v51, %v4985_v53  ;;  %v5631_v59 = vmax.f32 %v5503_v1, 0.0  ;;  %v6277_v56 = vmax.f32 %v6149_v26, 0.0  ;;  %v1499_v46 = vmul.f32 %v6955_v25, %v72_v14 }
 0x19f   :  { %6661 = vst [vmem:[#allocation7 + $0xe8] sm:$0xff] %v6533_v7  ;;  %v3304_v20 = vadd.f32 %v3176_v52, %v2658_v23  ;;  %v336_v60 = vadd.f32 %v6922_v6, %v207_v5  ;;  %v982_v3 = vadd.f32 %v6945_v17, %v853_v55  ;;  %v2145_v34 = vmul.f32 %v6973_v38, %v72_v14 }
 0x1a0   :  { %v5760_v19 = vmul.f32 %v7048_v12, %v5631_v59  ;;  %v6406_v11 = vmul.f32 %v7061_v37, %v6277_v56  ;;  %v1628_v48 = vadd.f32 %v6964_v30, %v1499_v46  ;;  %v2791_v44 = vmul.f32 %v6988_v50, %v72_v14 }
 0x1a1   :  { %v3950_v15 = vadd.f32 %v3822_v61, %v3304_v20  ;;  %v464_v28 = vmax.f32 %v336_v60, 0.0  ;;  %v1110_v18 = vmax.f32 %v982_v3, 0.0  ;;  %v2274_v0 = vadd.f32 %v6979_v42, %v2145_v34 }
 0x1a2   :  { %v1756_v43 = vmax.f32 %v1628_v48, 0.0  ;;  %v2920_v29 = vadd.f32 %v6993_v54, %v2791_v44  ;;  %v3437_v39 = vmul.f32 %v7001_v62, %v72_v14  ;;  %v4083_v2 = vmul.f32 %v7013_v24, %v72_v14 }
 0x1a3   :  { %v4596_v49 = vadd.f32 %v4468_v40, %v3950_v15  ;;  %v593_v27 = vmul.f32 %v6930_v10, %v464_v28  ;;  %v1239_v52 = vmul.f32 %v6951_v21, %v1110_v18  ;;  %v2402_v53 = vmax.f32 %v2274_v0, 0.0  ;;  %v73_v40 = vld [vmem:[#allocation6 + $0x100] sm:$0xff] }
 0x1a4   :  { %v1885_v1 = vmul.f32 %v6967_v33, %v1756_v43  ;;  %v3048_v61 = vmax.f32 %v2920_v29, 0.0  ;;  %v3566_v26 = vadd.f32 %v7007_v8, %v3437_v39  ;;  %v4212_v7 = vadd.f32 %v7019_v31, %v4083_v2 }
 0x1a5   :  { %v5242_v23 = vadd.f32 %v5114_v36, %v4596_v49  ;;  %v721_v5 = vadd.f32 %v593_v27, %v6928_v9  ;;  %v2531_v55 = vmul.f32 %v6982_v45, %v2402_v53  ;;  %v4729_v59 = vmul.f32 %v7026_v41, %v72_v14 }
 0x1a6   :  { %v3177_v56 = vmul.f32 %v6995_v57, %v3048_v61  ;;  %v3694_v46 = vmax.f32 %v3566_v26, 0.0  ;;  %v4340_v20 = vmax.f32 %v4212_v7, 0.0  ;;  %v5375_v60 = vmul.f32 %v7040_v58, %v72_v14 }
 0x1a7   :  { %v5888_v3 = vadd.f32 %v5760_v19, %v5242_v23  ;;  %v1367_v34 = vadd.f32 %v1239_v52, %v721_v5  ;;  %v4858_v48 = vadd.f32 %v7032_v47, %v4729_v59  ;;  %v6021_v44 = vmul.f32 %v7054_v22, %v72_v14 }
 0x1a8   :  { %v3823_v36 = vmul.f32 %v7009_v16, %v3694_v46  ;;  %v4469_v15 = vmul.f32 %v7021_v35, %v4340_v20  ;;  %v5504_v28 = vadd.f32 %v7045_v63, %v5375_v60  ;;  %v208_v18 = vmul.f32 %v6918_v4, %v73_v40 }
 0x1a9   :  { %v6534_v0 = vadd.f32 %v6406_v11, %v5888_v3  ;;  %v2013_v43 = vadd.f32 %v1885_v1, %v1367_v34  ;;  %v4986_v29 = vmax.f32 %v4858_v48, 0.0  ;;  %v6150_v39 = vadd.f32 %v7059_v32, %v6021_v44 }
 0x1aa   :  { %v5632_v2 = vmax.f32 %v5504_v28, 0.0  ;;  %v337_v19 = vadd.f32 %v6922_v6, %v208_v18  ;;  %v854_v49 = vmul.f32 %v6937_v13, %v73_v40  ;;  %v1500_v14 = vmul.f32 %v6955_v25, %v73_v40 }
 0x1ab   :  { %6662 = vst [vmem:[#allocation7 + $0xf0] sm:$0xff] %v6534_v0  ;;  %v2659_v27 = vadd.f32 %v2531_v55, %v2013_v43  ;;  %v5115_v52 = vmul.f32 %v7035_v51, %v4986_v29  ;;  %v6278_v53 = vmax.f32 %v6150_v39, 0.0  ;;  %v2146_v61 = vmul.f32 %v6973_v38, %v73_v40 }
 0x1ac   :  { %v5761_v11 = vmul.f32 %v7048_v12, %v5632_v2  ;;  %v465_v1 = vmax.f32 %v337_v19, 0.0  ;;  %v983_v26 = vadd.f32 %v6945_v17, %v854_v49  ;;  %v1629_v7 = vadd.f32 %v6964_v30, %v1500_v14 }
 0x1ad   :  { %v3305_v23 = vadd.f32 %v3177_v56, %v2659_v27  ;;  %v6407_v5 = vmul.f32 %v7061_v37, %v6278_v53  ;;  %v2275_v59 = vadd.f32 %v6979_v42, %v2146_v61  ;;  %v2792_v46 = vmul.f32 %v6988_v50, %v73_v40  ;;  %v74_v53 = vld [vmem:[#allocation6 + $0x108] sm:$0xff] }
 0x1ae   :  { %v594_v55 = vmul.f32 %v6930_v10, %v465_v1  ;;  %v1111_v20 = vmax.f32 %v983_v26, 0.0  ;;  %v1757_v60 = vmax.f32 %v1629_v7, 0.0  ;;  %v3438_v3 = vmul.f32 %v7001_v62, %v73_v40 }
 0x1af   :  { %v3951_v34 = vadd.f32 %v3823_v36, %v3305_v23  ;;  %v2403_v48 = vmax.f32 %v2275_v59, 0.0  ;;  %v2921_v44 = vadd.f32 %v6993_v54, %v2792_v46  ;;  %v4084_v28 = vmul.f32 %v7013_v24, %v73_v40 }
 0x1b0   :  { %v722_v56 = vadd.f32 %v594_v55, %v6928_v9  ;;  %v1240_v18 = vmul.f32 %v6951_v21, %v1111_v20  ;;  %v1886_v0 = vmul.f32 %v6967_v33, %v1757_v60  ;;  %v3567_v43 = vadd.f32 %v7007_v8, %v3438_v3 }
 0x1b1   :  { %v4597_v29 = vadd.f32 %v4469_v15, %v3951_v34  ;;  %v2532_v39 = vmul.f32 %v6982_v45, %v2403_v48  ;;  %v3049_v2 = vmax.f32 %v2921_v44, 0.0  ;;  %v4213_v19 = vadd.f32 %v7019_v31, %v4084_v28 }
 0x1b2   :  { %v1368_v36 = vadd.f32 %v1240_v18, %v722_v56  ;;  %v3695_v49 = vmax.f32 %v3567_v43, 0.0  ;;  %v4730_v14 = vmul.f32 %v7026_v41, %v73_v40  ;;  %v5376_v27 = vmul.f32 %v7040_v58, %v73_v40 }
 0x1b3   :  { %v5243_v61 = vadd.f32 %v5115_v52, %v4597_v29  ;;  %v3178_v1 = vmul.f32 %v6995_v57, %v3049_v2  ;;  %v4341_v26 = vmax.f32 %v4213_v19, 0.0  ;;  %v6022_v7 = vmul.f32 %v7054_v22, %v73_v40 }
 0x1b4   :  { %v2014_v23 = vadd.f32 %v1886_v0, %v1368_v36  ;;  %v3824_v15 = vmul.f32 %v7009_v16, %v3695_v49  ;;  %v4859_v59 = vadd.f32 %v7032_v47, %v4730_v14  ;;  %v5505_v46 = vadd.f32 %v7045_v63, %v5376_v27 }
 0x1b5   :  { %v5889_v55 = vadd.f32 %v5761_v11, %v5243_v61  ;;  %v4470_v20 = vmul.f32 %v7021_v35, %v4341_v26  ;;  %v6151_v60 = vadd.f32 %v7059_v32, %v6022_v7  ;;  %v209_v3 = vmul.f32 %v6918_v4, %v74_v53 }
 0x1b6   :  { %v2660_v52 = vadd.f32 %v2532_v39, %v2014_v23  ;;  %v4987_v34 = vmax.f32 %v4859_v59, 0.0  ;;  %v5633_v48 = vmax.f32 %v5505_v46, 0.0  ;;  %v855_v44 = vmul.f32 %v6937_v13, %v74_v53 }
 0x1b7   :  { %v6535_v40 = vadd.f32 %v6407_v5, %v5889_v55  ;;  %v6279_v28 = vmax.f32 %v6151_v60, 0.0  ;;  %v338_v56 = vadd.f32 %v6922_v6, %v209_v3  ;;  %v1501_v18 = vmul.f32 %v6955_v25, %v74_v53 }
 0x1b8   :  { %v3306_v0 = vadd.f32 %v3178_v1, %v2660_v52  ;;  %v5116_v11 = vmul.f32 %v7035_v51, %v4987_v34  ;;  %v5762_v43 = vmul.f32 %v7048_v12, %v5633_v48  ;;  %v984_v29 = vadd.f32 %v6945_v17, %v855_v44 }
 0x1b9   :  { %6663 = vst [vmem:[#allocation7 + $0xf8] sm:$0xff] %v6535_v40  ;;  %v6408_v39 = vmul.f32 %v7061_v37, %v6279_v28  ;;  %v466_v2 = vmax.f32 %v338_v56, 0.0  ;;  %v1630_v19 = vadd.f32 %v6964_v30, %v1501_v18  ;;  %v2147_v5 = vmul.f32 %v6973_v38, %v74_v53 }
 0x1ba   :  { %v3952_v36 = vadd.f32 %v3824_v15, %v3306_v0  ;;  %v1112_v49 = vmax.f32 %v984_v29, 0.0  ;;  %v2793_v14 = vmul.f32 %v6988_v50, %v74_v53  ;;  %v3439_v27 = vmul.f32 %v7001_v62, %v74_v53  ;;  %v75_v0 = vld [vmem:[#allocation6 + $0x110] sm:$0xff] }
 0x1bb   :  { %v595_v61 = vmul.f32 %v6930_v10, %v466_v2  ;;  %v1758_v1 = vmax.f32 %v1630_v19, 0.0  ;;  %v2276_v26 = vadd.f32 %v6979_v42, %v2147_v5  ;;  %v4085_v7 = vmul.f32 %v7013_v24, %v74_v53 }
 0x1bc   :  { %v4598_v23 = vadd.f32 %v4470_v20, %v3952_v36  ;;  %v1241_v59 = vmul.f32 %v6951_v21, %v1112_v49  ;;  %v2922_v46 = vadd.f32 %v6993_v54, %v2793_v14  ;;  %v3568_v55 = vadd.f32 %v7007_v8, %v3439_v27 }
 0x1bd   :  { %v723_v15 = vadd.f32 %v595_v61, %v6928_v9  ;;  %v1887_v60 = vmul.f32 %v6967_v33, %v1758_v1  ;;  %v2404_v3 = vmax.f32 %v2276_v26, 0.0  ;;  %v4214_v52 = vadd.f32 %v7019_v31, %v4085_v7 }
 0x1be   :  { %v5244_v34 = vadd.f32 %v5116_v11, %v4598_v23  ;;  %v3050_v48 = vmax.f32 %v2922_v46, 0.0  ;;  %v3696_v44 = vmax.f32 %v3568_v55, 0.0  ;;  %v4731_v40 = vmul.f32 %v7026_v41, %v74_v53 }
 0x1bf   :  { %v1369_v28 = vadd.f32 %v1241_v59, %v723_v15  ;;  %v2533_v20 = vmul.f32 %v6982_v45, %v2404_v3  ;;  %v4342_v56 = vmax.f32 %v4214_v52, 0.0  ;;  %v5377_v18 = vmul.f32 %v7040_v58, %v74_v53 }
 0x1c0   :  { %v5890_v29 = vadd.f32 %v5762_v43, %v5244_v34  ;;  %v3179_v2 = vmul.f32 %v6995_v57, %v3050_v48  ;;  %v3825_v19 = vmul.f32 %v7009_v16, %v3696_v44  ;;  %v4860_v5 = vadd.f32 %v7032_v47, %v4731_v40 }
 0x1c1   :  { %v2015_v36 = vadd.f32 %v1887_v60, %v1369_v28  ;;  %v4471_v11 = vmul.f32 %v7021_v35, %v4342_v56  ;;  %v5506_v49 = vadd.f32 %v7045_v63, %v5377_v18  ;;  %v6023_v14 = vmul.f32 %v7054_v22, %v74_v53 }
 0x1c2   :  { %v6536_v27 = vadd.f32 %v6408_v39, %v5890_v29  ;;  %v4988_v61 = vmax.f32 %v4860_v5, 0.0  ;;  %v210_v1 = vmul.f32 %v6918_v4, %v75_v0  ;;  %v856_v26 = vmul.f32 %v6937_v13, %v75_v0 }
 0x1c3   :  { %v2661_v43 = vadd.f32 %v2533_v20, %v2015_v36  ;;  %v5634_v7 = vmax.f32 %v5506_v49, 0.0  ;;  %v6152_v23 = vadd.f32 %v7059_v32, %v6023_v14  ;;  %v1502_v59 = vmul.f32 %v6955_v25, %v75_v0 }
 0x1c4   :  { %6664 = vst [vmem:[#allocation7 + $0x100] sm:$0xff] %v6536_v27  ;;  %v5117_v46 = vmul.f32 %v7035_v51, %v4988_v61  ;;  %v339_v55 = vadd.f32 %v6922_v6, %v210_v1  ;;  %v985_v15 = vadd.f32 %v6945_v17, %v856_v26  ;;  %v2148_v53 = vmul.f32 %v6973_v38, %v75_v0 }
 0x1c5   :  { %v3307_v39 = vadd.f32 %v3179_v2, %v2661_v43  ;;  %v5763_v60 = vmul.f32 %v7048_v12, %v5634_v7  ;;  %v6280_v3 = vmax.f32 %v6152_v23, 0.0  ;;  %v1631_v52 = vadd.f32 %v6964_v30, %v1502_v59 }
 0x1c6   :  { %v467_v34 = vmax.f32 %v339_v55, 0.0  ;;  %v1113_v48 = vmax.f32 %v985_v15, 0.0  ;;  %v2277_v44 = vadd.f32 %v6979_v42, %v2148_v53  ;;  %v2794_v40 = vmul.f32 %v6988_v50, %v75_v0 }
 0x1c7   :  { %v3953_v28 = vadd.f32 %v3825_v19, %v3307_v39  ;;  %v6409_v20 = vmul.f32 %v7061_v37, %v6280_v3  ;;  %v1759_v56 = vmax.f32 %v1631_v52, 0.0  ;;  %v3440_v18 = vmul.f32 %v7001_v62, %v75_v0 }
 0x1c8   :  { %v596_v29 = vmul.f32 %v6930_v10, %v467_v34  ;;  %v1242_v2 = vmul.f32 %v6951_v21, %v1113_v48  ;;  %v2405_v5 = vmax.f32 %v2277_v44, 0.0  ;;  %v2923_v36 = vadd.f32 %v6993_v54, %v2794_v40 }
 0x1c9   :  { %v4599_v49 = vadd.f32 %v4471_v11, %v3953_v28  ;;  %v1888_v14 = vmul.f32 %v6967_v33, %v1759_v56  ;;  %v3569_v27 = vadd.f32 %v7007_v8, %v3440_v18  ;;  %v4086_v61 = vmul.f32 %v7013_v24, %v75_v0  ;;  %v76_v11 = vld [vmem:[#allocation6 + $0x118] sm:$0xff] }
 0x1ca   :  { %v724_v19 = vadd.f32 %v596_v29, %v6928_v9  ;;  %v2534_v1 = vmul.f32 %v6982_v45, %v2405_v5  ;;  %v3051_v26 = vmax.f32 %v2923_v36, 0.0  ;;  %v4732_v43 = vmul.f32 %v7026_v41, %v75_v0 }
 0x1cb   :  { %v5245_v7 = vadd.f32 %v5117_v46, %v4599_v49  ;;  %v3697_v23 = vmax.f32 %v3569_v27, 0.0  ;;  %v4215_v59 = vadd.f32 %v7019_v31, %v4086_v61  ;;  %v5378_v55 = vmul.f32 %v7040_v58, %v75_v0 }
 0x1cc   :  { %v1370_v15 = vadd.f32 %v1242_v2, %v724_v19  ;;  %v3180_v53 = vmul.f32 %v6995_v57, %v3051_v26  ;;  %v4861_v39 = vadd.f32 %v7032_v47, %v4732_v43  ;;  %v6024_v3 = vmul.f32 %v7054_v22, %v75_v0 }
 0x1cd   :  { %v5891_v52 = vadd.f32 %v5763_v60, %v5245_v7  ;;  %v3826_v34 = vmul.f32 %v7009_v16, %v3697_v23  ;;  %v4343_v48 = vmax.f32 %v4215_v59, 0.0  ;;  %v5507_v44 = vadd.f32 %v7045_v63, %v5378_v55 }
 0x1ce   :  { %v2016_v46 = vadd.f32 %v1888_v14, %v1370_v15  ;;  %v4989_v40 = vmax.f32 %v4861_v39, 0.0  ;;  %v6153_v28 = vadd.f32 %v7059_v32, %v6024_v3  ;;  %v211_v56 = vmul.f32 %v6918_v4, %v76_v11 }
 0x1cf   :  { %v6537_v18 = vadd.f32 %v6409_v20, %v5891_v52  ;;  %v4472_v29 = vmul.f32 %v7021_v35, %v4343_v48  ;;  %v5635_v2 = vmax.f32 %v5507_v44, 0.0  ;;  %v857_v5 = vmul.f32 %v6937_v13, %v76_v11 }
 0x1d0   :  { %v2662_v36 = vadd.f32 %v2534_v1, %v2016_v46  ;;  %v5118_v0 = vmul.f32 %v7035_v51, %v4989_v40  ;;  %v6281_v60 = vmax.f32 %v6153_v28, 0.0  ;;  %v340_v49 = vadd.f32 %v6922_v6, %v211_v56 }
 0x1d1   :  { %6665 = vst [vmem:[#allocation7 + $0x108] sm:$0xff] %v6537_v18  ;;  %v5764_v14 = vmul.f32 %v7048_v12, %v5635_v2  ;;  %v986_v27 = vadd.f32 %v6945_v17, %v857_v5  ;;  %v1503_v61 = vmul.f32 %v6955_v25, %v76_v11  ;;  %v2149_v20 = vmul.f32 %v6973_v38, %v76_v11 }
 0x1d2   :  { %v3308_v19 = vadd.f32 %v3180_v53, %v2662_v36  ;;  %v6410_v26 = vmul.f32 %v7061_v37, %v6281_v60  ;;  %v468_v43 = vmax.f32 %v340_v49, 0.0  ;;  %v2795_v1 = vmul.f32 %v6988_v50, %v76_v11  ;;  %v77_v60 = vld [vmem:[#allocation6 + $0x120] sm:$0xff] }
 0x1d3   :  { %v1114_v7 = vmax.f32 %v986_v27, 0.0  ;;  %v1632_v23 = vadd.f32 %v6964_v30, %v1503_v61  ;;  %v2278_v59 = vadd.f32 %v6979_v42, %v2149_v20  ;;  %v3441_v55 = vmul.f32 %v7001_v62, %v76_v11 }
 0x1d4   :  { %v3954_v15 = vadd.f32 %v3826_v34, %v3308_v19  ;;  %v597_v39 = vmul.f32 %v6930_v10, %v468_v43  ;;  %v2924_v3 = vadd.f32 %v6993_v54, %v2795_v1  ;;  %v4087_v52 = vmul.f32 %v7013_v24, %v76_v11 }
 0x1d5   :  { %v1243_v53 = vmul.f32 %v6951_v21, %v1114_v7  ;;  %v1760_v48 = vmax.f32 %v1632_v23, 0.0  ;;  %v2406_v44 = vmax.f32 %v2278_v59, 0.0  ;;  %v3570_v46 = vadd.f32 %v7007_v8, %v3441_v55 }
 0x1d6   :  { %v4600_v40 = vadd.f32 %v4472_v29, %v3954_v15  ;;  %v725_v28 = vadd.f32 %v597_v39, %v6928_v9  ;;  %v3052_v56 = vmax.f32 %v2924_v3, 0.0  ;;  %v4216_v18 = vadd.f32 %v7019_v31, %v4087_v52 }
 0x1d7   :  { %v1889_v34 = vmul.f32 %v6967_v33, %v1760_v48  ;;  %v2535_v2 = vmul.f32 %v6982_v45, %v2406_v44  ;;  %v3698_v5 = vmax.f32 %v3570_v46, 0.0  ;;  %v4733_v36 = vmul.f32 %v7026_v41, %v76_v11 }
 0x1d8   :  { %v5246_v49 = vadd.f32 %v5118_v0, %v4600_v40  ;;  %v1371_v27 = vadd.f32 %v1243_v53, %v725_v28  ;;  %v3181_v61 = vmul.f32 %v6995_v57, %v3052_v56  ;;  %v4344_v20 = vmax.f32 %v4216_v18, 0.0 }
 0x1d9   :  { %v3827_v29 = vmul.f32 %v7009_v16, %v3698_v5  ;;  %v4862_v19 = vadd.f32 %v7032_v47, %v4733_v36  ;;  %v5379_v43 = vmul.f32 %v7040_v58, %v76_v11  ;;  %v6025_v1 = vmul.f32 %v7054_v22, %v76_v11 }
 0x1da   :  { %v5892_v7 = vadd.f32 %v5764_v14, %v5246_v49  ;;  %v2017_v23 = vadd.f32 %v1889_v34, %v1371_v27  ;;  %v4473_v59 = vmul.f32 %v7021_v35, %v4344_v20  ;;  %v212_v55 = vmul.f32 %v6918_v4, %v77_v60 }
 0x1db   :  { %v4990_v15 = vmax.f32 %v4862_v19, 0.0  ;;  %v5508_v0 = vadd.f32 %v7045_v63, %v5379_v43  ;;  %v6154_v39 = vadd.f32 %v7059_v32, %v6025_v1  ;;  %v858_v3 = vmul.f32 %v6937_v13, %v77_v60 }
 0x1dc   :  { %v6538_v52 = vadd.f32 %v6410_v26, %v5892_v7  ;;  %v2663_v53 = vadd.f32 %v2535_v2, %v2017_v23  ;;  %v341_v48 = vadd.f32 %v6922_v6, %v212_v55  ;;  %v1504_v44 = vmul.f32 %v6955_v25, %v77_v60 }
 0x1dd   :  { %v5119_v11 = vmul.f32 %v7035_v51, %v4990_v15  ;;  %v5636_v14 = vmax.f32 %v5508_v0, 0.0  ;;  %v6282_v46 = vmax.f32 %v6154_v39, 0.0  ;;  %v987_v40 = vadd.f32 %v6945_v17, %v858_v3 }
 0x1de   :  { %6666 = vst [vmem:[#allocation7 + $0x110] sm:$0xff] %v6538_v52  ;;  %v3309_v28 = vadd.f32 %v3181_v61, %v2663_v53  ;;  %v469_v56 = vmax.f32 %v341_v48, 0.0  ;;  %v1633_v18 = vadd.f32 %v6964_v30, %v1504_v44  ;;  %v2150_v34 = vmul.f32 %v6973_v38, %v77_v60 }
 0x1df   :  { %v5765_v26 = vmul.f32 %v7048_v12, %v5636_v14  ;;  %v6411_v2 = vmul.f32 %v7061_v37, %v6282_v46  ;;  %v1115_v5 = vmax.f32 %v987_v40, 0.0  ;;  %v2796_v36 = vmul.f32 %v6988_v50, %v77_v60  ;;  %v78_v46 = vld [vmem:[#allocation6 + $0x128] sm:$0xff] }
 0x1e0   :  { %v3955_v49 = vadd.f32 %v3827_v29, %v3309_v28  ;;  %v598_v27 = vmul.f32 %v6930_v10, %v469_v56  ;;  %v1761_v20 = vmax.f32 %v1633_v18, 0.0  ;;  %v2279_v19 = vadd.f32 %v6979_v42, %v2150_v34 }
 0x1e1   :  { %v1244_v61 = vmul.f32 %v6951_v21, %v1115_v5  ;;  %v2925_v43 = vadd.f32 %v6993_v54, %v2796_v36  ;;  %v3442_v1 = vmul.f32 %v7001_v62, %v77_v60  ;;  %v4088_v7 = vmul.f32 %v7013_v24, %v77_v60 }
 0x1e2   :  { %v4601_v23 = vadd.f32 %v4473_v59, %v3955_v49  ;;  %v726_v55 = vadd.f32 %v598_v27, %v6928_v9  ;;  %v1890_v15 = vmul.f32 %v6967_v33, %v1761_v20  ;;  %v2407_v0 = vmax.f32 %v2279_v19, 0.0 }
 0x1e3   :  { %v3053_v29 = vmax.f32 %v2925_v43, 0.0  ;;  %v3571_v39 = vadd.f32 %v7007_v8, %v3442_v1  ;;  %v4217_v3 = vadd.f32 %v7019_v31, %v4088_v7  ;;  %v4734_v52 = vmul.f32 %v7026_v41, %v77_v60 }
 0x1e4   :  { %v5247_v53 = vadd.f32 %v5119_v11, %v4601_v23  ;;  %v1372_v48 = vadd.f32 %v1244_v61, %v726_v55  ;;  %v2536_v44 = vmul.f32 %v6982_v45, %v2407_v0  ;;  %v5380_v14 = vmul.f32 %v7040_v58, %v77_v60 }
 0x1e5   :  { %v3182_v59 = vmul.f32 %v6995_v57, %v3053_v29  ;;  %v3699_v40 = vmax.f32 %v3571_v39, 0.0  ;;  %v4345_v28 = vmax.f32 %v4217_v3, 0.0  ;;  %v4863_v56 = vadd.f32 %v7032_v47, %v4734_v52 }
 0x1e6   :  { %v5893_v18 = vadd.f32 %v5765_v26, %v5247_v53  ;;  %v2018_v34 = vadd.f32 %v1890_v15, %v1372_v48  ;;  %v5509_v5 = vadd.f32 %v7045_v63, %v5380_v14  ;;  %v6026_v36 = vmul.f32 %v7054_v22, %v77_v60 }
 0x1e7   :  { %v3828_v11 = vmul.f32 %v7009_v16, %v3699_v40  ;;  %v4474_v49 = vmul.f32 %v7021_v35, %v4345_v28  ;;  %v4991_v27 = vmax.f32 %v4863_v56, 0.0  ;;  %v213_v20 = vmul.f32 %v6918_v4, %v78_v46 }
 0x1e8   :  { %v6539_v19 = vadd.f32 %v6411_v2, %v5893_v18  ;;  %v2664_v61 = vadd.f32 %v2536_v44, %v2018_v34  ;;  %v5637_v43 = vmax.f32 %v5509_v5, 0.0  ;;  %v6155_v1 = vadd.f32 %v7059_v32, %v6026_v36 }
 0x1e9   :  { %v5120_v7 = vmul.f32 %v7035_v51, %v4991_v27  ;;  %v342_v26 = vadd.f32 %v6922_v6, %v213_v20  ;;  %v859_v23 = vmul.f32 %v6937_v13, %v78_v46  ;;  %v1505_v60 = vmul.f32 %v6955_v25, %v78_v46 }
 0x1ea   :  { %6667 = vst [vmem:[#allocation7 + $0x118] sm:$0xff] %v6539_v19  ;;  %v3310_v55 = vadd.f32 %v3182_v59, %v2664_v61  ;;  %v5766_v15 = vmul.f32 %v7048_v12, %v5637_v43  ;;  %v6283_v0 = vmax.f32 %v6155_v1, 0.0  ;;  %v2151_v29 = vmul.f32 %v6973_v38, %v78_v46 }
 0x1eb   :  { %v470_v2 = vmax.f32 %v342_v26, 0.0  ;;  %v988_v39 = vadd.f32 %v6945_v17, %v859_v23  ;;  %v1634_v3 = vadd.f32 %v6964_v30, %v1505_v60  ;;  %v2797_v52 = vmul.f32 %v6988_v50, %v78_v46  ;;  %v79_v23 = vld [vmem:[#allocation6 + $0x130] sm:$0xff] }
 0x1ec   :  { %v3956_v53 = vadd.f32 %v3828_v11, %v3310_v55  ;;  %v6412_v48 = vmul.f32 %v7061_v37, %v6283_v0  ;;  %v2280_v44 = vadd.f32 %v6979_v42, %v2151_v29  ;;  %v3443_v14 = vmul.f32 %v7001_v62, %v78_v46 }
 0x1ed   :  { %v599_v59 = vmul.f32 %v6930_v10, %v470_v2  ;;  %v1116_v40 = vmax.f32 %v988_v39, 0.0  ;;  %v1762_v28 = vmax.f32 %v1634_v3, 0.0  ;;  %v2926_v56 = vadd.f32 %v6993_v54, %v2797_v52 }
 0x1ee   :  { %v4602_v18 = vadd.f32 %v4474_v49, %v3956_v53  ;;  %v2408_v34 = vmax.f32 %v2280_v44, 0.0  ;;  %v3572_v5 = vadd.f32 %v7007_v8, %v3443_v14  ;;  %v4089_v36 = vmul.f32 %v7013_v24, %v78_v46 }
 0x1ef   :  { %v727_v11 = vadd.f32 %v599_v59, %v6928_v9  ;;  %v1245_v27 = vmul.f32 %v6951_v21, %v1116_v40  ;;  %v1891_v20 = vmul.f32 %v6967_v33, %v1762_v28  ;;  %v3054_v19 = vmax.f32 %v2926_v56, 0.0 }
 0x1f0   :  { %v5248_v61 = vadd.f32 %v5120_v7, %v4602_v18  ;;  %v2537_v43 = vmul.f32 %v6982_v45, %v2408_v34  ;;  %v3700_v1 = vmax.f32 %v3572_v5, 0.0  ;;  %v4218_v26 = vadd.f32 %v7019_v31, %v4089_v36 }
 0x1f1   :  { %v1373_v49 = vadd.f32 %v1245_v27, %v727_v11  ;;  %v3183_v60 = vmul.f32 %v6995_v57, %v3054_v19  ;;  %v4735_v55 = vmul.f32 %v7026_v41, %v78_v46  ;;  %v5381_v0 = vmul.f32 %v7040_v58, %v78_v46 }
 0x1f2   :  { %v5894_v29 = vadd.f32 %v5766_v15, %v5248_v61  ;;  %v3829_v2 = vmul.f32 %v7009_v16, %v3700_v1  ;;  %v4346_v39 = vmax.f32 %v4218_v26, 0.0  ;;  %v6027_v3 = vmul.f32 %v7054_v22, %v78_v46 }
 0x1f3   :  { %v2019_v7 = vadd.f32 %v1891_v20, %v1373_v49  ;;  %v4864_v52 = vadd.f32 %v7032_v47, %v4735_v55  ;;  %v5510_v53 = vadd.f32 %v7045_v63, %v5381_v0  ;;  %v214_v44 = vmul.f32 %v6918_v4, %v79_v23 }
 0x1f4   :  { %v6540_v14 = vadd.f32 %v6412_v48, %v5894_v29  ;;  %v4475_v59 = vmul.f32 %v7021_v35, %v4346_v39  ;;  %v6156_v40 = vadd.f32 %v7059_v32, %v6027_v3  ;;  %v860_v28 = vmul.f32 %v6937_v13, %v79_v23 }
 0x1f5   :  { %v2665_v15 = vadd.f32 %v2537_v43, %v2019_v7  ;;  %v4992_v56 = vmax.f32 %v4864_v52, 0.0  ;;  %v5638_v18 = vmax.f32 %v5510_v53, 0.0  ;;  %v343_v34 = vadd.f32 %v6922_v6, %v214_v44 }
 0x1f6   :  { %6668 = vst [vmem:[#allocation7 + $0x120] sm:$0xff] %v6540_v14  ;;  %v6284_v46 = vmax.f32 %v6156_v40, 0.0  ;;  %v989_v5 = vadd.f32 %v6945_v17, %v860_v28  ;;  %v1506_v36 = vmul.f32 %v6955_v25, %v79_v23  ;;  %v2152_v11 = vmul.f32 %v6973_v38, %v79_v23 }
 0x1f7   :  { %v3311_v48 = vadd.f32 %v3183_v60, %v2665_v15  ;;  %v5121_v27 = vmul.f32 %v7035_v51, %v4992_v56  ;;  %v5767_v20 = vmul.f32 %v7048_v12, %v5638_v18  ;;  %v471_v19 = vmax.f32 %v343_v34, 0.0 }
 0x1f8   :  { %v6413_v61 = vmul.f32 %v7061_v37, %v6284_v46  ;;  %v1117_v43 = vmax.f32 %v989_v5, 0.0  ;;  %v1635_v1 = vadd.f32 %v6964_v30, %v1506_v36  ;;  %v2281_v26 = vadd.f32 %v6979_v42, %v2152_v11 }
 0x1f9   :  { %v3957_v49 = vadd.f32 %v3829_v2, %v3311_v48  ;;  %v600_v55 = vmul.f32 %v6930_v10, %v471_v19  ;;  %v2798_v0 = vmul.f32 %v6988_v50, %v79_v23  ;;  %v3444_v29 = vmul.f32 %v7001_v62, %v79_v23  ;;  %v80_v48 = vld [vmem:[#allocation6 + $0x138] sm:$0xff] }
 0x1fa   :  { %v1246_v60 = vmul.f32 %v6951_v21, %v1117_v43  ;;  %v1763_v39 = vmax.f32 %v1635_v1, 0.0  ;;  %v2409_v3 = vmax.f32 %v2281_v26, 0.0  ;;  %v4090_v7 = vmul.f32 %v7013_v24, %v79_v23 }
 0x1fb   :  { %v4603_v52 = vadd.f32 %v4475_v59, %v3957_v49  ;;  %v728_v53 = vadd.f32 %v600_v55, %v6928_v9  ;;  %v2927_v44 = vadd.f32 %v6993_v54, %v2798_v0  ;;  %v3573_v14 = vadd.f32 %v7007_v8, %v3444_v29 }
 0x1fc   :  { %v1892_v2 = vmul.f32 %v6967_v33, %v1763_v39  ;;  %v2538_v40 = vmul.f32 %v6982_v45, %v2409_v3  ;;  %v4219_v28 = vadd.f32 %v7019_v31, %v4090_v7  ;;  %v4736_v15 = vmul.f32 %v7026_v41, %v79_v23 }
 0x1fd   :  { %v5249_v56 = vadd.f32 %v5121_v27, %v4603_v52  ;;  %v1374_v18 = vadd.f32 %v1246_v60, %v728_v53  ;;  %v3055_v34 = vmax.f32 %v2927_v44, 0.0  ;;  %v3701_v46 = vmax.f32 %v3573_v14, 0.0 }
 0x1fe   :  { %v4347_v5 = vmax.f32 %v4219_v28, 0.0  ;;  %v4865_v59 = vadd.f32 %v7032_v47, %v4736_v15  ;;  %v5382_v36 = vmul.f32 %v7040_v58, %v79_v23  ;;  %v6028_v11 = vmul.f32 %v7054_v22, %v79_v23 }
 0x1ff   :  { %v5895_v19 = vadd.f32 %v5767_v20, %v5249_v56  ;;  %v2020_v43 = vadd.f32 %v1892_v2, %v1374_v18  ;;  %v3184_v1 = vmul.f32 %v6995_v57, %v3055_v34  ;;  %v3830_v26 = vmul.f32 %v7009_v16, %v3701_v46 }
 0x200   :  { %v4476_v49 = vmul.f32 %v7021_v35, %v4347_v5  ;;  %v4993_v27 = vmax.f32 %v4865_v59, 0.0  ;;  %v5511_v55 = vadd.f32 %v7045_v63, %v5382_v36  ;;  %v6157_v0 = vadd.f32 %v7059_v32, %v6028_v11 }
 0x201   :  { %v6541_v29 = vadd.f32 %v6413_v61, %v5895_v19  ;;  %v2666_v60 = vadd.f32 %v2538_v40, %v2020_v43  ;;  %v215_v39 = vmul.f32 %v6918_v4, %v80_v48  ;;  %v861_v23 = vmul.f32 %v6937_v13, %v80_v48 }
 0x202   :  { %v5122_v20 = vmul.f32 %v7035_v51, %v4993_v27  ;;  %v5639_v3 = vmax.f32 %v5511_v55, 0.0  ;;  %v6285_v7 = vmax.f32 %v6157_v0, 0.0  ;;  %v1507_v52 = vmul.f32 %v6955_v25, %v80_v48 }
 0x203   :  { %6669 = vst [vmem:[#allocation7 + $0x128] sm:$0xff] %v6541_v29  ;;  %v3312_v53 = vadd.f32 %v3184_v1, %v2666_v60  ;;  %v344_v44 = vadd.f32 %v6922_v6, %v215_v39  ;;  %v990_v14 = vadd.f32 %v6945_v17, %v861_v23  ;;  %v2153_v2 = vmul.f32 %v6973_v38, %v80_v48 }
 0x204   :  { %v5768_v61 = vmul.f32 %v7048_v12, %v5639_v3  ;;  %v6414_v40 = vmul.f32 %v7061_v37, %v6285_v7  ;;  %v1636_v28 = vadd.f32 %v6964_v30, %v1507_v52  ;;  %v2799_v15 = vmul.f32 %v6988_v50, %v80_v48 }
 0x205   :  { %v3958_v56 = vadd.f32 %v3830_v26, %v3312_v53  ;;  %v472_v18 = vmax.f32 %v344_v44, 0.0  ;;  %v1118_v34 = vmax.f32 %v990_v14, 0.0  ;;  %v2282_v46 = vadd.f32 %v6979_v42, %v2153_v2 }
 0x206   :  { %v1764_v5 = vmax.f32 %v1636_v28, 0.0  ;;  %v2928_v59 = vadd.f32 %v6993_v54, %v2799_v15  ;;  %v3445_v36 = vmul.f32 %v7001_v62, %v80_v48  ;;  %v4091_v11 = vmul.f32 %v7013_v24, %v80_v48 }
 0x207   :  { %v4604_v19 = vadd.f32 %v4476_v49, %v3958_v56  ;;  %v601_v43 = vmul.f32 %v6930_v10, %v472_v18  ;;  %v1247_v1 = vmul.f32 %v6951_v21, %v1118_v34  ;;  %v2410_v27 = vmax.f32 %v2282_v46, 0.0  ;;  %v81_v49 = vld [vmem:[#allocation6 + $0x140] sm:$0xff] }
 0x208   :  { %v1893_v55 = vmul.f32 %v6967_v33, %v1764_v5  ;;  %v3056_v26 = vmax.f32 %v2928_v59, 0.0  ;;  %v3574_v0 = vadd.f32 %v7007_v8, %v3445_v36  ;;  %v4220_v29 = vadd.f32 %v7019_v31, %v4091_v11 }
 0x209   :  { %v5250_v60 = vadd.f32 %v5122_v20, %v4604_v19  ;;  %v729_v39 = vadd.f32 %v601_v43, %v6928_v9  ;;  %v2539_v23 = vmul.f32 %v6982_v45, %v2410_v27  ;;  %v4737_v3 = vmul.f32 %v7026_v41, %v80_v48 }
 0x20a   :  { %v3185_v7 = vmul.f32 %v6995_v57, %v3056_v26  ;;  %v3702_v52 = vmax.f32 %v3574_v0, 0.0  ;;  %v4348_v53 = vmax.f32 %v4220_v29, 0.0  ;;  %v5383_v44 = vmul.f32 %v7040_v58, %v80_v48 }
 0x20b   :  { %v5896_v14 = vadd.f32 %v5768_v61, %v5250_v60  ;;  %v1375_v2 = vadd.f32 %v1247_v1, %v729_v39  ;;  %v4866_v28 = vadd.f32 %v7032_v47, %v4737_v3  ;;  %v6029_v15 = vmul.f32 %v7054_v22, %v80_v48 }
 0x20c   :  { %v3831_v20 = vmul.f32 %v7009_v16, %v3702_v52  ;;  %v4477_v56 = vmul.f32 %v7021_v35, %v4348_v53  ;;  %v5512_v18 = vadd.f32 %v7045_v63, %v5383_v44  ;;  %v216_v34 = vmul.f32 %v6918_v4, %v81_v49 }
 0x20d   :  { %v6542_v46 = vadd.f32 %v6414_v40, %v5896_v14  ;;  %v2021_v5 = vadd.f32 %v1893_v55, %v1375_v2  ;;  %v4994_v59 = vmax.f32 %v4866_v28, 0.0  ;;  %v6158_v36 = vadd.f32 %v7059_v32, %v6029_v15 }
 0x20e   :  { %v5640_v11 = vmax.f32 %v5512_v18, 0.0  ;;  %v345_v61 = vadd.f32 %v6922_v6, %v216_v34  ;;  %v862_v19 = vmul.f32 %v6937_v13, %v81_v49  ;;  %v1508_v48 = vmul.f32 %v6955_v25, %v81_v49 }
 0x20f   :  { %6670 = vst [vmem:[#allocation7 + $0x130] sm:$0xff] %v6542_v46  ;;  %v2667_v43 = vadd.f32 %v2539_v23, %v2021_v5  ;;  %v5123_v1 = vmul.f32 %v7035_v51, %v4994_v59  ;;  %v6286_v27 = vmax.f32 %v6158_v36, 0.0  ;;  %v2154_v26 = vmul.f32 %v6973_v38, %v81_v49 }
 0x210   :  { %v5769_v40 = vmul.f32 %v7048_v12, %v5640_v11  ;;  %v473_v55 = vmax.f32 %v345_v61, 0.0  ;;  %v991_v0 = vadd.f32 %v6945_v17, %v862_v19  ;;  %v1637_v29 = vadd.f32 %v6964_v30, %v1508_v48 }
 0x211   :  { %v3313_v60 = vadd.f32 %v3185_v7, %v2667_v43  ;;  %v6415_v39 = vmul.f32 %v7061_v37, %v6286_v27  ;;  %v2283_v3 = vadd.f32 %v6979_v42, %v2154_v26  ;;  %v2800_v52 = vmul.f32 %v6988_v50, %v81_v49  ;;  %v82_v27 = vld [vmem:[#allocation6 + $0x148] sm:$0xff] }
 0x212   :  { %v602_v23 = vmul.f32 %v6930_v10, %v473_v55  ;;  %v1119_v53 = vmax.f32 %v991_v0, 0.0  ;;  %v1765_v44 = vmax.f32 %v1637_v29, 0.0  ;;  %v3446_v14 = vmul.f32 %v7001_v62, %v81_v49 }
 0x213   :  { %v3959_v2 = vadd.f32 %v3831_v20, %v3313_v60  ;;  %v2411_v28 = vmax.f32 %v2283_v3, 0.0  ;;  %v2929_v15 = vadd.f32 %v6993_v54, %v2800_v52  ;;  %v4092_v18 = vmul.f32 %v7013_v24, %v81_v49 }
 0x214   :  { %v730_v7 = vadd.f32 %v602_v23, %v6928_v9  ;;  %v1248_v34 = vmul.f32 %v6951_v21, %v1119_v53  ;;  %v1894_v46 = vmul.f32 %v6967_v33, %v1765_v44  ;;  %v3575_v5 = vadd.f32 %v7007_v8, %v3446_v14 }
 0x215   :  { %v4605_v59 = vadd.f32 %v4477_v56, %v3959_v2  ;;  %v2540_v36 = vmul.f32 %v6982_v45, %v2411_v28  ;;  %v3057_v11 = vmax.f32 %v2929_v15, 0.0  ;;  %v4221_v61 = vadd.f32 %v7019_v31, %v4092_v18 }
 0x216   :  { %v1376_v20 = vadd.f32 %v1248_v34, %v730_v7  ;;  %v3703_v19 = vmax.f32 %v3575_v5, 0.0  ;;  %v4738_v48 = vmul.f32 %v7026_v41, %v81_v49  ;;  %v5384_v43 = vmul.f32 %v7040_v58, %v81_v49 }
 0x217   :  { %v5251_v26 = vadd.f32 %v5123_v1, %v4605_v59  ;;  %v3186_v55 = vmul.f32 %v6995_v57, %v3057_v11  ;;  %v4349_v0 = vmax.f32 %v4221_v61, 0.0  ;;  %v6030_v29 = vmul.f32 %v7054_v22, %v81_v49 }
 0x218   :  { %v2022_v60 = vadd.f32 %v1894_v46, %v1376_v20  ;;  %v3832_v56 = vmul.f32 %v7009_v16, %v3703_v19  ;;  %v4867_v3 = vadd.f32 %v7032_v47, %v4738_v48  ;;  %v5513_v52 = vadd.f32 %v7045_v63, %v5384_v43 }
 0x219   :  { %v5897_v23 = vadd.f32 %v5769_v40, %v5251_v26  ;;  %v4478_v53 = vmul.f32 %v7021_v35, %v4349_v0  ;;  %v6159_v44 = vadd.f32 %v7059_v32, %v6030_v29  ;;  %v217_v14 = vmul.f32 %v6918_v4, %v82_v27 }
 0x21a   :  { %v2668_v1 = vadd.f32 %v2540_v36, %v2022_v60  ;;  %v4995_v2 = vmax.f32 %v4867_v3, 0.0  ;;  %v5641_v28 = vmax.f32 %v5513_v52, 0.0  ;;  %v863_v15 = vmul.f32 %v6937_v13, %v82_v27 }
 0x21b   :  { %v6543_v49 = vadd.f32 %v6415_v39, %v5897_v23  ;;  %v6287_v18 = vmax.f32 %v6159_v44, 0.0  ;;  %v346_v7 = vadd.f32 %v6922_v6, %v217_v14  ;;  %v1509_v34 = vmul.f32 %v6955_v25, %v82_v27 }
 0x21c   :  { %v3314_v46 = vadd.f32 %v3186_v55, %v2668_v1  ;;  %v5124_v40 = vmul.f32 %v7035_v51, %v4995_v2  ;;  %v5770_v5 = vmul.f32 %v7048_v12, %v5641_v28  ;;  %v992_v59 = vadd.f32 %v6945_v17, %v863_v15 }
 0x21d   :  { %6671 = vst [vmem:[#allocation7 + $0x138] sm:$0xff] %v6543_v49  ;;  %v6416_v36 = vmul.f32 %v7061_v37, %v6287_v18  ;;  %v474_v11 = vmax.f32 %v346_v7, 0.0  ;;  %v1638_v61 = vadd.f32 %v6964_v30, %v1509_v34  ;;  %v2155_v39 = vmul.f32 %v6973_v38, %v82_v27 }
 0x21e   :  { %v3960_v20 = vadd.f32 %v3832_v56, %v3314_v46  ;;  %v1120_v19 = vmax.f32 %v992_v59, 0.0  ;;  %v2801_v48 = vmul.f32 %v6988_v50, %v82_v27  ;;  %v3447_v43 = vmul.f32 %v7001_v62, %v82_v27  ;;  %v83_v46 = vld [vmem:[#allocation6 + $0x150] sm:$0xff] }
 0x21f   :  { %v603_v26 = vmul.f32 %v6930_v10, %v474_v11  ;;  %v1766_v55 = vmax.f32 %v1638_v61, 0.0  ;;  %v2284_v0 = vadd.f32 %v6979_v42, %v2155_v39  ;;  %v4093_v29 = vmul.f32 %v7013_v24, %v82_v27 }
 0x220   :  { %v4606_v60 = vadd.f32 %v4478_v53, %v3960_v20  ;;  %v1249_v3 = vmul.f32 %v6951_v21, %v1120_v19  ;;  %v2930_v52 = vadd.f32 %v6993_v54, %v2801_v48  ;;  %v3576_v23 = vadd.f32 %v7007_v8, %v3447_v43 }
 0x221   :  { %v731_v56 = vadd.f32 %v603_v26, %v6928_v9  ;;  %v1895_v44 = vmul.f32 %v6967_v33, %v1766_v55  ;;  %v2412_v14 = vmax.f32 %v2284_v0, 0.0  ;;  %v4222_v1 = vadd.f32 %v7019_v31, %v4093_v29 }
 0x222   :  { %v5252_v2 = vadd.f32 %v5124_v40, %v4606_v60  ;;  %v3058_v28 = vmax.f32 %v2930_v52, 0.0  ;;  %v3704_v15 = vmax.f32 %v3576_v23, 0.0  ;;  %v4739_v49 = vmul.f32 %v7026_v41, %v82_v27 }
 0x223   :  { %v1377_v18 = vadd.f32 %v1249_v3, %v731_v56  ;;  %v2541_v53 = vmul.f32 %v6982_v45, %v2412_v14  ;;  %v4350_v7 = vmax.f32 %v4222_v1, 0.0  ;;  %v5385_v34 = vmul.f32 %v7040_v58, %v82_v27 }
 0x224   :  { %v5898_v59 = vadd.f32 %v5770_v5, %v5252_v2  ;;  %v3187_v11 = vmul.f32 %v6995_v57, %v3058_v28  ;;  %v3833_v61 = vmul.f32 %v7009_v16, %v3704_v15  ;;  %v4868_v39 = vadd.f32 %v7032_v47, %v4739_v49 }
 0x225   :  { %v2023_v20 = vadd.f32 %v1895_v44, %v1377_v18  ;;  %v4479_v40 = vmul.f32 %v7021_v35, %v4350_v7  ;;  %v5514_v19 = vadd.f32 %v7045_v63, %v5385_v34  ;;  %v6031_v48 = vmul.f32 %v7054_v22, %v82_v27 }
 0x226   :  { %v6544_v43 = vadd.f32 %v6416_v36, %v5898_v59  ;;  %v4996_v26 = vmax.f32 %v4868_v39, 0.0  ;;  %v218_v55 = vmul.f32 %v6918_v4, %v83_v46  ;;  %v864_v0 = vmul.f32 %v6937_v13, %v83_v46 }
 0x227   :  { %v2669_v5 = vadd.f32 %v2541_v53, %v2023_v20  ;;  %v5642_v29 = vmax.f32 %v5514_v19, 0.0  ;;  %v6160_v60 = vadd.f32 %v7059_v32, %v6031_v48  ;;  %v1510_v3 = vmul.f32 %v6955_v25, %v83_v46 }
 0x228   :  { %6672 = vst [vmem:[#allocation7 + $0x140] sm:$0xff] %v6544_v43  ;;  %v5125_v52 = vmul.f32 %v7035_v51, %v4996_v26  ;;  %v347_v23 = vadd.f32 %v6922_v6, %v218_v55  ;;  %v993_v56 = vadd.f32 %v6945_v17, %v864_v0  ;;  %v2156_v27 = vmul.f32 %v6973_v38, %v83_v46 }
 0x229   :  { %v3315_v36 = vadd.f32 %v3187_v11, %v2669_v5  ;;  %v5771_v44 = vmul.f32 %v7048_v12, %v5642_v29  ;;  %v6288_v14 = vmax.f32 %v6160_v60, 0.0  ;;  %v1639_v1 = vadd.f32 %v6964_v30, %v1510_v3 }
 0x22a   :  { %v475_v2 = vmax.f32 %v347_v23, 0.0  ;;  %v1121_v28 = vmax.f32 %v993_v56, 0.0  ;;  %v2285_v15 = vadd.f32 %v6979_v42, %v2156_v27  ;;  %v2802_v49 = vmul.f32 %v6988_v50, %v83_v46 }
 0x22b   :  { %v3961_v18 = vadd.f32 %v3833_v61, %v3315_v36  ;;  %v6417_v53 = vmul.f32 %v7061_v37, %v6288_v14  ;;  %v1767_v7 = vmax.f32 %v1639_v1, 0.0  ;;  %v3448_v34 = vmul.f32 %v7001_v62, %v83_v46 }
 0x22c   :  { %v604_v59 = vmul.f32 %v6930_v10, %v475_v2  ;;  %v1250_v11 = vmul.f32 %v6951_v21, %v1121_v28  ;;  %v2413_v39 = vmax.f32 %v2285_v15, 0.0  ;;  %v2931_v20 = vadd.f32 %v6993_v54, %v2802_v49 }
 0x22d   :  { %v4607_v19 = vadd.f32 %v4479_v40, %v3961_v18  ;;  %v1896_v48 = vmul.f32 %v6967_v33, %v1767_v7  ;;  %v3577_v43 = vadd.f32 %v7007_v8, %v3448_v34  ;;  %v4094_v26 = vmul.f32 %v7013_v24, %v83_v46  ;;  %v84_v40 = vld [vmem:[#allocation6 + $0x158] sm:$0xff] }
 0x22e   :  { %v732_v61 = vadd.f32 %v604_v59, %v6928_v9  ;;  %v2542_v55 = vmul.f32 %v6982_v45, %v2413_v39  ;;  %v3059_v0 = vmax.f32 %v2931_v20, 0.0  ;;  %v4740_v5 = vmul.f32 %v7026_v41, %v83_v46 }
 0x22f   :  { %v5253_v29 = vadd.f32 %v5125_v52, %v4607_v19  ;;  %v3705_v60 = vmax.f32 %v3577_v43, 0.0  ;;  %v4223_v3 = vadd.f32 %v7019_v31, %v4094_v26  ;;  %v5386_v23 = vmul.f32 %v7040_v58, %v83_v46 }
 0x230   :  { %v1378_v56 = vadd.f32 %v1250_v11, %v732_v61  ;;  %v3188_v27 = vmul.f32 %v6995_v57, %v3059_v0  ;;  %v4869_v36 = vadd.f32 %v7032_v47, %v4740_v5  ;;  %v6032_v14 = vmul.f32 %v7054_v22, %v83_v46 }
 0x231   :  { %v5899_v1 = vadd.f32 %v5771_v44, %v5253_v29  ;;  %v3834_v2 = vmul.f32 %v7009_v16, %v3705_v60  ;;  %v4351_v28 = vmax.f32 %v4223_v3, 0.0  ;;  %v5515_v15 = vadd.f32 %v7045_v63, %v5386_v23 }
 0x232   :  { %v2024_v52 = vadd.f32 %v1896_v48, %v1378_v56  ;;  %v4997_v49 = vmax.f32 %v4869_v36, 0.0  ;;  %v6161_v18 = vadd.f32 %v7059_v32, %v6032_v14  ;;  %v219_v7 = vmul.f32 %v6918_v4, %v84_v40 }
 0x233   :  { %v6545_v34 = vadd.f32 %v6417_v53, %v5899_v1  ;;  %v4480_v59 = vmul.f32 %v7021_v35, %v4351_v28  ;;  %v5643_v11 = vmax.f32 %v5515_v15, 0.0  ;;  %v865_v39 = vmul.f32 %v6937_v13, %v84_v40 }
 0x234   :  { %v2670_v20 = vadd.f32 %v2542_v55, %v2024_v52  ;;  %v5126_v46 = vmul.f32 %v7035_v51, %v4997_v49  ;;  %v6289_v44 = vmax.f32 %v6161_v18, 0.0  ;;  %v348_v19 = vadd.f32 %v6922_v6, %v219_v7 }
 0x235   :  { %6673 = vst [vmem:[#allocation7 + $0x148] sm:$0xff] %v6545_v34  ;;  %v5772_v48 = vmul.f32 %v7048_v12, %v5643_v11  ;;  %v994_v43 = vadd.f32 %v6945_v17, %v865_v39  ;;  %v1511_v26 = vmul.f32 %v6955_v25, %v84_v40  ;;  %v2157_v53 = vmul.f32 %v6973_v38, %v84_v40 }
 0x236   :  { %v3316_v61 = vadd.f32 %v3188_v27, %v2670_v20  ;;  %v6418_v0 = vmul.f32 %v7061_v37, %v6289_v44  ;;  %v476_v5 = vmax.f32 %v348_v19, 0.0  ;;  %v2803_v55 = vmul.f32 %v6988_v50, %v84_v40  ;;  %v85_v44 = vld [vmem:[#allocation6 + $0x160] sm:$0xff] }
 0x237   :  { %v1122_v29 = vmax.f32 %v994_v43, 0.0  ;;  %v1640_v60 = vadd.f32 %v6964_v30, %v1511_v26  ;;  %v2286_v3 = vadd.f32 %v6979_v42, %v2157_v53  ;;  %v3449_v23 = vmul.f32 %v7001_v62, %v84_v40 }
 0x238   :  { %v3962_v56 = vadd.f32 %v3834_v2, %v3316_v61  ;;  %v605_v36 = vmul.f32 %v6930_v10, %v476_v5  ;;  %v2932_v14 = vadd.f32 %v6993_v54, %v2803_v55  ;;  %v4095_v1 = vmul.f32 %v7013_v24, %v84_v40 }
 0x239   :  { %v1251_v27 = vmul.f32 %v6951_v21, %v1122_v29  ;;  %v1768_v28 = vmax.f32 %v1640_v60, 0.0  ;;  %v2414_v15 = vmax.f32 %v2286_v3, 0.0  ;;  %v3578_v52 = vadd.f32 %v7007_v8, %v3449_v23 }
 0x23a   :  { %v4608_v49 = vadd.f32 %v4480_v59, %v3962_v56  ;;  %v733_v18 = vadd.f32 %v605_v36, %v6928_v9  ;;  %v3060_v7 = vmax.f32 %v2932_v14, 0.0  ;;  %v4224_v34 = vadd.f32 %v7019_v31, %v4095_v1 }
 0x23b   :  { %v1897_v2 = vmul.f32 %v6967_v33, %v1768_v28  ;;  %v2543_v11 = vmul.f32 %v6982_v45, %v2414_v15  ;;  %v3706_v39 = vmax.f32 %v3578_v52, 0.0  ;;  %v4741_v20 = vmul.f32 %v7026_v41, %v84_v40 }
 0x23c   :  { %v5254_v19 = vadd.f32 %v5126_v46, %v4608_v49  ;;  %v1379_v43 = vadd.f32 %v1251_v27, %v733_v18  ;;  %v3189_v26 = vmul.f32 %v6995_v57, %v3060_v7  ;;  %v4352_v53 = vmax.f32 %v4224_v34, 0.0 }
 0x23d   :  { %v3835_v59 = vmul.f32 %v7009_v16, %v3706_v39  ;;  %v4870_v61 = vadd.f32 %v7032_v47, %v4741_v20  ;;  %v5387_v5 = vmul.f32 %v7040_v58, %v84_v40  ;;  %v6033_v55 = vmul.f32 %v7054_v22, %v84_v40 }
 0x23e   :  { %v5900_v29 = vadd.f32 %v5772_v48, %v5254_v19  ;;  %v2025_v60 = vadd.f32 %v1897_v2, %v1379_v43  ;;  %v4481_v3 = vmul.f32 %v7021_v35, %v4352_v53  ;;  %v220_v23 = vmul.f32 %v6918_v4, %v85_v44 }
 0x23f   :  { %v4998_v56 = vmax.f32 %v4870_v61, 0.0  ;;  %v5516_v46 = vadd.f32 %v7045_v63, %v5387_v5  ;;  %v6162_v36 = vadd.f32 %v7059_v32, %v6033_v55  ;;  %v866_v14 = vmul.f32 %v6937_v13, %v85_v44 }
 0x240   :  { %v6546_v1 = vadd.f32 %v6418_v0, %v5900_v29  ;;  %v2671_v27 = vadd.f32 %v2543_v11, %v2025_v60  ;;  %v349_v28 = vadd.f32 %v6922_v6, %v220_v23  ;;  %v1512_v15 = vmul.f32 %v6955_v25, %v85_v44 }
 0x241   :  { %v5127_v40 = vmul.f32 %v7035_v51, %v4998_v56  ;;  %v5644_v48 = vmax.f32 %v5516_v46, 0.0  ;;  %v6290_v52 = vmax.f32 %v6162_v36, 0.0  ;;  %v995_v49 = vadd.f32 %v6945_v17, %v866_v14 }
 0x242   :  { %6674 = vst [vmem:[#allocation7 + $0x150] sm:$0xff] %v6546_v1  ;;  %v3317_v18 = vadd.f32 %v3189_v26, %v2671_v27  ;;  %v477_v7 = vmax.f32 %v349_v28, 0.0  ;;  %v1641_v34 = vadd.f32 %v6964_v30, %v1512_v15  ;;  %v2158_v2 = vmul.f32 %v6973_v38, %v85_v44 }
 0x243   :  { %v5773_v0 = vmul.f32 %v7048_v12, %v5644_v48  ;;  %v6419_v11 = vmul.f32 %v7061_v37, %v6290_v52  ;;  %v1123_v39 = vmax.f32 %v995_v49, 0.0  ;;  %v2804_v20 = vmul.f32 %v6988_v50, %v85_v44  ;;  %v86_v52 = vld [vmem:[#allocation6 + $0x168] sm:$0xff] }
 0x244   :  { %v3963_v19 = vadd.f32 %v3835_v59, %v3317_v18  ;;  %v606_v43 = vmul.f32 %v6930_v10, %v477_v7  ;;  %v1769_v53 = vmax.f32 %v1641_v34, 0.0  ;;  %v2287_v61 = vadd.f32 %v6979_v42, %v2158_v2 }
 0x245   :  { %v1252_v26 = vmul.f32 %v6951_v21, %v1123_v39  ;;  %v2933_v5 = vadd.f32 %v6993_v54, %v2804_v20  ;;  %v3450_v55 = vmul.f32 %v7001_v62, %v85_v44  ;;  %v4096_v29 = vmul.f32 %v7013_v24, %v85_v44 }
 0x246   :  { %v4609_v60 = vadd.f32 %v4481_v3, %v3963_v19  ;;  %v734_v23 = vadd.f32 %v606_v43, %v6928_v9  ;;  %v1898_v56 = vmul.f32 %v6967_v33, %v1769_v53  ;;  %v2415_v46 = vmax.f32 %v2287_v61, 0.0 }
 0x247   :  { %v3061_v59 = vmax.f32 %v2933_v5, 0.0  ;;  %v3579_v36 = vadd.f32 %v7007_v8, %v3450_v55  ;;  %v4225_v14 = vadd.f32 %v7019_v31, %v4096_v29  ;;  %v4742_v1 = vmul.f32 %v7026_v41, %v85_v44 }
 0x248   :  { %v5255_v27 = vadd.f32 %v5127_v40, %v4609_v60  ;;  %v1380_v28 = vadd.f32 %v1252_v26, %v734_v23  ;;  %v2544_v15 = vmul.f32 %v6982_v45, %v2415_v46  ;;  %v5388_v48 = vmul.f32 %v7040_v58, %v85_v44 }
 0x249   :  { %v3190_v3 = vmul.f32 %v6995_v57, %v3061_v59  ;;  %v3707_v49 = vmax.f32 %v3579_v36, 0.0  ;;  %v4353_v18 = vmax.f32 %v4225_v14, 0.0  ;;  %v4871_v7 = vadd.f32 %v7032_v47, %v4742_v1 }
 0x24a   :  { %v5901_v34 = vadd.f32 %v5773_v0, %v5255_v27  ;;  %v2026_v2 = vadd.f32 %v1898_v56, %v1380_v28  ;;  %v5517_v39 = vadd.f32 %v7045_v63, %v5388_v48  ;;  %v6034_v20 = vmul.f32 %v7054_v22, %v85_v44 }
 0x24b   :  { %v3836_v40 = vmul.f32 %v7009_v16, %v3707_v49  ;;  %v4482_v19 = vmul.f32 %v7021_v35, %v4353_v18  ;;  %v4999_v43 = vmax.f32 %v4871_v7, 0.0  ;;  %v221_v53 = vmul.f32 %v6918_v4, %v86_v52 }
 0x24c   :  { %v6547_v61 = vadd.f32 %v6419_v11, %v5901_v34  ;;  %v2672_v26 = vadd.f32 %v2544_v15, %v2026_v2  ;;  %v5645_v5 = vmax.f32 %v5517_v39, 0.0  ;;  %v6163_v55 = vadd.f32 %v7059_v32, %v6034_v20 }
 0x24d   :  { %v5128_v29 = vmul.f32 %v7035_v51, %v4999_v43  ;;  %v350_v0 = vadd.f32 %v6922_v6, %v221_v53  ;;  %v867_v60 = vmul.f32 %v6937_v13, %v86_v52  ;;  %v1513_v44 = vmul.f32 %v6955_v25, %v86_v52 }
 0x24e   :  { %6675 = vst [vmem:[#allocation7 + $0x158] sm:$0xff] %v6547_v61  ;;  %v3318_v23 = vadd.f32 %v3190_v3, %v2672_v26  ;;  %v5774_v56 = vmul.f32 %v7048_v12, %v5645_v5  ;;  %v6291_v46 = vmax.f32 %v6163_v55, 0.0  ;;  %v2159_v59 = vmul.f32 %v6973_v38, %v86_v52 }
 0x24f   :  { %v478_v11 = vmax.f32 %v350_v0, 0.0  ;;  %v996_v36 = vadd.f32 %v6945_v17, %v867_v60  ;;  %v1642_v14 = vadd.f32 %v6964_v30, %v1513_v44  ;;  %v2805_v1 = vmul.f32 %v6988_v50, %v86_v52  ;;  %v87_v60 = vld [vmem:[#allocation6 + $0x170] sm:$0xff] }
 0x250   :  { %v3964_v27 = vadd.f32 %v3836_v40, %v3318_v23  ;;  %v6420_v28 = vmul.f32 %v7061_v37, %v6291_v46  ;;  %v2288_v15 = vadd.f32 %v6979_v42, %v2159_v59  ;;  %v3451_v48 = vmul.f32 %v7001_v62, %v86_v52 }
 0x251   :  { %v607_v3 = vmul.f32 %v6930_v10, %v478_v11  ;;  %v1124_v49 = vmax.f32 %v996_v36, 0.0  ;;  %v1770_v18 = vmax.f32 %v1642_v14, 0.0  ;;  %v2934_v7 = vadd.f32 %v6993_v54, %v2805_v1 }
 0x252   :  { %v4610_v34 = vadd.f32 %v4482_v19, %v3964_v27  ;;  %v2416_v2 = vmax.f32 %v2288_v15, 0.0  ;;  %v3580_v39 = vadd.f32 %v7007_v8, %v3451_v48  ;;  %v4097_v20 = vmul.f32 %v7013_v24, %v86_v52 }
 0x253   :  { %v735_v40 = vadd.f32 %v607_v3, %v6928_v9  ;;  %v1253_v43 = vmul.f32 %v6951_v21, %v1124_v49  ;;  %v1899_v53 = vmul.f32 %v6967_v33, %v1770_v18  ;;  %v3062_v61 = vmax.f32 %v2934_v7, 0.0 }
 0x254   :  { %v5256_v26 = vadd.f32 %v5128_v29, %v4610_v34  ;;  %v2545_v5 = vmul.f32 %v6982_v45, %v2416_v2  ;;  %v3708_v55 = vmax.f32 %v3580_v39, 0.0  ;;  %v4226_v0 = vadd.f32 %v7019_v31, %v4097_v20 }
 0x255   :  { %v1381_v19 = vadd.f32 %v1253_v43, %v735_v40  ;;  %v3191_v44 = vmul.f32 %v6995_v57, %v3062_v61  ;;  %v4743_v23 = vmul.f32 %v7026_v41, %v86_v52  ;;  %v5389_v46 = vmul.f32 %v7040_v58, %v86_v52 }
 0x256   :  { %v5902_v59 = vadd.f32 %v5774_v56, %v5256_v26  ;;  %v3837_v11 = vmul.f32 %v7009_v16, %v3708_v55  ;;  %v4354_v36 = vmax.f32 %v4226_v0, 0.0  ;;  %v6035_v14 = vmul.f32 %v7054_v22, %v86_v52 }
 0x257   :  { %v2027_v29 = vadd.f32 %v1899_v53, %v1381_v19  ;;  %v4872_v1 = vadd.f32 %v7032_v47, %v4743_v23  ;;  %v5518_v27 = vadd.f32 %v7045_v63, %v5389_v46  ;;  %v222_v15 = vmul.f32 %v6918_v4, %v87_v60 }
 0x258   :  { %v6548_v48 = vadd.f32 %v6420_v28, %v5902_v59  ;;  %v4483_v3 = vmul.f32 %v7021_v35, %v4354_v36  ;;  %v6164_v49 = vadd.f32 %v7059_v32, %v6035_v14  ;;  %v868_v18 = vmul.f32 %v6937_v13, %v87_v60 }
 0x259   :  { %v2673_v56 = vadd.f32 %v2545_v5, %v2027_v29  ;;  %v5000_v7 = vmax.f32 %v4872_v1, 0.0  ;;  %v5646_v34 = vmax.f32 %v5518_v27, 0.0  ;;  %v351_v2 = vadd.f32 %v6922_v6, %v222_v15 }
 0x25a   :  { %6676 = vst [vmem:[#allocation7 + $0x160] sm:$0xff] %v6548_v48  ;;  %v6292_v52 = vmax.f32 %v6164_v49, 0.0  ;;  %v997_v39 = vadd.f32 %v6945_v17, %v868_v18  ;;  %v1514_v20 = vmul.f32 %v6955_v25, %v87_v60  ;;  %v2160_v40 = vmul.f32 %v6973_v38, %v87_v60 }
 0x25b   :  { %v3319_v28 = vadd.f32 %v3191_v44, %v2673_v56  ;;  %v5129_v43 = vmul.f32 %v7035_v51, %v5000_v7  ;;  %v5775_v53 = vmul.f32 %v7048_v12, %v5646_v34  ;;  %v479_v61 = vmax.f32 %v351_v2, 0.0 }
 0x25c   :  { %v6421_v26 = vmul.f32 %v7061_v37, %v6292_v52  ;;  %v1125_v5 = vmax.f32 %v997_v39, 0.0  ;;  %v1643_v55 = vadd.f32 %v6964_v30, %v1514_v20  ;;  %v2289_v0 = vadd.f32 %v6979_v42, %v2160_v40 }
 0x25d   :  { %v3965_v19 = vadd.f32 %v3837_v11, %v3319_v28  ;;  %v608_v23 = vmul.f32 %v6930_v10, %v479_v61  ;;  %v2806_v46 = vmul.f32 %v6988_v50, %v87_v60  ;;  %v3452_v59 = vmul.f32 %v7001_v62, %v87_v60  ;;  %v88_v28 = vld [vmem:[#allocation6 + $0x178] sm:$0xff] }
 0x25e   :  { %v1254_v44 = vmul.f32 %v6951_v21, %v1125_v5  ;;  %v1771_v36 = vmax.f32 %v1643_v55, 0.0  ;;  %v2417_v14 = vmax.f32 %v2289_v0, 0.0  ;;  %v4098_v29 = vmul.f32 %v7013_v24, %v87_v60 }
 0x25f   :  { %v4611_v1 = vadd.f32 %v4483_v3, %v3965_v19  ;;  %v736_v27 = vadd.f32 %v608_v23, %v6928_v9  ;;  %v2935_v15 = vadd.f32 %v6993_v54, %v2806_v46  ;;  %v3581_v48 = vadd.f32 %v7007_v8, %v3452_v59 }
 0x260   :  { %v1900_v11 = vmul.f32 %v6967_v33, %v1771_v36  ;;  %v2546_v49 = vmul.f32 %v6982_v45, %v2417_v14  ;;  %v4227_v18 = vadd.f32 %v7019_v31, %v4098_v29  ;;  %v4744_v56 = vmul.f32 %v7026_v41, %v87_v60 }
 0x261   :  { %v5257_v7 = vadd.f32 %v5129_v43, %v4611_v1  ;;  %v1382_v34 = vadd.f32 %v1254_v44, %v736_v27  ;;  %v3063_v2 = vmax.f32 %v2935_v15, 0.0  ;;  %v3709_v52 = vmax.f32 %v3581_v48, 0.0 }
 0x262   :  { %v4355_v39 = vmax.f32 %v4227_v18, 0.0  ;;  %v4873_v3 = vadd.f32 %v7032_v47, %v4744_v56  ;;  %v5390_v20 = vmul.f32 %v7040_v58, %v87_v60  ;;  %v6036_v40 = vmul.f32 %v7054_v22, %v87_v60 }
 0x263   :  { %v5903_v61 = vadd.f32 %v5775_v53, %v5257_v7  ;;  %v2028_v5 = vadd.f32 %v1900_v11, %v1382_v34  ;;  %v3192_v55 = vmul.f32 %v6995_v57, %v3063_v2  ;;  %v3838_v0 = vmul.f32 %v7009_v16, %v3709_v52 }
 0x264   :  { %v4484_v19 = vmul.f32 %v7021_v35, %v4355_v39  ;;  %v5001_v43 = vmax.f32 %v4873_v3, 0.0  ;;  %v5519_v23 = vadd.f32 %v7045_v63, %v5390_v20  ;;  %v6165_v46 = vadd.f32 %v7059_v32, %v6036_v40 }
 0x265   :  { %v6549_v59 = vadd.f32 %v6421_v26, %v5903_v61  ;;  %v2674_v44 = vadd.f32 %v2546_v49, %v2028_v5  ;;  %v223_v36 = vmul.f32 %v6918_v4, %v88_v28  ;;  %v869_v60 = vmul.f32 %v6937_v13, %v88_v28 }
 0x266   :  { %v5130_v53 = vmul.f32 %v7035_v51, %v5001_v43  ;;  %v5647_v14 = vmax.f32 %v5519_v23, 0.0  ;;  %v6293_v29 = vmax.f32 %v6165_v46, 0.0  ;;  %v1515_v1 = vmul.f32 %v6955_v25, %v88_v28 }
 0x267   :  { %6677 = vst [vmem:[#allocation7 + $0x168] sm:$0xff] %v6549_v59  ;;  %v3320_v27 = vadd.f32 %v3192_v55, %v2674_v44  ;;  %v352_v15 = vadd.f32 %v6922_v6, %v223_v36  ;;  %v998_v48 = vadd.f32 %v6945_v17, %v869_v60  ;;  %v2161_v11 = vmul.f32 %v6973_v38, %v88_v28 }
 0x268   :  { %v5776_v26 = vmul.f32 %v7048_v12, %v5647_v14  ;;  %v6422_v49 = vmul.f32 %v7061_v37, %v6293_v29  ;;  %v1644_v18 = vadd.f32 %v6964_v30, %v1515_v1  ;;  %v2807_v56 = vmul.f32 %v6988_v50, %v88_v28 }
 0x269   :  { %v3966_v7 = vadd.f32 %v3838_v0, %v3320_v27  ;;  %v480_v34 = vmax.f32 %v352_v15, 0.0  ;;  %v1126_v2 = vmax.f32 %v998_v48, 0.0  ;;  %v2290_v52 = vadd.f32 %v6979_v42, %v2161_v11 }
 0x26a   :  { %v1772_v39 = vmax.f32 %v1644_v18, 0.0  ;;  %v2936_v3 = vadd.f32 %v6993_v54, %v2807_v56  ;;  %v3453_v20 = vmul.f32 %v7001_v62, %v88_v28  ;;  %v4099_v40 = vmul.f32 %v7013_v24, %v88_v28 }
 0x26b   :  { %v4612_v61 = vadd.f32 %v4484_v19, %v3966_v7  ;;  %v609_v5 = vmul.f32 %v6930_v10, %v480_v34  ;;  %v1255_v55 = vmul.f32 %v6951_v21, %v1126_v2  ;;  %v2418_v43 = vmax.f32 %v2290_v52, 0.0  ;;  %v89_v19 = vld [vmem:[#allocation6 + $0x180] sm:$0xff] }
 0x26c   :  { %v1901_v23 = vmul.f32 %v6967_v33, %v1772_v39  ;;  %v3064_v0 = vmax.f32 %v2936_v3, 0.0  ;;  %v3582_v46 = vadd.f32 %v7007_v8, %v3453_v20  ;;  %v4228_v59 = vadd.f32 %v7019_v31, %v4099_v40 }
 0x26d   :  { %v5258_v44 = vadd.f32 %v5130_v53, %v4612_v61  ;;  %v737_v36 = vadd.f32 %v609_v5, %v6928_v9  ;;  %v2547_v60 = vmul.f32 %v6982_v45, %v2418_v43  ;;  %v4745_v14 = vmul.f32 %v7026_v41, %v88_v28 }
 0x26e   :  { %v3193_v29 = vmul.f32 %v6995_v57, %v3064_v0  ;;  %v3710_v1 = vmax.f32 %v3582_v46, 0.0  ;;  %v4356_v27 = vmax.f32 %v4228_v59, 0.0  ;;  %v5391_v15 = vmul.f32 %v7040_v58, %v88_v28 }
 0x26f   :  { %v5904_v48 = vadd.f32 %v5776_v26, %v5258_v44  ;;  %v1383_v11 = vadd.f32 %v1255_v55, %v737_v36  ;;  %v4874_v18 = vadd.f32 %v7032_v47, %v4745_v14  ;;  %v6037_v56 = vmul.f32 %v7054_v22, %v88_v28 }
 0x270   :  { %v3839_v53 = vmul.f32 %v7009_v16, %v3710_v1  ;;  %v4485_v7 = vmul.f32 %v7021_v35, %v4356_v27  ;;  %v5520_v34 = vadd.f32 %v7045_v63, %v5391_v15  ;;  %v224_v2 = vmul.f32 %v6918_v4, %v89_v19 }
 0x271   :  { %v6550_v52 = vadd.f32 %v6422_v49, %v5904_v48  ;;  %v2029_v39 = vadd.f32 %v1901_v23, %v1383_v11  ;;  %v5002_v3 = vmax.f32 %v4874_v18, 0.0  ;;  %v6166_v20 = vadd.f32 %v7059_v32, %v6037_v56 }
 0x272   :  { %v5648_v40 = vmax.f32 %v5520_v34, 0.0  ;;  %v353_v26 = vadd.f32 %v6922_v6, %v224_v2  ;;  %v870_v61 = vmul.f32 %v6937_v13, %v89_v19  ;;  %v1516_v28 = vmul.f32 %v6955_v25, %v89_v19 }
 0x273   :  { %6678 = vst [vmem:[#allocation7 + $0x170] sm:$0xff] %v6550_v52  ;;  %v2675_v5 = vadd.f32 %v2547_v60, %v2029_v39  ;;  %v5131_v55 = vmul.f32 %v7035_v51, %v5002_v3  ;;  %v6294_v43 = vmax.f32 %v6166_v20, 0.0  ;;  %v2162_v0 = vmul.f32 %v6973_v38, %v89_v19 }
 0x274   :  { %v5777_v49 = vmul.f32 %v7048_v12, %v5648_v40  ;;  %v481_v23 = vmax.f32 %v353_v26, 0.0  ;;  %v999_v46 = vadd.f32 %v6945_v17, %v870_v61  ;;  %v1645_v59 = vadd.f32 %v6964_v30, %v1516_v28 }
 0x275   :  { %v3321_v44 = vadd.f32 %v3193_v29, %v2675_v5  ;;  %v6423_v36 = vmul.f32 %v7061_v37, %v6294_v43  ;;  %v2291_v14 = vadd.f32 %v6979_v42, %v2162_v0  ;;  %v2808_v1 = vmul.f32 %v6988_v50, %v89_v19  ;;  %v90_v43 = vld [vmem:[#allocation6 + $0x188] sm:$0xff] }
 0x276   :  { %v610_v60 = vmul.f32 %v6930_v10, %v481_v23  ;;  %v1127_v27 = vmax.f32 %v999_v46, 0.0  ;;  %v1773_v15 = vmax.f32 %v1645_v59, 0.0  ;;  %v3454_v48 = vmul.f32 %v7001_v62, %v89_v19 }
 0x277   :  { %v3967_v11 = vadd.f32 %v3839_v53, %v3321_v44  ;;  %v2419_v18 = vmax.f32 %v2291_v14, 0.0  ;;  %v2937_v56 = vadd.f32 %v6993_v54, %v2808_v1  ;;  %v4100_v34 = vmul.f32 %v7013_v24, %v89_v19 }
 0x278   :  { %v738_v29 = vadd.f32 %v610_v60, %v6928_v9  ;;  %v1256_v2 = vmul.f32 %v6951_v21, %v1127_v27  ;;  %v1902_v52 = vmul.f32 %v6967_v33, %v1773_v15  ;;  %v3583_v39 = vadd.f32 %v7007_v8, %v3454_v48 }
 0x279   :  { %v4613_v3 = vadd.f32 %v4485_v7, %v3967_v11  ;;  %v2548_v20 = vmul.f32 %v6982_v45, %v2419_v18  ;;  %v3065_v40 = vmax.f32 %v2937_v56, 0.0  ;;  %v4229_v26 = vadd.f32 %v7019_v31, %v4100_v34 }
 0x27a   :  { %v1384_v53 = vadd.f32 %v1256_v2, %v738_v29  ;;  %v3711_v61 = vmax.f32 %v3583_v39, 0.0  ;;  %v4746_v28 = vmul.f32 %v7026_v41, %v89_v19  ;;  %v5392_v5 = vmul.f32 %v7040_v58, %v89_v19 }
 0x27b   :  { %v5259_v0 = vadd.f32 %v5131_v55, %v4613_v3  ;;  %v3194_v23 = vmul.f32 %v6995_v57, %v3065_v40  ;;  %v4357_v46 = vmax.f32 %v4229_v26, 0.0  ;;  %v6038_v59 = vmul.f32 %v7054_v22, %v89_v19 }
 0x27c   :  { %v2030_v44 = vadd.f32 %v1902_v52, %v1384_v53  ;;  %v3840_v7 = vmul.f32 %v7009_v16, %v3711_v61  ;;  %v4875_v14 = vadd.f32 %v7032_v47, %v4746_v28  ;;  %v5521_v1 = vadd.f32 %v7045_v63, %v5392_v5 }
 0x27d   :  { %v5905_v60 = vadd.f32 %v5777_v49, %v5259_v0  ;;  %v4486_v27 = vmul.f32 %v7021_v35, %v4357_v46  ;;  %v6167_v15 = vadd.f32 %v7059_v32, %v6038_v59  ;;  %v225_v48 = vmul.f32 %v6918_v4, %v90_v43 }
 0x27e   :  { %v2676_v55 = vadd.f32 %v2548_v20, %v2030_v44  ;;  %v5003_v11 = vmax.f32 %v4875_v14, 0.0  ;;  %v5649_v18 = vmax.f32 %v5521_v1, 0.0  ;;  %v871_v56 = vmul.f32 %v6937_v13, %v90_v43 }
 0x27f   :  { %v6551_v19 = vadd.f32 %v6423_v36, %v5905_v60  ;;  %v6295_v34 = vmax.f32 %v6167_v15, 0.0  ;;  %v354_v29 = vadd.f32 %v6922_v6, %v225_v48  ;;  %v1517_v2 = vmul.f32 %v6955_v25, %v90_v43 }
 0x280   :  { %v3322_v52 = vadd.f32 %v3194_v23, %v2676_v55  ;;  %v5132_v49 = vmul.f32 %v7035_v51, %v5003_v11  ;;  %v5778_v39 = vmul.f32 %v7048_v12, %v5649_v18  ;;  %v1000_v3 = vadd.f32 %v6945_v17, %v871_v56 }
 0x281   :  { %6679 = vst [vmem:[#allocation7 + $0x178] sm:$0xff] %v6551_v19  ;;  %v6424_v20 = vmul.f32 %v7061_v37, %v6295_v34  ;;  %v482_v40 = vmax.f32 %v354_v29, 0.0  ;;  %v1646_v26 = vadd.f32 %v6964_v30, %v1517_v2  ;;  %v2163_v36 = vmul.f32 %v6973_v38, %v90_v43 }
 0x282   :  { %v3968_v53 = vadd.f32 %v3840_v7, %v3322_v52  ;;  %v1128_v61 = vmax.f32 %v1000_v3, 0.0  ;;  %v2809_v28 = vmul.f32 %v6988_v50, %v90_v43  ;;  %v3455_v5 = vmul.f32 %v7001_v62, %v90_v43  ;;  %v91_v52 = vld [vmem:[#allocation6 + $0x190] sm:$0xff] }
 0x283   :  { %v611_v0 = vmul.f32 %v6930_v10, %v482_v40  ;;  %v1774_v23 = vmax.f32 %v1646_v26, 0.0  ;;  %v2292_v46 = vadd.f32 %v6979_v42, %v2163_v36  ;;  %v4101_v59 = vmul.f32 %v7013_v24, %v90_v43 }
 0x284   :  { %v4614_v44 = vadd.f32 %v4486_v27, %v3968_v53  ;;  %v1257_v14 = vmul.f32 %v6951_v21, %v1128_v61  ;;  %v2938_v1 = vadd.f32 %v6993_v54, %v2809_v28  ;;  %v3584_v60 = vadd.f32 %v7007_v8, %v3455_v5 }
 0x285   :  { %v739_v7 = vadd.f32 %v611_v0, %v6928_v9  ;;  %v1903_v15 = vmul.f32 %v6967_v33, %v1774_v23  ;;  %v2420_v48 = vmax.f32 %v2292_v46, 0.0  ;;  %v4230_v55 = vadd.f32 %v7019_v31, %v4101_v59 }
 0x286   :  { %v5260_v11 = vadd.f32 %v5132_v49, %v4614_v44  ;;  %v3066_v18 = vmax.f32 %v2938_v1, 0.0  ;;  %v3712_v56 = vmax.f32 %v3584_v60, 0.0  ;;  %v4747_v19 = vmul.f32 %v7026_v41, %v90_v43 }
 0x287   :  { %v1385_v34 = vadd.f32 %v1257_v14, %v739_v7  ;;  %v2549_v27 = vmul.f32 %v6982_v45, %v2420_v48  ;;  %v4358_v29 = vmax.f32 %v4230_v55, 0.0  ;;  %v5393_v2 = vmul.f32 %v7040_v58, %v90_v43 }
 0x288   :  { %v5906_v3 = vadd.f32 %v5778_v39, %v5260_v11  ;;  %v3195_v40 = vmul.f32 %v6995_v57, %v3066_v18  ;;  %v3841_v26 = vmul.f32 %v7009_v16, %v3712_v56  ;;  %v4876_v36 = vadd.f32 %v7032_v47, %v4747_v19 }
 0x289   :  { %v2031_v53 = vadd.f32 %v1903_v15, %v1385_v34  ;;  %v4487_v49 = vmul.f32 %v7021_v35, %v4358_v29  ;;  %v5522_v61 = vadd.f32 %v7045_v63, %v5393_v2  ;;  %v6039_v28 = vmul.f32 %v7054_v22, %v90_v43 }
 0x28a   :  { %v6552_v5 = vadd.f32 %v6424_v20, %v5906_v3  ;;  %v5004_v0 = vmax.f32 %v4876_v36, 0.0  ;;  %v226_v23 = vmul.f32 %v6918_v4, %v91_v52  ;;  %v872_v46 = vmul.f32 %v6937_v13, %v91_v52 }
 0x28b   :  { %v2677_v39 = vadd.f32 %v2549_v27, %v2031_v53  ;;  %v5650_v59 = vmax.f32 %v5522_v61, 0.0  ;;  %v6168_v44 = vadd.f32 %v7059_v32, %v6039_v28  ;;  %v1518_v14 = vmul.f32 %v6955_v25, %v91_v52 }
 0x28c   :  { %6680 = vst [vmem:[#allocation7 + $0x180] sm:$0xff] %v6552_v5  ;;  %v5133_v1 = vmul.f32 %v7035_v51, %v5004_v0  ;;  %v355_v60 = vadd.f32 %v6922_v6, %v226_v23  ;;  %v1001_v7 = vadd.f32 %v6945_v17, %v872_v46  ;;  %v2164_v43 = vmul.f32 %v6973_v38, %v91_v52 }
 0x28d   :  { %v3323_v20 = vadd.f32 %v3195_v40, %v2677_v39  ;;  %v5779_v15 = vmul.f32 %v7048_v12, %v5650_v59  ;;  %v6296_v48 = vmax.f32 %v6168_v44, 0.0  ;;  %v1647_v55 = vadd.f32 %v6964_v30, %v1518_v14 }
 0x28e   :  { %v483_v11 = vmax.f32 %v355_v60, 0.0  ;;  %v1129_v18 = vmax.f32 %v1001_v7, 0.0  ;;  %v2293_v56 = vadd.f32 %v6979_v42, %v2164_v43  ;;  %v2810_v19 = vmul.f32 %v6988_v50, %v91_v52 }
 0x28f   :  { %v3969_v34 = vadd.f32 %v3841_v26, %v3323_v20  ;;  %v6425_v27 = vmul.f32 %v7061_v37, %v6296_v48  ;;  %v1775_v29 = vmax.f32 %v1647_v55, 0.0  ;;  %v3456_v2 = vmul.f32 %v7001_v62, %v91_v52 }
 0x290   :  { %v612_v3 = vmul.f32 %v6930_v10, %v483_v11  ;;  %v1258_v40 = vmul.f32 %v6951_v21, %v1129_v18  ;;  %v2421_v36 = vmax.f32 %v2293_v56, 0.0  ;;  %v2939_v53 = vadd.f32 %v6993_v54, %v2810_v19 }
 0x291   :  { %v4615_v61 = vadd.f32 %v4487_v49, %v3969_v34  ;;  %v1904_v28 = vmul.f32 %v6967_v33, %v1775_v29  ;;  %v3585_v5 = vadd.f32 %v7007_v8, %v3456_v2  ;;  %v4102_v0 = vmul.f32 %v7013_v24, %v91_v52  ;;  %v92_v49 = vld [vmem:[#allocation6 + $0x198] sm:$0xff] }
 0x292   :  { %v740_v26 = vadd.f32 %v612_v3, %v6928_v9  ;;  %v2550_v23 = vmul.f32 %v6982_v45, %v2421_v36  ;;  %v3067_v46 = vmax.f32 %v2939_v53, 0.0  ;;  %v4748_v39 = vmul.f32 %v7026_v41, %v91_v52 }
 0x293   :  { %v5261_v59 = vadd.f32 %v5133_v1, %v4615_v61  ;;  %v3713_v44 = vmax.f32 %v3585_v5, 0.0  ;;  %v4231_v14 = vadd.f32 %v7019_v31, %v4102_v0  ;;  %v5394_v60 = vmul.f32 %v7040_v58, %v91_v52 }
 0x294   :  { %v1386_v7 = vadd.f32 %v1258_v40, %v740_v26  ;;  %v3196_v43 = vmul.f32 %v6995_v57, %v3067_v46  ;;  %v4877_v20 = vadd.f32 %v7032_v47, %v4748_v39  ;;  %v6040_v48 = vmul.f32 %v7054_v22, %v91_v52 }
 0x295   :  { %v5907_v55 = vadd.f32 %v5779_v15, %v5261_v59  ;;  %v3842_v11 = vmul.f32 %v7009_v16, %v3713_v44  ;;  %v4359_v18 = vmax.f32 %v4231_v14, 0.0  ;;  %v5523_v56 = vadd.f32 %v7045_v63, %v5394_v60 }
 0x296   :  { %v2032_v1 = vadd.f32 %v1904_v28, %v1386_v7  ;;  %v5005_v19 = vmax.f32 %v4877_v20, 0.0  ;;  %v6169_v34 = vadd.f32 %v7059_v32, %v6040_v48  ;;  %v227_v29 = vmul.f32 %v6918_v4, %v92_v49 }
 0x297   :  { %v6553_v2 = vadd.f32 %v6425_v27, %v5907_v55  ;;  %v4488_v3 = vmul.f32 %v7021_v35, %v4359_v18  ;;  %v5651_v40 = vmax.f32 %v5523_v56, 0.0  ;;  %v873_v36 = vmul.f32 %v6937_v13, %v92_v49 }
 0x298   :  { %v2678_v53 = vadd.f32 %v2550_v23, %v2032_v1  ;;  %v5134_v52 = vmul.f32 %v7035_v51, %v5005_v19  ;;  %v6297_v15 = vmax.f32 %v6169_v34, 0.0  ;;  %v356_v61 = vadd.f32 %v6922_v6, %v227_v29 }
 0x299   :  { %6681 = vst [vmem:[#allocation7 + $0x188] sm:$0xff] %v6553_v2  ;;  %v5780_v28 = vmul.f32 %v7048_v12, %v5651_v40  ;;  %v1002_v5 = vadd.f32 %v6945_v17, %v873_v36  ;;  %v1519_v0 = vmul.f32 %v6955_v25, %v92_v49  ;;  %v2165_v27 = vmul.f32 %v6973_v38, %v92_v49 }
 0x29a   :  { %v3324_v26 = vadd.f32 %v3196_v43, %v2678_v53  ;;  %v6426_v46 = vmul.f32 %v7061_v37, %v6297_v15  ;;  %v484_v39 = vmax.f32 %v356_v61, 0.0  ;;  %v2811_v23 = vmul.f32 %v6988_v50, %v92_v49  ;;  %v93_v15 = vld [vmem:[#allocation6 + $0x1a0] sm:$0xff] }
 0x29b   :  { %v1130_v59 = vmax.f32 %v1002_v5, 0.0  ;;  %v1648_v44 = vadd.f32 %v6964_v30, %v1519_v0  ;;  %v2294_v14 = vadd.f32 %v6979_v42, %v2165_v27  ;;  %v3457_v60 = vmul.f32 %v7001_v62, %v92_v49 }
 0x29c   :  { %v3970_v7 = vadd.f32 %v3842_v11, %v3324_v26  ;;  %v613_v20 = vmul.f32 %v6930_v10, %v484_v39  ;;  %v2940_v48 = vadd.f32 %v6993_v54, %v2811_v23  ;;  %v4103_v55 = vmul.f32 %v7013_v24, %v92_v49 }
 0x29d   :  { %v1259_v43 = vmul.f32 %v6951_v21, %v1130_v59  ;;  %v1776_v18 = vmax.f32 %v1648_v44, 0.0  ;;  %v2422_v56 = vmax.f32 %v2294_v14, 0.0  ;;  %v3586_v1 = vadd.f32 %v7007_v8, %v3457_v60 }
 0x29e   :  { %v4616_v19 = vadd.f32 %v4488_v3, %v3970_v7  ;;  %v741_v34 = vadd.f32 %v613_v20, %v6928_v9  ;;  %v3068_v29 = vmax.f32 %v2940_v48, 0.0  ;;  %v4232_v2 = vadd.f32 %v7019_v31, %v4103_v55 }
 0x29f   :  { %v1905_v11 = vmul.f32 %v6967_v33, %v1776_v18  ;;  %v2551_v40 = vmul.f32 %v6982_v45, %v2422_v56  ;;  %v3714_v36 = vmax.f32 %v3586_v1, 0.0  ;;  %v4749_v53 = vmul.f32 %v7026_v41, %v92_v49 }
 0x2a0   :  { %v5262_v61 = vadd.f32 %v5134_v52, %v4616_v19  ;;  %v1387_v5 = vadd.f32 %v1259_v43, %v741_v34  ;;  %v3197_v0 = vmul.f32 %v6995_v57, %v3068_v29  ;;  %v4360_v27 = vmax.f32 %v4232_v2, 0.0 }
 0x2a1   :  { %v3843_v3 = vmul.f32 %v7009_v16, %v3714_v36  ;;  %v4878_v26 = vadd.f32 %v7032_v47, %v4749_v53  ;;  %v5395_v39 = vmul.f32 %v7040_v58, %v92_v49  ;;  %v6041_v23 = vmul.f32 %v7054_v22, %v92_v49 }
 0x2a2   :  { %v5908_v59 = vadd.f32 %v5780_v28, %v5262_v61  ;;  %v2033_v44 = vadd.f32 %v1905_v11, %v1387_v5  ;;  %v4489_v14 = vmul.f32 %v7021_v35, %v4360_v27  ;;  %v228_v60 = vmul.f32 %v6918_v4, %v93_v15 }
 0x2a3   :  { %v5006_v7 = vmax.f32 %v4878_v26, 0.0  ;;  %v5524_v52 = vadd.f32 %v7045_v63, %v5395_v39  ;;  %v6170_v20 = vadd.f32 %v7059_v32, %v6041_v23  ;;  %v874_v48 = vmul.f32 %v6937_v13, %v93_v15 }
 0x2a4   :  { %v6554_v55 = vadd.f32 %v6426_v46, %v5908_v59  ;;  %v2679_v43 = vadd.f32 %v2551_v40, %v2033_v44  ;;  %v357_v18 = vadd.f32 %v6922_v6, %v228_v60  ;;  %v1520_v56 = vmul.f32 %v6955_v25, %v93_v15 }
 0x2a5   :  { %v5135_v49 = vmul.f32 %v7035_v51, %v5006_v7  ;;  %v5652_v28 = vmax.f32 %v5524_v52, 0.0  ;;  %v6298_v1 = vmax.f32 %v6170_v20, 0.0  ;;  %v1003_v19 = vadd.f32 %v6945_v17, %v874_v48 }
 0x2a6   :  { %6682 = vst [vmem:[#allocation7 + $0x190] sm:$0xff] %v6554_v55  ;;  %v3325_v34 = vadd.f32 %v3197_v0, %v2679_v43  ;;  %v485_v29 = vmax.f32 %v357_v18, 0.0  ;;  %v1649_v2 = vadd.f32 %v6964_v30, %v1520_v56  ;;  %v2166_v11 = vmul.f32 %v6973_v38, %v93_v15 }
 0x2a7   :  { %v5781_v46 = vmul.f32 %v7048_v12, %v5652_v28  ;;  %v6427_v40 = vmul.f32 %v7061_v37, %v6298_v1  ;;  %v1131_v36 = vmax.f32 %v1003_v19, 0.0  ;;  %v2812_v53 = vmul.f32 %v6988_v50, %v93_v15  ;;  %v94_v1 = vld [vmem:[#allocation6 + $0x1a8] sm:$0xff] }
 0x2a8   :  { %v3971_v61 = vadd.f32 %v3843_v3, %v3325_v34  ;;  %v614_v5 = vmul.f32 %v6930_v10, %v485_v29  ;;  %v1777_v27 = vmax.f32 %v1649_v2, 0.0  ;;  %v2295_v26 = vadd.f32 %v6979_v42, %v2166_v11 }
 0x2a9   :  { %v1260_v0 = vmul.f32 %v6951_v21, %v1131_v36  ;;  %v2941_v39 = vadd.f32 %v6993_v54, %v2812_v53  ;;  %v3458_v23 = vmul.f32 %v7001_v62, %v93_v15  ;;  %v4104_v59 = vmul.f32 %v7013_v24, %v93_v15 }
 0x2aa   :  { %v4617_v44 = vadd.f32 %v4489_v14, %v3971_v61  ;;  %v742_v60 = vadd.f32 %v614_v5, %v6928_v9  ;;  %v1906_v7 = vmul.f32 %v6967_v33, %v1777_v27  ;;  %v2423_v52 = vmax.f32 %v2295_v26, 0.0 }
 0x2ab   :  { %v3069_v3 = vmax.f32 %v2941_v39, 0.0  ;;  %v3587_v20 = vadd.f32 %v7007_v8, %v3458_v23  ;;  %v4233_v48 = vadd.f32 %v7019_v31, %v4104_v59  ;;  %v4750_v55 = vmul.f32 %v7026_v41, %v93_v15 }
 0x2ac   :  { %v5263_v43 = vadd.f32 %v5135_v49, %v4617_v44  ;;  %v1388_v18 = vadd.f32 %v1260_v0, %v742_v60  ;;  %v2552_v56 = vmul.f32 %v6982_v45, %v2423_v52  ;;  %v5396_v28 = vmul.f32 %v7040_v58, %v93_v15 }
 0x2ad   :  { %v3198_v14 = vmul.f32 %v6995_v57, %v3069_v3  ;;  %v3715_v19 = vmax.f32 %v3587_v20, 0.0  ;;  %v4361_v34 = vmax.f32 %v4233_v48, 0.0  ;;  %v4879_v29 = vadd.f32 %v7032_v47, %v4750_v55 }
 0x2ae   :  { %v5909_v2 = vadd.f32 %v5781_v46, %v5263_v43  ;;  %v2034_v11 = vadd.f32 %v1906_v7, %v1388_v18  ;;  %v5525_v36 = vadd.f32 %v7045_v63, %v5396_v28  ;;  %v6042_v53 = vmul.f32 %v7054_v22, %v93_v15 }
 0x2af   :  { %v3844_v49 = vmul.f32 %v7009_v16, %v3715_v19  ;;  %v4490_v61 = vmul.f32 %v7021_v35, %v4361_v34  ;;  %v5007_v5 = vmax.f32 %v4879_v29, 0.0  ;;  %v229_v27 = vmul.f32 %v6918_v4, %v94_v1 }
 0x2b0   :  { %v6555_v26 = vadd.f32 %v6427_v40, %v5909_v2  ;;  %v2680_v0 = vadd.f32 %v2552_v56, %v2034_v11  ;;  %v5653_v39 = vmax.f32 %v5525_v36, 0.0  ;;  %v6171_v23 = vadd.f32 %v7059_v32, %v6042_v53 }
 0x2b1   :  { %v5136_v59 = vmul.f32 %v7035_v51, %v5007_v5  ;;  %v358_v46 = vadd.f32 %v6922_v6, %v229_v27  ;;  %v875_v44 = vmul.f32 %v6937_v13, %v94_v1  ;;  %v1521_v15 = vmul.f32 %v6955_v25, %v94_v1 }
 0x2b2   :  { %6683 = vst [vmem:[#allocation7 + $0x198] sm:$0xff] %v6555_v26  ;;  %v3326_v60 = vadd.f32 %v3198_v14, %v2680_v0  ;;  %v5782_v7 = vmul.f32 %v7048_v12, %v5653_v39  ;;  %v6299_v52 = vmax.f32 %v6171_v23, 0.0  ;;  %v2167_v3 = vmul.f32 %v6973_v38, %v94_v1 }
 0x2b3   :  { %v486_v40 = vmax.f32 %v358_v46, 0.0  ;;  %v1004_v20 = vadd.f32 %v6945_v17, %v875_v44  ;;  %v1650_v48 = vadd.f32 %v6964_v30, %v1521_v15  ;;  %v2813_v55 = vmul.f32 %v6988_v50, %v94_v1  ;;  %v95_v44 = vld [vmem:[#allocation6 + $0x1b0] sm:$0xff] }
 0x2b4   :  { %v3972_v43 = vadd.f32 %v3844_v49, %v3326_v60  ;;  %v6428_v18 = vmul.f32 %v7061_v37, %v6299_v52  ;;  %v2296_v56 = vadd.f32 %v6979_v42, %v2167_v3  ;;  %v3459_v28 = vmul.f32 %v7001_v62, %v94_v1 }
 0x2b5   :  { %v615_v14 = vmul.f32 %v6930_v10, %v486_v40  ;;  %v1132_v19 = vmax.f32 %v1004_v20, 0.0  ;;  %v1778_v34 = vmax.f32 %v1650_v48, 0.0  ;;  %v2942_v29 = vadd.f32 %v6993_v54, %v2813_v55 }
 0x2b6   :  { %v4618_v2 = vadd.f32 %v4490_v61, %v3972_v43  ;;  %v2424_v11 = vmax.f32 %v2296_v56, 0.0  ;;  %v3588_v36 = vadd.f32 %v7007_v8, %v3459_v28  ;;  %v4105_v53 = vmul.f32 %v7013_v24, %v94_v1 }
 0x2b7   :  { %v743_v49 = vadd.f32 %v615_v14, %v6928_v9  ;;  %v1261_v5 = vmul.f32 %v6951_v21, %v1132_v19  ;;  %v1907_v27 = vmul.f32 %v6967_v33, %v1778_v34  ;;  %v3070_v26 = vmax.f32 %v2942_v29, 0.0 }
 0x2b8   :  { %v5264_v0 = vadd.f32 %v5136_v59, %v4618_v2  ;;  %v2553_v39 = vmul.f32 %v6982_v45, %v2424_v11  ;;  %v3716_v23 = vmax.f32 %v3588_v36, 0.0  ;;  %v4234_v46 = vadd.f32 %v7019_v31, %v4105_v53 }
 0x2b9   :  { %v1389_v61 = vadd.f32 %v1261_v5, %v743_v49  ;;  %v3199_v15 = vmul.f32 %v6995_v57, %v3070_v26  ;;  %v4751_v60 = vmul.f32 %v7026_v41, %v94_v1  ;;  %v5397_v52 = vmul.f32 %v7040_v58, %v94_v1 }
 0x2ba   :  { %v5910_v3 = vadd.f32 %v5782_v7, %v5264_v0  ;;  %v3845_v40 = vmul.f32 %v7009_v16, %v3716_v23  ;;  %v4362_v20 = vmax.f32 %v4234_v46, 0.0  ;;  %v6043_v48 = vmul.f32 %v7054_v22, %v94_v1 }
 0x2bb   :  { %v2035_v59 = vadd.f32 %v1907_v27, %v1389_v61  ;;  %v4880_v55 = vadd.f32 %v7032_v47, %v4751_v60  ;;  %v5526_v43 = vadd.f32 %v7045_v63, %v5397_v52  ;;  %v230_v56 = vmul.f32 %v6918_v4, %v95_v44 }
 0x2bc   :  { %v6556_v28 = vadd.f32 %v6428_v18, %v5910_v3  ;;  %v4491_v14 = vmul.f32 %v7021_v35, %v4362_v20  ;;  %v6172_v19 = vadd.f32 %v7059_v32, %v6043_v48  ;;  %v876_v34 = vmul.f32 %v6937_v13, %v95_v44 }
 0x2bd   :  { %v2681_v7 = vadd.f32 %v2553_v39, %v2035_v59  ;;  %v5008_v29 = vmax.f32 %v4880_v55, 0.0  ;;  %v5654_v2 = vmax.f32 %v5526_v43, 0.0  ;;  %v359_v11 = vadd.f32 %v6922_v6, %v230_v56 }
 0x2be   :  { %6684 = vst [vmem:[#allocation7 + $0x1a0] sm:$0xff] %v6556_v28  ;;  %v6300_v1 = vmax.f32 %v6172_v19, 0.0  ;;  %v1005_v36 = vadd.f32 %v6945_v17, %v876_v34  ;;  %v1522_v53 = vmul.f32 %v6955_v25, %v95_v44  ;;  %v2168_v49 = vmul.f32 %v6973_v38, %v95_v44 }
 0x2bf   :  { %v3327_v18 = vadd.f32 %v3199_v15, %v2681_v7  ;;  %v5137_v5 = vmul.f32 %v7035_v51, %v5008_v29  ;;  %v5783_v27 = vmul.f32 %v7048_v12, %v5654_v2  ;;  %v487_v26 = vmax.f32 %v359_v11, 0.0 }
 0x2c0   :  { %v6429_v0 = vmul.f32 %v7061_v37, %v6300_v1  ;;  %v1133_v39 = vmax.f32 %v1005_v36, 0.0  ;;  %v1651_v23 = vadd.f32 %v6964_v30, %v1522_v53  ;;  %v2297_v46 = vadd.f32 %v6979_v42, %v2168_v49 }
 0x2c1   :  { %v3973_v61 = vadd.f32 %v3845_v40, %v3327_v18  ;;  %v616_v60 = vmul.f32 %v6930_v10, %v487_v26  ;;  %v2814_v52 = vmul.f32 %v6988_v50, %v95_v44  ;;  %v3460_v3 = vmul.f32 %v7001_v62, %v95_v44  ;;  %v96_v18 = vld [vmem:[#allocation6 + $0x1b8] sm:$0xff] }
 0x2c2   :  { %v1262_v15 = vmul.f32 %v6951_v21, %v1133_v39  ;;  %v1779_v20 = vmax.f32 %v1651_v23, 0.0  ;;  %v2425_v48 = vmax.f32 %v2297_v46, 0.0  ;;  %v4106_v59 = vmul.f32 %v7013_v24, %v95_v44 }
 0x2c3   :  { %v4619_v55 = vadd.f32 %v4491_v14, %v3973_v61  ;;  %v744_v43 = vadd.f32 %v616_v60, %v6928_v9  ;;  %v2943_v56 = vadd.f32 %v6993_v54, %v2814_v52  ;;  %v3589_v28 = vadd.f32 %v7007_v8, %v3460_v3 }
 0x2c4   :  { %v1908_v40 = vmul.f32 %v6967_v33, %v1779_v20  ;;  %v2554_v19 = vmul.f32 %v6982_v45, %v2425_v48  ;;  %v4235_v34 = vadd.f32 %v7019_v31, %v4106_v59  ;;  %v4752_v7 = vmul.f32 %v7026_v41, %v95_v44 }
 0x2c5   :  { %v5265_v29 = vadd.f32 %v5137_v5, %v4619_v55  ;;  %v1390_v2 = vadd.f32 %v1262_v15, %v744_v43  ;;  %v3071_v11 = vmax.f32 %v2943_v56, 0.0  ;;  %v3717_v1 = vmax.f32 %v3589_v28, 0.0 }
 0x2c6   :  { %v4363_v36 = vmax.f32 %v4235_v34, 0.0  ;;  %v4881_v14 = vadd.f32 %v7032_v47, %v4752_v7  ;;  %v5398_v53 = vmul.f32 %v7040_v58, %v95_v44  ;;  %v6044_v49 = vmul.f32 %v7054_v22, %v95_v44 }
 0x2c7   :  { %v5911_v26 = vadd.f32 %v5783_v27, %v5265_v29  ;;  %v2036_v39 = vadd.f32 %v1908_v40, %v1390_v2  ;;  %v3200_v23 = vmul.f32 %v6995_v57, %v3071_v11  ;;  %v3846_v46 = vmul.f32 %v7009_v16, %v3717_v1 }
 0x2c8   :  { %v4492_v61 = vmul.f32 %v7021_v35, %v4363_v36  ;;  %v5009_v5 = vmax.f32 %v4881_v14, 0.0  ;;  %v5527_v60 = vadd.f32 %v7045_v63, %v5398_v53  ;;  %v6173_v52 = vadd.f32 %v7059_v32, %v6044_v49 }
 0x2c9   :  { %v6557_v3 = vadd.f32 %v6429_v0, %v5911_v26  ;;  %v2682_v15 = vadd.f32 %v2554_v19, %v2036_v39  ;;  %v231_v20 = vmul.f32 %v6918_v4, %v96_v18  ;;  %v877_v44 = vmul.f32 %v6937_v13, %v96_v18 }
 0x2ca   :  { %v5138_v27 = vmul.f32 %v7035_v51, %v5009_v5  ;;  %v5655_v48 = vmax.f32 %v5527_v60, 0.0  ;;  %v6301_v59 = vmax.f32 %v6173_v52, 0.0  ;;  %v1523_v55 = vmul.f32 %v6955_v25, %v96_v18 }
 0x2cb   :  { %6685 = vst [vmem:[#allocation7 + $0x1a8] sm:$0xff] %v6557_v3  ;;  %v3328_v43 = vadd.f32 %v3200_v23, %v2682_v15  ;;  %v360_v56 = vadd.f32 %v6922_v6, %v231_v20  ;;  %v1006_v28 = vadd.f32 %v6945_v17, %v877_v44  ;;  %v2169_v40 = vmul.f32 %v6973_v38, %v96_v18 }
 0x2cc   :  { %v5784_v0 = vmul.f32 %v7048_v12, %v5655_v48  ;;  %v6430_v19 = vmul.f32 %v7061_v37, %v6301_v59  ;;  %v1652_v34 = vadd.f32 %v6964_v30, %v1523_v55  ;;  %v2815_v7 = vmul.f32 %v6988_v50, %v96_v18 }
 0x2cd   :  { %v3974_v29 = vadd.f32 %v3846_v46, %v3328_v43  ;;  %v488_v2 = vmax.f32 %v360_v56, 0.0  ;;  %v1134_v11 = vmax.f32 %v1006_v28, 0.0  ;;  %v2298_v1 = vadd.f32 %v6979_v42, %v2169_v40 }
 0x2ce   :  { %v1780_v36 = vmax.f32 %v1652_v34, 0.0  ;;  %v2944_v14 = vadd.f32 %v6993_v54, %v2815_v7  ;;  %v3461_v53 = vmul.f32 %v7001_v62, %v96_v18  ;;  %v4107_v49 = vmul.f32 %v7013_v24, %v96_v18 }
 0x2cf   :  { %v4620_v26 = vadd.f32 %v4492_v61, %v3974_v29  ;;  %v617_v39 = vmul.f32 %v6930_v10, %v488_v2  ;;  %v1263_v23 = vmul.f32 %v6951_v21, %v1134_v11  ;;  %v2426_v5 = vmax.f32 %v2298_v1, 0.0  ;;  %v97_v61 = vld [vmem:[#allocation6 + $0x1c0] sm:$0xff] }
 0x2d0   :  { %v1909_v60 = vmul.f32 %v6967_v33, %v1780_v36  ;;  %v3072_v46 = vmax.f32 %v2944_v14, 0.0  ;;  %v3590_v52 = vadd.f32 %v7007_v8, %v3461_v53  ;;  %v4236_v3 = vadd.f32 %v7019_v31, %v4107_v49 }
 0x2d1   :  { %v5266_v15 = vadd.f32 %v5138_v27, %v4620_v26  ;;  %v745_v20 = vadd.f32 %v617_v39, %v6928_v9  ;;  %v2555_v44 = vmul.f32 %v6982_v45, %v2426_v5  ;;  %v4753_v48 = vmul.f32 %v7026_v41, %v96_v18 }
 0x2d2   :  { %v3201_v59 = vmul.f32 %v6995_v57, %v3072_v46  ;;  %v3718_v55 = vmax.f32 %v3590_v52, 0.0  ;;  %v4364_v43 = vmax.f32 %v4236_v3, 0.0  ;;  %v5399_v56 = vmul.f32 %v7040_v58, %v96_v18 }
 0x2d3   :  { %v5912_v28 = vadd.f32 %v5784_v0, %v5266_v15  ;;  %v1391_v40 = vadd.f32 %v1263_v23, %v745_v20  ;;  %v4882_v34 = vadd.f32 %v7032_v47, %v4753_v48  ;;  %v6045_v7 = vmul.f32 %v7054_v22, %v96_v18 }
 0x2d4   :  { %v3847_v27 = vmul.f32 %v7009_v16, %v3718_v55  ;;  %v4493_v29 = vmul.f32 %v7021_v35, %v4364_v43  ;;  %v5528_v2 = vadd.f32 %v7045_v63, %v5399_v56  ;;  %v232_v11 = vmul.f32 %v6918_v4, %v97_v61 }
 0x2d5   :  { %v6558_v1 = vadd.f32 %v6430_v19, %v5912_v28  ;;  %v2037_v36 = vadd.f32 %v1909_v60, %v1391_v40  ;;  %v5010_v14 = vmax.f32 %v4882_v34, 0.0  ;;  %v6174_v53 = vadd.f32 %v7059_v32, %v6045_v7 }
 0x2d6   :  { %v5656_v49 = vmax.f32 %v5528_v2, 0.0  ;;  %v361_v0 = vadd.f32 %v6922_v6, %v232_v11  ;;  %v878_v26 = vmul.f32 %v6937_v13, %v97_v61  ;;  %v1524_v18 = vmul.f32 %v6955_v25, %v97_v61 }
 0x2d7   :  { %6686 = vst [vmem:[#allocation7 + $0x1b0] sm:$0xff] %v6558_v1  ;;  %v2683_v39 = vadd.f32 %v2555_v44, %v2037_v36  ;;  %v5139_v23 = vmul.f32 %v7035_v51, %v5010_v14  ;;  %v6302_v5 = vmax.f32 %v6174_v53, 0.0  ;;  %v2170_v46 = vmul.f32 %v6973_v38, %v97_v61 }
 0x2d8   :  { %v5785_v19 = vmul.f32 %v7048_v12, %v5656_v49  ;;  %v489_v60 = vmax.f32 %v361_v0, 0.0  ;;  %v1007_v52 = vadd.f32 %v6945_v17, %v878_v26  ;;  %v1653_v3 = vadd.f32 %v6964_v30, %v1524_v18 }
 0x2d9   :  { %v3329_v15 = vadd.f32 %v3201_v59, %v2683_v39  ;;  %v6431_v20 = vmul.f32 %v7061_v37, %v6302_v5  ;;  %v2299_v48 = vadd.f32 %v6979_v42, %v2170_v46  ;;  %v2816_v55 = vmul.f32 %v6988_v50, %v97_v61  ;;  %v98_v5 = vld [vmem:[#allocation6 + $0x1c8] sm:$0xff] }
 0x2da   :  { %v618_v44 = vmul.f32 %v6930_v10, %v489_v60  ;;  %v1135_v43 = vmax.f32 %v1007_v52, 0.0  ;;  %v1781_v56 = vmax.f32 %v1653_v3, 0.0  ;;  %v3462_v28 = vmul.f32 %v7001_v62, %v97_v61 }
 0x2db   :  { %v3975_v40 = vadd.f32 %v3847_v27, %v3329_v15  ;;  %v2427_v34 = vmax.f32 %v2299_v48, 0.0  ;;  %v2945_v7 = vadd.f32 %v6993_v54, %v2816_v55  ;;  %v4108_v2 = vmul.f32 %v7013_v24, %v97_v61 }
 0x2dc   :  { %v746_v59 = vadd.f32 %v618_v44, %v6928_v9  ;;  %v1264_v11 = vmul.f32 %v6951_v21, %v1135_v43  ;;  %v1910_v1 = vmul.f32 %v6967_v33, %v1781_v56  ;;  %v3591_v36 = vadd.f32 %v7007_v8, %v3462_v28 }
 0x2dd   :  { %v4621_v14 = vadd.f32 %v4493_v29, %v3975_v40  ;;  %v2556_v53 = vmul.f32 %v6982_v45, %v2427_v34  ;;  %v3073_v49 = vmax.f32 %v2945_v7, 0.0  ;;  %v4237_v0 = vadd.f32 %v7019_v31, %v4108_v2 }
 0x2de   :  { %v1392_v27 = vadd.f32 %v1264_v11, %v746_v59  ;;  %v3719_v26 = vmax.f32 %v3591_v36, 0.0  ;;  %v4754_v18 = vmul.f32 %v7026_v41, %v97_v61  ;;  %v5400_v39 = vmul.f32 %v7040_v58, %v97_v61 }
 0x2df   :  { %v5267_v46 = vadd.f32 %v5139_v23, %v4621_v14  ;;  %v3202_v60 = vmul.f32 %v6995_v57, %v3073_v49  ;;  %v4365_v52 = vmax.f32 %v4237_v0, 0.0  ;;  %v6046_v3 = vmul.f32 %v7054_v22, %v97_v61 }
 0x2e0   :  { %v2038_v15 = vadd.f32 %v1910_v1, %v1392_v27  ;;  %v3848_v29 = vmul.f32 %v7009_v16, %v3719_v26  ;;  %v4883_v48 = vadd.f32 %v7032_v47, %v4754_v18  ;;  %v5529_v55 = vadd.f32 %v7045_v63, %v5400_v39 }
 0x2e1   :  { %v5913_v44 = vadd.f32 %v5785_v19, %v5267_v46  ;;  %v4494_v43 = vmul.f32 %v7021_v35, %v4365_v52  ;;  %v6175_v56 = vadd.f32 %v7059_v32, %v6046_v3  ;;  %v233_v28 = vmul.f32 %v6918_v4, %v98_v5 }
 0x2e2   :  { %v2684_v23 = vadd.f32 %v2556_v53, %v2038_v15  ;;  %v5011_v40 = vmax.f32 %v4883_v48, 0.0  ;;  %v5657_v34 = vmax.f32 %v5529_v55, 0.0  ;;  %v879_v7 = vmul.f32 %v6937_v13, %v98_v5 }
 0x2e3   :  { %v6559_v61 = vadd.f32 %v6431_v20, %v5913_v44  ;;  %v6303_v2 = vmax.f32 %v6175_v56, 0.0  ;;  %v362_v59 = vadd.f32 %v6922_v6, %v233_v28  ;;  %v1525_v11 = vmul.f32 %v6955_v25, %v98_v5 }
 0x2e4   :  { %v3330_v1 = vadd.f32 %v3202_v60, %v2684_v23  ;;  %v5140_v19 = vmul.f32 %v7035_v51, %v5011_v40  ;;  %v5786_v36 = vmul.f32 %v7048_v12, %v5657_v34  ;;  %v1008_v14 = vadd.f32 %v6945_v17, %v879_v7 }
 0x2e5   :  { %6687 = vst [vmem:[#allocation7 + $0x1b8] sm:$0xff] %v6559_v61  ;;  %v6432_v53 = vmul.f32 %v7061_v37, %v6303_v2  ;;  %v490_v49 = vmax.f32 %v362_v59, 0.0  ;;  %v1654_v0 = vadd.f32 %v6964_v30, %v1525_v11  ;;  %v2171_v20 = vmul.f32 %v6973_v38, %v98_v5 }
 0x2e6   :  { %v3976_v27 = vadd.f32 %v3848_v29, %v3330_v1  ;;  %v1136_v26 = vmax.f32 %v1008_v14, 0.0  ;;  %v2817_v18 = vmul.f32 %v6988_v50, %v98_v5  ;;  %v3463_v39 = vmul.f32 %v7001_v62, %v98_v5  ;;  %v99_v1 = vld [vmem:[#allocation6 + $0x1d0] sm:$0xff] }
 0x2e7   :  { %v619_v46 = vmul.f32 %v6930_v10, %v490_v49  ;;  %v1782_v60 = vmax.f32 %v1654_v0, 0.0  ;;  %v2300_v52 = vadd.f32 %v6979_v42, %v2171_v20  ;;  %v4109_v3 = vmul.f32 %v7013_v24, %v98_v5 }
 0x2e8   :  { %v4622_v15 = vadd.f32 %v4494_v43, %v3976_v27  ;;  %v1265_v48 = vmul.f32 %v6951_v21, %v1136_v26  ;;  %v2946_v55 = vadd.f32 %v6993_v54, %v2817_v18  ;;  %v3592_v44 = vadd.f32 %v7007_v8, %v3463_v39 }
 0x2e9   :  { %v747_v29 = vadd.f32 %v619_v46, %v6928_v9  ;;  %v1911_v56 = vmul.f32 %v6967_v33, %v1782_v60  ;;  %v2428_v28 = vmax.f32 %v2300_v52, 0.0  ;;  %v4238_v23 = vadd.f32 %v7019_v31, %v4109_v3 }
 0x2ea   :  { %v5268_v40 = vadd.f32 %v5140_v19, %v4622_v15  ;;  %v3074_v34 = vmax.f32 %v2946_v55, 0.0  ;;  %v3720_v7 = vmax.f32 %v3592_v44, 0.0  ;;  %v4755_v61 = vmul.f32 %v7026_v41, %v98_v5 }
 0x2eb   :  { %v1393_v2 = vadd.f32 %v1265_v48, %v747_v29  ;;  %v2557_v43 = vmul.f32 %v6982_v45, %v2428_v28  ;;  %v4366_v59 = vmax.f32 %v4238_v23, 0.0  ;;  %v5401_v11 = vmul.f32 %v7040_v58, %v98_v5 }
 0x2ec   :  { %v5914_v14 = vadd.f32 %v5786_v36, %v5268_v40  ;;  %v3203_v49 = vmul.f32 %v6995_v57, %v3074_v34  ;;  %v3849_v0 = vmul.f32 %v7009_v16, %v3720_v7  ;;  %v4884_v20 = vadd.f32 %v7032_v47, %v4755_v61 }
 0x2ed   :  { %v2039_v27 = vadd.f32 %v1911_v56, %v1393_v2  ;;  %v4495_v19 = vmul.f32 %v7021_v35, %v4366_v59  ;;  %v5530_v26 = vadd.f32 %v7045_v63, %v5401_v11  ;;  %v6047_v18 = vmul.f32 %v7054_v22, %v98_v5 }
 0x2ee   :  { %v6560_v39 = vadd.f32 %v6432_v53, %v5914_v14  ;;  %v5012_v46 = vmax.f32 %v4884_v20, 0.0  ;;  %v234_v60 = vmul.f32 %v6918_v4, %v99_v1  ;;  %v880_v52 = vmul.f32 %v6937_v13, %v99_v1 }
 0x2ef   :  { %v2685_v36 = vadd.f32 %v2557_v43, %v2039_v27  ;;  %v5658_v3 = vmax.f32 %v5530_v26, 0.0  ;;  %v6176_v15 = vadd.f32 %v7059_v32, %v6047_v18  ;;  %v1526_v48 = vmul.f32 %v6955_v25, %v99_v1 }
 0x2f0   :  { %6688 = vst [vmem:[#allocation7 + $0x1c0] sm:$0xff] %v6560_v39  ;;  %v5141_v55 = vmul.f32 %v7035_v51, %v5012_v46  ;;  %v363_v44 = vadd.f32 %v6922_v6, %v234_v60  ;;  %v1009_v29 = vadd.f32 %v6945_v17, %v880_v52  ;;  %v2172_v5 = vmul.f32 %v6973_v38, %v99_v1 }
 0x2f1   :  { %v3331_v53 = vadd.f32 %v3203_v49, %v2685_v36  ;;  %v5787_v56 = vmul.f32 %v7048_v12, %v5658_v3  ;;  %v6304_v28 = vmax.f32 %v6176_v15, 0.0  ;;  %v1655_v23 = vadd.f32 %v6964_v30, %v1526_v48 }
 0x2f2   :  { %v491_v40 = vmax.f32 %v363_v44, 0.0  ;;  %v1137_v34 = vmax.f32 %v1009_v29, 0.0  ;;  %v2301_v7 = vadd.f32 %v6979_v42, %v2172_v5  ;;  %v2818_v61 = vmul.f32 %v6988_v50, %v99_v1 }
 0x2f3   :  { %v3977_v2 = vadd.f32 %v3849_v0, %v3331_v53  ;;  %v6433_v43 = vmul.f32 %v7061_v37, %v6304_v28  ;;  %v1783_v59 = vmax.f32 %v1655_v23, 0.0  ;;  %v3464_v11 = vmul.f32 %v7001_v62, %v99_v1 }
 0x2f4   :  { %v620_v14 = vmul.f32 %v6930_v10, %v491_v40  ;;  %v1266_v49 = vmul.f32 %v6951_v21, %v1137_v34  ;;  %v2429_v20 = vmax.f32 %v2301_v7, 0.0  ;;  %v2947_v27 = vadd.f32 %v6993_v54, %v2818_v61 }
 0x2f5   :  { %v4623_v26 = vadd.f32 %v4495_v19, %v3977_v2  ;;  %v1912_v18 = vmul.f32 %v6967_v33, %v1783_v59  ;;  %v3593_v39 = vadd.f32 %v7007_v8, %v3464_v11  ;;  %v4110_v46 = vmul.f32 %v7013_v24, %v99_v1  ;;  %v100_v19 = vld [vmem:[#allocation6 + $0x1d8] sm:$0xff] }
 0x2f6   :  { %v748_v0 = vadd.f32 %v620_v14, %v6928_v9  ;;  %v2558_v60 = vmul.f32 %v6982_v45, %v2429_v20  ;;  %v3075_v52 = vmax.f32 %v2947_v27, 0.0  ;;  %v4756_v36 = vmul.f32 %v7026_v41, %v99_v1 }
 0x2f7   :  { %v5269_v3 = vadd.f32 %v5141_v55, %v4623_v26  ;;  %v3721_v15 = vmax.f32 %v3593_v39, 0.0  ;;  %v4239_v48 = vadd.f32 %v7019_v31, %v4110_v46  ;;  %v5402_v44 = vmul.f32 %v7040_v58, %v99_v1 }
 0x2f8   :  { %v1394_v29 = vadd.f32 %v1266_v49, %v748_v0  ;;  %v3204_v5 = vmul.f32 %v6995_v57, %v3075_v52  ;;  %v4885_v53 = vadd.f32 %v7032_v47, %v4756_v36  ;;  %v6048_v28 = vmul.f32 %v7054_v22, %v99_v1 }
 0x2f9   :  { %v5915_v23 = vadd.f32 %v5787_v56, %v5269_v3  ;;  %v3850_v40 = vmul.f32 %v7009_v16, %v3721_v15  ;;  %v4367_v34 = vmax.f32 %v4239_v48, 0.0  ;;  %v5531_v7 = vadd.f32 %v7045_v63, %v5402_v44 }
 0x2fa   :  { %v2040_v55 = vadd.f32 %v1912_v18, %v1394_v29  ;;  %v5013_v61 = vmax.f32 %v4885_v53, 0.0  ;;  %v6177_v2 = vadd.f32 %v7059_v32, %v6048_v28  ;;  %v235_v59 = vmul.f32 %v6918_v4, %v100_v19 }
 0x2fb   :  { %v6561_v11 = vadd.f32 %v6433_v43, %v5915_v23  ;;  %v4496_v14 = vmul.f32 %v7021_v35, %v4367_v34  ;;  %v5659_v49 = vmax.f32 %v5531_v7, 0.0  ;;  %v881_v20 = vmul.f32 %v6937_v13, %v100_v19 }
 0x2fc   :  { %v2686_v27 = vadd.f32 %v2558_v60, %v2040_v55  ;;  %v5142_v1 = vmul.f32 %v7035_v51, %v5013_v61  ;;  %v6305_v56 = vmax.f32 %v6177_v2, 0.0  ;;  %v364_v26 = vadd.f32 %v6922_v6, %v235_v59 }
 0x2fd   :  { %6689 = vst [vmem:[#allocation7 + $0x1c8] sm:$0xff] %v6561_v11  ;;  %v5788_v18 = vmul.f32 %v7048_v12, %v5659_v49  ;;  %v1010_v39 = vadd.f32 %v6945_v17, %v881_v20  ;;  %v1527_v46 = vmul.f32 %v6955_v25, %v100_v19  ;;  %v2173_v43 = vmul.f32 %v6973_v38, %v100_v19 }
 0x2fe   :  { %v3332_v0 = vadd.f32 %v3204_v5, %v2686_v27  ;;  %v6434_v52 = vmul.f32 %v7061_v37, %v6305_v56  ;;  %v492_v36 = vmax.f32 %v364_v26, 0.0  ;;  %v2819_v60 = vmul.f32 %v6988_v50, %v100_v19  ;;  %v101_v56 = vld [vmem:[#allocation6 + $0x1e0] sm:$0xff] }
 0x2ff   :  { %v1138_v3 = vmax.f32 %v1010_v39, 0.0  ;;  %v1656_v15 = vadd.f32 %v6964_v30, %v1527_v46  ;;  %v2302_v48 = vadd.f32 %v6979_v42, %v2173_v43  ;;  %v3465_v44 = vmul.f32 %v7001_v62, %v100_v19 }
 0x300   :  { %v3978_v29 = vadd.f32 %v3850_v40, %v3332_v0  ;;  %v621_v53 = vmul.f32 %v6930_v10, %v492_v36  ;;  %v2948_v28 = vadd.f32 %v6993_v54, %v2819_v60  ;;  %v4111_v23 = vmul.f32 %v7013_v24, %v100_v19 }
 0x301   :  { %v1267_v5 = vmul.f32 %v6951_v21, %v1138_v3  ;;  %v1784_v34 = vmax.f32 %v1656_v15, 0.0  ;;  %v2430_v7 = vmax.f32 %v2302_v48, 0.0  ;;  %v3594_v55 = vadd.f32 %v7007_v8, %v3465_v44 }
 0x302   :  { %v4624_v61 = vadd.f32 %v4496_v14, %v3978_v29  ;;  %v749_v2 = vadd.f32 %v621_v53, %v6928_v9  ;;  %v3076_v59 = vmax.f32 %v2948_v28, 0.0  ;;  %v4240_v11 = vadd.f32 %v7019_v31, %v4111_v23 }
 0x303   :  { %v1913_v40 = vmul.f32 %v6967_v33, %v1784_v34  ;;  %v2559_v49 = vmul.f32 %v6982_v45, %v2430_v7  ;;  %v3722_v20 = vmax.f32 %v3594_v55, 0.0  ;;  %v4757_v27 = vmul.f32 %v7026_v41, %v100_v19 }
 0x304   :  { %v5270_v26 = vadd.f32 %v5142_v1, %v4624_v61  ;;  %v1395_v39 = vadd.f32 %v1267_v5, %v749_v2  ;;  %v3205_v46 = vmul.f32 %v6995_v57, %v3076_v59  ;;  %v4368_v43 = vmax.f32 %v4240_v11, 0.0 }
 0x305   :  { %v3851_v14 = vmul.f32 %v7009_v16, %v3722_v20  ;;  %v4886_v0 = vadd.f32 %v7032_v47, %v4757_v27  ;;  %v5403_v36 = vmul.f32 %v7040_v58, %v100_v19  ;;  %v6049_v60 = vmul.f32 %v7054_v22, %v100_v19 }
 0x306   :  { %v5916_v3 = vadd.f32 %v5788_v18, %v5270_v26  ;;  %v2041_v15 = vadd.f32 %v1913_v40, %v1395_v39  ;;  %v4497_v48 = vmul.f32 %v7021_v35, %v4368_v43  ;;  %v236_v44 = vmul.f32 %v6918_v4, %v101_v56 }
 0x307   :  { %v5014_v29 = vmax.f32 %v4886_v0, 0.0  ;;  %v5532_v1 = vadd.f32 %v7045_v63, %v5403_v36  ;;  %v6178_v53 = vadd.f32 %v7059_v32, %v6049_v60  ;;  %v882_v28 = vmul.f32 %v6937_v13, %v101_v56 }
 0x308   :  { %v6562_v23 = vadd.f32 %v6434_v52, %v5916_v3  ;;  %v2687_v5 = vadd.f32 %v2559_v49, %v2041_v15  ;;  %v365_v34 = vadd.f32 %v6922_v6, %v236_v44  ;;  %v1528_v7 = vmul.f32 %v6955_v25, %v101_v56 }
 0x309   :  { %v5143_v19 = vmul.f32 %v7035_v51, %v5014_v29  ;;  %v5660_v18 = vmax.f32 %v5532_v1, 0.0  ;;  %v6306_v55 = vmax.f32 %v6178_v53, 0.0  ;;  %v1011_v61 = vadd.f32 %v6945_v17, %v882_v28 }
 0x30a   :  { %6690 = vst [vmem:[#allocation7 + $0x1d0] sm:$0xff] %v6562_v23  ;;  %v3333_v2 = vadd.f32 %v3205_v46, %v2687_v5  ;;  %v493_v59 = vmax.f32 %v365_v34, 0.0  ;;  %v1657_v11 = vadd.f32 %v6964_v30, %v1528_v7  ;;  %v2174_v40 = vmul.f32 %v6973_v38, %v101_v56 }
 0x30b   :  { %v5789_v52 = vmul.f32 %v7048_v12, %v5660_v18  ;;  %v6435_v49 = vmul.f32 %v7061_v37, %v6306_v55  ;;  %v1139_v20 = vmax.f32 %v1011_v61, 0.0  ;;  %v2820_v27 = vmul.f32 %v6988_v50, %v101_v56  ;;  %v102_v55 = vld [vmem:[#allocation6 + $0x1e8] sm:$0xff] }
 0x30c   :  { %v3979_v26 = vadd.f32 %v3851_v14, %v3333_v2  ;;  %v622_v39 = vmul.f32 %v6930_v10, %v493_v59  ;;  %v1785_v43 = vmax.f32 %v1657_v11, 0.0  ;;  %v2303_v0 = vadd.f32 %v6979_v42, %v2174_v40 }
 0x30d   :  { %v1268_v46 = vmul.f32 %v6951_v21, %v1139_v20  ;;  %v2949_v36 = vadd.f32 %v6993_v54, %v2820_v27  ;;  %v3466_v60 = vmul.f32 %v7001_v62, %v101_v56  ;;  %v4112_v3 = vmul.f32 %v7013_v24, %v101_v56 }
 0x30e   :  { %v4625_v15 = vadd.f32 %v4497_v48, %v3979_v26  ;;  %v750_v44 = vadd.f32 %v622_v39, %v6928_v9  ;;  %v1914_v29 = vmul.f32 %v6967_v33, %v1785_v43  ;;  %v2431_v1 = vmax.f32 %v2303_v0, 0.0 }
 0x30f   :  { %v3077_v14 = vmax.f32 %v2949_v36, 0.0  ;;  %v3595_v53 = vadd.f32 %v7007_v8, %v3466_v60  ;;  %v4241_v28 = vadd.f32 %v7019_v31, %v4112_v3  ;;  %v4758_v23 = vmul.f32 %v7026_v41, %v101_v56 }
 0x310   :  { %v5271_v5 = vadd.f32 %v5143_v19, %v4625_v15  ;;  %v1396_v34 = vadd.f32 %v1268_v46, %v750_v44  ;;  %v2560_v7 = vmul.f32 %v6982_v45, %v2431_v1  ;;  %v5404_v18 = vmul.f32 %v7040_v58, %v101_v56 }
 0x311   :  { %v3206_v48 = vmul.f32 %v6995_v57, %v3077_v14  ;;  %v3723_v61 = vmax.f32 %v3595_v53, 0.0  ;;  %v4369_v2 = vmax.f32 %v4241_v28, 0.0  ;;  %v4887_v59 = vadd.f32 %v7032_v47, %v4758_v23 }
 0x312   :  { %v5917_v11 = vadd.f32 %v5789_v52, %v5271_v5  ;;  %v2042_v40 = vadd.f32 %v1914_v29, %v1396_v34  ;;  %v5533_v20 = vadd.f32 %v7045_v63, %v5404_v18  ;;  %v6050_v27 = vmul.f32 %v7054_v22, %v101_v56 }
 0x313   :  { %v3852_v19 = vmul.f32 %v7009_v16, %v3723_v61  ;;  %v4498_v26 = vmul.f32 %v7021_v35, %v4369_v2  ;;  %v5015_v39 = vmax.f32 %v4887_v59, 0.0  ;;  %v237_v43 = vmul.f32 %v6918_v4, %v102_v55 }
 0x314   :  { %v6563_v0 = vadd.f32 %v6435_v49, %v5917_v11  ;;  %v2688_v46 = vadd.f32 %v2560_v7, %v2042_v40  ;;  %v5661_v36 = vmax.f32 %v5533_v20, 0.0  ;;  %v6179_v60 = vadd.f32 %v7059_v32, %v6050_v27 }
 0x315   :  { %v5144_v3 = vmul.f32 %v7035_v51, %v5015_v39  ;;  %v366_v52 = vadd.f32 %v6922_v6, %v237_v43  ;;  %v883_v15 = vmul.f32 %v6937_v13, %v102_v55  ;;  %v1529_v56 = vmul.f32 %v6955_v25, %v102_v55 }
 0x316   :  { %6691 = vst [vmem:[#allocation7 + $0x1d8] sm:$0xff] %v6563_v0  ;;  %v3334_v44 = vadd.f32 %v3206_v48, %v2688_v46  ;;  %v5790_v29 = vmul.f32 %v7048_v12, %v5661_v36  ;;  %v6307_v1 = vmax.f32 %v6179_v60, 0.0  ;;  %v2175_v14 = vmul.f32 %v6973_v38, %v102_v55 }
 0x317   :  { %v494_v49 = vmax.f32 %v366_v52, 0.0  ;;  %v1012_v53 = vadd.f32 %v6945_v17, %v883_v15  ;;  %v1658_v28 = vadd.f32 %v6964_v30, %v1529_v56  ;;  %v2821_v23 = vmul.f32 %v6988_v50, %v102_v55  ;;  %v103_v15 = vld [vmem:[#allocation6 + $0x1f0] sm:$0xff] }
 0x318   :  { %v3980_v5 = vadd.f32 %v3852_v19, %v3334_v44  ;;  %v6436_v34 = vmul.f32 %v7061_v37, %v6307_v1  ;;  %v2304_v7 = vadd.f32 %v6979_v42, %v2175_v14  ;;  %v3467_v18 = vmul.f32 %v7001_v62, %v102_v55 }
 0x319   :  { %v623_v48 = vmul.f32 %v6930_v10, %v494_v49  ;;  %v1140_v61 = vmax.f32 %v1012_v53, 0.0  ;;  %v1786_v2 = vmax.f32 %v1658_v28, 0.0  ;;  %v2950_v59 = vadd.f32 %v6993_v54, %v2821_v23 }
 0x31a   :  { %v4626_v11 = vadd.f32 %v4498_v26, %v3980_v5  ;;  %v2432_v40 = vmax.f32 %v2304_v7, 0.0  ;;  %v3596_v20 = vadd.f32 %v7007_v8, %v3467_v18  ;;  %v4113_v27 = vmul.f32 %v7013_v24, %v102_v55 }
 0x31b   :  { %v751_v19 = vadd.f32 %v623_v48, %v6928_v9  ;;  %v1269_v39 = vmul.f32 %v6951_v21, %v1140_v61  ;;  %v1915_v43 = vmul.f32 %v6967_v33, %v1786_v2  ;;  %v3078_v0 = vmax.f32 %v2950_v59, 0.0 }
 0x31c   :  { %v5272_v46 = vadd.f32 %v5144_v3, %v4626_v11  ;;  %v2561_v36 = vmul.f32 %v6982_v45, %v2432_v40  ;;  %v3724_v60 = vmax.f32 %v3596_v20, 0.0  ;;  %v4242_v52 = vadd.f32 %v7019_v31, %v4113_v27 }
 0x31d   :  { %v1397_v26 = vadd.f32 %v1269_v39, %v751_v19  ;;  %v3207_v56 = vmul.f32 %v6995_v57, %v3078_v0  ;;  %v4759_v44 = vmul.f32 %v7026_v41, %v102_v55  ;;  %v5405_v1 = vmul.f32 %v7040_v58, %v102_v55 }
 0x31e   :  { %v5918_v14 = vadd.f32 %v5790_v29, %v5272_v46  ;;  %v3853_v49 = vmul.f32 %v7009_v16, %v3724_v60  ;;  %v4370_v53 = vmax.f32 %v4242_v52, 0.0  ;;  %v6051_v28 = vmul.f32 %v7054_v22, %v102_v55 }
 0x31f   :  { %v2043_v3 = vadd.f32 %v1915_v43, %v1397_v26  ;;  %v4888_v23 = vadd.f32 %v7032_v47, %v4759_v44  ;;  %v5534_v5 = vadd.f32 %v7045_v63, %v5405_v1  ;;  %v238_v7 = vmul.f32 %v6918_v4, %v103_v15 }
 0x320   :  { %v6564_v18 = vadd.f32 %v6436_v34, %v5918_v14  ;;  %v4499_v48 = vmul.f32 %v7021_v35, %v4370_v53  ;;  %v6180_v61 = vadd.f32 %v7059_v32, %v6051_v28  ;;  %v884_v2 = vmul.f32 %v6937_v13, %v103_v15 }
 0x321   :  { %v2689_v29 = vadd.f32 %v2561_v36, %v2043_v3  ;;  %v5016_v59 = vmax.f32 %v4888_v23, 0.0  ;;  %v5662_v11 = vmax.f32 %v5534_v5, 0.0  ;;  %v367_v40 = vadd.f32 %v6922_v6, %v238_v7 }
 0x322   :  { %6692 = vst [vmem:[#allocation7 + $0x1e0] sm:$0xff] %v6564_v18  ;;  %v6308_v55 = vmax.f32 %v6180_v61, 0.0  ;;  %v1013_v20 = vadd.f32 %v6945_v17, %v884_v2  ;;  %v1530_v27 = vmul.f32 %v6955_v25, %v103_v15  ;;  %v2176_v19 = vmul.f32 %v6973_v38, %v103_v15 }
 0x323   :  { %v3335_v34 = vadd.f32 %v3207_v56, %v2689_v29  ;;  %v5145_v39 = vmul.f32 %v7035_v51, %v5016_v59  ;;  %v5791_v43 = vmul.f32 %v7048_v12, %v5662_v11  ;;  %v495_v0 = vmax.f32 %v367_v40, 0.0 }
 0x324   :  { %v6437_v46 = vmul.f32 %v7061_v37, %v6308_v55  ;;  %v1141_v36 = vmax.f32 %v1013_v20, 0.0  ;;  %v1659_v60 = vadd.f32 %v6964_v30, %v1530_v27  ;;  %v2305_v52 = vadd.f32 %v6979_v42, %v2176_v19 }
 0x325   :  { %v3981_v26 = vadd.f32 %v3853_v49, %v3335_v34  ;;  %v624_v44 = vmul.f32 %v6930_v10, %v495_v0  ;;  %v2822_v1 = vmul.f32 %v6988_v50, %v103_v15  ;;  %v3468_v14 = vmul.f32 %v7001_v62, %v103_v15  ;;  %v104_v34 = vld [vmem:[#allocation6 + $0x1f8] sm:$0xff] }
 0x326   :  { %v1270_v56 = vmul.f32 %v6951_v21, %v1141_v36  ;;  %v1787_v53 = vmax.f32 %v1659_v60, 0.0  ;;  %v2433_v28 = vmax.f32 %v2305_v52, 0.0  ;;  %v4114_v3 = vmul.f32 %v7013_v24, %v103_v15 }
 0x327   :  { %v4627_v23 = vadd.f32 %v4499_v48, %v3981_v26  ;;  %v752_v5 = vadd.f32 %v624_v44, %v6928_v9  ;;  %v2951_v7 = vadd.f32 %v6993_v54, %v2822_v1  ;;  %v3597_v18 = vadd.f32 %v7007_v8, %v3468_v14 }
 0x328   :  { %v1916_v49 = vmul.f32 %v6967_v33, %v1787_v53  ;;  %v2562_v61 = vmul.f32 %v6982_v45, %v2433_v28  ;;  %v4243_v2 = vadd.f32 %v7019_v31, %v4114_v3  ;;  %v4760_v29 = vmul.f32 %v7026_v41, %v103_v15 }
 0x329   :  { %v5273_v59 = vadd.f32 %v5145_v39, %v4627_v23  ;;  %v1398_v11 = vadd.f32 %v1270_v56, %v752_v5  ;;  %v3079_v40 = vmax.f32 %v2951_v7, 0.0  ;;  %v3725_v55 = vmax.f32 %v3597_v18, 0.0 }
 0x32a   :  { %v4371_v20 = vmax.f32 %v4243_v2, 0.0  ;;  %v4889_v48 = vadd.f32 %v7032_v47, %v4760_v29  ;;  %v5406_v27 = vmul.f32 %v7040_v58, %v103_v15  ;;  %v6052_v19 = vmul.f32 %v7054_v22, %v103_v15 }
 0x32b   :  { %v5919_v0 = vadd.f32 %v5791_v43, %v5273_v59  ;;  %v2044_v36 = vadd.f32 %v1916_v49, %v1398_v11  ;;  %v3208_v60 = vmul.f32 %v6995_v57, %v3079_v40  ;;  %v3854_v52 = vmul.f32 %v7009_v16, %v3725_v55 }
 0x32c   :  { %v4500_v26 = vmul.f32 %v7021_v35, %v4371_v20  ;;  %v5017_v39 = vmax.f32 %v4889_v48, 0.0  ;;  %v5535_v44 = vadd.f32 %v7045_v63, %v5406_v27  ;;  %v6181_v1 = vadd.f32 %v7059_v32, %v6052_v19 }
 0x32d   :  { %v6565_v14 = vadd.f32 %v6437_v46, %v5919_v0  ;;  %v2690_v56 = vadd.f32 %v2562_v61, %v2044_v36  ;;  %v239_v53 = vmul.f32 %v6918_v4, %v104_v34  ;;  %v885_v15 = vmul.f32 %v6937_v13, %v104_v34 }
 0x32e   :  { %v5146_v43 = vmul.f32 %v7035_v51, %v5017_v39  ;;  %v5663_v28 = vmax.f32 %v5535_v44, 0.0  ;;  %v6309_v3 = vmax.f32 %v6181_v1, 0.0  ;;  %v1531_v23 = vmul.f32 %v6955_v25, %v104_v34 }
 0x32f   :  { %6693 = vst [vmem:[#allocation7 + $0x1e8] sm:$0xff] %v6565_v14  ;;  %v3336_v5 = vadd.f32 %v3208_v60, %v2690_v56  ;;  %v368_v7 = vadd.f32 %v6922_v6, %v239_v53  ;;  %v1014_v18 = vadd.f32 %v6945_v17, %v885_v15  ;;  %v2177_v49 = vmul.f32 %v6973_v38, %v104_v34 }
 0x330   :  { %v5792_v46 = vmul.f32 %v7048_v12, %v5663_v28  ;;  %v6438_v61 = vmul.f32 %v7061_v37, %v6309_v3  ;;  %v1660_v2 = vadd.f32 %v6964_v30, %v1531_v23  ;;  %v2823_v29 = vmul.f32 %v6988_v50, %v104_v34 }
 0x331   :  { %v3982_v59 = vadd.f32 %v3854_v52, %v3336_v5  ;;  %v496_v11 = vmax.f32 %v368_v7, 0.0  ;;  %v1142_v40 = vmax.f32 %v1014_v18, 0.0  ;;  %v2306_v55 = vadd.f32 %v6979_v42, %v2177_v49 }
 0x332   :  { %v1788_v20 = vmax.f32 %v1660_v2, 0.0  ;;  %v2952_v48 = vadd.f32 %v6993_v54, %v2823_v29  ;;  %v3469_v27 = vmul.f32 %v7001_v62, %v104_v34  ;;  %v4115_v19 = vmul.f32 %v7013_v24, %v104_v34 }
 0x333   :  { %v4628_v0 = vadd.f32 %v4500_v26, %v3982_v59  ;;  %v625_v36 = vmul.f32 %v6930_v10, %v496_v11  ;;  %v1271_v60 = vmul.f32 %v6951_v21, %v1142_v40  ;;  %v2434_v39 = vmax.f32 %v2306_v55, 0.0  ;;  %v105_v26 = vld [vmem:[#allocation6 + $0x200] sm:$0xff] }
 0x334   :  { %v1917_v44 = vmul.f32 %v6967_v33, %v1788_v20  ;;  %v3080_v52 = vmax.f32 %v2952_v48, 0.0  ;;  %v3598_v1 = vadd.f32 %v7007_v8, %v3469_v27  ;;  %v4244_v14 = vadd.f32 %v7019_v31, %v4115_v19 }
 0x335   :  { %v5274_v56 = vadd.f32 %v5146_v43, %v4628_v0  ;;  %v753_v53 = vadd.f32 %v625_v36, %v6928_v9  ;;  %v2563_v15 = vmul.f32 %v6982_v45, %v2434_v39  ;;  %v4761_v28 = vmul.f32 %v7026_v41, %v104_v34 }
 0x336   :  { %v3209_v3 = vmul.f32 %v6995_v57, %v3080_v52  ;;  %v3726_v23 = vmax.f32 %v3598_v1, 0.0  ;;  %v4372_v5 = vmax.f32 %v4244_v14, 0.0  ;;  %v5407_v7 = vmul.f32 %v7040_v58, %v104_v34 }
 0x337   :  { %v5920_v18 = vadd.f32 %v5792_v46, %v5274_v56  ;;  %v1399_v49 = vadd.f32 %v1271_v60, %v753_v53  ;;  %v4890_v2 = vadd.f32 %v7032_v47, %v4761_v28  ;;  %v6053_v29 = vmul.f32 %v7054_v22, %v104_v34 }
 0x338   :  { %v3855_v43 = vmul.f32 %v7009_v16, %v3726_v23  ;;  %v4501_v59 = vmul.f32 %v7021_v35, %v4372_v5  ;;  %v5536_v11 = vadd.f32 %v7045_v63, %v5407_v7  ;;  %v240_v40 = vmul.f32 %v6918_v4, %v105_v26 }
 0x339   :  { %v6566_v55 = vadd.f32 %v6438_v61, %v5920_v18  ;;  %v2045_v20 = vadd.f32 %v1917_v44, %v1399_v49  ;;  %v5018_v48 = vmax.f32 %v4890_v2, 0.0  ;;  %v6182_v27 = vadd.f32 %v7059_v32, %v6053_v29 }
 0x33a   :  { %v5664_v19 = vmax.f32 %v5536_v11, 0.0  ;;  %v369_v46 = vadd.f32 %v6922_v6, %v240_v40  ;;  %v886_v0 = vmul.f32 %v6937_v13, %v105_v26  ;;  %v1532_v34 = vmul.f32 %v6955_v25, %v105_v26 }
 0x33b   :  { %6694 = vst [vmem:[#allocation7 + $0x1f0] sm:$0xff] %v6566_v55  ;;  %v2691_v36 = vadd.f32 %v2563_v15, %v2045_v20  ;;  %v5147_v60 = vmul.f32 %v7035_v51, %v5018_v48  ;;  %v6310_v39 = vmax.f32 %v6182_v27, 0.0  ;;  %v2178_v52 = vmul.f32 %v6973_v38, %v105_v26 }
 0x33c   :  { %v5793_v61 = vmul.f32 %v7048_v12, %v5664_v19  ;;  %v497_v44 = vmax.f32 %v369_v46, 0.0  ;;  %v1015_v1 = vadd.f32 %v6945_v17, %v886_v0  ;;  %v1661_v14 = vadd.f32 %v6964_v30, %v1532_v34 }
 0x33d   :  { %v3337_v56 = vadd.f32 %v3209_v3, %v2691_v36  ;;  %v6439_v53 = vmul.f32 %v7061_v37, %v6310_v39  ;;  %v2307_v28 = vadd.f32 %v6979_v42, %v2178_v52  ;;  %v2824_v23 = vmul.f32 %v6988_v50, %v105_v26  ;;  %v106_v39 = vld [vmem:[#allocation6 + $0x208] sm:$0xff] }
 0x33e   :  { %v626_v15 = vmul.f32 %v6930_v10, %v497_v44  ;;  %v1143_v5 = vmax.f32 %v1015_v1, 0.0  ;;  %v1789_v7 = vmax.f32 %v1661_v14, 0.0  ;;  %v3470_v18 = vmul.f32 %v7001_v62, %v105_v26 }
 0x33f   :  { %v3983_v49 = vadd.f32 %v3855_v43, %v3337_v56  ;;  %v2435_v2 = vmax.f32 %v2307_v28, 0.0  ;;  %v2953_v29 = vadd.f32 %v6993_v54, %v2824_v23  ;;  %v4116_v11 = vmul.f32 %v7013_v24, %v105_v26 }
 0x340   :  { %v754_v3 = vadd.f32 %v626_v15, %v6928_v9  ;;  %v1272_v40 = vmul.f32 %v6951_v21, %v1143_v5  ;;  %v1918_v55 = vmul.f32 %v6967_v33, %v1789_v7  ;;  %v3599_v20 = vadd.f32 %v7007_v8, %v3470_v18 }
 0x341   :  { %v4629_v48 = vadd.f32 %v4501_v59, %v3983_v49  ;;  %v2564_v27 = vmul.f32 %v6982_v45, %v2435_v2  ;;  %v3081_v19 = vmax.f32 %v2953_v29, 0.0  ;;  %v4245_v46 = vadd.f32 %v7019_v31, %v4116_v11 }
 0x342   :  { %v1400_v43 = vadd.f32 %v1272_v40, %v754_v3  ;;  %v3727_v0 = vmax.f32 %v3599_v20, 0.0  ;;  %v4762_v34 = vmul.f32 %v7026_v41, %v105_v26  ;;  %v5408_v36 = vmul.f32 %v7040_v58, %v105_v26 }
 0x343   :  { %v5275_v52 = vadd.f32 %v5147_v60, %v4629_v48  ;;  %v3210_v44 = vmul.f32 %v6995_v57, %v3081_v19  ;;  %v4373_v1 = vmax.f32 %v4245_v46, 0.0  ;;  %v6054_v14 = vmul.f32 %v7054_v22, %v105_v26 }
 0x344   :  { %v2046_v56 = vadd.f32 %v1918_v55, %v1400_v43  ;;  %v3856_v59 = vmul.f32 %v7009_v16, %v3727_v0  ;;  %v4891_v28 = vadd.f32 %v7032_v47, %v4762_v34  ;;  %v5537_v23 = vadd.f32 %v7045_v63, %v5408_v36 }
 0x345   :  { %v5921_v15 = vadd.f32 %v5793_v61, %v5275_v52  ;;  %v4502_v5 = vmul.f32 %v7021_v35, %v4373_v1  ;;  %v6183_v7 = vadd.f32 %v7059_v32, %v6054_v14  ;;  %v241_v18 = vmul.f32 %v6918_v4, %v106_v39 }
 0x346   :  { %v2692_v60 = vadd.f32 %v2564_v27, %v2046_v56  ;;  %v5019_v49 = vmax.f32 %v4891_v28, 0.0  ;;  %v5665_v2 = vmax.f32 %v5537_v23, 0.0  ;;  %v887_v29 = vmul.f32 %v6937_v13, %v106_v39 }
 0x347   :  { %v6567_v26 = vadd.f32 %v6439_v53, %v5921_v15  ;;  %v6311_v11 = vmax.f32 %v6183_v7, 0.0  ;;  %v370_v3 = vadd.f32 %v6922_v6, %v241_v18  ;;  %v1533_v40 = vmul.f32 %v6955_v25, %v106_v39 }
 0x348   :  { %v3338_v55 = vadd.f32 %v3210_v44, %v2692_v60  ;;  %v5148_v61 = vmul.f32 %v7035_v51, %v5019_v49  ;;  %v5794_v20 = vmul.f32 %v7048_v12, %v5665_v2  ;;  %v1016_v48 = vadd.f32 %v6945_v17, %v887_v29 }
 0x349   :  { %6695 = vst [vmem:[#allocation7 + $0x1f8] sm:$0xff] %v6567_v26  ;;  %v6440_v27 = vmul.f32 %v7061_v37, %v6311_v11  ;;  %v498_v19 = vmax.f32 %v370_v3, 0.0  ;;  %v1662_v46 = vadd.f32 %v6964_v30, %v1533_v40  ;;  %v2179_v53 = vmul.f32 %v6973_v38, %v106_v39 }
 0x34a   :  { %v3984_v43 = vadd.f32 %v3856_v59, %v3338_v55  ;;  %v1144_v0 = vmax.f32 %v1016_v48, 0.0  ;;  %v2825_v34 = vmul.f32 %v6988_v50, %v106_v39  ;;  %v3471_v36 = vmul.f32 %v7001_v62, %v106_v39  ;;  %v107_v55 = vld [vmem:[#allocation6 + $0x210] sm:$0xff] }
 0x34b   :  { %v627_v52 = vmul.f32 %v6930_v10, %v498_v19  ;;  %v1790_v44 = vmax.f32 %v1662_v46, 0.0  ;;  %v2308_v1 = vadd.f32 %v6979_v42, %v2179_v53  ;;  %v4117_v14 = vmul.f32 %v7013_v24, %v106_v39 }
 0x34c   :  { %v4630_v56 = vadd.f32 %v4502_v5, %v3984_v43  ;;  %v1273_v28 = vmul.f32 %v6951_v21, %v1144_v0  ;;  %v2954_v23 = vadd.f32 %v6993_v54, %v2825_v34  ;;  %v3600_v15 = vadd.f32 %v7007_v8, %v3471_v36 }
 0x34d   :  { %v755_v59 = vadd.f32 %v627_v52, %v6928_v9  ;;  %v1919_v7 = vmul.f32 %v6967_v33, %v1790_v44  ;;  %v2436_v18 = vmax.f32 %v2308_v1, 0.0  ;;  %v4246_v60 = vadd.f32 %v7019_v31, %v4117_v14 }
 0x34e   :  { %v5276_v49 = vadd.f32 %v5148_v61, %v4630_v56  ;;  %v3082_v2 = vmax.f32 %v2954_v23, 0.0  ;;  %v3728_v29 = vmax.f32 %v3600_v15, 0.0  ;;  %v4763_v26 = vmul.f32 %v7026_v41, %v106_v39 }
 0x34f   :  { %v1401_v11 = vadd.f32 %v1273_v28, %v755_v59  ;;  %v2565_v5 = vmul.f32 %v6982_v45, %v2436_v18  ;;  %v4374_v3 = vmax.f32 %v4246_v60, 0.0  ;;  %v5409_v40 = vmul.f32 %v7040_v58, %v106_v39 }
 0x350   :  { %v5922_v48 = vadd.f32 %v5794_v20, %v5276_v49  ;;  %v3211_v19 = vmul.f32 %v6995_v57, %v3082_v2  ;;  %v3857_v46 = vmul.f32 %v7009_v16, %v3728_v29  ;;  %v4892_v53 = vadd.f32 %v7032_v47, %v4763_v26 }
 0x351   :  { %v2047_v43 = vadd.f32 %v1919_v7, %v1401_v11  ;;  %v4503_v61 = vmul.f32 %v7021_v35, %v4374_v3  ;;  %v5538_v0 = vadd.f32 %v7045_v63, %v5409_v40  ;;  %v6055_v34 = vmul.f32 %v7054_v22, %v106_v39 }
 0x352   :  { %v6568_v36 = vadd.f32 %v6440_v27, %v5922_v48  ;;  %v5020_v52 = vmax.f32 %v4892_v53, 0.0  ;;  %v242_v44 = vmul.f32 %v6918_v4, %v107_v55  ;;  %v888_v1 = vmul.f32 %v6937_v13, %v107_v55 }
 0x353   :  { %v2693_v20 = vadd.f32 %v2565_v5, %v2047_v43  ;;  %v5666_v14 = vmax.f32 %v5538_v0, 0.0  ;;  %v6184_v56 = vadd.f32 %v7059_v32, %v6055_v34  ;;  %v1534_v28 = vmul.f32 %v6955_v25, %v107_v55 }
 0x354   :  { %6696 = vst [vmem:[#allocation7 + $0x200] sm:$0xff] %v6568_v36  ;;  %v5149_v23 = vmul.f32 %v7035_v51, %v5020_v52  ;;  %v371_v15 = vadd.f32 %v6922_v6, %v242_v44  ;;  %v1017_v59 = vadd.f32 %v6945_v17, %v888_v1  ;;  %v2180_v39 = vmul.f32 %v6973_v38, %v107_v55 }
 0x355   :  { %v3339_v27 = vadd.f32 %v3211_v19, %v2693_v20  ;;  %v5795_v7 = vmul.f32 %v7048_v12, %v5666_v14  ;;  %v6312_v18 = vmax.f32 %v6184_v56, 0.0  ;;  %v1663_v60 = vadd.f32 %v6964_v30, %v1534_v28 }
 0x356   :  { %v499_v49 = vmax.f32 %v371_v15, 0.0  ;;  %v1145_v2 = vmax.f32 %v1017_v59, 0.0  ;;  %v2309_v29 = vadd.f32 %v6979_v42, %v2180_v39  ;;  %v2826_v26 = vmul.f32 %v6988_v50, %v107_v55 }
 0x357   :  { %v3985_v11 = vadd.f32 %v3857_v46, %v3339_v27  ;;  %v6441_v5 = vmul.f32 %v7061_v37, %v6312_v18  ;;  %v1791_v3 = vmax.f32 %v1663_v60, 0.0  ;;  %v3472_v40 = vmul.f32 %v7001_v62, %v107_v55 }
 0x358   :  { %v628_v48 = vmul.f32 %v6930_v10, %v499_v49  ;;  %v1274_v19 = vmul.f32 %v6951_v21, %v1145_v2  ;;  %v2437_v53 = vmax.f32 %v2309_v29, 0.0  ;;  %v2955_v43 = vadd.f32 %v6993_v54, %v2826_v26 }
 0x359   :  { %v4631_v0 = vadd.f32 %v4503_v61, %v3985_v11  ;;  %v1920_v34 = vmul.f32 %v6967_v33, %v1791_v3  ;;  %v3601_v36 = vadd.f32 %v7007_v8, %v3472_v40  ;;  %v4118_v52 = vmul.f32 %v7013_v24, %v107_v55  ;;  %v108_v61 = vld [vmem:[#allocation6 + $0x218] sm:$0xff] }
 0x35a   :  { %v756_v46 = vadd.f32 %v628_v48, %v6928_v9  ;;  %v2566_v44 = vmul.f32 %v6982_v45, %v2437_v53  ;;  %v3083_v1 = vmax.f32 %v2955_v43, 0.0  ;;  %v4764_v20 = vmul.f32 %v7026_v41, %v107_v55 }
 0x35b   :  { %v5277_v14 = vadd.f32 %v5149_v23, %v4631_v0  ;;  %v3729_v56 = vmax.f32 %v3601_v36, 0.0  ;;  %v4247_v28 = vadd.f32 %v7019_v31, %v4118_v52  ;;  %v5410_v15 = vmul.f32 %v7040_v58, %v107_v55 }
 0x35c   :  { %v1402_v59 = vadd.f32 %v1274_v19, %v756_v46  ;;  %v3212_v39 = vmul.f32 %v6995_v57, %v3083_v1  ;;  %v4893_v27 = vadd.f32 %v7032_v47, %v4764_v20  ;;  %v6056_v18 = vmul.f32 %v7054_v22, %v107_v55 }
 0x35d   :  { %v5923_v60 = vadd.f32 %v5795_v7, %v5277_v14  ;;  %v3858_v49 = vmul.f32 %v7009_v16, %v3729_v56  ;;  %v4375_v2 = vmax.f32 %v4247_v28, 0.0  ;;  %v5539_v29 = vadd.f32 %v7045_v63, %v5410_v15 }
 0x35e   :  { %v2048_v23 = vadd.f32 %v1920_v34, %v1402_v59  ;;  %v5021_v26 = vmax.f32 %v4893_v27, 0.0  ;;  %v6185_v11 = vadd.f32 %v7059_v32, %v6056_v18  ;;  %v243_v3 = vmul.f32 %v6918_v4, %v108_v61 }
 0x35f   :  { %v6569_v40 = vadd.f32 %v6441_v5, %v5923_v60  ;;  %v4504_v48 = vmul.f32 %v7021_v35, %v4375_v2  ;;  %v5667_v19 = vmax.f32 %v5539_v29, 0.0  ;;  %v889_v53 = vmul.f32 %v6937_v13, %v108_v61 }
 0x360   :  { %v2694_v43 = vadd.f32 %v2566_v44, %v2048_v23  ;;  %v5150_v55 = vmul.f32 %v7035_v51, %v5021_v26  ;;  %v6313_v7 = vmax.f32 %v6185_v11, 0.0  ;;  %v372_v0 = vadd.f32 %v6922_v6, %v243_v3 }
 0x361   :  { %6697 = vst [vmem:[#allocation7 + $0x208] sm:$0xff] %v6569_v40  ;;  %v5796_v34 = vmul.f32 %v7048_v12, %v5667_v19  ;;  %v1018_v36 = vadd.f32 %v6945_v17, %v889_v53  ;;  %v1535_v52 = vmul.f32 %v6955_v25, %v108_v61  ;;  %v2181_v5 = vmul.f32 %v6973_v38, %v108_v61 }
 0x362   :  { %v3340_v46 = vadd.f32 %v3212_v39, %v2694_v43  ;;  %v6442_v1 = vmul.f32 %v7061_v37, %v6313_v7  ;;  %v500_v20 = vmax.f32 %v372_v0, 0.0  ;;  %v2827_v44 = vmul.f32 %v6988_v50, %v108_v61  ;;  %v109_v7 = vld [vmem:[#allocation6 + $0x220] sm:$0xff] }
 0x363   :  { %v1146_v14 = vmax.f32 %v1018_v36, 0.0  ;;  %v1664_v56 = vadd.f32 %v6964_v30, %v1535_v52  ;;  %v2310_v28 = vadd.f32 %v6979_v42, %v2181_v5  ;;  %v3473_v15 = vmul.f32 %v7001_v62, %v108_v61 }
 0x364   :  { %v3986_v59 = vadd.f32 %v3858_v49, %v3340_v46  ;;  %v629_v27 = vmul.f32 %v6930_v10, %v500_v20  ;;  %v2956_v18 = vadd.f32 %v6993_v54, %v2827_v44  ;;  %v4119_v60 = vmul.f32 %v7013_v24, %v108_v61 }
 0x365   :  { %v1275_v39 = vmul.f32 %v6951_v21, %v1146_v14  ;;  %v1792_v2 = vmax.f32 %v1664_v56, 0.0  ;;  %v2438_v29 = vmax.f32 %v2310_v28, 0.0  ;;  %v3602_v23 = vadd.f32 %v7007_v8, %v3473_v15 }
 0x366   :  { %v4632_v26 = vadd.f32 %v4504_v48, %v3986_v59  ;;  %v757_v11 = vadd.f32 %v629_v27, %v6928_v9  ;;  %v3084_v3 = vmax.f32 %v2956_v18, 0.0  ;;  %v4248_v40 = vadd.f32 %v7019_v31, %v4119_v60 }
 0x367   :  { %v1921_v49 = vmul.f32 %v6967_v33, %v1792_v2  ;;  %v2567_v19 = vmul.f32 %v6982_v45, %v2438_v29  ;;  %v3730_v53 = vmax.f32 %v3602_v23, 0.0  ;;  %v4765_v43 = vmul.f32 %v7026_v41, %v108_v61 }
 0x368   :  { %v5278_v0 = vadd.f32 %v5150_v55, %v4632_v26  ;;  %v1403_v36 = vadd.f32 %v1275_v39, %v757_v11  ;;  %v3213_v52 = vmul.f32 %v6995_v57, %v3084_v3  ;;  %v4376_v5 = vmax.f32 %v4248_v40, 0.0 }
 0x369   :  { %v3859_v48 = vmul.f32 %v7009_v16, %v3730_v53  ;;  %v4894_v46 = vadd.f32 %v7032_v47, %v4765_v43  ;;  %v5411_v20 = vmul.f32 %v7040_v58, %v108_v61  ;;  %v6057_v44 = vmul.f32 %v7054_v22, %v108_v61 }
 0x36a   :  { %v5924_v14 = vadd.f32 %v5796_v34, %v5278_v0  ;;  %v2049_v56 = vadd.f32 %v1921_v49, %v1403_v36  ;;  %v4505_v28 = vmul.f32 %v7021_v35, %v4376_v5  ;;  %v244_v15 = vmul.f32 %v6918_v4, %v109_v7 }
 0x36b   :  { %v5022_v59 = vmax.f32 %v4894_v46, 0.0  ;;  %v5540_v55 = vadd.f32 %v7045_v63, %v5411_v20  ;;  %v6186_v27 = vadd.f32 %v7059_v32, %v6057_v44  ;;  %v890_v18 = vmul.f32 %v6937_v13, %v109_v7 }
 0x36c   :  { %v6570_v60 = vadd.f32 %v6442_v1, %v5924_v14  ;;  %v2695_v39 = vadd.f32 %v2567_v19, %v2049_v56  ;;  %v373_v2 = vadd.f32 %v6922_v6, %v244_v15  ;;  %v1536_v29 = vmul.f32 %v6955_v25, %v109_v7 }
 0x36d   :  { %v5151_v61 = vmul.f32 %v7035_v51, %v5022_v59  ;;  %v5668_v34 = vmax.f32 %v5540_v55, 0.0  ;;  %v6314_v23 = vmax.f32 %v6186_v27, 0.0  ;;  %v1019_v26 = vadd.f32 %v6945_v17, %v890_v18 }
 0x36e   :  { %6698 = vst [vmem:[#allocation7 + $0x210] sm:$0xff] %v6570_v60  ;;  %v3341_v11 = vadd.f32 %v3213_v52, %v2695_v39  ;;  %v501_v3 = vmax.f32 %v373_v2, 0.0  ;;  %v1665_v40 = vadd.f32 %v6964_v30, %v1536_v29  ;;  %v2182_v49 = vmul.f32 %v6973_v38, %v109_v7 }
 0x36f   :  { %v5797_v1 = vmul.f32 %v7048_v12, %v5668_v34  ;;  %v6443_v19 = vmul.f32 %v7061_v37, %v6314_v23  ;;  %v1147_v53 = vmax.f32 %v1019_v26, 0.0  ;;  %v2828_v43 = vmul.f32 %v6988_v50, %v109_v7  ;;  %v110_v23 = vld [vmem:[#allocation6 + $0x228] sm:$0xff] }
 0x370   :  { %v3987_v0 = vadd.f32 %v3859_v48, %v3341_v11  ;;  %v630_v36 = vmul.f32 %v6930_v10, %v501_v3  ;;  %v1793_v5 = vmax.f32 %v1665_v40, 0.0  ;;  %v2311_v46 = vadd.f32 %v6979_v42, %v2182_v49 }
 0x371   :  { %v1276_v52 = vmul.f32 %v6951_v21, %v1147_v53  ;;  %v2957_v20 = vadd.f32 %v6993_v54, %v2828_v43  ;;  %v3474_v44 = vmul.f32 %v7001_v62, %v109_v7  ;;  %v4120_v14 = vmul.f32 %v7013_v24, %v109_v7 }
 0x372   :  { %v4633_v56 = vadd.f32 %v4505_v28, %v3987_v0  ;;  %v758_v15 = vadd.f32 %v630_v36, %v6928_v9  ;;  %v1922_v59 = vmul.f32 %v6967_v33, %v1793_v5  ;;  %v2439_v55 = vmax.f32 %v2311_v46, 0.0 }
 0x373   :  { %v3085_v48 = vmax.f32 %v2957_v20, 0.0  ;;  %v3603_v27 = vadd.f32 %v7007_v8, %v3474_v44  ;;  %v4249_v18 = vadd.f32 %v7019_v31, %v4120_v14  ;;  %v4766_v60 = vmul.f32 %v7026_v41, %v109_v7 }
 0x374   :  { %v5279_v39 = vadd.f32 %v5151_v61, %v4633_v56  ;;  %v1404_v2 = vadd.f32 %v1276_v52, %v758_v15  ;;  %v2568_v29 = vmul.f32 %v6982_v45, %v2439_v55  ;;  %v5412_v34 = vmul.f32 %v7040_v58, %v109_v7 }
 0x375   :  { %v3214_v28 = vmul.f32 %v6995_v57, %v3085_v48  ;;  %v3731_v26 = vmax.f32 %v3603_v27, 0.0  ;;  %v4377_v11 = vmax.f32 %v4249_v18, 0.0  ;;  %v4895_v3 = vadd.f32 %v7032_v47, %v4766_v60 }
 0x376   :  { %v5925_v40 = vadd.f32 %v5797_v1, %v5279_v39  ;;  %v2050_v49 = vadd.f32 %v1922_v59, %v1404_v2  ;;  %v5541_v53 = vadd.f32 %v7045_v63, %v5412_v34  ;;  %v6058_v43 = vmul.f32 %v7054_v22, %v109_v7 }
 0x377   :  { %v3860_v61 = vmul.f32 %v7009_v16, %v3731_v26  ;;  %v4506_v0 = vmul.f32 %v7021_v35, %v4377_v11  ;;  %v5023_v36 = vmax.f32 %v4895_v3, 0.0  ;;  %v245_v5 = vmul.f32 %v6918_v4, %v110_v23 }
 0x378   :  { %v6571_v46 = vadd.f32 %v6443_v19, %v5925_v40  ;;  %v2696_v52 = vadd.f32 %v2568_v29, %v2050_v49  ;;  %v5669_v20 = vmax.f32 %v5541_v53, 0.0  ;;  %v6187_v44 = vadd.f32 %v7059_v32, %v6058_v43 }
 0x379   :  { %v5152_v14 = vmul.f32 %v7035_v51, %v5023_v36  ;;  %v374_v1 = vadd.f32 %v6922_v6, %v245_v5  ;;  %v891_v56 = vmul.f32 %v6937_v13, %v110_v23  ;;  %v1537_v7 = vmul.f32 %v6955_v25, %v110_v23 }
 0x37a   :  { %6699 = vst [vmem:[#allocation7 + $0x218] sm:$0xff] %v6571_v46  ;;  %v3342_v15 = vadd.f32 %v3214_v28, %v2696_v52  ;;  %v5798_v59 = vmul.f32 %v7048_v12, %v5669_v20  ;;  %v6315_v55 = vmax.f32 %v6187_v44, 0.0  ;;  %v2183_v48 = vmul.f32 %v6973_v38, %v110_v23 }
 0x37b   :  { %v502_v19 = vmax.f32 %v374_v1, 0.0  ;;  %v1020_v27 = vadd.f32 %v6945_v17, %v891_v56  ;;  %v1666_v18 = vadd.f32 %v6964_v30, %v1537_v7  ;;  %v2829_v60 = vmul.f32 %v6988_v50, %v110_v23  ;;  %v111_v56 = vld [vmem:[#allocation6 + $0x230] sm:$0xff] }
 0x37c   :  { %v3988_v39 = vadd.f32 %v3860_v61, %v3342_v15  ;;  %v6444_v2 = vmul.f32 %v7061_v37, %v6315_v55  ;;  %v2312_v29 = vadd.f32 %v6979_v42, %v2183_v48  ;;  %v3475_v34 = vmul.f32 %v7001_v62, %v110_v23 }
 0x37d   :  { %v631_v28 = vmul.f32 %v6930_v10, %v502_v19  ;;  %v1148_v26 = vmax.f32 %v1020_v27, 0.0  ;;  %v1794_v11 = vmax.f32 %v1666_v18, 0.0  ;;  %v2958_v3 = vadd.f32 %v6993_v54, %v2829_v60 }
 0x37e   :  { %v4634_v40 = vadd.f32 %v4506_v0, %v3988_v39  ;;  %v2440_v49 = vmax.f32 %v2312_v29, 0.0  ;;  %v3604_v53 = vadd.f32 %v7007_v8, %v3475_v34  ;;  %v4121_v43 = vmul.f32 %v7013_v24, %v110_v23 }
 0x37f   :  { %v759_v61 = vadd.f32 %v631_v28, %v6928_v9  ;;  %v1277_v36 = vmul.f32 %v6951_v21, %v1148_v26  ;;  %v1923_v5 = vmul.f32 %v6967_v33, %v1794_v11  ;;  %v3086_v46 = vmax.f32 %v2958_v3, 0.0 }
 0x380   :  { %v5280_v52 = vadd.f32 %v5152_v14, %v4634_v40  ;;  %v2569_v20 = vmul.f32 %v6982_v45, %v2440_v49  ;;  %v3732_v44 = vmax.f32 %v3604_v53, 0.0  ;;  %v4250_v1 = vadd.f32 %v7019_v31, %v4121_v43 }
 0x381   :  { %v1405_v0 = vadd.f32 %v1277_v36, %v759_v61  ;;  %v3215_v7 = vmul.f32 %v6995_v57, %v3086_v46  ;;  %v4767_v15 = vmul.f32 %v7026_v41, %v110_v23  ;;  %v5413_v55 = vmul.f32 %v7040_v58, %v110_v23 }
 0x382   :  { %v5926_v48 = vadd.f32 %v5798_v59, %v5280_v52  ;;  %v3861_v19 = vmul.f32 %v7009_v16, %v3732_v44  ;;  %v4378_v27 = vmax.f32 %v4250_v1, 0.0  ;;  %v6059_v18 = vmul.f32 %v7054_v22, %v110_v23 }
 0x383   :  { %v2051_v14 = vadd.f32 %v1923_v5, %v1405_v0  ;;  %v4896_v60 = vadd.f32 %v7032_v47, %v4767_v15  ;;  %v5542_v39 = vadd.f32 %v7045_v63, %v5413_v55  ;;  %v246_v29 = vmul.f32 %v6918_v4, %v111_v56 }
 0x384   :  { %v6572_v34 = vadd.f32 %v6444_v2, %v5926_v48  ;;  %v4507_v28 = vmul.f32 %v7021_v35, %v4378_v27  ;;  %v6188_v26 = vadd.f32 %v7059_v32, %v6059_v18  ;;  %v892_v11 = vmul.f32 %v6937_v13, %v111_v56 }
 0x385   :  { %v2697_v59 = vadd.f32 %v2569_v20, %v2051_v14  ;;  %v5024_v3 = vmax.f32 %v4896_v60, 0.0  ;;  %v5670_v40 = vmax.f32 %v5542_v39, 0.0  ;;  %v375_v49 = vadd.f32 %v6922_v6, %v246_v29 }
 0x386   :  { %6700 = vst [vmem:[#allocation7 + $0x220] sm:$0xff] %v6572_v34  ;;  %v6316_v23 = vmax.f32 %v6188_v26, 0.0  ;;  %v1021_v53 = vadd.f32 %v6945_v17, %v892_v11  ;;  %v1538_v43 = vmul.f32 %v6955_v25, %v111_v56  ;;  %v2184_v61 = vmul.f32 %v6973_v38, %v111_v56 }
 0x387   :  { %v3343_v2 = vadd.f32 %v3215_v7, %v2697_v59  ;;  %v5153_v36 = vmul.f32 %v7035_v51, %v5024_v3  ;;  %v5799_v5 = vmul.f32 %v7048_v12, %v5670_v40  ;;  %v503_v46 = vmax.f32 %v375_v49, 0.0 }
 0x388   :  { %v6445_v52 = vmul.f32 %v7061_v37, %v6316_v23  ;;  %v1149_v20 = vmax.f32 %v1021_v53, 0.0  ;;  %v1667_v44 = vadd.f32 %v6964_v30, %v1538_v43  ;;  %v2313_v1 = vadd.f32 %v6979_v42, %v2184_v61 }
 0x389   :  { %v3989_v0 = vadd.f32 %v3861_v19, %v3343_v2  ;;  %v632_v15 = vmul.f32 %v6930_v10, %v503_v46  ;;  %v2830_v55 = vmul.f32 %v6988_v50, %v111_v56  ;;  %v3476_v48 = vmul.f32 %v7001_v62, %v111_v56  ;;  %v112_v2 = vld [vmem:[#allocation6 + $0x238] sm:$0xff] }
 0x38a   :  { %v1278_v7 = vmul.f32 %v6951_v21, %v1149_v20  ;;  %v1795_v27 = vmax.f32 %v1667_v44, 0.0  ;;  %v2441_v18 = vmax.f32 %v2313_v1, 0.0  ;;  %v4122_v14 = vmul.f32 %v7013_v24, %v111_v56 }
 0x38b   :  { %v4635_v60 = vadd.f32 %v4507_v28, %v3989_v0  ;;  %v760_v39 = vadd.f32 %v632_v15, %v6928_v9  ;;  %v2959_v29 = vadd.f32 %v6993_v54, %v2830_v55  ;;  %v3605_v34 = vadd.f32 %v7007_v8, %v3476_v48 }
 0x38c   :  { %v1924_v19 = vmul.f32 %v6967_v33, %v1795_v27  ;;  %v2570_v26 = vmul.f32 %v6982_v45, %v2441_v18  ;;  %v4251_v11 = vadd.f32 %v7019_v31, %v4122_v14  ;;  %v4768_v59 = vmul.f32 %v7026_v41, %v111_v56 }
 0x38d   :  { %v5281_v3 = vadd.f32 %v5153_v36, %v4635_v60  ;;  %v1406_v40 = vadd.f32 %v1278_v7, %v760_v39  ;;  %v3087_v49 = vmax.f32 %v2959_v29, 0.0  ;;  %v3733_v23 = vmax.f32 %v3605_v34, 0.0 }
 0x38e   :  { %v4379_v53 = vmax.f32 %v4251_v11, 0.0  ;;  %v4897_v28 = vadd.f32 %v7032_v47, %v4768_v59  ;;  %v5414_v43 = vmul.f32 %v7040_v58, %v111_v56  ;;  %v6060_v61 = vmul.f32 %v7054_v22, %v111_v56 }
 0x38f   :  { %v5927_v46 = vadd.f32 %v5799_v5, %v5281_v3  ;;  %v2052_v20 = vadd.f32 %v1924_v19, %v1406_v40  ;;  %v3216_v44 = vmul.f32 %v6995_v57, %v3087_v49  ;;  %v3862_v1 = vmul.f32 %v7009_v16, %v3733_v23 }
 0x390   :  { %v4508_v0 = vmul.f32 %v7021_v35, %v4379_v53  ;;  %v5025_v36 = vmax.f32 %v4897_v28, 0.0  ;;  %v5543_v15 = vadd.f32 %v7045_v63, %v5414_v43  ;;  %v6189_v55 = vadd.f32 %v7059_v32, %v6060_v61 }
 0x391   :  { %v6573_v48 = vadd.f32 %v6445_v52, %v5927_v46  ;;  %v2698_v7 = vadd.f32 %v2570_v26, %v2052_v20  ;;  %v247_v27 = vmul.f32 %v6918_v4, %v112_v2  ;;  %v893_v56 = vmul.f32 %v6937_v13, %v112_v2 }
 0x392   :  { %v5154_v5 = vmul.f32 %v7035_v51, %v5025_v36  ;;  %v5671_v18 = vmax.f32 %v5543_v15, 0.0  ;;  %v6317_v14 = vmax.f32 %v6189_v55, 0.0  ;;  %v1539_v60 = vmul.f32 %v6955_v25, %v112_v2 }
 0x393   :  { %6701 = vst [vmem:[#allocation7 + $0x228] sm:$0xff] %v6573_v48  ;;  %v3344_v39 = vadd.f32 %v3216_v44, %v2698_v7  ;;  %v376_v29 = vadd.f32 %v6922_v6, %v247_v27  ;;  %v1022_v34 = vadd.f32 %v6945_v17, %v893_v56  ;;  %v2185_v19 = vmul.f32 %v6973_v38, %v112_v2 }
 0x394   :  { %v5800_v52 = vmul.f32 %v7048_v12, %v5671_v18  ;;  %v6446_v26 = vmul.f32 %v7061_v37, %v6317_v14  ;;  %v1668_v11 = vadd.f32 %v6964_v30, %v1539_v60  ;;  %v2831_v59 = vmul.f32 %v6988_v50, %v112_v2 }
 0x395   :  { %v3990_v3 = vadd.f32 %v3862_v1, %v3344_v39  ;;  %v504_v40 = vmax.f32 %v376_v29, 0.0  ;;  %v1150_v49 = vmax.f32 %v1022_v34, 0.0  ;;  %v2314_v23 = vadd.f32 %v6979_v42, %v2185_v19 }
 0x396   :  { %v1796_v53 = vmax.f32 %v1668_v11, 0.0  ;;  %v2960_v28 = vadd.f32 %v6993_v54, %v2831_v59  ;;  %v3477_v43 = vmul.f32 %v7001_v62, %v112_v2  ;;  %v4123_v61 = vmul.f32 %v7013_v24, %v112_v2 }
 0x397   :  { %v4636_v46 = vadd.f32 %v4508_v0, %v3990_v3  ;;  %v633_v20 = vmul.f32 %v6930_v10, %v504_v40  ;;  %v1279_v44 = vmul.f32 %v6951_v21, %v1150_v49  ;;  %v2442_v36 = vmax.f32 %v2314_v23, 0.0  ;;  %v113_v0 = vld [vmem:[#allocation6 + $0x240] sm:$0xff] }
 0x398   :  { %v1925_v15 = vmul.f32 %v6967_v33, %v1796_v53  ;;  %v3088_v1 = vmax.f32 %v2960_v28, 0.0  ;;  %v3606_v55 = vadd.f32 %v7007_v8, %v3477_v43  ;;  %v4252_v48 = vadd.f32 %v7019_v31, %v4123_v61 }
 0x399   :  { %v5282_v7 = vadd.f32 %v5154_v5, %v4636_v46  ;;  %v761_v27 = vadd.f32 %v633_v20, %v6928_v9  ;;  %v2571_v56 = vmul.f32 %v6982_v45, %v2442_v36  ;;  %v4769_v18 = vmul.f32 %v7026_v41, %v112_v2 }
 0x39a   :  { %v3217_v14 = vmul.f32 %v6995_v57, %v3088_v1  ;;  %v3734_v60 = vmax.f32 %v3606_v55, 0.0  ;;  %v4380_v39 = vmax.f32 %v4252_v48, 0.0  ;;  %v5415_v29 = vmul.f32 %v7040_v58, %v112_v2 }
 0x39b   :  { %v5928_v34 = vadd.f32 %v5800_v52, %v5282_v7  ;;  %v1407_v19 = vadd.f32 %v1279_v44, %v761_v27  ;;  %v4898_v11 = vadd.f32 %v7032_v47, %v4769_v18  ;;  %v6061_v59 = vmul.f32 %v7054_v22, %v112_v2 }
 0x39c   :  { %v3863_v5 = vmul.f32 %v7009_v16, %v3734_v60  ;;  %v4509_v3 = vmul.f32 %v7021_v35, %v4380_v39  ;;  %v5544_v40 = vadd.f32 %v7045_v63, %v5415_v29  ;;  %v248_v49 = vmul.f32 %v6918_v4, %v113_v0 }
 0x39d   :  { %v6574_v23 = vadd.f32 %v6446_v26, %v5928_v34  ;;  %v2053_v53 = vadd.f32 %v1925_v15, %v1407_v19  ;;  %v5026_v28 = vmax.f32 %v4898_v11, 0.0  ;;  %v6190_v43 = vadd.f32 %v7059_v32, %v6061_v59 }
 0x39e   :  { %v5672_v61 = vmax.f32 %v5544_v40, 0.0  ;;  %v377_v52 = vadd.f32 %v6922_v6, %v248_v49  ;;  %v894_v46 = vmul.f32 %v6937_v13, %v113_v0  ;;  %v1540_v2 = vmul.f32 %v6955_v25, %v113_v0 }
 0x39f   :  { %6702 = vst [vmem:[#allocation7 + $0x230] sm:$0xff] %v6574_v23  ;;  %v2699_v20 = vadd.f32 %v2571_v56, %v2053_v53  ;;  %v5155_v44 = vmul.f32 %v7035_v51, %v5026_v28  ;;  %v6318_v36 = vmax.f32 %v6190_v43, 0.0  ;;  %v2186_v1 = vmul.f32 %v6973_v38, %v113_v0 }
 0x3a0   :  { %v5801_v26 = vmul.f32 %v7048_v12, %v5672_v61  ;;  %v505_v15 = vmax.f32 %v377_v52, 0.0  ;;  %v1023_v55 = vadd.f32 %v6945_v17, %v894_v46  ;;  %v1669_v48 = vadd.f32 %v6964_v30, %v1540_v2 }
 0x3a1   :  { %v3345_v7 = vadd.f32 %v3217_v14, %v2699_v20  ;;  %v6447_v27 = vmul.f32 %v7061_v37, %v6318_v36  ;;  %v2315_v18 = vadd.f32 %v6979_v42, %v2186_v1  ;;  %v2832_v60 = vmul.f32 %v6988_v50, %v113_v0  ;;  %v114_v36 = vld [vmem:[#allocation6 + $0x248] sm:$0xff] }
 0x3a2   :  { %v634_v56 = vmul.f32 %v6930_v10, %v505_v15  ;;  %v1151_v39 = vmax.f32 %v1023_v55, 0.0  ;;  %v1797_v29 = vmax.f32 %v1669_v48, 0.0  ;;  %v3478_v34 = vmul.f32 %v7001_v62, %v113_v0 }
 0x3a3   :  { %v3991_v19 = vadd.f32 %v3863_v5, %v3345_v7  ;;  %v2443_v11 = vmax.f32 %v2315_v18, 0.0  ;;  %v2961_v59 = vadd.f32 %v6993_v54, %v2832_v60  ;;  %v4124_v40 = vmul.f32 %v7013_v24, %v113_v0 }
 0x3a4   :  { %v762_v14 = vadd.f32 %v634_v56, %v6928_v9  ;;  %v1280_v49 = vmul.f32 %v6951_v21, %v1151_v39  ;;  %v1926_v23 = vmul.f32 %v6967_v33, %v1797_v29  ;;  %v3607_v53 = vadd.f32 %v7007_v8, %v3478_v34 }
 0x3a5   :  { %v4637_v28 = vadd.f32 %v4509_v3, %v3991_v19  ;;  %v2572_v43 = vmul.f32 %v6982_v45, %v2443_v11  ;;  %v3089_v61 = vmax.f32 %v2961_v59, 0.0  ;;  %v4253_v52 = vadd.f32 %v7019_v31, %v4124_v40 }
 0x3a6   :  { %v1408_v5 = vadd.f32 %v1280_v49, %v762_v14  ;;  %v3735_v46 = vmax.f32 %v3607_v53, 0.0  ;;  %v4770_v2 = vmul.f32 %v7026_v41, %v113_v0  ;;  %v5416_v20 = vmul.f32 %v7040_v58, %v113_v0 }
 0x3a7   :  { %v5283_v1 = vadd.f32 %v5155_v44, %v4637_v28  ;;  %v3218_v15 = vmul.f32 %v6995_v57, %v3089_v61  ;;  %v4381_v55 = vmax.f32 %v4253_v52, 0.0  ;;  %v6062_v48 = vmul.f32 %v7054_v22, %v113_v0 }
 0x3a8   :  { %v2054_v7 = vadd.f32 %v1926_v23, %v1408_v5  ;;  %v3864_v3 = vmul.f32 %v7009_v16, %v3735_v46  ;;  %v4899_v18 = vadd.f32 %v7032_v47, %v4770_v2  ;;  %v5545_v60 = vadd.f32 %v7045_v63, %v5416_v20 }
 0x3a9   :  { %v5929_v56 = vadd.f32 %v5801_v26, %v5283_v1  ;;  %v4510_v39 = vmul.f32 %v7021_v35, %v4381_v55  ;;  %v6191_v29 = vadd.f32 %v7059_v32, %v6062_v48  ;;  %v249_v34 = vmul.f32 %v6918_v4, %v114_v36 }
 0x3aa   :  { %v2700_v44 = vadd.f32 %v2572_v43, %v2054_v7  ;;  %v5027_v19 = vmax.f32 %v4899_v18, 0.0  ;;  %v5673_v11 = vmax.f32 %v5545_v60, 0.0  ;;  %v895_v59 = vmul.f32 %v6937_v13, %v114_v36 }
 0x3ab   :  { %v6575_v0 = vadd.f32 %v6447_v27, %v5929_v56  ;;  %v6319_v40 = vmax.f32 %v6191_v29, 0.0  ;;  %v378_v14 = vadd.f32 %v6922_v6, %v249_v34  ;;  %v1541_v49 = vmul.f32 %v6955_v25, %v114_v36 }
 0x3ac   :  { %v3346_v23 = vadd.f32 %v3218_v15, %v2700_v44  ;;  %v5156_v26 = vmul.f32 %v7035_v51, %v5027_v19  ;;  %v5802_v53 = vmul.f32 %v7048_v12, %v5673_v11  ;;  %v1024_v28 = vadd.f32 %v6945_v17, %v895_v59 }
 0x3ad   :  { %6703 = vst [vmem:[#allocation7 + $0x238] sm:$0xff] %v6575_v0  ;;  %v6448_v43 = vmul.f32 %v7061_v37, %v6319_v40  ;;  %v506_v61 = vmax.f32 %v378_v14, 0.0  ;;  %v1670_v52 = vadd.f32 %v6964_v30, %v1541_v49  ;;  %v2187_v27 = vmul.f32 %v6973_v38, %v114_v36 }
 0x3ae   :  { %v3992_v5 = vadd.f32 %v3864_v3, %v3346_v23  ;;  %v1152_v46 = vmax.f32 %v1024_v28, 0.0  ;;  %v2833_v2 = vmul.f32 %v6988_v50, %v114_v36  ;;  %v3479_v20 = vmul.f32 %v7001_v62, %v114_v36  ;;  %v115_v23 = vld [vmem:[#allocation6 + $0x250] sm:$0xff] }
 0x3af   :  { %v635_v1 = vmul.f32 %v6930_v10, %v506_v61  ;;  %v1798_v15 = vmax.f32 %v1670_v52, 0.0  ;;  %v2316_v55 = vadd.f32 %v6979_v42, %v2187_v27  ;;  %v4125_v48 = vmul.f32 %v7013_v24, %v114_v36 }
 0x3b0   :  { %v4638_v7 = vadd.f32 %v4510_v39, %v3992_v5  ;;  %v1281_v18 = vmul.f32 %v6951_v21, %v1152_v46  ;;  %v2962_v60 = vadd.f32 %v6993_v54, %v2833_v2  ;;  %v3608_v56 = vadd.f32 %v7007_v8, %v3479_v20 }
 0x3b1   :  { %v763_v3 = vadd.f32 %v635_v1, %v6928_v9  ;;  %v1927_v29 = vmul.f32 %v6967_v33, %v1798_v15  ;;  %v2444_v34 = vmax.f32 %v2316_v55, 0.0  ;;  %v4254_v44 = vadd.f32 %v7019_v31, %v4125_v48 }
 0x3b2   :  { %v5284_v19 = vadd.f32 %v5156_v26, %v4638_v7  ;;  %v3090_v11 = vmax.f32 %v2962_v60, 0.0  ;;  %v3736_v59 = vmax.f32 %v3608_v56, 0.0  ;;  %v4771_v0 = vmul.f32 %v7026_v41, %v114_v36 }
 0x3b3   :  { %v1409_v40 = vadd.f32 %v1281_v18, %v763_v3  ;;  %v2573_v39 = vmul.f32 %v6982_v45, %v2444_v34  ;;  %v4382_v14 = vmax.f32 %v4254_v44, 0.0  ;;  %v5417_v49 = vmul.f32 %v7040_v58, %v114_v36 }
 0x3b4   :  { %v5930_v28 = vadd.f32 %v5802_v53, %v5284_v19  ;;  %v3219_v61 = vmul.f32 %v6995_v57, %v3090_v11  ;;  %v3865_v52 = vmul.f32 %v7009_v16, %v3736_v59  ;;  %v4900_v27 = vadd.f32 %v7032_v47, %v4771_v0 }
 0x3b5   :  { %v2055_v5 = vadd.f32 %v1927_v29, %v1409_v40  ;;  %v4511_v26 = vmul.f32 %v7021_v35, %v4382_v14  ;;  %v5546_v46 = vadd.f32 %v7045_v63, %v5417_v49  ;;  %v6063_v2 = vmul.f32 %v7054_v22, %v114_v36 }
 0x3b6   :  { %v6576_v20 = vadd.f32 %v6448_v43, %v5930_v28  ;;  %v5028_v1 = vmax.f32 %v4900_v27, 0.0  ;;  %v250_v15 = vmul.f32 %v6918_v4, %v115_v23  ;;  %v896_v55 = vmul.f32 %v6937_v13, %v115_v23 }
 0x3b7   :  { %v2701_v53 = vadd.f32 %v2573_v39, %v2055_v5  ;;  %v5674_v48 = vmax.f32 %v5546_v46, 0.0  ;;  %v6192_v7 = vadd.f32 %v7059_v32, %v6063_v2  ;;  %v1542_v18 = vmul.f32 %v6955_v25, %v115_v23 }
 0x3b8   :  { %6704 = vst [vmem:[#allocation7 + $0x240] sm:$0xff] %v6576_v20  ;;  %v5157_v60 = vmul.f32 %v7035_v51, %v5028_v1  ;;  %v379_v56 = vadd.f32 %v6922_v6, %v250_v15  ;;  %v1025_v3 = vadd.f32 %v6945_v17, %v896_v55  ;;  %v2188_v36 = vmul.f32 %v6973_v38, %v115_v23 }
 0x3b9   :  { %v3347_v43 = vadd.f32 %v3219_v61, %v2701_v53  ;;  %v5803_v29 = vmul.f32 %v7048_v12, %v5674_v48  ;;  %v6320_v34 = vmax.f32 %v6192_v7, 0.0  ;;  %v1671_v44 = vadd.f32 %v6964_v30, %v1542_v18 }
 0x3ba   :  { %v507_v19 = vmax.f32 %v379_v56, 0.0  ;;  %v1153_v11 = vmax.f32 %v1025_v3, 0.0  ;;  %v2317_v59 = vadd.f32 %v6979_v42, %v2188_v36  ;;  %v2834_v0 = vmul.f32 %v6988_v50, %v115_v23 }
 0x3bb   :  { %v3993_v40 = vadd.f32 %v3865_v52, %v3347_v43  ;;  %v6449_v39 = vmul.f32 %v7061_v37, %v6320_v34  ;;  %v1799_v14 = vmax.f32 %v1671_v44, 0.0  ;;  %v3480_v49 = vmul.f32 %v7001_v62, %v115_v23 }
 0x3bc   :  { %v636_v28 = vmul.f32 %v6930_v10, %v507_v19  ;;  %v1282_v61 = vmul.f32 %v6951_v21, %v1153_v11  ;;  %v2445_v27 = vmax.f32 %v2317_v59, 0.0  ;;  %v2963_v5 = vadd.f32 %v6993_v54, %v2834_v0 }
 0x3bd   :  { %v4639_v46 = vadd.f32 %v4511_v26, %v3993_v40  ;;  %v1928_v2 = vmul.f32 %v6967_v33, %v1799_v14  ;;  %v3609_v20 = vadd.f32 %v7007_v8, %v3480_v49  ;;  %v4126_v1 = vmul.f32 %v7013_v24, %v115_v23  ;;  %v116_v26 = vld [vmem:[#allocation6 + $0x258] sm:$0xff] }
 0x3be   :  { %v764_v52 = vadd.f32 %v636_v28, %v6928_v9  ;;  %v2574_v15 = vmul.f32 %v6982_v45, %v2445_v27  ;;  %v3091_v55 = vmax.f32 %v2963_v5, 0.0  ;;  %v4772_v53 = vmul.f32 %v7026_v41, %v115_v23 }
 0x3bf   :  { %v5285_v48 = vadd.f32 %v5157_v60, %v4639_v46  ;;  %v3737_v7 = vmax.f32 %v3609_v20, 0.0  ;;  %v4255_v18 = vadd.f32 %v7019_v31, %v4126_v1  ;;  %v5418_v56 = vmul.f32 %v7040_v58, %v115_v23 }
 0x3c0   :  { %v1410_v3 = vadd.f32 %v1282_v61, %v764_v52  ;;  %v3220_v36 = vmul.f32 %v6995_v57, %v3091_v55  ;;  %v4901_v43 = vadd.f32 %v7032_v47, %v4772_v53  ;;  %v6064_v34 = vmul.f32 %v7054_v22, %v115_v23 }
 0x3c1   :  { %v5931_v44 = vadd.f32 %v5803_v29, %v5285_v48  ;;  %v3866_v19 = vmul.f32 %v7009_v16, %v3737_v7  ;;  %v4383_v11 = vmax.f32 %v4255_v18, 0.0  ;;  %v5547_v59 = vadd.f32 %v7045_v63, %v5418_v56 }
 0x3c2   :  { %v2056_v60 = vadd.f32 %v1928_v2, %v1410_v3  ;;  %v5029_v0 = vmax.f32 %v4901_v43, 0.0  ;;  %v6193_v40 = vadd.f32 %v7059_v32, %v6064_v34  ;;  %v251_v14 = vmul.f32 %v6918_v4, %v116_v26 }
 0x3c3   :  { %v6577_v49 = vadd.f32 %v6449_v39, %v5931_v44  ;;  %v4512_v28 = vmul.f32 %v7021_v35, %v4383_v11  ;;  %v5675_v61 = vmax.f32 %v5547_v59, 0.0  ;;  %v897_v27 = vmul.f32 %v6937_v13, %v116_v26 }
 0x3c4   :  { %v2702_v5 = vadd.f32 %v2574_v15, %v2056_v60  ;;  %v5158_v23 = vmul.f32 %v7035_v51, %v5029_v0  ;;  %v6321_v29 = vmax.f32 %v6193_v40, 0.0  ;;  %v380_v46 = vadd.f32 %v6922_v6, %v251_v14 }
 0x3c5   :  { %6705 = vst [vmem:[#allocation7 + $0x248] sm:$0xff] %v6577_v49  ;;  %v5804_v2 = vmul.f32 %v7048_v12, %v5675_v61  ;;  %v1026_v20 = vadd.f32 %v6945_v17, %v897_v27  ;;  %v1543_v1 = vmul.f32 %v6955_v25, %v116_v26  ;;  %v2189_v39 = vmul.f32 %v6973_v38, %v116_v26 }
 0x3c6   :  { %v3348_v52 = vadd.f32 %v3220_v36, %v2702_v5  ;;  %v6450_v55 = vmul.f32 %v7061_v37, %v6321_v29  ;;  %v508_v53 = vmax.f32 %v380_v46, 0.0  ;;  %v2835_v15 = vmul.f32 %v6988_v50, %v116_v26  ;;  %v117_v29 = vld [vmem:[#allocation6 + $0x260] sm:$0xff] }
 0x3c7   :  { %v1154_v48 = vmax.f32 %v1026_v20, 0.0  ;;  %v1672_v7 = vadd.f32 %v6964_v30, %v1543_v1  ;;  %v2318_v18 = vadd.f32 %v6979_v42, %v2189_v39  ;;  %v3481_v56 = vmul.f32 %v7001_v62, %v116_v26 }
 0x3c8   :  { %v3994_v3 = vadd.f32 %v3866_v19, %v3348_v52  ;;  %v637_v43 = vmul.f32 %v6930_v10, %v508_v53  ;;  %v2964_v34 = vadd.f32 %v6993_v54, %v2835_v15  ;;  %v4127_v44 = vmul.f32 %v7013_v24, %v116_v26 }
 0x3c9   :  { %v1283_v36 = vmul.f32 %v6951_v21, %v1154_v48  ;;  %v1800_v11 = vmax.f32 %v1672_v7, 0.0  ;;  %v2446_v59 = vmax.f32 %v2318_v18, 0.0  ;;  %v3610_v60 = vadd.f32 %v7007_v8, %v3481_v56 }
 0x3ca   :  { %v4640_v0 = vadd.f32 %v4512_v28, %v3994_v3  ;;  %v765_v40 = vadd.f32 %v637_v43, %v6928_v9  ;;  %v3092_v14 = vmax.f32 %v2964_v34, 0.0  ;;  %v4256_v49 = vadd.f32 %v7019_v31, %v4127_v44 }
 0x3cb   :  { %v1929_v19 = vmul.f32 %v6967_v33, %v1800_v11  ;;  %v2575_v61 = vmul.f32 %v6982_v45, %v2446_v59  ;;  %v3738_v27 = vmax.f32 %v3610_v60, 0.0  ;;  %v4773_v5 = vmul.f32 %v7026_v41, %v116_v26 }
 0x3cc   :  { %v5286_v46 = vadd.f32 %v5158_v23, %v4640_v0  ;;  %v1411_v20 = vadd.f32 %v1283_v36, %v765_v40  ;;  %v3221_v1 = vmul.f32 %v6995_v57, %v3092_v14  ;;  %v4384_v39 = vmax.f32 %v4256_v49, 0.0 }
 0x3cd   :  { %v3867_v28 = vmul.f32 %v7009_v16, %v3738_v27  ;;  %v4902_v52 = vadd.f32 %v7032_v47, %v4773_v5  ;;  %v5419_v53 = vmul.f32 %v7040_v58, %v116_v26  ;;  %v6065_v15 = vmul.f32 %v7054_v22, %v116_v26 }
 0x3ce   :  { %v5932_v48 = vadd.f32 %v5804_v2, %v5286_v46  ;;  %v2057_v7 = vadd.f32 %v1929_v19, %v1411_v20  ;;  %v4513_v18 = vmul.f32 %v7021_v35, %v4384_v39  ;;  %v252_v56 = vmul.f32 %v6918_v4, %v117_v29 }
 0x3cf   :  { %v5030_v3 = vmax.f32 %v4902_v52, 0.0  ;;  %v5548_v23 = vadd.f32 %v7045_v63, %v5419_v53  ;;  %v6194_v43 = vadd.f32 %v7059_v32, %v6065_v15  ;;  %v898_v34 = vmul.f32 %v6937_v13, %v117_v29 }
 0x3d0   :  { %v6578_v44 = vadd.f32 %v6450_v55, %v5932_v48  ;;  %v2703_v36 = vadd.f32 %v2575_v61, %v2057_v7  ;;  %v381_v11 = vadd.f32 %v6922_v6, %v252_v56  ;;  %v1544_v59 = vmul.f32 %v6955_v25, %v117_v29 }
 0x3d1   :  { %v5159_v26 = vmul.f32 %v7035_v51, %v5030_v3  ;;  %v5676_v2 = vmax.f32 %v5548_v23, 0.0  ;;  %v6322_v60 = vmax.f32 %v6194_v43, 0.0  ;;  %v1027_v0 = vadd.f32 %v6945_v17, %v898_v34 }
 0x3d2   :  { %6706 = vst [vmem:[#allocation7 + $0x250] sm:$0xff] %v6578_v44  ;;  %v3349_v40 = vadd.f32 %v3221_v1, %v2703_v36  ;;  %v509_v14 = vmax.f32 %v381_v11, 0.0  ;;  %v1673_v49 = vadd.f32 %v6964_v30, %v1544_v59  ;;  %v2190_v19 = vmul.f32 %v6973_v38, %v117_v29 }
 0x3d3   :  { %v5805_v55 = vmul.f32 %v7048_v12, %v5676_v2  ;;  %v6451_v61 = vmul.f32 %v7061_v37, %v6322_v60  ;;  %v1155_v27 = vmax.f32 %v1027_v0, 0.0  ;;  %v2836_v5 = vmul.f32 %v6988_v50, %v117_v29  ;;  %v118_v60 = vld [vmem:[#allocation6 + $0x268] sm:$0xff] }
 0x3d4   :  { %v3995_v46 = vadd.f32 %v3867_v28, %v3349_v40  ;;  %v638_v20 = vmul.f32 %v6930_v10, %v509_v14  ;;  %v1801_v39 = vmax.f32 %v1673_v49, 0.0  ;;  %v2319_v52 = vadd.f32 %v6979_v42, %v2190_v19 }
 0x3d5   :  { %v1284_v1 = vmul.f32 %v6951_v21, %v1155_v27  ;;  %v2965_v53 = vadd.f32 %v6993_v54, %v2836_v5  ;;  %v3482_v15 = vmul.f32 %v7001_v62, %v117_v29  ;;  %v4128_v48 = vmul.f32 %v7013_v24, %v117_v29 }
 0x3d6   :  { %v4641_v7 = vadd.f32 %v4513_v18, %v3995_v46  ;;  %v766_v56 = vadd.f32 %v638_v20, %v6928_v9  ;;  %v1930_v3 = vmul.f32 %v6967_v33, %v1801_v39  ;;  %v2447_v23 = vmax.f32 %v2319_v52, 0.0 }
 0x3d7   :  { %v3093_v28 = vmax.f32 %v2965_v53, 0.0  ;;  %v3611_v43 = vadd.f32 %v7007_v8, %v3482_v15  ;;  %v4257_v34 = vadd.f32 %v7019_v31, %v4128_v48  ;;  %v4774_v44 = vmul.f32 %v7026_v41, %v117_v29 }
 0x3d8   :  { %v5287_v36 = vadd.f32 %v5159_v26, %v4641_v7  ;;  %v1412_v11 = vadd.f32 %v1284_v1, %v766_v56  ;;  %v2576_v59 = vmul.f32 %v6982_v45, %v2447_v23  ;;  %v5420_v2 = vmul.f32 %v7040_v58, %v117_v29 }
 0x3d9   :  { %v3222_v18 = vmul.f32 %v6995_v57, %v3093_v28  ;;  %v3739_v0 = vmax.f32 %v3611_v43, 0.0  ;;  %v4385_v40 = vmax.f32 %v4257_v34, 0.0  ;;  %v4903_v14 = vadd.f32 %v7032_v47, %v4774_v44 }
 0x3da   :  { %v5933_v49 = vadd.f32 %v5805_v55, %v5287_v36  ;;  %v2058_v19 = vadd.f32 %v1930_v3, %v1412_v11  ;;  %v5549_v27 = vadd.f32 %v7045_v63, %v5420_v2  ;;  %v6066_v5 = vmul.f32 %v7054_v22, %v117_v29 }
 0x3db   :  { %v3868_v26 = vmul.f32 %v7009_v16, %v3739_v0  ;;  %v4514_v46 = vmul.f32 %v7021_v35, %v4385_v40  ;;  %v5031_v20 = vmax.f32 %v4903_v14, 0.0  ;;  %v253_v39 = vmul.f32 %v6918_v4, %v118_v60 }
 0x3dc   :  { %v6579_v52 = vadd.f32 %v6451_v61, %v5933_v49  ;;  %v2704_v1 = vadd.f32 %v2576_v59, %v2058_v19  ;;  %v5677_v53 = vmax.f32 %v5549_v27, 0.0  ;;  %v6195_v15 = vadd.f32 %v7059_v32, %v6066_v5 }
 0x3dd   :  { %v5160_v48 = vmul.f32 %v7035_v51, %v5031_v20  ;;  %v382_v55 = vadd.f32 %v6922_v6, %v253_v39  ;;  %v899_v7 = vmul.f32 %v6937_v13, %v118_v60  ;;  %v1545_v29 = vmul.f32 %v6955_v25, %v118_v60 }
 0x3de   :  { %6707 = vst [vmem:[#allocation7 + $0x258] sm:$0xff] %v6579_v52  ;;  %v3350_v56 = vadd.f32 %v3222_v18, %v2704_v1  ;;  %v5806_v3 = vmul.f32 %v7048_v12, %v5677_v53  ;;  %v6323_v23 = vmax.f32 %v6195_v15, 0.0  ;;  %v2191_v28 = vmul.f32 %v6973_v38, %v118_v60 }
 0x3df   :  { %v510_v61 = vmax.f32 %v382_v55, 0.0  ;;  %v1028_v43 = vadd.f32 %v6945_v17, %v899_v7  ;;  %v1674_v34 = vadd.f32 %v6964_v30, %v1545_v29  ;;  %v2837_v44 = vmul.f32 %v6988_v50, %v118_v60  ;;  %v119_v7 = vld [vmem:[#allocation6 + $0x270] sm:$0xff] }
 0x3e0   :  { %v3996_v36 = vadd.f32 %v3868_v26, %v3350_v56  ;;  %v6452_v11 = vmul.f32 %v7061_v37, %v6323_v23  ;;  %v2320_v59 = vadd.f32 %v6979_v42, %v2191_v28  ;;  %v3483_v2 = vmul.f32 %v7001_v62, %v118_v60 }
 0x3e1   :  { %v639_v18 = vmul.f32 %v6930_v10, %v510_v61  ;;  %v1156_v0 = vmax.f32 %v1028_v43, 0.0  ;;  %v1802_v40 = vmax.f32 %v1674_v34, 0.0  ;;  %v2966_v14 = vadd.f32 %v6993_v54, %v2837_v44 }
 0x3e2   :  { %v4642_v49 = vadd.f32 %v4514_v46, %v3996_v36  ;;  %v2448_v19 = vmax.f32 %v2320_v59, 0.0  ;;  %v3612_v27 = vadd.f32 %v7007_v8, %v3483_v2  ;;  %v4129_v5 = vmul.f32 %v7013_v24, %v118_v60 }
 0x3e3   :  { %v767_v26 = vadd.f32 %v639_v18, %v6928_v9  ;;  %v1285_v20 = vmul.f32 %v6951_v21, %v1156_v0  ;;  %v1931_v39 = vmul.f32 %v6967_v33, %v1802_v40  ;;  %v3094_v52 = vmax.f32 %v2966_v14, 0.0 }
 0x3e4   :  { %v5288_v1 = vadd.f32 %v5160_v48, %v4642_v49  ;;  %v2577_v53 = vmul.f32 %v6982_v45, %v2448_v19  ;;  %v3740_v15 = vmax.f32 %v3612_v27, 0.0  ;;  %v4258_v55 = vadd.f32 %v7019_v31, %v4129_v5 }
 0x3e5   :  { %v1413_v46 = vadd.f32 %v1285_v20, %v767_v26  ;;  %v3223_v29 = vmul.f32 %v6995_v57, %v3094_v52  ;;  %v4775_v56 = vmul.f32 %v7026_v41, %v118_v60  ;;  %v5421_v23 = vmul.f32 %v7040_v58, %v118_v60 }
 0x3e6   :  { %v5934_v28 = vadd.f32 %v5806_v3, %v5288_v1  ;;  %v3869_v61 = vmul.f32 %v7009_v16, %v3740_v15  ;;  %v4386_v43 = vmax.f32 %v4258_v55, 0.0  ;;  %v6067_v34 = vmul.f32 %v7054_v22, %v118_v60 }
 0x3e7   :  { %v2059_v48 = vadd.f32 %v1931_v39, %v1413_v46  ;;  %v4904_v44 = vadd.f32 %v7032_v47, %v4775_v56  ;;  %v5550_v36 = vadd.f32 %v7045_v63, %v5421_v23  ;;  %v254_v59 = vmul.f32 %v6918_v4, %v119_v7 }
 0x3e8   :  { %v6580_v2 = vadd.f32 %v6452_v11, %v5934_v28  ;;  %v4515_v18 = vmul.f32 %v7021_v35, %v4386_v43  ;;  %v6196_v0 = vadd.f32 %v7059_v32, %v6067_v34  ;;  %v900_v40 = vmul.f32 %v6937_v13, %v119_v7 }
 0x3e9   :  { %v2705_v3 = vadd.f32 %v2577_v53, %v2059_v48  ;;  %v5032_v14 = vmax.f32 %v4904_v44, 0.0  ;;  %v5678_v49 = vmax.f32 %v5550_v36, 0.0  ;;  %v383_v19 = vadd.f32 %v6922_v6, %v254_v59 }
 0x3ea   :  { %6708 = vst [vmem:[#allocation7 + $0x260] sm:$0xff] %v6580_v2  ;;  %v6324_v60 = vmax.f32 %v6196_v0, 0.0  ;;  %v1029_v27 = vadd.f32 %v6945_v17, %v900_v40  ;;  %v1546_v5 = vmul.f32 %v6955_v25, %v119_v7  ;;  %v2192_v26 = vmul.f32 %v6973_v38, %v119_v7 }
 0x3eb   :  { %v3351_v11 = vadd.f32 %v3223_v29, %v2705_v3  ;;  %v5161_v20 = vmul.f32 %v7035_v51, %v5032_v14  ;;  %v5807_v39 = vmul.f32 %v7048_v12, %v5678_v49  ;;  %v511_v52 = vmax.f32 %v383_v19, 0.0 }
 0x3ec   :  { %v6453_v1 = vmul.f32 %v7061_v37, %v6324_v60  ;;  %v1157_v53 = vmax.f32 %v1029_v27, 0.0  ;;  %v1675_v15 = vadd.f32 %v6964_v30, %v1546_v5  ;;  %v2321_v55 = vadd.f32 %v6979_v42, %v2192_v26 }
 0x3ed   :  { %v3997_v46 = vadd.f32 %v3869_v61, %v3351_v11  ;;  %v640_v56 = vmul.f32 %v6930_v10, %v511_v52  ;;  %v2838_v23 = vmul.f32 %v6988_v50, %v119_v7  ;;  %v3484_v28 = vmul.f32 %v7001_v62, %v119_v7  ;;  %v120_v11 = vld [vmem:[#allocation6 + $0x278] sm:$0xff] }
 0x3ee   :  { %v1286_v29 = vmul.f32 %v6951_v21, %v1157_v53  ;;  %v1803_v43 = vmax.f32 %v1675_v15, 0.0  ;;  %v2449_v34 = vmax.f32 %v2321_v55, 0.0  ;;  %v4130_v48 = vmul.f32 %v7013_v24, %v119_v7 }
 0x3ef   :  { %v4643_v44 = vadd.f32 %v4515_v18, %v3997_v46  ;;  %v768_v36 = vadd.f32 %v640_v56, %v6928_v9  ;;  %v2967_v59 = vadd.f32 %v6993_v54, %v2838_v23  ;;  %v3613_v2 = vadd.f32 %v7007_v8, %v3484_v28 }
 0x3f0   :  { %v1932_v61 = vmul.f32 %v6967_v33, %v1803_v43  ;;  %v2578_v0 = vmul.f32 %v6982_v45, %v2449_v34  ;;  %v4259_v40 = vadd.f32 %v7019_v31, %v4130_v48  ;;  %v4776_v3 = vmul.f32 %v7026_v41, %v119_v7 }
 0x3f1   :  { %v5289_v14 = vadd.f32 %v5161_v20, %v4643_v44  ;;  %v1414_v49 = vadd.f32 %v1286_v29, %v768_v36  ;;  %v3095_v19 = vmax.f32 %v2967_v59, 0.0  ;;  %v3741_v60 = vmax.f32 %v3613_v2, 0.0 }
 0x3f2   :  { %v4387_v27 = vmax.f32 %v4259_v40, 0.0  ;;  %v4905_v18 = vadd.f32 %v7032_v47, %v4776_v3  ;;  %v5422_v5 = vmul.f32 %v7040_v58, %v119_v7  ;;  %v6068_v26 = vmul.f32 %v7054_v22, %v119_v7 }
 0x3f3   :  { %v5935_v52 = vadd.f32 %v5807_v39, %v5289_v14  ;;  %v2060_v53 = vadd.f32 %v1932_v61, %v1414_v49  ;;  %v3224_v15 = vmul.f32 %v6995_v57, %v3095_v19  ;;  %v3870_v55 = vmul.f32 %v7009_v16, %v3741_v60 }
 0x3f4   :  { %v4516_v46 = vmul.f32 %v7021_v35, %v4387_v27  ;;  %v5033_v20 = vmax.f32 %v4905_v18, 0.0  ;;  %v5551_v56 = vadd.f32 %v7045_v63, %v5422_v5  ;;  %v6197_v23 = vadd.f32 %v7059_v32, %v6068_v26 }
 0x3f5   :  { %v6581_v28 = vadd.f32 %v6453_v1, %v5935_v52  ;;  %v2706_v29 = vadd.f32 %v2578_v0, %v2060_v53  ;;  %v255_v43 = vmul.f32 %v6918_v4, %v120_v11  ;;  %v901_v7 = vmul.f32 %v6937_v13, %v120_v11 }
 0x3f6   :  { %v5162_v39 = vmul.f32 %v7035_v51, %v5033_v20  ;;  %v5679_v34 = vmax.f32 %v5551_v56, 0.0  ;;  %v6325_v48 = vmax.f32 %v6197_v23, 0.0  ;;  %v1547_v44 = vmul.f32 %v6955_v25, %v120_v11 }
 0x3f7   :  { %6709 = vst [vmem:[#allocation7 + $0x268] sm:$0xff] %v6581_v28  ;;  %v3352_v36 = vadd.f32 %v3224_v15, %v2706_v29  ;;  %v384_v59 = vadd.f32 %v6922_v6, %v255_v43  ;;  %v1030_v2 = vadd.f32 %v6945_v17, %v901_v7  ;;  %v2193_v61 = vmul.f32 %v6973_v38, %v120_v11 }
 0x3f8   :  { %v5808_v1 = vmul.f32 %v7048_v12, %v5679_v34  ;;  %v6454_v0 = vmul.f32 %v7061_v37, %v6325_v48  ;;  %v1676_v40 = vadd.f32 %v6964_v30, %v1547_v44  ;;  %v2839_v3 = vmul.f32 %v6988_v50, %v120_v11 }
 0x3f9   :  { %v3998_v14 = vadd.f32 %v3870_v55, %v3352_v36  ;;  %v512_v49 = vmax.f32 %v384_v59, 0.0  ;;  %v1158_v19 = vmax.f32 %v1030_v2, 0.0  ;;  %v2322_v60 = vadd.f32 %v6979_v42, %v2193_v61 }
 0x3fa   :  { %v1804_v27 = vmax.f32 %v1676_v40, 0.0  ;;  %v2968_v18 = vadd.f32 %v6993_v54, %v2839_v3  ;;  %v3485_v5 = vmul.f32 %v7001_v62, %v120_v11  ;;  %v4131_v26 = vmul.f32 %v7013_v24, %v120_v11 }
 0x3fb   :  { %v4644_v52 = vadd.f32 %v4516_v46, %v3998_v14  ;;  %v641_v53 = vmul.f32 %v6930_v10, %v512_v49  ;;  %v1287_v15 = vmul.f32 %v6951_v21, %v1158_v19  ;;  %v2450_v20 = vmax.f32 %v2322_v60, 0.0  ;;  %v121_v46 = vld [vmem:[#allocation6 + $0x280] sm:$0xff] }
 0x3fc   :  { %v1933_v56 = vmul.f32 %v6967_v33, %v1804_v27  ;;  %v3096_v55 = vmax.f32 %v2968_v18, 0.0  ;;  %v3614_v23 = vadd.f32 %v7007_v8, %v3485_v5  ;;  %v4260_v28 = vadd.f32 %v7019_v31, %v4131_v26 }
 0x3fd   :  { %v5290_v29 = vadd.f32 %v5162_v39, %v4644_v52  ;;  %v769_v43 = vadd.f32 %v641_v53, %v6928_v9  ;;  %v2579_v7 = vmul.f32 %v6982_v45, %v2450_v20  ;;  %v4777_v34 = vmul.f32 %v7026_v41, %v120_v11 }
 0x3fe   :  { %v3225_v48 = vmul.f32 %v6995_v57, %v3096_v55  ;;  %v3742_v44 = vmax.f32 %v3614_v23, 0.0  ;;  %v4388_v36 = vmax.f32 %v4260_v28, 0.0  ;;  %v5423_v59 = vmul.f32 %v7040_v58, %v120_v11 }
 0x3ff   :  { %v5936_v2 = vadd.f32 %v5808_v1, %v5290_v29  ;;  %v1415_v61 = vadd.f32 %v1287_v15, %v769_v43  ;;  %v4906_v40 = vadd.f32 %v7032_v47, %v4777_v34  ;;  %v6069_v3 = vmul.f32 %v7054_v22, %v120_v11 }
 0x400   :  { %v3871_v39 = vmul.f32 %v7009_v16, %v3742_v44  ;;  %v4517_v14 = vmul.f32 %v7021_v35, %v4388_v36  ;;  %v5552_v49 = vadd.f32 %v7045_v63, %v5423_v59  ;;  %v256_v19 = vmul.f32 %v6918_v4, %v121_v46 }
 0x401   :  { %v6582_v60 = vadd.f32 %v6454_v0, %v5936_v2  ;;  %v2061_v27 = vadd.f32 %v1933_v56, %v1415_v61  ;;  %v5034_v18 = vmax.f32 %v4906_v40, 0.0  ;;  %v6198_v5 = vadd.f32 %v7059_v32, %v6069_v3 }
 0x402   :  { %v5680_v26 = vmax.f32 %v5552_v49, 0.0  ;;  %v385_v1 = vadd.f32 %v6922_v6, %v256_v19  ;;  %v902_v52 = vmul.f32 %v6937_v13, %v121_v46  ;;  %v1548_v11 = vmul.f32 %v6955_v25, %v121_v46 }
 0x403   :  { %6710 = vst [vmem:[#allocation7 + $0x270] sm:$0xff] %v6582_v60  ;;  %v2707_v53 = vadd.f32 %v2579_v7, %v2061_v27  ;;  %v5163_v15 = vmul.f32 %v7035_v51, %v5034_v18  ;;  %v6326_v20 = vmax.f32 %v6198_v5, 0.0  ;;  %v2194_v55 = vmul.f32 %v6973_v38, %v121_v46 }
 0x404   :  { %v5809_v0 = vmul.f32 %v7048_v12, %v5680_v26  ;;  %v513_v56 = vmax.f32 %v385_v1, 0.0  ;;  %v1031_v23 = vadd.f32 %v6945_v17, %v902_v52  ;;  %v1677_v28 = vadd.f32 %v6964_v30, %v1548_v11 }
 0x405   :  { %v3353_v29 = vadd.f32 %v3225_v48, %v2707_v53  ;;  %v6455_v43 = vmul.f32 %v7061_v37, %v6326_v20  ;;  %v2323_v34 = vadd.f32 %v6979_v42, %v2194_v55  ;;  %v2840_v44 = vmul.f32 %v6988_v50, %v121_v46  ;;  %v122_v20 = vld [vmem:[#allocation6 + $0x288] sm:$0xff] }
 0x406   :  { %v642_v7 = vmul.f32 %v6930_v10, %v513_v56  ;;  %v1159_v36 = vmax.f32 %v1031_v23, 0.0  ;;  %v1805_v59 = vmax.f32 %v1677_v28, 0.0  ;;  %v3486_v2 = vmul.f32 %v7001_v62, %v121_v46 }
 0x407   :  { %v3999_v61 = vadd.f32 %v3871_v39, %v3353_v29  ;;  %v2451_v40 = vmax.f32 %v2323_v34, 0.0  ;;  %v2969_v3 = vadd.f32 %v6993_v54, %v2840_v44  ;;  %v4132_v49 = vmul.f32 %v7013_v24, %v121_v46 }
 0x408   :  { %v770_v48 = vadd.f32 %v642_v7, %v6928_v9  ;;  %v1288_v19 = vmul.f32 %v6951_v21, %v1159_v36  ;;  %v1934_v60 = vmul.f32 %v6967_v33, %v1805_v59  ;;  %v3615_v27 = vadd.f32 %v7007_v8, %v3486_v2 }
 0x409   :  { %v4645_v18 = vadd.f32 %v4517_v14, %v3999_v61  ;;  %v2580_v5 = vmul.f32 %v6982_v45, %v2451_v40  ;;  %v3097_v26 = vmax.f32 %v2969_v3, 0.0  ;;  %v4261_v1 = vadd.f32 %v7019_v31, %v4132_v49 }
 0x40a   :  { %v1416_v39 = vadd.f32 %v1288_v19, %v770_v48  ;;  %v3743_v52 = vmax.f32 %v3615_v27, 0.0  ;;  %v4778_v11 = vmul.f32 %v7026_v41, %v121_v46  ;;  %v5424_v53 = vmul.f32 %v7040_v58, %v121_v46 }
 0x40b   :  { %v5291_v55 = vadd.f32 %v5163_v15, %v4645_v18  ;;  %v3226_v56 = vmul.f32 %v6995_v57, %v3097_v26  ;;  %v4389_v23 = vmax.f32 %v4261_v1, 0.0  ;;  %v6070_v28 = vmul.f32 %v7054_v22, %v121_v46 }
 0x40c   :  { %v2062_v29 = vadd.f32 %v1934_v60, %v1416_v39  ;;  %v3872_v14 = vmul.f32 %v7009_v16, %v3743_v52  ;;  %v4907_v34 = vadd.f32 %v7032_v47, %v4778_v11  ;;  %v5553_v44 = vadd.f32 %v7045_v63, %v5424_v53 }
 0x40d   :  { %v5937_v7 = vadd.f32 %v5809_v0, %v5291_v55  ;;  %v4518_v36 = vmul.f32 %v7021_v35, %v4389_v23  ;;  %v6199_v59 = vadd.f32 %v7059_v32, %v6070_v28  ;;  %v257_v2 = vmul.f32 %v6918_v4, %v122_v20 }
 0x40e   :  { %v2708_v15 = vadd.f32 %v2580_v5, %v2062_v29  ;;  %v5035_v61 = vmax.f32 %v4907_v34, 0.0  ;;  %v5681_v40 = vmax.f32 %v5553_v44, 0.0  ;;  %v903_v3 = vmul.f32 %v6937_v13, %v122_v20 }
 0x40f   :  { %v6583_v46 = vadd.f32 %v6455_v43, %v5937_v7  ;;  %v6327_v49 = vmax.f32 %v6199_v59, 0.0  ;;  %v386_v48 = vadd.f32 %v6922_v6, %v257_v2  ;;  %v1549_v19 = vmul.f32 %v6955_v25, %v122_v20 }
 0x410   :  { %v3354_v60 = vadd.f32 %v3226_v56, %v2708_v15  ;;  %v5164_v0 = vmul.f32 %v7035_v51, %v5035_v61  ;;  %v5810_v27 = vmul.f32 %v7048_v12, %v5681_v40  ;;  %v1032_v18 = vadd.f32 %v6945_v17, %v903_v3 }
 0x411   :  { %6711 = vst [vmem:[#allocation7 + $0x278] sm:$0xff] %v6583_v46  ;;  %v6456_v5 = vmul.f32 %v7061_v37, %v6327_v49  ;;  %v514_v26 = vmax.f32 %v386_v48, 0.0  ;;  %v1678_v1 = vadd.f32 %v6964_v30, %v1549_v19  ;;  %v2195_v43 = vmul.f32 %v6973_v38, %v122_v20 }
 0x412   :  { %v4000_v39 = vadd.f32 %v3872_v14, %v3354_v60  ;;  %v1160_v52 = vmax.f32 %v1032_v18, 0.0  ;;  %v2841_v11 = vmul.f32 %v6988_v50, %v122_v20  ;;  %v3487_v53 = vmul.f32 %v7001_v62, %v122_v20  ;;  %v123_v60 = vld [vmem:[#allocation6 + $0x290] sm:$0xff] }
 0x413   :  { %v643_v55 = vmul.f32 %v6930_v10, %v514_v26  ;;  %v1806_v56 = vmax.f32 %v1678_v1, 0.0  ;;  %v2324_v23 = vadd.f32 %v6979_v42, %v2195_v43  ;;  %v4133_v28 = vmul.f32 %v7013_v24, %v122_v20 }
 0x414   :  { %v4646_v29 = vadd.f32 %v4518_v36, %v4000_v39  ;;  %v1289_v34 = vmul.f32 %v6951_v21, %v1160_v52  ;;  %v2970_v44 = vadd.f32 %v6993_v54, %v2841_v11  ;;  %v3616_v7 = vadd.f32 %v7007_v8, %v3487_v53 }
 0x415   :  { %v771_v14 = vadd.f32 %v643_v55, %v6928_v9  ;;  %v1935_v59 = vmul.f32 %v6967_v33, %v1806_v56  ;;  %v2452_v2 = vmax.f32 %v2324_v23, 0.0  ;;  %v4262_v15 = vadd.f32 %v7019_v31, %v4133_v28 }
 0x416   :  { %v5292_v61 = vadd.f32 %v5164_v0, %v4646_v29  ;;  %v3098_v40 = vmax.f32 %v2970_v44, 0.0  ;;  %v3744_v3 = vmax.f32 %v3616_v7, 0.0  ;;  %v4779_v46 = vmul.f32 %v7026_v41, %v122_v20 }
 0x417   :  { %v1417_v49 = vadd.f32 %v1289_v34, %v771_v14  ;;  %v2581_v36 = vmul.f32 %v6982_v45, %v2452_v2  ;;  %v4390_v48 = vmax.f32 %v4262_v15, 0.0  ;;  %v5425_v19 = vmul.f32 %v7040_v58, %v122_v20 }
 0x418   :  { %v5938_v18 = vadd.f32 %v5810_v27, %v5292_v61  ;;  %v3227_v26 = vmul.f32 %v6995_v57, %v3098_v40  ;;  %v3873_v1 = vmul.f32 %v7009_v16, %v3744_v3  ;;  %v4908_v43 = vadd.f32 %v7032_v47, %v4779_v46 }
 0x419   :  { %v2063_v39 = vadd.f32 %v1935_v59, %v1417_v49  ;;  %v4519_v0 = vmul.f32 %v7021_v35, %v4390_v48  ;;  %v5554_v52 = vadd.f32 %v7045_v63, %v5425_v19  ;;  %v6071_v11 = vmul.f32 %v7054_v22, %v122_v20 }
 0x41a   :  { %v6584_v53 = vadd.f32 %v6456_v5, %v5938_v18  ;;  %v5036_v55 = vmax.f32 %v4908_v43, 0.0  ;;  %v258_v56 = vmul.f32 %v6918_v4, %v123_v60  ;;  %v904_v23 = vmul.f32 %v6937_v13, %v123_v60 }
 0x41b   :  { %v2709_v27 = vadd.f32 %v2581_v36, %v2063_v39  ;;  %v5682_v28 = vmax.f32 %v5554_v52, 0.0  ;;  %v6200_v29 = vadd.f32 %v7059_v32, %v6071_v11  ;;  %v1550_v34 = vmul.f32 %v6955_v25, %v123_v60 }
 0x41c   :  { %6712 = vst [vmem:[#allocation7 + $0x280] sm:$0xff] %v6584_v53  ;;  %v5165_v44 = vmul.f32 %v7035_v51, %v5036_v55  ;;  %v387_v7 = vadd.f32 %v6922_v6, %v258_v56  ;;  %v1033_v14 = vadd.f32 %v6945_v17, %v904_v23  ;;  %v2196_v20 = vmul.f32 %v6973_v38, %v123_v60 }
 0x41d   :  { %v3355_v5 = vadd.f32 %v3227_v26, %v2709_v27  ;;  %v5811_v59 = vmul.f32 %v7048_v12, %v5682_v28  ;;  %v6328_v2 = vmax.f32 %v6200_v29, 0.0  ;;  %v1679_v15 = vadd.f32 %v6964_v30, %v1550_v34 }
 0x41e   :  { %v515_v61 = vmax.f32 %v387_v7, 0.0  ;;  %v1161_v40 = vmax.f32 %v1033_v14, 0.0  ;;  %v2325_v3 = vadd.f32 %v6979_v42, %v2196_v20  ;;  %v2842_v46 = vmul.f32 %v6988_v50, %v123_v60 }
 0x41f   :  { %v4001_v49 = vadd.f32 %v3873_v1, %v3355_v5  ;;  %v6457_v36 = vmul.f32 %v7061_v37, %v6328_v2  ;;  %v1807_v48 = vmax.f32 %v1679_v15, 0.0  ;;  %v3488_v19 = vmul.f32 %v7001_v62, %v123_v60 }
 0x420   :  { %v644_v18 = vmul.f32 %v6930_v10, %v515_v61  ;;  %v1290_v26 = vmul.f32 %v6951_v21, %v1161_v40  ;;  %v2453_v43 = vmax.f32 %v2325_v3, 0.0  ;;  %v2971_v39 = vadd.f32 %v6993_v54, %v2842_v46 }
 0x421   :  { %v4647_v52 = vadd.f32 %v4519_v0, %v4001_v49  ;;  %v1936_v11 = vmul.f32 %v6967_v33, %v1807_v48  ;;  %v3617_v53 = vadd.f32 %v7007_v8, %v3488_v19  ;;  %v4134_v55 = vmul.f32 %v7013_v24, %v123_v60  ;;  %v124_v0 = vld [vmem:[#allocation6 + $0x298] sm:$0xff] }
 0x422   :  { %v772_v1 = vadd.f32 %v644_v18, %v6928_v9  ;;  %v2582_v56 = vmul.f32 %v6982_v45, %v2453_v43  ;;  %v3099_v23 = vmax.f32 %v2971_v39, 0.0  ;;  %v4780_v27 = vmul.f32 %v7026_v41, %v123_v60 }
 0x423   :  { %v5293_v28 = vadd.f32 %v5165_v44, %v4647_v52  ;;  %v3745_v29 = vmax.f32 %v3617_v53, 0.0  ;;  %v4263_v34 = vadd.f32 %v7019_v31, %v4134_v55  ;;  %v5426_v7 = vmul.f32 %v7040_v58, %v123_v60 }
 0x424   :  { %v1418_v14 = vadd.f32 %v1290_v26, %v772_v1  ;;  %v3228_v20 = vmul.f32 %v6995_v57, %v3099_v23  ;;  %v4909_v5 = vadd.f32 %v7032_v47, %v4780_v27  ;;  %v6072_v2 = vmul.f32 %v7054_v22, %v123_v60 }
 0x425   :  { %v5939_v15 = vadd.f32 %v5811_v59, %v5293_v28  ;;  %v3874_v61 = vmul.f32 %v7009_v16, %v3745_v29  ;;  %v4391_v40 = vmax.f32 %v4263_v34, 0.0  ;;  %v5555_v3 = vadd.f32 %v7045_v63, %v5426_v7 }
 0x426   :  { %v2064_v44 = vadd.f32 %v1936_v11, %v1418_v14  ;;  %v5037_v46 = vmax.f32 %v4909_v5, 0.0  ;;  %v6201_v49 = vadd.f32 %v7059_v32, %v6072_v2  ;;  %v259_v48 = vmul.f32 %v6918_v4, %v124_v0 }
 0x427   :  { %v6585_v19 = vadd.f32 %v6457_v36, %v5939_v15  ;;  %v4520_v18 = vmul.f32 %v7021_v35, %v4391_v40  ;;  %v5683_v26 = vmax.f32 %v5555_v3, 0.0  ;;  %v905_v43 = vmul.f32 %v6937_v13, %v124_v0 }
 0x428   :  { %v2710_v39 = vadd.f32 %v2582_v56, %v2064_v44  ;;  %v5166_v60 = vmul.f32 %v7035_v51, %v5037_v46  ;;  %v6329_v59 = vmax.f32 %v6201_v49, 0.0  ;;  %v388_v52 = vadd.f32 %v6922_v6, %v259_v48 }
 0x429   :  { %6713 = vst [vmem:[#allocation7 + $0x288] sm:$0xff] %v6585_v19  ;;  %v5812_v11 = vmul.f32 %v7048_v12, %v5683_v26  ;;  %v1034_v53 = vadd.f32 %v6945_v17, %v905_v43  ;;  %v1551_v55 = vmul.f32 %v6955_v25, %v124_v0  ;;  %v2197_v36 = vmul.f32 %v6973_v38, %v124_v0 }
 0x42a   :  { %v3356_v1 = vadd.f32 %v3228_v20, %v2710_v39  ;;  %v6458_v23 = vmul.f32 %v7061_v37, %v6329_v59  ;;  %v516_v27 = vmax.f32 %v388_v52, 0.0  ;;  %v2843_v56 = vmul.f32 %v6988_v50, %v124_v0  ;;  %v125_v59 = vld [vmem:[#allocation6 + $0x2a0] sm:$0xff] }
 0x42b   :  { %v1162_v28 = vmax.f32 %v1034_v53, 0.0  ;;  %v1680_v29 = vadd.f32 %v6964_v30, %v1551_v55  ;;  %v2326_v34 = vadd.f32 %v6979_v42, %v2197_v36  ;;  %v3489_v7 = vmul.f32 %v7001_v62, %v124_v0 }
 0x42c   :  { %v4002_v14 = vadd.f32 %v3874_v61, %v3356_v1  ;;  %v645_v5 = vmul.f32 %v6930_v10, %v516_v27  ;;  %v2972_v2 = vadd.f32 %v6993_v54, %v2843_v56  ;;  %v4135_v15 = vmul.f32 %v7013_v24, %v124_v0 }
 0x42d   :  { %v1291_v20 = vmul.f32 %v6951_v21, %v1162_v28  ;;  %v1808_v40 = vmax.f32 %v1680_v29, 0.0  ;;  %v2454_v3 = vmax.f32 %v2326_v34, 0.0  ;;  %v3618_v44 = vadd.f32 %v7007_v8, %v3489_v7 }
 0x42e   :  { %v4648_v46 = vadd.f32 %v4520_v18, %v4002_v14  ;;  %v773_v49 = vadd.f32 %v645_v5, %v6928_v9  ;;  %v3100_v48 = vmax.f32 %v2972_v2, 0.0  ;;  %v4264_v19 = vadd.f32 %v7019_v31, %v4135_v15 }
 0x42f   :  { %v1937_v61 = vmul.f32 %v6967_v33, %v1808_v40  ;;  %v2583_v26 = vmul.f32 %v6982_v45, %v2454_v3  ;;  %v3746_v43 = vmax.f32 %v3618_v44, 0.0  ;;  %v4781_v39 = vmul.f32 %v7026_v41, %v124_v0 }
 0x430   :  { %v5294_v52 = vadd.f32 %v5166_v60, %v4648_v46  ;;  %v1419_v53 = vadd.f32 %v1291_v20, %v773_v49  ;;  %v3229_v55 = vmul.f32 %v6995_v57, %v3100_v48  ;;  %v4392_v36 = vmax.f32 %v4264_v19, 0.0 }
 0x431   :  { %v3875_v18 = vmul.f32 %v7009_v16, %v3746_v43  ;;  %v4910_v1 = vadd.f32 %v7032_v47, %v4781_v39  ;;  %v5427_v27 = vmul.f32 %v7040_v58, %v124_v0  ;;  %v6073_v56 = vmul.f32 %v7054_v22, %v124_v0 }
 0x432   :  { %v5940_v28 = vadd.f32 %v5812_v11, %v5294_v52  ;;  %v2065_v29 = vadd.f32 %v1937_v61, %v1419_v53  ;;  %v4521_v34 = vmul.f32 %v7021_v35, %v4392_v36  ;;  %v260_v7 = vmul.f32 %v6918_v4, %v125_v59 }
 0x433   :  { %v5038_v14 = vmax.f32 %v4910_v1, 0.0  ;;  %v5556_v60 = vadd.f32 %v7045_v63, %v5427_v27  ;;  %v6202_v5 = vadd.f32 %v7059_v32, %v6073_v56  ;;  %v906_v2 = vmul.f32 %v6937_v13, %v125_v59 }
 0x434   :  { %v6586_v15 = vadd.f32 %v6458_v23, %v5940_v28  ;;  %v2711_v20 = vadd.f32 %v2583_v26, %v2065_v29  ;;  %v389_v40 = vadd.f32 %v6922_v6, %v260_v7  ;;  %v1552_v3 = vmul.f32 %v6955_v25, %v125_v59 }
 0x435   :  { %v5167_v0 = vmul.f32 %v7035_v51, %v5038_v14  ;;  %v5684_v11 = vmax.f32 %v5556_v60, 0.0  ;;  %v6330_v44 = vmax.f32 %v6202_v5, 0.0  ;;  %v1035_v46 = vadd.f32 %v6945_v17, %v906_v2 }
 0x436   :  { %6714 = vst [vmem:[#allocation7 + $0x290] sm:$0xff] %v6586_v15  ;;  %v3357_v49 = vadd.f32 %v3229_v55, %v2711_v20  ;;  %v517_v48 = vmax.f32 %v389_v40, 0.0  ;;  %v1681_v19 = vadd.f32 %v6964_v30, %v1552_v3  ;;  %v2198_v61 = vmul.f32 %v6973_v38, %v125_v59 }
 0x437   :  { %v5813_v23 = vmul.f32 %v7048_v12, %v5684_v11  ;;  %v6459_v26 = vmul.f32 %v7061_v37, %v6330_v44  ;;  %v1163_v43 = vmax.f32 %v1035_v46, 0.0  ;;  %v2844_v39 = vmul.f32 %v6988_v50, %v125_v59  ;;  %v126_v44 = vld [vmem:[#allocation6 + $0x2a8] sm:$0xff] }
 0x438   :  { %v4003_v52 = vadd.f32 %v3875_v18, %v3357_v49  ;;  %v646_v53 = vmul.f32 %v6930_v10, %v517_v48  ;;  %v1809_v36 = vmax.f32 %v1681_v19, 0.0  ;;  %v2327_v1 = vadd.f32 %v6979_v42, %v2198_v61 }
 0x439   :  { %v1292_v55 = vmul.f32 %v6951_v21, %v1163_v43  ;;  %v2973_v27 = vadd.f32 %v6993_v54, %v2844_v39  ;;  %v3490_v56 = vmul.f32 %v7001_v62, %v125_v59  ;;  %v4136_v28 = vmul.f32 %v7013_v24, %v125_v59 }
 0x43a   :  { %v4649_v29 = vadd.f32 %v4521_v34, %v4003_v52  ;;  %v774_v7 = vadd.f32 %v646_v53, %v6928_v9  ;;  %v1938_v14 = vmul.f32 %v6967_v33, %v1809_v36  ;;  %v2455_v60 = vmax.f32 %v2327_v1, 0.0 }
 0x43b   :  { %v3101_v18 = vmax.f32 %v2973_v27, 0.0  ;;  %v3619_v5 = vadd.f32 %v7007_v8, %v3490_v56  ;;  %v4265_v2 = vadd.f32 %v7019_v31, %v4136_v28  ;;  %v4782_v15 = vmul.f32 %v7026_v41, %v125_v59 }
 0x43c   :  { %v5295_v20 = vadd.f32 %v5167_v0, %v4649_v29  ;;  %v1420_v40 = vadd.f32 %v1292_v55, %v774_v7  ;;  %v2584_v3 = vmul.f32 %v6982_v45, %v2455_v60  ;;  %v5428_v11 = vmul.f32 %v7040_v58, %v125_v59 }
 0x43d   :  { %v3230_v34 = vmul.f32 %v6995_v57, %v3101_v18  ;;  %v3747_v46 = vmax.f32 %v3619_v5, 0.0  ;;  %v4393_v49 = vmax.f32 %v4265_v2, 0.0  ;;  %v4911_v48 = vadd.f32 %v7032_v47, %v4782_v15 }
 0x43e   :  { %v5941_v19 = vadd.f32 %v5813_v23, %v5295_v20  ;;  %v2066_v61 = vadd.f32 %v1938_v14, %v1420_v40  ;;  %v5557_v43 = vadd.f32 %v7045_v63, %v5428_v11  ;;  %v6074_v39 = vmul.f32 %v7054_v22, %v125_v59 }
 0x43f   :  { %v3876_v0 = vmul.f32 %v7009_v16, %v3747_v46  ;;  %v4522_v52 = vmul.f32 %v7021_v35, %v4393_v49  ;;  %v5039_v53 = vmax.f32 %v4911_v48, 0.0  ;;  %v261_v36 = vmul.f32 %v6918_v4, %v126_v44 }
 0x440   :  { %v6587_v1 = vadd.f32 %v6459_v26, %v5941_v19  ;;  %v2712_v55 = vadd.f32 %v2584_v3, %v2066_v61  ;;  %v5685_v27 = vmax.f32 %v5557_v43, 0.0  ;;  %v6203_v56 = vadd.f32 %v7059_v32, %v6074_v39 }
 0x441   :  { %v5168_v28 = vmul.f32 %v7035_v51, %v5039_v53  ;;  %v390_v23 = vadd.f32 %v6922_v6, %v261_v36  ;;  %v907_v29 = vmul.f32 %v6937_v13, %v126_v44  ;;  %v1553_v59 = vmul.f32 %v6955_v25, %v126_v44 }
 0x442   :  { %6715 = vst [vmem:[#allocation7 + $0x298] sm:$0xff] %v6587_v1  ;;  %v3358_v7 = vadd.f32 %v3230_v34, %v2712_v55  ;;  %v5814_v14 = vmul.f32 %v7048_v12, %v5685_v27  ;;  %v6331_v60 = vmax.f32 %v6203_v56, 0.0  ;;  %v2199_v18 = vmul.f32 %v6973_v38, %v126_v44 }
 0x443   :  { %v518_v26 = vmax.f32 %v390_v23, 0.0  ;;  %v1036_v5 = vadd.f32 %v6945_v17, %v907_v29  ;;  %v1682_v2 = vadd.f32 %v6964_v30, %v1553_v59  ;;  %v2845_v15 = vmul.f32 %v6988_v50, %v126_v44  ;;  %v127_v29 = vld [vmem:[#allocation6 + $0x2b0] sm:$0xff] }
 0x444   :  { %v4004_v20 = vadd.f32 %v3876_v0, %v3358_v7  ;;  %v6460_v40 = vmul.f32 %v7061_v37, %v6331_v60  ;;  %v2328_v3 = vadd.f32 %v6979_v42, %v2199_v18  ;;  %v3491_v11 = vmul.f32 %v7001_v62, %v126_v44 }
 0x445   :  { %v647_v34 = vmul.f32 %v6930_v10, %v518_v26  ;;  %v1164_v46 = vmax.f32 %v1036_v5, 0.0  ;;  %v1810_v49 = vmax.f32 %v1682_v2, 0.0  ;;  %v2974_v48 = vadd.f32 %v6993_v54, %v2845_v15 }
 0x446   :  { %v4650_v19 = vadd.f32 %v4522_v52, %v4004_v20  ;;  %v2456_v61 = vmax.f32 %v2328_v3, 0.0  ;;  %v3620_v43 = vadd.f32 %v7007_v8, %v3491_v11  ;;  %v4137_v39 = vmul.f32 %v7013_v24, %v126_v44 }
 0x447   :  { %v775_v0 = vadd.f32 %v647_v34, %v6928_v9  ;;  %v1293_v53 = vmul.f32 %v6951_v21, %v1164_v46  ;;  %v1939_v36 = vmul.f32 %v6967_v33, %v1810_v49  ;;  %v3102_v1 = vmax.f32 %v2974_v48, 0.0 }
 0x448   :  { %v5296_v55 = vadd.f32 %v5168_v28, %v4650_v19  ;;  %v2585_v27 = vmul.f32 %v6982_v45, %v2456_v61  ;;  %v3748_v56 = vmax.f32 %v3620_v43, 0.0  ;;  %v4266_v23 = vadd.f32 %v7019_v31, %v4137_v39 }
 0x449   :  { %v1421_v52 = vadd.f32 %v1293_v53, %v775_v0  ;;  %v3231_v59 = vmul.f32 %v6995_v57, %v3102_v1  ;;  %v4783_v7 = vmul.f32 %v7026_v41, %v126_v44  ;;  %v5429_v60 = vmul.f32 %v7040_v58, %v126_v44 }
 0x44a   :  { %v5942_v18 = vadd.f32 %v5814_v14, %v5296_v55  ;;  %v3877_v26 = vmul.f32 %v7009_v16, %v3748_v56  ;;  %v4394_v5 = vmax.f32 %v4266_v23, 0.0  ;;  %v6075_v2 = vmul.f32 %v7054_v22, %v126_v44 }
 0x44b   :  { %v2067_v28 = vadd.f32 %v1939_v36, %v1421_v52  ;;  %v4912_v15 = vadd.f32 %v7032_v47, %v4783_v7  ;;  %v5558_v20 = vadd.f32 %v7045_v63, %v5429_v60  ;;  %v262_v3 = vmul.f32 %v6918_v4, %v127_v29 }
 0x44c   :  { %v6588_v11 = vadd.f32 %v6460_v40, %v5942_v18  ;;  %v4523_v34 = vmul.f32 %v7021_v35, %v4394_v5  ;;  %v6204_v46 = vadd.f32 %v7059_v32, %v6075_v2  ;;  %v908_v49 = vmul.f32 %v6937_v13, %v127_v29 }
 0x44d   :  { %v2713_v14 = vadd.f32 %v2585_v27, %v2067_v28  ;;  %v5040_v48 = vmax.f32 %v4912_v15, 0.0  ;;  %v5686_v19 = vmax.f32 %v5558_v20, 0.0  ;;  %v391_v61 = vadd.f32 %v6922_v6, %v262_v3 }
 0x44e   :  { %6716 = vst [vmem:[#allocation7 + $0x2a0] sm:$0xff] %v6588_v11  ;;  %v6332_v44 = vmax.f32 %v6204_v46, 0.0  ;;  %v1037_v43 = vadd.f32 %v6945_v17, %v908_v49  ;;  %v1554_v39 = vmul.f32 %v6955_v25, %v127_v29  ;;  %v2200_v0 = vmul.f32 %v6973_v38, %v127_v29 }
 0x44f   :  { %v3359_v40 = vadd.f32 %v3231_v59, %v2713_v14  ;;  %v5169_v53 = vmul.f32 %v7035_v51, %v5040_v48  ;;  %v5815_v36 = vmul.f32 %v7048_v12, %v5686_v19  ;;  %v519_v1 = vmax.f32 %v391_v61, 0.0 }
 0x450   :  { %v6461_v55 = vmul.f32 %v7061_v37, %v6332_v44  ;;  %v1165_v27 = vmax.f32 %v1037_v43, 0.0  ;;  %v1683_v56 = vadd.f32 %v6964_v30, %v1554_v39  ;;  %v2329_v23 = vadd.f32 %v6979_v42, %v2200_v0 }
 0x451   :  { %v4005_v52 = vadd.f32 %v3877_v26, %v3359_v40  ;;  %v648_v7 = vmul.f32 %v6930_v10, %v519_v1  ;;  %v2846_v60 = vmul.f32 %v6988_v50, %v127_v29  ;;  %v3492_v18 = vmul.f32 %v7001_v62, %v127_v29  ;;  %v128_v40 = vld [vmem:[#allocation6 + $0x2b8] sm:$0xff] }
 0x452   :  { %v1294_v59 = vmul.f32 %v6951_v21, %v1165_v27  ;;  %v1811_v5 = vmax.f32 %v1683_v56, 0.0  ;;  %v2457_v2 = vmax.f32 %v2329_v23, 0.0  ;;  %v4138_v28 = vmul.f32 %v7013_v24, %v127_v29 }
 0x453   :  { %v4651_v15 = vadd.f32 %v4523_v34, %v4005_v52  ;;  %v776_v20 = vadd.f32 %v648_v7, %v6928_v9  ;;  %v2975_v3 = vadd.f32 %v6993_v54, %v2846_v60  ;;  %v3621_v11 = vadd.f32 %v7007_v8, %v3492_v18 }
 0x454   :  { %v1940_v26 = vmul.f32 %v6967_v33, %v1811_v5  ;;  %v2586_v46 = vmul.f32 %v6982_v45, %v2457_v2  ;;  %v4267_v49 = vadd.f32 %v7019_v31, %v4138_v28  ;;  %v4784_v14 = vmul.f32 %v7026_v41, %v127_v29 }
 0x455   :  { %v5297_v48 = vadd.f32 %v5169_v53, %v4651_v15  ;;  %v1422_v19 = vadd.f32 %v1294_v59, %v776_v20  ;;  %v3103_v61 = vmax.f32 %v2975_v3, 0.0  ;;  %v3749_v44 = vmax.f32 %v3621_v11, 0.0 }
 0x456   :  { %v4395_v43 = vmax.f32 %v4267_v49, 0.0  ;;  %v4913_v34 = vadd.f32 %v7032_v47, %v4784_v14  ;;  %v5430_v39 = vmul.f32 %v7040_v58, %v127_v29  ;;  %v6076_v0 = vmul.f32 %v7054_v22, %v127_v29 }
 0x457   :  { %v5943_v1 = vadd.f32 %v5815_v36, %v5297_v48  ;;  %v2068_v27 = vadd.f32 %v1940_v26, %v1422_v19  ;;  %v3232_v56 = vmul.f32 %v6995_v57, %v3103_v61  ;;  %v3878_v23 = vmul.f32 %v7009_v16, %v3749_v44 }
 0x458   :  { %v4524_v52 = vmul.f32 %v7021_v35, %v4395_v43  ;;  %v5041_v53 = vmax.f32 %v4913_v34, 0.0  ;;  %v5559_v7 = vadd.f32 %v7045_v63, %v5430_v39  ;;  %v6205_v60 = vadd.f32 %v7059_v32, %v6076_v0 }
 0x459   :  { %v6589_v18 = vadd.f32 %v6461_v55, %v5943_v1  ;;  %v2714_v59 = vadd.f32 %v2586_v46, %v2068_v27  ;;  %v263_v5 = vmul.f32 %v6918_v4, %v128_v40  ;;  %v909_v29 = vmul.f32 %v6937_v13, %v128_v40 }
 0x45a   :  { %v5170_v36 = vmul.f32 %v7035_v51, %v5041_v53  ;;  %v5687_v2 = vmax.f32 %v5559_v7, 0.0  ;;  %v6333_v28 = vmax.f32 %v6205_v60, 0.0  ;;  %v1555_v15 = vmul.f32 %v6955_v25, %v128_v40 }
 0x45b   :  { %6717 = vst [vmem:[#allocation7 + $0x2a8] sm:$0xff] %v6589_v18  ;;  %v3360_v20 = vadd.f32 %v3232_v56, %v2714_v59  ;;  %v392_v3 = vadd.f32 %v6922_v6, %v263_v5  ;;  %v1038_v11 = vadd.f32 %v6945_v17, %v909_v29  ;;  %v2201_v26 = vmul.f32 %v6973_v38, %v128_v40 }
 0x45c   :  { %v5816_v55 = vmul.f32 %v7048_v12, %v5687_v2  ;;  %v6462_v46 = vmul.f32 %v7061_v37, %v6333_v28  ;;  %v1684_v49 = vadd.f32 %v6964_v30, %v1555_v15  ;;  %v2847_v14 = vmul.f32 %v6988_v50, %v128_v40 }
 0x45d   :  { %v4006_v48 = vadd.f32 %v3878_v23, %v3360_v20  ;;  %v520_v19 = vmax.f32 %v392_v3, 0.0  ;;  %v1166_v61 = vmax.f32 %v1038_v11, 0.0  ;;  %v2330_v44 = vadd.f32 %v6979_v42, %v2201_v26 }
 0x45e   :  { %v1812_v43 = vmax.f32 %v1684_v49, 0.0  ;;  %v2976_v34 = vadd.f32 %v6993_v54, %v2847_v14  ;;  %v3493_v39 = vmul.f32 %v7001_v62, %v128_v40  ;;  %v4139_v0 = vmul.f32 %v7013_v24, %v128_v40 }
 0x45f   :  { %v4652_v1 = vadd.f32 %v4524_v52, %v4006_v48  ;;  %v649_v27 = vmul.f32 %v6930_v10, %v520_v19  ;;  %v1295_v56 = vmul.f32 %v6951_v21, %v1166_v61  ;;  %v2458_v53 = vmax.f32 %v2330_v44, 0.0  ;;  %v129_v52 = vld [vmem:[#allocation6 + $0x2c0] sm:$0xff] }
 0x460   :  { %v1941_v7 = vmul.f32 %v6967_v33, %v1812_v43  ;;  %v3104_v23 = vmax.f32 %v2976_v34, 0.0  ;;  %v3622_v60 = vadd.f32 %v7007_v8, %v3493_v39  ;;  %v4268_v18 = vadd.f32 %v7019_v31, %v4139_v0 }
 0x461   :  { %v5298_v59 = vadd.f32 %v5170_v36, %v4652_v1  ;;  %v777_v5 = vadd.f32 %v649_v27, %v6928_v9  ;;  %v2587_v29 = vmul.f32 %v6982_v45, %v2458_v53  ;;  %v4785_v2 = vmul.f32 %v7026_v41, %v128_v40 }
 0x462   :  { %v3233_v28 = vmul.f32 %v6995_v57, %v3104_v23  ;;  %v3750_v15 = vmax.f32 %v3622_v60, 0.0  ;;  %v4396_v20 = vmax.f32 %v4268_v18, 0.0  ;;  %v5431_v3 = vmul.f32 %v7040_v58, %v128_v40 }
 0x463   :  { %v5944_v11 = vadd.f32 %v5816_v55, %v5298_v59  ;;  %v1423_v26 = vadd.f32 %v1295_v56, %v777_v5  ;;  %v4914_v49 = vadd.f32 %v7032_v47, %v4785_v2  ;;  %v6077_v14 = vmul.f32 %v7054_v22, %v128_v40 }
 0x464   :  { %v3879_v36 = vmul.f32 %v7009_v16, %v3750_v15  ;;  %v4525_v48 = vmul.f32 %v7021_v35, %v4396_v20  ;;  %v5560_v19 = vadd.f32 %v7045_v63, %v5431_v3  ;;  %v264_v61 = vmul.f32 %v6918_v4, %v129_v52 }
 0x465   :  { %v6590_v44 = vadd.f32 %v6462_v46, %v5944_v11  ;;  %v2069_v43 = vadd.f32 %v1941_v7, %v1423_v26  ;;  %v5042_v34 = vmax.f32 %v4914_v49, 0.0  ;;  %v6206_v39 = vadd.f32 %v7059_v32, %v6077_v14 }
 0x466   :  { %v5688_v0 = vmax.f32 %v5560_v19, 0.0  ;;  %v393_v55 = vadd.f32 %v6922_v6, %v264_v61  ;;  %v910_v1 = vmul.f32 %v6937_v13, %v129_v52  ;;  %v1556_v40 = vmul.f32 %v6955_v25, %v129_v52 }
 0x467   :  { %6718 = vst [vmem:[#allocation7 + $0x2b0] sm:$0xff] %v6590_v44  ;;  %v2715_v27 = vadd.f32 %v2587_v29, %v2069_v43  ;;  %v5171_v56 = vmul.f32 %v7035_v51, %v5042_v34  ;;  %v6334_v53 = vmax.f32 %v6206_v39, 0.0  ;;  %v2202_v23 = vmul.f32 %v6973_v38, %v129_v52 }
 0x468   :  { %v5817_v46 = vmul.f32 %v7048_v12, %v5688_v0  ;;  %v521_v7 = vmax.f32 %v393_v55, 0.0  ;;  %v1039_v60 = vadd.f32 %v6945_v17, %v910_v1  ;;  %v1685_v18 = vadd.f32 %v6964_v30, %v1556_v40 }
 0x469   :  { %v3361_v59 = vadd.f32 %v3233_v28, %v2715_v27  ;;  %v6463_v5 = vmul.f32 %v7061_v37, %v6334_v53  ;;  %v2331_v2 = vadd.f32 %v6979_v42, %v2202_v23  ;;  %v2848_v15 = vmul.f32 %v6988_v50, %v129_v52  ;;  %v130_v53 = vld [vmem:[#allocation6 + $0x2c8] sm:$0xff] }
 0x46a   :  { %v650_v29 = vmul.f32 %v6930_v10, %v521_v7  ;;  %v1167_v20 = vmax.f32 %v1039_v60, 0.0  ;;  %v1813_v3 = vmax.f32 %v1685_v18, 0.0  ;;  %v3494_v11 = vmul.f32 %v7001_v62, %v129_v52 }
 0x46b   :  { %v4007_v26 = vadd.f32 %v3879_v36, %v3361_v59  ;;  %v2459_v49 = vmax.f32 %v2331_v2, 0.0  ;;  %v2977_v14 = vadd.f32 %v6993_v54, %v2848_v15  ;;  %v4140_v19 = vmul.f32 %v7013_v24, %v129_v52 }
 0x46c   :  { %v778_v28 = vadd.f32 %v650_v29, %v6928_v9  ;;  %v1296_v61 = vmul.f32 %v6951_v21, %v1167_v20  ;;  %v1942_v44 = vmul.f32 %v6967_v33, %v1813_v3  ;;  %v3623_v43 = vadd.f32 %v7007_v8, %v3494_v11 }
 0x46d   :  { %v4653_v34 = vadd.f32 %v4525_v48, %v4007_v26  ;;  %v2588_v39 = vmul.f32 %v6982_v45, %v2459_v49  ;;  %v3105_v0 = vmax.f32 %v2977_v14, 0.0  ;;  %v4269_v55 = vadd.f32 %v7019_v31, %v4140_v19 }
 0x46e   :  { %v1424_v36 = vadd.f32 %v1296_v61, %v778_v28  ;;  %v3751_v1 = vmax.f32 %v3623_v43, 0.0  ;;  %v4786_v40 = vmul.f32 %v7026_v41, %v129_v52  ;;  %v5432_v27 = vmul.f32 %v7040_v58, %v129_v52 }
 0x46f   :  { %v5299_v23 = vadd.f32 %v5171_v56, %v4653_v34  ;;  %v3234_v7 = vmul.f32 %v6995_v57, %v3105_v0  ;;  %v4397_v60 = vmax.f32 %v4269_v55, 0.0  ;;  %v6078_v18 = vmul.f32 %v7054_v22, %v129_v52 }
 0x470   :  { %v2070_v59 = vadd.f32 %v1942_v44, %v1424_v36  ;;  %v3880_v48 = vmul.f32 %v7009_v16, %v3751_v1  ;;  %v4915_v2 = vadd.f32 %v7032_v47, %v4786_v40  ;;  %v5561_v15 = vadd.f32 %v7045_v63, %v5432_v27 }
 0x471   :  { %v5945_v29 = vadd.f32 %v5817_v46, %v5299_v23  ;;  %v4526_v20 = vmul.f32 %v7021_v35, %v4397_v60  ;;  %v6207_v3 = vadd.f32 %v7059_v32, %v6078_v18  ;;  %v265_v11 = vmul.f32 %v6918_v4, %v130_v53 }
 0x472   :  { %v2716_v56 = vadd.f32 %v2588_v39, %v2070_v59  ;;  %v5043_v26 = vmax.f32 %v4915_v2, 0.0  ;;  %v5689_v49 = vmax.f32 %v5561_v15, 0.0  ;;  %v911_v14 = vmul.f32 %v6937_v13, %v130_v53 }
 0x473   :  { %v6591_v52 = vadd.f32 %v6463_v5, %v5945_v29  ;;  %v6335_v19 = vmax.f32 %v6207_v3, 0.0  ;;  %v394_v28 = vadd.f32 %v6922_v6, %v265_v11  ;;  %v1557_v61 = vmul.f32 %v6955_v25, %v130_v53 }
 0x474   :  { %v3362_v44 = vadd.f32 %v3234_v7, %v2716_v56  ;;  %v5172_v46 = vmul.f32 %v7035_v51, %v5043_v26  ;;  %v5818_v43 = vmul.f32 %v7048_v12, %v5689_v49  ;;  %v1040_v34 = vadd.f32 %v6945_v17, %v911_v14 }
 0x475   :  { %6719 = vst [vmem:[#allocation7 + $0x2b8] sm:$0xff] %v6591_v52  ;;  %v6464_v39 = vmul.f32 %v7061_v37, %v6335_v19  ;;  %v522_v0 = vmax.f32 %v394_v28, 0.0  ;;  %v1686_v55 = vadd.f32 %v6964_v30, %v1557_v61  ;;  %v2203_v5 = vmul.f32 %v6973_v38, %v130_v53 }
 0x476   :  { %v4008_v36 = vadd.f32 %v3880_v48, %v3362_v44  ;;  %v1168_v1 = vmax.f32 %v1040_v34, 0.0  ;;  %v2849_v40 = vmul.f32 %v6988_v50, %v130_v53  ;;  %v3495_v27 = vmul.f32 %v7001_v62, %v130_v53  ;;  %v131_v44 = vld [vmem:[#allocation6 + $0x2d0] sm:$0xff] }
 0x477   :  { %v651_v23 = vmul.f32 %v6930_v10, %v522_v0  ;;  %v1814_v7 = vmax.f32 %v1686_v55, 0.0  ;;  %v2332_v60 = vadd.f32 %v6979_v42, %v2203_v5  ;;  %v4141_v18 = vmul.f32 %v7013_v24, %v130_v53 }
 0x478   :  { %v4654_v59 = vadd.f32 %v4526_v20, %v4008_v36  ;;  %v1297_v2 = vmul.f32 %v6951_v21, %v1168_v1  ;;  %v2978_v15 = vadd.f32 %v6993_v54, %v2849_v40  ;;  %v3624_v29 = vadd.f32 %v7007_v8, %v3495_v27 }
 0x479   :  { %v779_v48 = vadd.f32 %v651_v23, %v6928_v9  ;;  %v1943_v3 = vmul.f32 %v6967_v33, %v1814_v7  ;;  %v2460_v11 = vmax.f32 %v2332_v60, 0.0  ;;  %v4270_v56 = vadd.f32 %v7019_v31, %v4141_v18 }
 0x47a   :  { %v5300_v26 = vadd.f32 %v5172_v46, %v4654_v59  ;;  %v3106_v49 = vmax.f32 %v2978_v15, 0.0  ;;  %v3752_v14 = vmax.f32 %v3624_v29, 0.0  ;;  %v4787_v52 = vmul.f32 %v7026_v41, %v130_v53 }
 0x47b   :  { %v1425_v19 = vadd.f32 %v1297_v2, %v779_v48  ;;  %v2589_v20 = vmul.f32 %v6982_v45, %v2460_v11  ;;  %v4398_v28 = vmax.f32 %v4270_v56, 0.0  ;;  %v5433_v61 = vmul.f32 %v7040_v58, %v130_v53 }
 0x47c   :  { %v5946_v34 = vadd.f32 %v5818_v43, %v5300_v26  ;;  %v3235_v0 = vmul.f32 %v6995_v57, %v3106_v49  ;;  %v3881_v55 = vmul.f32 %v7009_v16, %v3752_v14  ;;  %v4916_v5 = vadd.f32 %v7032_v47, %v4787_v52 }
 0x47d   :  { %v2071_v36 = vadd.f32 %v1943_v3, %v1425_v19  ;;  %v4527_v46 = vmul.f32 %v7021_v35, %v4398_v28  ;;  %v5562_v1 = vadd.f32 %v7045_v63, %v5433_v61  ;;  %v6079_v40 = vmul.f32 %v7054_v22, %v130_v53 }
 0x47e   :  { %v6592_v27 = vadd.f32 %v6464_v39, %v5946_v34  ;;  %v5044_v23 = vmax.f32 %v4916_v5, 0.0  ;;  %v266_v7 = vmul.f32 %v6918_v4, %v131_v44  ;;  %v912_v60 = vmul.f32 %v6937_v13, %v131_v44 }
 0x47f   :  { %v2717_v43 = vadd.f32 %v2589_v20, %v2071_v36  ;;  %v5690_v18 = vmax.f32 %v5562_v1, 0.0  ;;  %v6208_v59 = vadd.f32 %v7059_v32, %v6079_v40  ;;  %v1558_v2 = vmul.f32 %v6955_v25, %v131_v44 }
 0x480   :  { %6720 = vst [vmem:[#allocation7 + $0x2c0] sm:$0xff] %v6592_v27  ;;  %v5173_v15 = vmul.f32 %v7035_v51, %v5044_v23  ;;  %v395_v29 = vadd.f32 %v6922_v6, %v266_v7  ;;  %v1041_v48 = vadd.f32 %v6945_v17, %v912_v60  ;;  %v2204_v53 = vmul.f32 %v6973_v38, %v131_v44 }
 0x481   :  { %v3363_v39 = vadd.f32 %v3235_v0, %v2717_v43  ;;  %v5819_v3 = vmul.f32 %v7048_v12, %v5690_v18  ;;  %v6336_v11 = vmax.f32 %v6208_v59, 0.0  ;;  %v1687_v56 = vadd.f32 %v6964_v30, %v1558_v2 }
 0x482   :  { %v523_v26 = vmax.f32 %v395_v29, 0.0  ;;  %v1169_v49 = vmax.f32 %v1041_v48, 0.0  ;;  %v2333_v14 = vadd.f32 %v6979_v42, %v2204_v53  ;;  %v2850_v52 = vmul.f32 %v6988_v50, %v131_v44 }
 0x483   :  { %v4009_v19 = vadd.f32 %v3881_v55, %v3363_v39  ;;  %v6465_v20 = vmul.f32 %v7061_v37, %v6336_v11  ;;  %v1815_v28 = vmax.f32 %v1687_v56, 0.0  ;;  %v3496_v61 = vmul.f32 %v7001_v62, %v131_v44 }
 0x484   :  { %v652_v34 = vmul.f32 %v6930_v10, %v523_v26  ;;  %v1298_v0 = vmul.f32 %v6951_v21, %v1169_v49  ;;  %v2461_v5 = vmax.f32 %v2333_v14, 0.0  ;;  %v2979_v36 = vadd.f32 %v6993_v54, %v2850_v52 }
 0x485   :  { %v4655_v1 = vadd.f32 %v4527_v46, %v4009_v19  ;;  %v1944_v40 = vmul.f32 %v6967_v33, %v1815_v28  ;;  %v3625_v27 = vadd.f32 %v7007_v8, %v3496_v61  ;;  %v4142_v23 = vmul.f32 %v7013_v24, %v131_v44  ;;  %v132_v46 = vld [vmem:[#allocation6 + $0x2d8] sm:$0xff] }
 0x486   :  { %v780_v55 = vadd.f32 %v652_v34, %v6928_v9  ;;  %v2590_v7 = vmul.f32 %v6982_v45, %v2461_v5  ;;  %v3107_v60 = vmax.f32 %v2979_v36, 0.0  ;;  %v4788_v43 = vmul.f32 %v7026_v41, %v131_v44 }
 0x487   :  { %v5301_v18 = vadd.f32 %v5173_v15, %v4655_v1  ;;  %v3753_v59 = vmax.f32 %v3625_v27, 0.0  ;;  %v4271_v2 = vadd.f32 %v7019_v31, %v4142_v23  ;;  %v5434_v29 = vmul.f32 %v7040_v58, %v131_v44 }
 0x488   :  { %v1426_v48 = vadd.f32 %v1298_v0, %v780_v55  ;;  %v3236_v53 = vmul.f32 %v6995_v57, %v3107_v60  ;;  %v4917_v39 = vadd.f32 %v7032_v47, %v4788_v43  ;;  %v6080_v11 = vmul.f32 %v7054_v22, %v131_v44 }
 0x489   :  { %v5947_v56 = vadd.f32 %v5819_v3, %v5301_v18  ;;  %v3882_v26 = vmul.f32 %v7009_v16, %v3753_v59  ;;  %v4399_v49 = vmax.f32 %v4271_v2, 0.0  ;;  %v5563_v14 = vadd.f32 %v7045_v63, %v5434_v29 }
 0x48a   :  { %v2072_v15 = vadd.f32 %v1944_v40, %v1426_v48  ;;  %v5045_v52 = vmax.f32 %v4917_v39, 0.0  ;;  %v6209_v19 = vadd.f32 %v7059_v32, %v6080_v11  ;;  %v267_v28 = vmul.f32 %v6918_v4, %v132_v46 }
 0x48b   :  { %v6593_v61 = vadd.f32 %v6465_v20, %v5947_v56  ;;  %v4528_v34 = vmul.f32 %v7021_v35, %v4399_v49  ;;  %v5691_v0 = vmax.f32 %v5563_v14, 0.0  ;;  %v913_v5 = vmul.f32 %v6937_v13, %v132_v46 }
 0x48c   :  { %v2718_v36 = vadd.f32 %v2590_v7, %v2072_v15  ;;  %v5174_v44 = vmul.f32 %v7035_v51, %v5045_v52  ;;  %v6337_v3 = vmax.f32 %v6209_v19, 0.0  ;;  %v396_v1 = vadd.f32 %v6922_v6, %v267_v28 }
 0x48d   :  { %6721 = vst [vmem:[#allocation7 + $0x2c8] sm:$0xff] %v6593_v61  ;;  %v5820_v40 = vmul.f32 %v7048_v12, %v5691_v0  ;;  %v1042_v27 = vadd.f32 %v6945_v17, %v913_v5  ;;  %v1559_v23 = vmul.f32 %v6955_v25, %v132_v46  ;;  %v2205_v20 = vmul.f32 %v6973_v38, %v132_v46 }
 0x48e   :  { %v3364_v55 = vadd.f32 %v3236_v53, %v2718_v36  ;;  %v6466_v60 = vmul.f32 %v7061_v37, %v6337_v3  ;;  %v524_v43 = vmax.f32 %v396_v1, 0.0  ;;  %v2851_v7 = vmul.f32 %v6988_v50, %v132_v46  ;;  %v133_v3 = vld [vmem:[#allocation6 + $0x2e0] sm:$0xff] }
 0x48f   :  { %v1170_v18 = vmax.f32 %v1042_v27, 0.0  ;;  %v1688_v59 = vadd.f32 %v6964_v30, %v1559_v23  ;;  %v2334_v2 = vadd.f32 %v6979_v42, %v2205_v20  ;;  %v3497_v29 = vmul.f32 %v7001_v62, %v132_v46 }
 0x490   :  { %v4010_v48 = vadd.f32 %v3882_v26, %v3364_v55  ;;  %v653_v39 = vmul.f32 %v6930_v10, %v524_v43  ;;  %v2980_v11 = vadd.f32 %v6993_v54, %v2851_v7  ;;  %v4143_v56 = vmul.f32 %v7013_v24, %v132_v46 }
 0x491   :  { %v1299_v53 = vmul.f32 %v6951_v21, %v1170_v18  ;;  %v1816_v49 = vmax.f32 %v1688_v59, 0.0  ;;  %v2462_v14 = vmax.f32 %v2334_v2, 0.0  ;;  %v3626_v15 = vadd.f32 %v7007_v8, %v3497_v29 }
 0x492   :  { %v4656_v52 = vadd.f32 %v4528_v34, %v4010_v48  ;;  %v781_v19 = vadd.f32 %v653_v39, %v6928_v9  ;;  %v3108_v28 = vmax.f32 %v2980_v11, 0.0  ;;  %v4272_v61 = vadd.f32 %v7019_v31, %v4143_v56 }
 0x493   :  { %v1945_v26 = vmul.f32 %v6967_v33, %v1816_v49  ;;  %v2591_v0 = vmul.f32 %v6982_v45, %v2462_v14  ;;  %v3754_v5 = vmax.f32 %v3626_v15, 0.0  ;;  %v4789_v36 = vmul.f32 %v7026_v41, %v132_v46 }
 0x494   :  { %v5302_v1 = vadd.f32 %v5174_v44, %v4656_v52  ;;  %v1427_v27 = vadd.f32 %v1299_v53, %v781_v19  ;;  %v3237_v23 = vmul.f32 %v6995_v57, %v3108_v28  ;;  %v4400_v20 = vmax.f32 %v4272_v61, 0.0 }
 0x495   :  { %v3883_v34 = vmul.f32 %v7009_v16, %v3754_v5  ;;  %v4918_v55 = vadd.f32 %v7032_v47, %v4789_v36  ;;  %v5435_v43 = vmul.f32 %v7040_v58, %v132_v46  ;;  %v6081_v7 = vmul.f32 %v7054_v22, %v132_v46 }
 0x496   :  { %v5948_v18 = vadd.f32 %v5820_v40, %v5302_v1  ;;  %v2073_v59 = vadd.f32 %v1945_v26, %v1427_v27  ;;  %v4529_v2 = vmul.f32 %v7021_v35, %v4400_v20  ;;  %v268_v29 = vmul.f32 %v6918_v4, %v133_v3 }
 0x497   :  { %v5046_v48 = vmax.f32 %v4918_v55, 0.0  ;;  %v5564_v44 = vadd.f32 %v7045_v63, %v5435_v43  ;;  %v6210_v39 = vadd.f32 %v7059_v32, %v6081_v7  ;;  %v914_v11 = vmul.f32 %v6937_v13, %v133_v3 }
 0x498   :  { %v6594_v56 = vadd.f32 %v6466_v60, %v5948_v18  ;;  %v2719_v53 = vadd.f32 %v2591_v0, %v2073_v59  ;;  %v397_v49 = vadd.f32 %v6922_v6, %v268_v29  ;;  %v1560_v14 = vmul.f32 %v6955_v25, %v133_v3 }
 0x499   :  { %v5175_v46 = vmul.f32 %v7035_v51, %v5046_v48  ;;  %v5692_v40 = vmax.f32 %v5564_v44, 0.0  ;;  %v6338_v15 = vmax.f32 %v6210_v39, 0.0  ;;  %v1043_v52 = vadd.f32 %v6945_v17, %v914_v11 }
 0x49a   :  { %6722 = vst [vmem:[#allocation7 + $0x2d0] sm:$0xff] %v6594_v56  ;;  %v3365_v19 = vadd.f32 %v3237_v23, %v2719_v53  ;;  %v525_v28 = vmax.f32 %v397_v49, 0.0  ;;  %v1689_v61 = vadd.f32 %v6964_v30, %v1560_v14  ;;  %v2206_v26 = vmul.f32 %v6973_v38, %v133_v3 }
 0x49b   :  { %v5821_v60 = vmul.f32 %v7048_v12, %v5692_v40  ;;  %v6467_v0 = vmul.f32 %v7061_v37, %v6338_v15  ;;  %v1171_v5 = vmax.f32 %v1043_v52, 0.0  ;;  %v2852_v36 = vmul.f32 %v6988_v50, %v133_v3  ;;  %v134_v15 = vld [vmem:[#allocation6 + $0x2e8] sm:$0xff] }
 0x49c   :  { %v4011_v1 = vadd.f32 %v3883_v34, %v3365_v19  ;;  %v654_v27 = vmul.f32 %v6930_v10, %v525_v28  ;;  %v1817_v20 = vmax.f32 %v1689_v61, 0.0  ;;  %v2335_v55 = vadd.f32 %v6979_v42, %v2206_v26 }
 0x49d   :  { %v1300_v23 = vmul.f32 %v6951_v21, %v1171_v5  ;;  %v2981_v43 = vadd.f32 %v6993_v54, %v2852_v36  ;;  %v3498_v7 = vmul.f32 %v7001_v62, %v133_v3  ;;  %v4144_v18 = vmul.f32 %v7013_v24, %v133_v3 }
 0x49e   :  { %v4657_v59 = vadd.f32 %v4529_v2, %v4011_v1  ;;  %v782_v29 = vadd.f32 %v654_v27, %v6928_v9  ;;  %v1946_v48 = vmul.f32 %v6967_v33, %v1817_v20  ;;  %v2463_v44 = vmax.f32 %v2335_v55, 0.0 }
 0x49f   :  { %v3109_v34 = vmax.f32 %v2981_v43, 0.0  ;;  %v3627_v39 = vadd.f32 %v7007_v8, %v3498_v7  ;;  %v4273_v11 = vadd.f32 %v7019_v31, %v4144_v18  ;;  %v4790_v56 = vmul.f32 %v7026_v41, %v133_v3 }
 0x4a0   :  { %v5303_v53 = vadd.f32 %v5175_v46, %v4657_v59  ;;  %v1428_v49 = vadd.f32 %v1300_v23, %v782_v29  ;;  %v2592_v14 = vmul.f32 %v6982_v45, %v2463_v44  ;;  %v5436_v40 = vmul.f32 %v7040_v58, %v133_v3 }
 0x4a1   :  { %v3238_v2 = vmul.f32 %v6995_v57, %v3109_v34  ;;  %v3755_v52 = vmax.f32 %v3627_v39, 0.0  ;;  %v4401_v19 = vmax.f32 %v4273_v11, 0.0  ;;  %v4919_v28 = vadd.f32 %v7032_v47, %v4790_v56 }
 0x4a2   :  { %v5949_v61 = vadd.f32 %v5821_v60, %v5303_v53  ;;  %v2074_v26 = vadd.f32 %v1946_v48, %v1428_v49  ;;  %v5565_v5 = vadd.f32 %v7045_v63, %v5436_v40  ;;  %v6082_v36 = vmul.f32 %v7054_v22, %v133_v3 }
 0x4a3   :  { %v3884_v46 = vmul.f32 %v7009_v16, %v3755_v52  ;;  %v4530_v1 = vmul.f32 %v7021_v35, %v4401_v19  ;;  %v5047_v27 = vmax.f32 %v4919_v28, 0.0  ;;  %v269_v20 = vmul.f32 %v6918_v4, %v134_v15 }
 0x4a4   :  { %v6595_v55 = vadd.f32 %v6467_v0, %v5949_v61  ;;  %v2720_v23 = vadd.f32 %v2592_v14, %v2074_v26  ;;  %v5693_v43 = vmax.f32 %v5565_v5, 0.0  ;;  %v6211_v7 = vadd.f32 %v7059_v32, %v6082_v36 }
 0x4a5   :  { %v5176_v18 = vmul.f32 %v7035_v51, %v5047_v27  ;;  %v398_v60 = vadd.f32 %v6922_v6, %v269_v20  ;;  %v915_v59 = vmul.f32 %v6937_v13, %v134_v15  ;;  %v1561_v3 = vmul.f32 %v6955_v25, %v134_v15 }
 0x4a6   :  { %6723 = vst [vmem:[#allocation7 + $0x2d8] sm:$0xff] %v6595_v55  ;;  %v3366_v29 = vadd.f32 %v3238_v2, %v2720_v23  ;;  %v5822_v48 = vmul.f32 %v7048_v12, %v5693_v43  ;;  %v6339_v44 = vmax.f32 %v6211_v7, 0.0  ;;  %v2207_v34 = vmul.f32 %v6973_v38, %v134_v15 }
 0x4a7   :  { %v526_v0 = vmax.f32 %v398_v60, 0.0  ;;  %v1044_v39 = vadd.f32 %v6945_v17, %v915_v59  ;;  %v1690_v11 = vadd.f32 %v6964_v30, %v1561_v3  ;;  %v2853_v56 = vmul.f32 %v6988_v50, %v134_v15  ;;  %v135_v59 = vld [vmem:[#allocation6 + $0x2f0] sm:$0xff] }
 0x4a8   :  { %v4012_v53 = vadd.f32 %v3884_v46, %v3366_v29  ;;  %v6468_v49 = vmul.f32 %v7061_v37, %v6339_v44  ;;  %v2336_v14 = vadd.f32 %v6979_v42, %v2207_v34  ;;  %v3499_v40 = vmul.f32 %v7001_v62, %v134_v15 }
 0x4a9   :  { %v655_v2 = vmul.f32 %v6930_v10, %v526_v0  ;;  %v1172_v52 = vmax.f32 %v1044_v39, 0.0  ;;  %v1818_v19 = vmax.f32 %v1690_v11, 0.0  ;;  %v2982_v28 = vadd.f32 %v6993_v54, %v2853_v56 }
 0x4aa   :  { %v4658_v61 = vadd.f32 %v4530_v1, %v4012_v53  ;;  %v2464_v26 = vmax.f32 %v2336_v14, 0.0  ;;  %v3628_v5 = vadd.f32 %v7007_v8, %v3499_v40  ;;  %v4145_v36 = vmul.f32 %v7013_v24, %v134_v15 }
 0x4ab   :  { %v783_v46 = vadd.f32 %v655_v2, %v6928_v9  ;;  %v1301_v27 = vmul.f32 %v6951_v21, %v1172_v52  ;;  %v1947_v20 = vmul.f32 %v6967_v33, %v1818_v19  ;;  %v3110_v55 = vmax.f32 %v2982_v28, 0.0 }
 0x4ac   :  { %v5304_v23 = vadd.f32 %v5176_v18, %v4658_v61  ;;  %v2593_v43 = vmul.f32 %v6982_v45, %v2464_v26  ;;  %v3756_v7 = vmax.f32 %v3628_v5, 0.0  ;;  %v4274_v60 = vadd.f32 %v7019_v31, %v4145_v36 }
 0x4ad   :  { %v1429_v1 = vadd.f32 %v1301_v27, %v783_v46  ;;  %v3239_v3 = vmul.f32 %v6995_v57, %v3110_v55  ;;  %v4791_v29 = vmul.f32 %v7026_v41, %v134_v15  ;;  %v5437_v44 = vmul.f32 %v7040_v58, %v134_v15 }
 0x4ae   :  { %v5950_v34 = vadd.f32 %v5822_v48, %v5304_v23  ;;  %v3885_v0 = vmul.f32 %v7009_v16, %v3756_v7  ;;  %v4402_v39 = vmax.f32 %v4274_v60, 0.0  ;;  %v6083_v11 = vmul.f32 %v7054_v22, %v134_v15 }
 0x4af   :  { %v2075_v18 = vadd.f32 %v1947_v20, %v1429_v1  ;;  %v4920_v56 = vadd.f32 %v7032_v47, %v4791_v29  ;;  %v5566_v53 = vadd.f32 %v7045_v63, %v5437_v44  ;;  %v270_v14 = vmul.f32 %v6918_v4, %v135_v59 }
 0x4b0   :  { %v6596_v40 = vadd.f32 %v6468_v49, %v5950_v34  ;;  %v4531_v2 = vmul.f32 %v7021_v35, %v4402_v39  ;;  %v6212_v52 = vadd.f32 %v7059_v32, %v6083_v11  ;;  %v916_v19 = vmul.f32 %v6937_v13, %v135_v59 }
 0x4b1   :  { %v2721_v48 = vadd.f32 %v2593_v43, %v2075_v18  ;;  %v5048_v28 = vmax.f32 %v4920_v56, 0.0  ;;  %v5694_v61 = vmax.f32 %v5566_v53, 0.0  ;;  %v399_v26 = vadd.f32 %v6922_v6, %v270_v14 }
 0x4b2   :  { %6724 = vst [vmem:[#allocation7 + $0x2e0] sm:$0xff] %v6596_v40  ;;  %v6340_v15 = vmax.f32 %v6212_v52, 0.0  ;;  %v1045_v5 = vadd.f32 %v6945_v17, %v916_v19  ;;  %v1562_v36 = vmul.f32 %v6955_v25, %v135_v59  ;;  %v2208_v46 = vmul.f32 %v6973_v38, %v135_v59 }
 0x4b3   :  { %v3367_v49 = vadd.f32 %v3239_v3, %v2721_v48  ;;  %v5177_v27 = vmul.f32 %v7035_v51, %v5048_v28  ;;  %v5823_v20 = vmul.f32 %v7048_v12, %v5694_v61  ;;  %v527_v55 = vmax.f32 %v399_v26, 0.0 }
 0x4b4   :  { %v6469_v23 = vmul.f32 %v7061_v37, %v6340_v15  ;;  %v1173_v43 = vmax.f32 %v1045_v5, 0.0  ;;  %v1691_v7 = vadd.f32 %v6964_v30, %v1562_v36  ;;  %v2337_v60 = vadd.f32 %v6979_v42, %v2208_v46 }
 0x4b5   :  { %v4013_v1 = vadd.f32 %v3885_v0, %v3367_v49  ;;  %v656_v29 = vmul.f32 %v6930_v10, %v527_v55  ;;  %v2854_v44 = vmul.f32 %v6988_v50, %v135_v59  ;;  %v3500_v34 = vmul.f32 %v7001_v62, %v135_v59  ;;  %v136_v49 = vld [vmem:[#allocation6 + $0x2f8] sm:$0xff] }
 0x4b6   :  { %v1302_v3 = vmul.f32 %v6951_v21, %v1173_v43  ;;  %v1819_v39 = vmax.f32 %v1691_v7, 0.0  ;;  %v2465_v11 = vmax.f32 %v2337_v60, 0.0  ;;  %v4146_v18 = vmul.f32 %v7013_v24, %v135_v59 }
 0x4b7   :  { %v4659_v56 = vadd.f32 %v4531_v2, %v4013_v1  ;;  %v784_v53 = vadd.f32 %v656_v29, %v6928_v9  ;;  %v2983_v14 = vadd.f32 %v6993_v54, %v2854_v44  ;;  %v3629_v40 = vadd.f32 %v7007_v8, %v3500_v34 }
 0x4b8   :  { %v1948_v0 = vmul.f32 %v6967_v33, %v1819_v39  ;;  %v2594_v52 = vmul.f32 %v6982_v45, %v2465_v11  ;;  %v4275_v19 = vadd.f32 %v7019_v31, %v4146_v18  ;;  %v4792_v48 = vmul.f32 %v7026_v41, %v135_v59 }
 0x4b9   :  { %v5305_v28 = vadd.f32 %v5177_v27, %v4659_v56  ;;  %v1430_v61 = vadd.f32 %v1302_v3, %v784_v53  ;;  %v3111_v26 = vmax.f32 %v2983_v14, 0.0  ;;  %v3757_v15 = vmax.f32 %v3629_v40, 0.0 }
 0x4ba   :  { %v4403_v5 = vmax.f32 %v4275_v19, 0.0  ;;  %v4921_v2 = vadd.f32 %v7032_v47, %v4792_v48  ;;  %v5438_v36 = vmul.f32 %v7040_v58, %v135_v59  ;;  %v6084_v46 = vmul.f32 %v7054_v22, %v135_v59 }
 0x4bb   :  { %v5951_v55 = vadd.f32 %v5823_v20, %v5305_v28  ;;  %v2076_v43 = vadd.f32 %v1948_v0, %v1430_v61  ;;  %v3240_v7 = vmul.f32 %v6995_v57, %v3111_v26  ;;  %v3886_v60 = vmul.f32 %v7009_v16, %v3757_v15 }
 0x4bc   :  { %v4532_v1 = vmul.f32 %v7021_v35, %v4403_v5  ;;  %v5049_v27 = vmax.f32 %v4921_v2, 0.0  ;;  %v5567_v29 = vadd.f32 %v7045_v63, %v5438_v36  ;;  %v6213_v44 = vadd.f32 %v7059_v32, %v6084_v46 }
 0x4bd   :  { %v6597_v34 = vadd.f32 %v6469_v23, %v5951_v55  ;;  %v2722_v3 = vadd.f32 %v2594_v52, %v2076_v43  ;;  %v271_v39 = vmul.f32 %v6918_v4, %v136_v49  ;;  %v917_v59 = vmul.f32 %v6937_v13, %v136_v49 }
 0x4be   :  { %v5178_v20 = vmul.f32 %v7035_v51, %v5049_v27  ;;  %v5695_v11 = vmax.f32 %v5567_v29, 0.0  ;;  %v6341_v18 = vmax.f32 %v6213_v44, 0.0  ;;  %v1563_v56 = vmul.f32 %v6955_v25, %v136_v49 }
 0x4bf   :  { %6725 = vst [vmem:[#allocation7 + $0x2e8] sm:$0xff] %v6597_v34  ;;  %v3368_v53 = vadd.f32 %v3240_v7, %v2722_v3  ;;  %v400_v14 = vadd.f32 %v6922_v6, %v271_v39  ;;  %v1046_v40 = vadd.f32 %v6945_v17, %v917_v59  ;;  %v2209_v0 = vmul.f32 %v6973_v38, %v136_v49 }
 0x4c0   :  { %v5824_v23 = vmul.f32 %v7048_v12, %v5695_v11  ;;  %v6470_v52 = vmul.f32 %v7061_v37, %v6341_v18  ;;  %v1692_v19 = vadd.f32 %v6964_v30, %v1563_v56  ;;  %v2855_v48 = vmul.f32 %v6988_v50, %v136_v49 }
 0x4c1   :  { %v4014_v28 = vadd.f32 %v3886_v60, %v3368_v53  ;;  %v528_v61 = vmax.f32 %v400_v14, 0.0  ;;  %v1174_v26 = vmax.f32 %v1046_v40, 0.0  ;;  %v2338_v15 = vadd.f32 %v6979_v42, %v2209_v0 }
 0x4c2   :  { %v1820_v5 = vmax.f32 %v1692_v19, 0.0  ;;  %v2984_v2 = vadd.f32 %v6993_v54, %v2855_v48  ;;  %v3501_v36 = vmul.f32 %v7001_v62, %v136_v49  ;;  %v4147_v46 = vmul.f32 %v7013_v24, %v136_v49 }
 0x4c3   :  { %v4660_v55 = vadd.f32 %v4532_v1, %v4014_v28  ;;  %v657_v43 = vmul.f32 %v6930_v10, %v528_v61  ;;  %v1303_v7 = vmul.f32 %v6951_v21, %v1174_v26  ;;  %v2466_v27 = vmax.f32 %v2338_v15, 0.0  ;;  %v137_v1 = vld [vmem:[#allocation6 + $0x300] sm:$0xff] }
 0x4c4   :  { %v1949_v29 = vmul.f32 %v6967_v33, %v1820_v5  ;;  %v3112_v60 = vmax.f32 %v2984_v2, 0.0  ;;  %v3630_v44 = vadd.f32 %v7007_v8, %v3501_v36  ;;  %v4276_v34 = vadd.f32 %v7019_v31, %v4147_v46 }
 0x4c5   :  { %v5306_v3 = vadd.f32 %v5178_v20, %v4660_v55  ;;  %v785_v39 = vadd.f32 %v657_v43, %v6928_v9  ;;  %v2595_v59 = vmul.f32 %v6982_v45, %v2466_v27  ;;  %v4793_v11 = vmul.f32 %v7026_v41, %v136_v49 }
 0x4c6   :  { %v3241_v18 = vmul.f32 %v6995_v57, %v3112_v60  ;;  %v3758_v56 = vmax.f32 %v3630_v44, 0.0  ;;  %v4404_v53 = vmax.f32 %v4276_v34, 0.0  ;;  %v5439_v14 = vmul.f32 %v7040_v58, %v136_v49 }
 0x4c7   :  { %v5952_v40 = vadd.f32 %v5824_v23, %v5306_v3  ;;  %v1431_v0 = vadd.f32 %v1303_v7, %v785_v39  ;;  %v4922_v19 = vadd.f32 %v7032_v47, %v4793_v11  ;;  %v6085_v48 = vmul.f32 %v7054_v22, %v136_v49 }
 0x4c8   :  { %v3887_v20 = vmul.f32 %v7009_v16, %v3758_v56  ;;  %v4533_v28 = vmul.f32 %v7021_v35, %v4404_v53  ;;  %v5568_v61 = vadd.f32 %v7045_v63, %v5439_v14  ;;  %v272_v26 = vmul.f32 %v6918_v4, %v137_v1 }
 0x4c9   :  { %v6598_v15 = vadd.f32 %v6470_v52, %v5952_v40  ;;  %v2077_v5 = vadd.f32 %v1949_v29, %v1431_v0  ;;  %v5050_v2 = vmax.f32 %v4922_v19, 0.0  ;;  %v6214_v36 = vadd.f32 %v7059_v32, %v6085_v48 }
 0x4ca   :  { %v5696_v46 = vmax.f32 %v5568_v61, 0.0  ;;  %v401_v23 = vadd.f32 %v6922_v6, %v272_v26  ;;  %v918_v55 = vmul.f32 %v6937_v13, %v137_v1  ;;  %v1564_v49 = vmul.f32 %v6955_v25, %v137_v1 }
 0x4cb   :  { %6726 = vst [vmem:[#allocation7 + $0x2f0] sm:$0xff] %v6598_v15  ;;  %v2723_v43 = vadd.f32 %v2595_v59, %v2077_v5  ;;  %v5179_v7 = vmul.f32 %v7035_v51, %v5050_v2  ;;  %v6342_v27 = vmax.f32 %v6214_v36, 0.0  ;;  %v2210_v60 = vmul.f32 %v6973_v38, %v137_v1 }
 0x4cc   :  { %v5825_v52 = vmul.f32 %v7048_v12, %v5696_v46  ;;  %v529_v29 = vmax.f32 %v401_v23, 0.0  ;;  %v1047_v44 = vadd.f32 %v6945_v17, %v918_v55  ;;  %v1693_v34 = vadd.f32 %v6964_v30, %v1564_v49 }
 0x4cd   :  { %v3369_v3 = vadd.f32 %v3241_v18, %v2723_v43  ;;  %v6471_v39 = vmul.f32 %v7061_v37, %v6342_v27  ;;  %v2339_v11 = vadd.f32 %v6979_v42, %v2210_v60  ;;  %v2856_v56 = vmul.f32 %v6988_v50, %v137_v1  ;;  %v138_v27 = vld [vmem:[#allocation6 + $0x308] sm:$0xff] }
 0x4ce   :  { %v658_v59 = vmul.f32 %v6930_v10, %v529_v29  ;;  %v1175_v53 = vmax.f32 %v1047_v44, 0.0  ;;  %v1821_v14 = vmax.f32 %v1693_v34, 0.0  ;;  %v3502_v40 = vmul.f32 %v7001_v62, %v137_v1 }
 0x4cf   :  { %v4015_v0 = vadd.f32 %v3887_v20, %v3369_v3  ;;  %v2467_v19 = vmax.f32 %v2339_v11, 0.0  ;;  %v2985_v48 = vadd.f32 %v6993_v54, %v2856_v56  ;;  %v4148_v61 = vmul.f32 %v7013_v24, %v137_v1 }
 0x4d0   :  { %v786_v18 = vadd.f32 %v658_v59, %v6928_v9  ;;  %v1304_v26 = vmul.f32 %v6951_v21, %v1175_v53  ;;  %v1950_v15 = vmul.f32 %v6967_v33, %v1821_v14  ;;  %v3631_v5 = vadd.f32 %v7007_v8, %v3502_v40 }
 0x4d1   :  { %v4661_v2 = vadd.f32 %v4533_v28, %v4015_v0  ;;  %v2596_v36 = vmul.f32 %v6982_v45, %v2467_v19  ;;  %v3113_v46 = vmax.f32 %v2985_v48, 0.0  ;;  %v4277_v23 = vadd.f32 %v7019_v31, %v4148_v61 }
 0x4d2   :  { %v1432_v20 = vadd.f32 %v1304_v26, %v786_v18  ;;  %v3759_v55 = vmax.f32 %v3631_v5, 0.0  ;;  %v4794_v49 = vmul.f32 %v7026_v41, %v137_v1  ;;  %v5440_v43 = vmul.f32 %v7040_v58, %v137_v1 }
 0x4d3   :  { %v5307_v60 = vadd.f32 %v5179_v7, %v4661_v2  ;;  %v3242_v29 = vmul.f32 %v6995_v57, %v3113_v46  ;;  %v4405_v44 = vmax.f32 %v4277_v23, 0.0  ;;  %v6086_v34 = vmul.f32 %v7054_v22, %v137_v1 }
 0x4d4   :  { %v2078_v3 = vadd.f32 %v1950_v15, %v1432_v20  ;;  %v3888_v28 = vmul.f32 %v7009_v16, %v3759_v55  ;;  %v4923_v11 = vadd.f32 %v7032_v47, %v4794_v49  ;;  %v5569_v56 = vadd.f32 %v7045_v63, %v5440_v43 }
 0x4d5   :  { %v5953_v59 = vadd.f32 %v5825_v52, %v5307_v60  ;;  %v4534_v53 = vmul.f32 %v7021_v35, %v4405_v44  ;;  %v6215_v14 = vadd.f32 %v7059_v32, %v6086_v34  ;;  %v273_v40 = vmul.f32 %v6918_v4, %v138_v27 }
 0x4d6   :  { %v2724_v7 = vadd.f32 %v2596_v36, %v2078_v3  ;;  %v5051_v0 = vmax.f32 %v4923_v11, 0.0  ;;  %v5697_v19 = vmax.f32 %v5569_v56, 0.0  ;;  %v919_v48 = vmul.f32 %v6937_v13, %v138_v27 }
 0x4d7   :  { %v6599_v1 = vadd.f32 %v6471_v39, %v5953_v59  ;;  %v6343_v61 = vmax.f32 %v6215_v14, 0.0  ;;  %v402_v18 = vadd.f32 %v6922_v6, %v273_v40  ;;  %v1565_v26 = vmul.f32 %v6955_v25, %v138_v27 }
 0x4d8   :  { %v3370_v15 = vadd.f32 %v3242_v29, %v2724_v7  ;;  %v5180_v52 = vmul.f32 %v7035_v51, %v5051_v0  ;;  %v5826_v5 = vmul.f32 %v7048_v12, %v5697_v19  ;;  %v1048_v2 = vadd.f32 %v6945_v17, %v919_v48 }
 0x4d9   :  { %6727 = vst [vmem:[#allocation7 + $0x2f8] sm:$0xff] %v6599_v1  ;;  %v6472_v36 = vmul.f32 %v7061_v37, %v6343_v61  ;;  %v530_v46 = vmax.f32 %v402_v18, 0.0  ;;  %v1694_v23 = vadd.f32 %v6964_v30, %v1565_v26  ;;  %v2211_v39 = vmul.f32 %v6973_v38, %v138_v27 }
 0x4da   :  { %v4016_v20 = vadd.f32 %v3888_v28, %v3370_v15  ;;  %v1176_v55 = vmax.f32 %v1048_v2, 0.0  ;;  %v2857_v49 = vmul.f32 %v6988_v50, %v138_v27  ;;  %v3503_v43 = vmul.f32 %v7001_v62, %v138_v27  ;;  %v139_v15 = vld [vmem:[#allocation6 + $0x310] sm:$0xff] }
 0x4db   :  { %v659_v60 = vmul.f32 %v6930_v10, %v530_v46  ;;  %v1822_v29 = vmax.f32 %v1694_v23, 0.0  ;;  %v2340_v44 = vadd.f32 %v6979_v42, %v2211_v39  ;;  %v4149_v34 = vmul.f32 %v7013_v24, %v138_v27 }
 0x4dc   :  { %v4662_v3 = vadd.f32 %v4534_v53, %v4016_v20  ;;  %v1305_v11 = vmul.f32 %v6951_v21, %v1176_v55  ;;  %v2986_v56 = vadd.f32 %v6993_v54, %v2857_v49  ;;  %v3632_v59 = vadd.f32 %v7007_v8, %v3503_v43 }
 0x4dd   :  { %v787_v28 = vadd.f32 %v659_v60, %v6928_v9  ;;  %v1951_v14 = vmul.f32 %v6967_v33, %v1822_v29  ;;  %v2468_v40 = vmax.f32 %v2340_v44, 0.0  ;;  %v4278_v7 = vadd.f32 %v7019_v31, %v4149_v34 }
 0x4de   :  { %v5308_v0 = vadd.f32 %v5180_v52, %v4662_v3  ;;  %v3114_v19 = vmax.f32 %v2986_v56, 0.0  ;;  %v3760_v48 = vmax.f32 %v3632_v59, 0.0  ;;  %v4795_v1 = vmul.f32 %v7026_v41, %v138_v27 }
 0x4df   :  { %v1433_v61 = vadd.f32 %v1305_v11, %v787_v28  ;;  %v2597_v53 = vmul.f32 %v6982_v45, %v2468_v40  ;;  %v4406_v18 = vmax.f32 %v4278_v7, 0.0  ;;  %v5441_v26 = vmul.f32 %v7040_v58, %v138_v27 }
 0x4e0   :  { %v5954_v2 = vadd.f32 %v5826_v5, %v5308_v0  ;;  %v3243_v46 = vmul.f32 %v6995_v57, %v3114_v19  ;;  %v3889_v23 = vmul.f32 %v7009_v16, %v3760_v48  ;;  %v4924_v39 = vadd.f32 %v7032_v47, %v4795_v1 }
 0x4e1   :  { %v2079_v20 = vadd.f32 %v1951_v14, %v1433_v61  ;;  %v4535_v52 = vmul.f32 %v7021_v35, %v4406_v18  ;;  %v5570_v55 = vadd.f32 %v7045_v63, %v5441_v26  ;;  %v6087_v49 = vmul.f32 %v7054_v22, %v138_v27 }
 0x4e2   :  { %v6600_v43 = vadd.f32 %v6472_v36, %v5954_v2  ;;  %v5052_v60 = vmax.f32 %v4924_v39, 0.0  ;;  %v274_v29 = vmul.f32 %v6918_v4, %v139_v15  ;;  %v920_v44 = vmul.f32 %v6937_v13, %v139_v15 }
 0x4e3   :  { %v2725_v5 = vadd.f32 %v2597_v53, %v2079_v20  ;;  %v5698_v34 = vmax.f32 %v5570_v55, 0.0  ;;  %v6216_v3 = vadd.f32 %v7059_v32, %v6087_v49  ;;  %v1566_v11 = vmul.f32 %v6955_v25, %v139_v15 }
 0x4e4   :  { %6728 = vst [vmem:[#allocation7 + $0x300] sm:$0xff] %v6600_v43  ;;  %v5181_v56 = vmul.f32 %v7035_v51, %v5052_v60  ;;  %v403_v59 = vadd.f32 %v6922_v6, %v274_v29  ;;  %v1049_v28 = vadd.f32 %v6945_v17, %v920_v44  ;;  %v2212_v27 = vmul.f32 %v6973_v38, %v139_v15 }
 0x4e5   :  { %v3371_v36 = vadd.f32 %v3243_v46, %v2725_v5  ;;  %v5827_v14 = vmul.f32 %v7048_v12, %v5698_v34  ;;  %v6344_v40 = vmax.f32 %v6216_v3, 0.0  ;;  %v1695_v7 = vadd.f32 %v6964_v30, %v1566_v11 }
 0x4e6   :  { %v531_v0 = vmax.f32 %v403_v59, 0.0  ;;  %v1177_v19 = vmax.f32 %v1049_v28, 0.0  ;;  %v2341_v48 = vadd.f32 %v6979_v42, %v2212_v27  ;;  %v2858_v1 = vmul.f32 %v6988_v50, %v139_v15 }
 0x4e7   :  { %v4017_v61 = vadd.f32 %v3889_v23, %v3371_v36  ;;  %v6473_v53 = vmul.f32 %v7061_v37, %v6344_v40  ;;  %v1823_v18 = vmax.f32 %v1695_v7, 0.0  ;;  %v3504_v26 = vmul.f32 %v7001_v62, %v139_v15 }
 0x4e8   :  { %v660_v2 = vmul.f32 %v6930_v10, %v531_v0  ;;  %v1306_v46 = vmul.f32 %v6951_v21, %v1177_v19  ;;  %v2469_v39 = vmax.f32 %v2341_v48, 0.0  ;;  %v2987_v20 = vadd.f32 %v6993_v54, %v2858_v1 }
 0x4e9   :  { %v4663_v55 = vadd.f32 %v4535_v52, %v4017_v61  ;;  %v1952_v49 = vmul.f32 %v6967_v33, %v1823_v18  ;;  %v3633_v43 = vadd.f32 %v7007_v8, %v3504_v26  ;;  %v4150_v60 = vmul.f32 %v7013_v24, %v139_v15  ;;  %v140_v52 = vld [vmem:[#allocation6 + $0x318] sm:$0xff] }
 0x4ea   :  { %v788_v23 = vadd.f32 %v660_v2, %v6928_v9  ;;  %v2598_v29 = vmul.f32 %v6982_v45, %v2469_v39  ;;  %v3115_v44 = vmax.f32 %v2987_v20, 0.0  ;;  %v4796_v5 = vmul.f32 %v7026_v41, %v139_v15 }
 0x4eb   :  { %v5309_v34 = vadd.f32 %v5181_v56, %v4663_v55  ;;  %v3761_v3 = vmax.f32 %v3633_v43, 0.0  ;;  %v4279_v11 = vadd.f32 %v7019_v31, %v4150_v60  ;;  %v5442_v59 = vmul.f32 %v7040_v58, %v139_v15 }
 0x4ec   :  { %v1434_v28 = vadd.f32 %v1306_v46, %v788_v23  ;;  %v3244_v27 = vmul.f32 %v6995_v57, %v3115_v44  ;;  %v4925_v36 = vadd.f32 %v7032_v47, %v4796_v5  ;;  %v6088_v40 = vmul.f32 %v7054_v22, %v139_v15 }
 0x4ed   :  { %v5955_v7 = vadd.f32 %v5827_v14, %v5309_v34  ;;  %v3890_v0 = vmul.f32 %v7009_v16, %v3761_v3  ;;  %v4407_v19 = vmax.f32 %v4279_v11, 0.0  ;;  %v5571_v48 = vadd.f32 %v7045_v63, %v5442_v59 }
 0x4ee   :  { %v2080_v56 = vadd.f32 %v1952_v49, %v1434_v28  ;;  %v5053_v1 = vmax.f32 %v4925_v36, 0.0  ;;  %v6217_v61 = vadd.f32 %v7059_v32, %v6088_v40  ;;  %v275_v18 = vmul.f32 %v6918_v4, %v140_v52 }
 0x4ef   :  { %v6601_v26 = vadd.f32 %v6473_v53, %v5955_v7  ;;  %v4536_v2 = vmul.f32 %v7021_v35, %v4407_v19  ;;  %v5699_v46 = vmax.f32 %v5571_v48, 0.0  ;;  %v921_v39 = vmul.f32 %v6937_v13, %v140_v52 }
 0x4f0   :  { %v2726_v20 = vadd.f32 %v2598_v29, %v2080_v56  ;;  %v5182_v15 = vmul.f32 %v7035_v51, %v5053_v1  ;;  %v6345_v14 = vmax.f32 %v6217_v61, 0.0  ;;  %v404_v55 = vadd.f32 %v6922_v6, %v275_v18 }
 0x4f1   :  { %6729 = vst [vmem:[#allocation7 + $0x308] sm:$0xff] %v6601_v26  ;;  %v5828_v49 = vmul.f32 %v7048_v12, %v5699_v46  ;;  %v1050_v43 = vadd.f32 %v6945_v17, %v921_v39  ;;  %v1567_v60 = vmul.f32 %v6955_v25, %v140_v52  ;;  %v2213_v53 = vmul.f32 %v6973_v38, %v140_v52 }
 0x4f2   :  { %v3372_v23 = vadd.f32 %v3244_v27, %v2726_v20  ;;  %v6474_v44 = vmul.f32 %v7061_v37, %v6345_v14  ;;  %v532_v5 = vmax.f32 %v404_v55, 0.0  ;;  %v2859_v29 = vmul.f32 %v6988_v50, %v140_v52  ;;  %v141_v14 = vld [vmem:[#allocation6 + $0x320] sm:$0xff] }
 0x4f3   :  { %v1178_v34 = vmax.f32 %v1050_v43, 0.0  ;;  %v1696_v3 = vadd.f32 %v6964_v30, %v1567_v60  ;;  %v2342_v11 = vadd.f32 %v6979_v42, %v2213_v53  ;;  %v3505_v59 = vmul.f32 %v7001_v62, %v140_v52 }
 0x4f4   :  { %v4018_v28 = vadd.f32 %v3890_v0, %v3372_v23  ;;  %v661_v36 = vmul.f32 %v6930_v10, %v532_v5  ;;  %v2988_v40 = vadd.f32 %v6993_v54, %v2859_v29  ;;  %v4151_v7 = vmul.f32 %v7013_v24, %v140_v52 }
 0x4f5   :  { %v1307_v27 = vmul.f32 %v6951_v21, %v1178_v34  ;;  %v1824_v19 = vmax.f32 %v1696_v3, 0.0  ;;  %v2470_v48 = vmax.f32 %v2342_v11, 0.0  ;;  %v3634_v56 = vadd.f32 %v7007_v8, %v3505_v59 }
 0x4f6   :  { %v4664_v1 = vadd.f32 %v4536_v2, %v4018_v28  ;;  %v789_v61 = vadd.f32 %v661_v36, %v6928_v9  ;;  %v3116_v18 = vmax.f32 %v2988_v40, 0.0  ;;  %v4280_v26 = vadd.f32 %v7019_v31, %v4151_v7 }
 0x4f7   :  { %v1953_v0 = vmul.f32 %v6967_v33, %v1824_v19  ;;  %v2599_v46 = vmul.f32 %v6982_v45, %v2470_v48  ;;  %v3762_v39 = vmax.f32 %v3634_v56, 0.0  ;;  %v4797_v20 = vmul.f32 %v7026_v41, %v140_v52 }
 0x4f8   :  { %v5310_v55 = vadd.f32 %v5182_v15, %v4664_v1  ;;  %v1435_v43 = vadd.f32 %v1307_v27, %v789_v61  ;;  %v3245_v60 = vmul.f32 %v6995_v57, %v3116_v18  ;;  %v4408_v53 = vmax.f32 %v4280_v26, 0.0 }
 0x4f9   :  { %v3891_v2 = vmul.f32 %v7009_v16, %v3762_v39  ;;  %v4926_v23 = vadd.f32 %v7032_v47, %v4797_v20  ;;  %v5443_v5 = vmul.f32 %v7040_v58, %v140_v52  ;;  %v6089_v29 = vmul.f32 %v7054_v22, %v140_v52 }
 0x4fa   :  { %v5956_v34 = vadd.f32 %v5828_v49, %v5310_v55  ;;  %v2081_v3 = vadd.f32 %v1953_v0, %v1435_v43  ;;  %v4537_v11 = vmul.f32 %v7021_v35, %v4408_v53  ;;  %v276_v59 = vmul.f32 %v6918_v4, %v141_v14 }
 0x4fb   :  { %v5054_v28 = vmax.f32 %v4926_v23, 0.0  ;;  %v5572_v15 = vadd.f32 %v7045_v63, %v5443_v5  ;;  %v6218_v36 = vadd.f32 %v7059_v32, %v6089_v29  ;;  %v922_v40 = vmul.f32 %v6937_v13, %v141_v14 }
 0x4fc   :  { %v6602_v7 = vadd.f32 %v6474_v44, %v5956_v34  ;;  %v2727_v27 = vadd.f32 %v2599_v46, %v2081_v3  ;;  %v405_v19 = vadd.f32 %v6922_v6, %v276_v59  ;;  %v1568_v48 = vmul.f32 %v6955_v25, %v141_v14 }
 0x4fd   :  { %v5183_v52 = vmul.f32 %v7035_v51, %v5054_v28  ;;  %v5700_v49 = vmax.f32 %v5572_v15, 0.0  ;;  %v6346_v56 = vmax.f32 %v6218_v36, 0.0  ;;  %v1051_v1 = vadd.f32 %v6945_v17, %v922_v40 }
 0x4fe   :  { %6730 = vst [vmem:[#allocation7 + $0x310] sm:$0xff] %v6602_v7  ;;  %v3373_v61 = vadd.f32 %v3245_v60, %v2727_v27  ;;  %v533_v18 = vmax.f32 %v405_v19, 0.0  ;;  %v1697_v26 = vadd.f32 %v6964_v30, %v1568_v48  ;;  %v2214_v0 = vmul.f32 %v6973_v38, %v141_v14 }
 0x4ff   :  { %v5829_v44 = vmul.f32 %v7048_v12, %v5700_v49  ;;  %v6475_v46 = vmul.f32 %v7061_v37, %v6346_v56  ;;  %v1179_v39 = vmax.f32 %v1051_v1, 0.0  ;;  %v2860_v20 = vmul.f32 %v6988_v50, %v141_v14  ;;  %v142_v56 = vld [vmem:[#allocation6 + $0x328] sm:$0xff] }
 0x500   :  { %v4019_v55 = vadd.f32 %v3891_v2, %v3373_v61  ;;  %v662_v43 = vmul.f32 %v6930_v10, %v533_v18  ;;  %v1825_v53 = vmax.f32 %v1697_v26, 0.0  ;;  %v2343_v23 = vadd.f32 %v6979_v42, %v2214_v0 }
 0x501   :  { %v1308_v60 = vmul.f32 %v6951_v21, %v1179_v39  ;;  %v2989_v5 = vadd.f32 %v6993_v54, %v2860_v20  ;;  %v3506_v29 = vmul.f32 %v7001_v62, %v141_v14  ;;  %v4152_v34 = vmul.f32 %v7013_v24, %v141_v14 }
 0x502   :  { %v4665_v3 = vadd.f32 %v4537_v11, %v4019_v55  ;;  %v790_v59 = vadd.f32 %v662_v43, %v6928_v9  ;;  %v1954_v28 = vmul.f32 %v6967_v33, %v1825_v53  ;;  %v2471_v15 = vmax.f32 %v2343_v23, 0.0 }
 0x503   :  { %v3117_v2 = vmax.f32 %v2989_v5, 0.0  ;;  %v3635_v36 = vadd.f32 %v7007_v8, %v3506_v29  ;;  %v4281_v40 = vadd.f32 %v7019_v31, %v4152_v34  ;;  %v4798_v7 = vmul.f32 %v7026_v41, %v141_v14 }
 0x504   :  { %v5311_v27 = vadd.f32 %v5183_v52, %v4665_v3  ;;  %v1436_v19 = vadd.f32 %v1308_v60, %v790_v59  ;;  %v2600_v48 = vmul.f32 %v6982_v45, %v2471_v15  ;;  %v5444_v49 = vmul.f32 %v7040_v58, %v141_v14 }
 0x505   :  { %v3246_v11 = vmul.f32 %v6995_v57, %v3117_v2  ;;  %v3763_v1 = vmax.f32 %v3635_v36, 0.0  ;;  %v4409_v61 = vmax.f32 %v4281_v40, 0.0  ;;  %v4927_v18 = vadd.f32 %v7032_v47, %v4798_v7 }
 0x506   :  { %v5957_v26 = vadd.f32 %v5829_v44, %v5311_v27  ;;  %v2082_v0 = vadd.f32 %v1954_v28, %v1436_v19  ;;  %v5573_v39 = vadd.f32 %v7045_v63, %v5444_v49  ;;  %v6090_v20 = vmul.f32 %v7054_v22, %v141_v14 }
 0x507   :  { %v3892_v52 = vmul.f32 %v7009_v16, %v3763_v1  ;;  %v4538_v55 = vmul.f32 %v7021_v35, %v4409_v61  ;;  %v5055_v43 = vmax.f32 %v4927_v18, 0.0  ;;  %v277_v53 = vmul.f32 %v6918_v4, %v142_v56 }
 0x508   :  { %v6603_v23 = vadd.f32 %v6475_v46, %v5957_v26  ;;  %v2728_v60 = vadd.f32 %v2600_v48, %v2082_v0  ;;  %v5701_v5 = vmax.f32 %v5573_v39, 0.0  ;;  %v6219_v29 = vadd.f32 %v7059_v32, %v6090_v20 }
 0x509   :  { %v5184_v34 = vmul.f32 %v7035_v51, %v5055_v43  ;;  %v406_v44 = vadd.f32 %v6922_v6, %v277_v53  ;;  %v923_v3 = vmul.f32 %v6937_v13, %v142_v56  ;;  %v1569_v14 = vmul.f32 %v6955_v25, %v142_v56 }
 0x50a   :  { %6731 = vst [vmem:[#allocation7 + $0x318] sm:$0xff] %v6603_v23  ;;  %v3374_v59 = vadd.f32 %v3246_v11, %v2728_v60  ;;  %v5830_v28 = vmul.f32 %v7048_v12, %v5701_v5  ;;  %v6347_v15 = vmax.f32 %v6219_v29, 0.0  ;;  %v2215_v2 = vmul.f32 %v6973_v38, %v142_v56 }
 0x50b   :  { %v534_v46 = vmax.f32 %v406_v44, 0.0  ;;  %v1052_v36 = vadd.f32 %v6945_v17, %v923_v3  ;;  %v1698_v40 = vadd.f32 %v6964_v30, %v1569_v14  ;;  %v2861_v7 = vmul.f32 %v6988_v50, %v142_v56  ;;  %v143_v3 = vld [vmem:[#allocation6 + $0x330] sm:$0xff] }
 0x50c   :  { %v4020_v27 = vadd.f32 %v3892_v52, %v3374_v59  ;;  %v6476_v19 = vmul.f32 %v7061_v37, %v6347_v15  ;;  %v2344_v48 = vadd.f32 %v6979_v42, %v2215_v2  ;;  %v3507_v49 = vmul.f32 %v7001_v62, %v142_v56 }
 0x50d   :  { %v663_v11 = vmul.f32 %v6930_v10, %v534_v46  ;;  %v1180_v1 = vmax.f32 %v1052_v36, 0.0  ;;  %v1826_v61 = vmax.f32 %v1698_v40, 0.0  ;;  %v2990_v18 = vadd.f32 %v6993_v54, %v2861_v7 }
 0x50e   :  { %v4666_v26 = vadd.f32 %v4538_v55, %v4020_v27  ;;  %v2472_v0 = vmax.f32 %v2344_v48, 0.0  ;;  %v3636_v39 = vadd.f32 %v7007_v8, %v3507_v49  ;;  %v4153_v20 = vmul.f32 %v7013_v24, %v142_v56 }
 0x50f   :  { %v791_v52 = vadd.f32 %v663_v11, %v6928_v9  ;;  %v1309_v43 = vmul.f32 %v6951_v21, %v1180_v1  ;;  %v1955_v53 = vmul.f32 %v6967_v33, %v1826_v61  ;;  %v3118_v23 = vmax.f32 %v2990_v18, 0.0 }
 0x510   :  { %v5312_v60 = vadd.f32 %v5184_v34, %v4666_v26  ;;  %v2601_v5 = vmul.f32 %v6982_v45, %v2472_v0  ;;  %v3764_v29 = vmax.f32 %v3636_v39, 0.0  ;;  %v4282_v44 = vadd.f32 %v7019_v31, %v4153_v20 }
 0x511   :  { %v1437_v55 = vadd.f32 %v1309_v43, %v791_v52  ;;  %v3247_v14 = vmul.f32 %v6995_v57, %v3118_v23  ;;  %v4799_v59 = vmul.f32 %v7026_v41, %v142_v56  ;;  %v5445_v15 = vmul.f32 %v7040_v58, %v142_v56 }
 0x512   :  { %v5958_v2 = vadd.f32 %v5830_v28, %v5312_v60  ;;  %v3893_v46 = vmul.f32 %v7009_v16, %v3764_v29  ;;  %v4410_v36 = vmax.f32 %v4282_v44, 0.0  ;;  %v6091_v40 = vmul.f32 %v7054_v22, %v142_v56 }
 0x513   :  { %v2083_v34 = vadd.f32 %v1955_v53, %v1437_v55  ;;  %v4928_v7 = vadd.f32 %v7032_v47, %v4799_v59  ;;  %v5574_v27 = vadd.f32 %v7045_v63, %v5445_v15  ;;  %v278_v48 = vmul.f32 %v6918_v4, %v143_v3 }
 0x514   :  { %v6604_v49 = vadd.f32 %v6476_v19, %v5958_v2  ;;  %v4539_v11 = vmul.f32 %v7021_v35, %v4410_v36  ;;  %v6220_v1 = vadd.f32 %v7059_v32, %v6091_v40  ;;  %v924_v61 = vmul.f32 %v6937_v13, %v143_v3 }
 0x515   :  { %v2729_v28 = vadd.f32 %v2601_v5, %v2083_v34  ;;  %v5056_v18 = vmax.f32 %v4928_v7, 0.0  ;;  %v5702_v26 = vmax.f32 %v5574_v27, 0.0  ;;  %v407_v0 = vadd.f32 %v6922_v6, %v278_v48 }
 0x516   :  { %6732 = vst [vmem:[#allocation7 + $0x320] sm:$0xff] %v6604_v49  ;;  %v6348_v56 = vmax.f32 %v6220_v1, 0.0  ;;  %v1053_v39 = vadd.f32 %v6945_v17, %v924_v61  ;;  %v1570_v20 = vmul.f32 %v6955_v25, %v143_v3  ;;  %v2216_v52 = vmul.f32 %v6973_v38, %v143_v3 }
 0x517   :  { %v3375_v19 = vadd.f32 %v3247_v14, %v2729_v28  ;;  %v5185_v43 = vmul.f32 %v7035_v51, %v5056_v18  ;;  %v5831_v53 = vmul.f32 %v7048_v12, %v5702_v26  ;;  %v535_v23 = vmax.f32 %v407_v0, 0.0 }
 0x518   :  { %v6477_v60 = vmul.f32 %v7061_v37, %v6348_v56  ;;  %v1181_v5 = vmax.f32 %v1053_v39, 0.0  ;;  %v1699_v29 = vadd.f32 %v6964_v30, %v1570_v20  ;;  %v2345_v44 = vadd.f32 %v6979_v42, %v2216_v52 }
 0x519   :  { %v4021_v55 = vadd.f32 %v3893_v46, %v3375_v19  ;;  %v664_v59 = vmul.f32 %v6930_v10, %v535_v23  ;;  %v2862_v15 = vmul.f32 %v6988_v50, %v143_v3  ;;  %v3508_v2 = vmul.f32 %v7001_v62, %v143_v3  ;;  %v144_v19 = vld [vmem:[#allocation6 + $0x338] sm:$0xff] }
 0x51a   :  { %v1310_v14 = vmul.f32 %v6951_v21, %v1181_v5  ;;  %v1827_v36 = vmax.f32 %v1699_v29, 0.0  ;;  %v2473_v40 = vmax.f32 %v2345_v44, 0.0  ;;  %v4154_v34 = vmul.f32 %v7013_v24, %v143_v3 }
 0x51b   :  { %v4667_v7 = vadd.f32 %v4539_v11, %v4021_v55  ;;  %v792_v27 = vadd.f32 %v664_v59, %v6928_v9  ;;  %v2991_v48 = vadd.f32 %v6993_v54, %v2862_v15  ;;  %v3637_v49 = vadd.f32 %v7007_v8, %v3508_v2 }
 0x51c   :  { %v1956_v46 = vmul.f32 %v6967_v33, %v1827_v36  ;;  %v2602_v1 = vmul.f32 %v6982_v45, %v2473_v40  ;;  %v4283_v61 = vadd.f32 %v7019_v31, %v4154_v34  ;;  %v4800_v28 = vmul.f32 %v7026_v41, %v143_v3 }
 0x51d   :  { %v5313_v18 = vadd.f32 %v5185_v43, %v4667_v7  ;;  %v1438_v26 = vadd.f32 %v1310_v14, %v792_v27  ;;  %v3119_v0 = vmax.f32 %v2991_v48, 0.0  ;;  %v3765_v56 = vmax.f32 %v3637_v49, 0.0 }
 0x51e   :  { %v4411_v39 = vmax.f32 %v4283_v61, 0.0  ;;  %v4929_v11 = vadd.f32 %v7032_v47, %v4800_v28  ;;  %v5446_v20 = vmul.f32 %v7040_v58, %v143_v3  ;;  %v6092_v52 = vmul.f32 %v7054_v22, %v143_v3 }
 0x51f   :  { %v5959_v23 = vadd.f32 %v5831_v53, %v5313_v18  ;;  %v2084_v5 = vadd.f32 %v1956_v46, %v1438_v26  ;;  %v3248_v29 = vmul.f32 %v6995_v57, %v3119_v0  ;;  %v3894_v44 = vmul.f32 %v7009_v16, %v3765_v56 }
 0x520   :  { %v4540_v55 = vmul.f32 %v7021_v35, %v4411_v39  ;;  %v5057_v43 = vmax.f32 %v4929_v11, 0.0  ;;  %v5575_v59 = vadd.f32 %v7045_v63, %v5446_v20  ;;  %v6221_v15 = vadd.f32 %v7059_v32, %v6092_v52 }
 0x521   :  { %v6605_v2 = vadd.f32 %v6477_v60, %v5959_v23  ;;  %v2730_v14 = vadd.f32 %v2602_v1, %v2084_v5  ;;  %v279_v36 = vmul.f32 %v6918_v4, %v144_v19  ;;  %v925_v3 = vmul.f32 %v6937_v13, %v144_v19 }
 0x522   :  { %v5186_v53 = vmul.f32 %v7035_v51, %v5057_v43  ;;  %v5703_v40 = vmax.f32 %v5575_v59, 0.0  ;;  %v6349_v34 = vmax.f32 %v6221_v15, 0.0  ;;  %v1571_v7 = vmul.f32 %v6955_v25, %v144_v19 }
 0x523   :  { %6733 = vst [vmem:[#allocation7 + $0x328] sm:$0xff] %v6605_v2  ;;  %v3376_v27 = vadd.f32 %v3248_v29, %v2730_v14  ;;  %v408_v48 = vadd.f32 %v6922_v6, %v279_v36  ;;  %v1054_v49 = vadd.f32 %v6945_v17, %v925_v3  ;;  %v2217_v46 = vmul.f32 %v6973_v38, %v144_v19 }
 0x524   :  { %v5832_v60 = vmul.f32 %v7048_v12, %v5703_v40  ;;  %v6478_v1 = vmul.f32 %v7061_v37, %v6349_v34  ;;  %v1700_v61 = vadd.f32 %v6964_v30, %v1571_v7  ;;  %v2863_v28 = vmul.f32 %v6988_v50, %v144_v19 }
 0x525   :  { %v4022_v18 = vadd.f32 %v3894_v44, %v3376_v27  ;;  %v536_v26 = vmax.f32 %v408_v48, 0.0  ;;  %v1182_v0 = vmax.f32 %v1054_v49, 0.0  ;;  %v2346_v56 = vadd.f32 %v6979_v42, %v2217_v46 }
 0x526   :  { %v1828_v39 = vmax.f32 %v1700_v61, 0.0  ;;  %v2992_v11 = vadd.f32 %v6993_v54, %v2863_v28  ;;  %v3509_v20 = vmul.f32 %v7001_v62, %v144_v19  ;;  %v4155_v52 = vmul.f32 %v7013_v24, %v144_v19 }
 0x527   :  { %v4668_v23 = vadd.f32 %v4540_v55, %v4022_v18  ;;  %v665_v5 = vmul.f32 %v6930_v10, %v536_v26  ;;  %v1311_v29 = vmul.f32 %v6951_v21, %v1182_v0  ;;  %v2474_v43 = vmax.f32 %v2346_v56, 0.0  ;;  %v145_v55 = vld [vmem:[#allocation6 + $0x340] sm:$0xff] }
 0x528   :  { %v1957_v59 = vmul.f32 %v6967_v33, %v1828_v39  ;;  %v3120_v44 = vmax.f32 %v2992_v11, 0.0  ;;  %v3638_v15 = vadd.f32 %v7007_v8, %v3509_v20  ;;  %v4284_v2 = vadd.f32 %v7019_v31, %v4155_v52 }
 0x529   :  { %v5314_v14 = vadd.f32 %v5186_v53, %v4668_v23  ;;  %v793_v36 = vadd.f32 %v665_v5, %v6928_v9  ;;  %v2603_v3 = vmul.f32 %v6982_v45, %v2474_v43  ;;  %v4801_v40 = vmul.f32 %v7026_v41, %v144_v19 }
 0x52a   :  { %v3249_v34 = vmul.f32 %v6995_v57, %v3120_v44  ;;  %v3766_v7 = vmax.f32 %v3638_v15, 0.0  ;;  %v4412_v27 = vmax.f32 %v4284_v2, 0.0  ;;  %v5447_v48 = vmul.f32 %v7040_v58, %v144_v19 }
 0x52b   :  { %v5960_v49 = vadd.f32 %v5832_v60, %v5314_v14  ;;  %v1439_v46 = vadd.f32 %v1311_v29, %v793_v36  ;;  %v4930_v61 = vadd.f32 %v7032_v47, %v4801_v40  ;;  %v6093_v28 = vmul.f32 %v7054_v22, %v144_v19 }
 0x52c   :  { %v3895_v53 = vmul.f32 %v7009_v16, %v3766_v7  ;;  %v4541_v18 = vmul.f32 %v7021_v35, %v4412_v27  ;;  %v5576_v26 = vadd.f32 %v7045_v63, %v5447_v48  ;;  %v280_v0 = vmul.f32 %v6918_v4, %v145_v55 }
 0x52d   :  { %v6606_v56 = vadd.f32 %v6478_v1, %v5960_v49  ;;  %v2085_v39 = vadd.f32 %v1957_v59, %v1439_v46  ;;  %v5058_v11 = vmax.f32 %v4930_v61, 0.0  ;;  %v6222_v20 = vadd.f32 %v7059_v32, %v6093_v28 }
 0x52e   :  { %v5704_v52 = vmax.f32 %v5576_v26, 0.0  ;;  %v409_v60 = vadd.f32 %v6922_v6, %v280_v0  ;;  %v926_v23 = vmul.f32 %v6937_v13, %v145_v55  ;;  %v1572_v19 = vmul.f32 %v6955_v25, %v145_v55 }
 0x52f   :  { %6734 = vst [vmem:[#allocation7 + $0x330] sm:$0xff] %v6606_v56  ;;  %v2731_v5 = vadd.f32 %v2603_v3, %v2085_v39  ;;  %v5187_v29 = vmul.f32 %v7035_v51, %v5058_v11  ;;  %v6350_v43 = vmax.f32 %v6222_v20, 0.0  ;;  %v2218_v44 = vmul.f32 %v6973_v38, %v145_v55 }
 0x530   :  { %v5833_v1 = vmul.f32 %v7048_v12, %v5704_v52  ;;  %v537_v59 = vmax.f32 %v409_v60, 0.0  ;;  %v1055_v15 = vadd.f32 %v6945_v17, %v926_v23  ;;  %v1701_v2 = vadd.f32 %v6964_v30, %v1572_v19 }
 0x531   :  { %v3377_v14 = vadd.f32 %v3249_v34, %v2731_v5  ;;  %v6479_v36 = vmul.f32 %v7061_v37, %v6350_v43  ;;  %v2347_v40 = vadd.f32 %v6979_v42, %v2218_v44  ;;  %v2864_v7 = vmul.f32 %v6988_v50, %v145_v55  ;;  %v146_v43 = vld [vmem:[#allocation6 + $0x348] sm:$0xff] }
 0x532   :  { %v666_v3 = vmul.f32 %v6930_v10, %v537_v59  ;;  %v1183_v27 = vmax.f32 %v1055_v15, 0.0  ;;  %v1829_v48 = vmax.f32 %v1701_v2, 0.0  ;;  %v3510_v49 = vmul.f32 %v7001_v62, %v145_v55 }
 0x533   :  { %v4023_v46 = vadd.f32 %v3895_v53, %v3377_v14  ;;  %v2475_v61 = vmax.f32 %v2347_v40, 0.0  ;;  %v2993_v28 = vadd.f32 %v6993_v54, %v2864_v7  ;;  %v4156_v26 = vmul.f32 %v7013_v24, %v145_v55 }
 0x534   :  { %v794_v34 = vadd.f32 %v666_v3, %v6928_v9  ;;  %v1312_v0 = vmul.f32 %v6951_v21, %v1183_v27  ;;  %v1958_v56 = vmul.f32 %v6967_v33, %v1829_v48  ;;  %v3639_v39 = vadd.f32 %v7007_v8, %v3510_v49 }
 0x535   :  { %v4669_v11 = vadd.f32 %v4541_v18, %v4023_v46  ;;  %v2604_v20 = vmul.f32 %v6982_v45, %v2475_v61  ;;  %v3121_v52 = vmax.f32 %v2993_v28, 0.0  ;;  %v4285_v60 = vadd.f32 %v7019_v31, %v4156_v26 }
 0x536   :  { %v1440_v53 = vadd.f32 %v1312_v0, %v794_v34  ;;  %v3767_v23 = vmax.f32 %v3639_v39, 0.0  ;;  %v4802_v19 = vmul.f32 %v7026_v41, %v145_v55  ;;  %v5448_v5 = vmul.f32 %v7040_v58, %v145_v55 }
 0x537   :  { %v5315_v44 = vadd.f32 %v5187_v29, %v4669_v11  ;;  %v3250_v59 = vmul.f32 %v6995_v57, %v3121_v52  ;;  %v4413_v15 = vmax.f32 %v4285_v60, 0.0  ;;  %v6094_v2 = vmul.f32 %v7054_v22, %v145_v55 }
 0x538   :  { %v2086_v14 = vadd.f32 %v1958_v56, %v1440_v53  ;;  %v3896_v18 = vmul.f32 %v7009_v16, %v3767_v23  ;;  %v4931_v40 = vadd.f32 %v7032_v47, %v4802_v19  ;;  %v5577_v7 = vadd.f32 %v7045_v63, %v5448_v5 }
 0x539   :  { %v5961_v3 = vadd.f32 %v5833_v1, %v5315_v44  ;;  %v4542_v27 = vmul.f32 %v7021_v35, %v4413_v15  ;;  %v6223_v48 = vadd.f32 %v7059_v32, %v6094_v2  ;;  %v281_v49 = vmul.f32 %v6918_v4, %v146_v43 }
 0x53a   :  { %v2732_v29 = vadd.f32 %v2604_v20, %v2086_v14  ;;  %v5059_v46 = vmax.f32 %v4931_v40, 0.0  ;;  %v5705_v61 = vmax.f32 %v5577_v7, 0.0  ;;  %v927_v28 = vmul.f32 %v6937_v13, %v146_v43 }
 0x53b   :  { %v6607_v55 = vadd.f32 %v6479_v36, %v5961_v3  ;;  %v6351_v26 = vmax.f32 %v6223_v48, 0.0  ;;  %v410_v34 = vadd.f32 %v6922_v6, %v281_v49  ;;  %v1573_v0 = vmul.f32 %v6955_v25, %v146_v43 }
 0x53c   :  { %v3378_v56 = vadd.f32 %v3250_v59, %v2732_v29  ;;  %v5188_v1 = vmul.f32 %v7035_v51, %v5059_v46  ;;  %v5834_v39 = vmul.f32 %v7048_v12, %v5705_v61  ;;  %v1056_v11 = vadd.f32 %v6945_v17, %v927_v28 }
 0x53d   :  { %6735 = vst [vmem:[#allocation7 + $0x338] sm:$0xff] %v6607_v55  ;;  %v6480_v20 = vmul.f32 %v7061_v37, %v6351_v26  ;;  %v538_v52 = vmax.f32 %v410_v34, 0.0  ;;  %v1702_v60 = vadd.f32 %v6964_v30, %v1573_v0  ;;  %v2219_v36 = vmul.f32 %v6973_v38, %v146_v43 }
 0x53e   :  { %v4024_v53 = vadd.f32 %v3896_v18, %v3378_v56  ;;  %v1184_v23 = vmax.f32 %v1056_v11, 0.0  ;;  %v2865_v19 = vmul.f32 %v6988_v50, %v146_v43  ;;  %v3511_v5 = vmul.f32 %v7001_v62, %v146_v43  ;;  %v147_v56 = vld [vmem:[#allocation6 + $0x350] sm:$0xff] }
 0x53f   :  { %v667_v44 = vmul.f32 %v6930_v10, %v538_v52  ;;  %v1830_v59 = vmax.f32 %v1702_v60, 0.0  ;;  %v2348_v15 = vadd.f32 %v6979_v42, %v2219_v36  ;;  %v4157_v2 = vmul.f32 %v7013_v24, %v146_v43 }
 0x540   :  { %v4670_v14 = vadd.f32 %v4542_v27, %v4024_v53  ;;  %v1313_v40 = vmul.f32 %v6951_v21, %v1184_v23  ;;  %v2994_v7 = vadd.f32 %v6993_v54, %v2865_v19  ;;  %v3640_v3 = vadd.f32 %v7007_v8, %v3511_v5 }
 0x541   :  { %v795_v18 = vadd.f32 %v667_v44, %v6928_v9  ;;  %v1959_v48 = vmul.f32 %v6967_v33, %v1830_v59  ;;  %v2476_v49 = vmax.f32 %v2348_v15, 0.0  ;;  %v4286_v29 = vadd.f32 %v7019_v31, %v4157_v2 }
 0x542   :  { %v5316_v46 = vadd.f32 %v5188_v1, %v4670_v14  ;;  %v3122_v61 = vmax.f32 %v2994_v7, 0.0  ;;  %v3768_v28 = vmax.f32 %v3640_v3, 0.0  ;;  %v4803_v55 = vmul.f32 %v7026_v41, %v146_v43 }
 0x543   :  { %v1441_v26 = vadd.f32 %v1313_v40, %v795_v18  ;;  %v2605_v27 = vmul.f32 %v6982_v45, %v2476_v49  ;;  %v4414_v34 = vmax.f32 %v4286_v29, 0.0  ;;  %v5449_v0 = vmul.f32 %v7040_v58, %v146_v43 }
 0x544   :  { %v5962_v11 = vadd.f32 %v5834_v39, %v5316_v46  ;;  %v3251_v52 = vmul.f32 %v6995_v57, %v3122_v61  ;;  %v3897_v60 = vmul.f32 %v7009_v16, %v3768_v28  ;;  %v4932_v36 = vadd.f32 %v7032_v47, %v4803_v55 }
 0x545   :  { %v2087_v53 = vadd.f32 %v1959_v48, %v1441_v26  ;;  %v4543_v1 = vmul.f32 %v7021_v35, %v4414_v34  ;;  %v5578_v23 = vadd.f32 %v7045_v63, %v5449_v0  ;;  %v6095_v19 = vmul.f32 %v7054_v22, %v146_v43 }
 0x546   :  { %v6608_v5 = vadd.f32 %v6480_v20, %v5962_v11  ;;  %v5060_v44 = vmax.f32 %v4932_v36, 0.0  ;;  %v282_v59 = vmul.f32 %v6918_v4, %v147_v56  ;;  %v928_v15 = vmul.f32 %v6937_v13, %v147_v56 }
 0x547   :  { %v2733_v39 = vadd.f32 %v2605_v27, %v2087_v53  ;;  %v5706_v2 = vmax.f32 %v5578_v23, 0.0  ;;  %v6224_v14 = vadd.f32 %v7059_v32, %v6095_v19  ;;  %v1574_v40 = vmul.f32 %v6955_v25, %v147_v56 }
 0x548   :  { %6736 = vst [vmem:[#allocation7 + $0x340] sm:$0xff] %v6608_v5  ;;  %v5189_v7 = vmul.f32 %v7035_v51, %v5060_v44  ;;  %v411_v3 = vadd.f32 %v6922_v6, %v282_v59  ;;  %v1057_v18 = vadd.f32 %v6945_v17, %v928_v15  ;;  %v2220_v43 = vmul.f32 %v6973_v38, %v147_v56 }
 0x549   :  { %v3379_v20 = vadd.f32 %v3251_v52, %v2733_v39  ;;  %v5835_v48 = vmul.f32 %v7048_v12, %v5706_v2  ;;  %v6352_v49 = vmax.f32 %v6224_v14, 0.0  ;;  %v1703_v29 = vadd.f32 %v6964_v30, %v1574_v40 }
 0x54a   :  { %v539_v46 = vmax.f32 %v411_v3, 0.0  ;;  %v1185_v61 = vmax.f32 %v1057_v18, 0.0  ;;  %v2349_v28 = vadd.f32 %v6979_v42, %v2220_v43  ;;  %v2866_v55 = vmul.f32 %v6988_v50, %v147_v56 }
 0x54b   :  { %v4025_v26 = vadd.f32 %v3897_v60, %v3379_v20  ;;  %v6481_v27 = vmul.f32 %v7061_v37, %v6352_v49  ;;  %v1831_v34 = vmax.f32 %v1703_v29, 0.0  ;;  %v3512_v0 = vmul.f32 %v7001_v62, %v147_v56 }
 0x54c   :  { %v668_v11 = vmul.f32 %v6930_v10, %v539_v46  ;;  %v1314_v52 = vmul.f32 %v6951_v21, %v1185_v61  ;;  %v2477_v36 = vmax.f32 %v2349_v28, 0.0  ;;  %v2995_v53 = vadd.f32 %v6993_v54, %v2866_v55 }
 0x54d   :  { %v4671_v23 = vadd.f32 %v4543_v1, %v4025_v26  ;;  %v1960_v19 = vmul.f32 %v6967_v33, %v1831_v34  ;;  %v3641_v5 = vadd.f32 %v7007_v8, %v3512_v0  ;;  %v4158_v44 = vmul.f32 %v7013_v24, %v147_v56  ;;  %v148_v1 = vld [vmem:[#allocation6 + $0x358] sm:$0xff] }
 0x54e   :  { %v796_v60 = vadd.f32 %v668_v11, %v6928_v9  ;;  %v2606_v59 = vmul.f32 %v6982_v45, %v2477_v36  ;;  %v3123_v15 = vmax.f32 %v2995_v53, 0.0  ;;  %v4804_v39 = vmul.f32 %v7026_v41, %v147_v56 }
 0x54f   :  { %v5317_v2 = vadd.f32 %v5189_v7, %v4671_v23  ;;  %v3769_v14 = vmax.f32 %v3641_v5, 0.0  ;;  %v4287_v40 = vadd.f32 %v7019_v31, %v4158_v44  ;;  %v5450_v3 = vmul.f32 %v7040_v58, %v147_v56 }
 0x550   :  { %v1442_v18 = vadd.f32 %v1314_v52, %v796_v60  ;;  %v3252_v43 = vmul.f32 %v6995_v57, %v3123_v15  ;;  %v4933_v20 = vadd.f32 %v7032_v47, %v4804_v39  ;;  %v6096_v49 = vmul.f32 %v7054_v22, %v147_v56 }
 0x551   :  { %v5963_v29 = vadd.f32 %v5835_v48, %v5317_v2  ;;  %v3898_v46 = vmul.f32 %v7009_v16, %v3769_v14  ;;  %v4415_v61 = vmax.f32 %v4287_v40, 0.0  ;;  %v5579_v28 = vadd.f32 %v7045_v63, %v5450_v3 }
 0x552   :  { %v2088_v7 = vadd.f32 %v1960_v19, %v1442_v18  ;;  %v5061_v55 = vmax.f32 %v4933_v20, 0.0  ;;  %v6225_v26 = vadd.f32 %v7059_v32, %v6096_v49  ;;  %v283_v34 = vmul.f32 %v6918_v4, %v148_v1 }
 0x553   :  { %v6609_v0 = vadd.f32 %v6481_v27, %v5963_v29  ;;  %v4544_v11 = vmul.f32 %v7021_v35, %v4415_v61  ;;  %v5707_v52 = vmax.f32 %v5579_v28, 0.0  ;;  %v929_v36 = vmul.f32 %v6937_v13, %v148_v1 }
 0x554   :  { %v2734_v53 = vadd.f32 %v2606_v59, %v2088_v7  ;;  %v5190_v56 = vmul.f32 %v7035_v51, %v5061_v55  ;;  %v6353_v48 = vmax.f32 %v6225_v26, 0.0  ;;  %v412_v23 = vadd.f32 %v6922_v6, %v283_v34 }
 0x555   :  { %6737 = vst [vmem:[#allocation7 + $0x348] sm:$0xff] %v6609_v0  ;;  %v5836_v19 = vmul.f32 %v7048_v12, %v5707_v52  ;;  %v1058_v5 = vadd.f32 %v6945_v17, %v929_v36  ;;  %v1575_v44 = vmul.f32 %v6955_v25, %v148_v1  ;;  %v2221_v27 = vmul.f32 %v6973_v38, %v148_v1 }
 0x556   :  { %v3380_v60 = vadd.f32 %v3252_v43, %v2734_v53  ;;  %v6482_v15 = vmul.f32 %v7061_v37, %v6353_v48  ;;  %v540_v39 = vmax.f32 %v412_v23, 0.0  ;;  %v2867_v59 = vmul.f32 %v6988_v50, %v148_v1  ;;  %v149_v48 = vld [vmem:[#allocation6 + $0x360] sm:$0xff] }
 0x557   :  { %v1186_v2 = vmax.f32 %v1058_v5, 0.0  ;;  %v1704_v14 = vadd.f32 %v6964_v30, %v1575_v44  ;;  %v2350_v40 = vadd.f32 %v6979_v42, %v2221_v27  ;;  %v3513_v3 = vmul.f32 %v7001_v62, %v148_v1 }
 0x558   :  { %v4026_v18 = vadd.f32 %v3898_v46, %v3380_v60  ;;  %v669_v20 = vmul.f32 %v6930_v10, %v540_v39  ;;  %v2996_v49 = vadd.f32 %v6993_v54, %v2867_v59  ;;  %v4159_v29 = vmul.f32 %v7013_v24, %v148_v1 }
 0x559   :  { %v1315_v43 = vmul.f32 %v6951_v21, %v1186_v2  ;;  %v1832_v61 = vmax.f32 %v1704_v14, 0.0  ;;  %v2478_v28 = vmax.f32 %v2350_v40, 0.0  ;;  %v3642_v7 = vadd.f32 %v7007_v8, %v3513_v3 }
 0x55a   :  { %v4672_v55 = vadd.f32 %v4544_v11, %v4026_v18  ;;  %v797_v26 = vadd.f32 %v669_v20, %v6928_v9  ;;  %v3124_v34 = vmax.f32 %v2996_v49, 0.0  ;;  %v4288_v0 = vadd.f32 %v7019_v31, %v4159_v29 }
 0x55b   :  { %v1961_v46 = vmul.f32 %v6967_v33, %v1832_v61  ;;  %v2607_v52 = vmul.f32 %v6982_v45, %v2478_v28  ;;  %v3770_v36 = vmax.f32 %v3642_v7, 0.0  ;;  %v4805_v53 = vmul.f32 %v7026_v41, %v148_v1 }
 0x55c   :  { %v5318_v23 = vadd.f32 %v5190_v56, %v4672_v55  ;;  %v1443_v5 = vadd.f32 %v1315_v43, %v797_v26  ;;  %v3253_v44 = vmul.f32 %v6995_v57, %v3124_v34  ;;  %v4416_v27 = vmax.f32 %v4288_v0, 0.0 }
 0x55d   :  { %v3899_v11 = vmul.f32 %v7009_v16, %v3770_v36  ;;  %v4934_v60 = vadd.f32 %v7032_v47, %v4805_v53  ;;  %v5451_v39 = vmul.f32 %v7040_v58, %v148_v1  ;;  %v6097_v59 = vmul.f32 %v7054_v22, %v148_v1 }
 0x55e   :  { %v5964_v2 = vadd.f32 %v5836_v19, %v5318_v23  ;;  %v2089_v14 = vadd.f32 %v1961_v46, %v1443_v5  ;;  %v4545_v40 = vmul.f32 %v7021_v35, %v4416_v27  ;;  %v284_v3 = vmul.f32 %v6918_v4, %v149_v48 }
 0x55f   :  { %v5062_v18 = vmax.f32 %v4934_v60, 0.0  ;;  %v5580_v56 = vadd.f32 %v7045_v63, %v5451_v39  ;;  %v6226_v20 = vadd.f32 %v7059_v32, %v6097_v59  ;;  %v930_v49 = vmul.f32 %v6937_v13, %v149_v48 }
 0x560   :  { %v6610_v29 = vadd.f32 %v6482_v15, %v5964_v2  ;;  %v2735_v43 = vadd.f32 %v2607_v52, %v2089_v14  ;;  %v413_v61 = vadd.f32 %v6922_v6, %v284_v3  ;;  %v1576_v28 = vmul.f32 %v6955_v25, %v149_v48 }
 0x561   :  { %v5191_v1 = vmul.f32 %v7035_v51, %v5062_v18  ;;  %v5708_v19 = vmax.f32 %v5580_v56, 0.0  ;;  %v6354_v7 = vmax.f32 %v6226_v20, 0.0  ;;  %v1059_v55 = vadd.f32 %v6945_v17, %v930_v49 }
 0x562   :  { %6738 = vst [vmem:[#allocation7 + $0x350] sm:$0xff] %v6610_v29  ;;  %v3381_v26 = vadd.f32 %v3253_v44, %v2735_v43  ;;  %v541_v34 = vmax.f32 %v413_v61, 0.0  ;;  %v1705_v0 = vadd.f32 %v6964_v30, %v1576_v28  ;;  %v2222_v46 = vmul.f32 %v6973_v38, %v149_v48 }
 0x563   :  { %v5837_v15 = vmul.f32 %v7048_v12, %v5708_v19  ;;  %v6483_v52 = vmul.f32 %v7061_v37, %v6354_v7  ;;  %v1187_v36 = vmax.f32 %v1059_v55, 0.0  ;;  %v2868_v53 = vmul.f32 %v6988_v50, %v149_v48  ;;  %v150_v7 = vld [vmem:[#allocation6 + $0x368] sm:$0xff] }
 0x564   :  { %v4027_v23 = vadd.f32 %v3899_v11, %v3381_v26  ;;  %v670_v5 = vmul.f32 %v6930_v10, %v541_v34  ;;  %v1833_v27 = vmax.f32 %v1705_v0, 0.0  ;;  %v2351_v60 = vadd.f32 %v6979_v42, %v2222_v46 }
 0x565   :  { %v1316_v44 = vmul.f32 %v6951_v21, %v1187_v36  ;;  %v2997_v39 = vadd.f32 %v6993_v54, %v2868_v53  ;;  %v3514_v59 = vmul.f32 %v7001_v62, %v149_v48  ;;  %v4160_v2 = vmul.f32 %v7013_v24, %v149_v48 }
 0x566   :  { %v4673_v14 = vadd.f32 %v4545_v40, %v4027_v23  ;;  %v798_v3 = vadd.f32 %v670_v5, %v6928_v9  ;;  %v1962_v18 = vmul.f32 %v6967_v33, %v1833_v27  ;;  %v2479_v56 = vmax.f32 %v2351_v60, 0.0 }
 0x567   :  { %v3125_v11 = vmax.f32 %v2997_v39, 0.0  ;;  %v3643_v20 = vadd.f32 %v7007_v8, %v3514_v59  ;;  %v4289_v49 = vadd.f32 %v7019_v31, %v4160_v2  ;;  %v4806_v29 = vmul.f32 %v7026_v41, %v149_v48 }
 0x568   :  { %v5319_v43 = vadd.f32 %v5191_v1, %v4673_v14  ;;  %v1444_v61 = vadd.f32 %v1316_v44, %v798_v3  ;;  %v2608_v28 = vmul.f32 %v6982_v45, %v2479_v56  ;;  %v5452_v19 = vmul.f32 %v7040_v58, %v149_v48 }
 0x569   :  { %v3254_v40 = vmul.f32 %v6995_v57, %v3125_v11  ;;  %v3771_v55 = vmax.f32 %v3643_v20, 0.0  ;;  %v4417_v26 = vmax.f32 %v4289_v49, 0.0  ;;  %v4935_v34 = vadd.f32 %v7032_v47, %v4806_v29 }
 0x56a   :  { %v5965_v0 = vadd.f32 %v5837_v15, %v5319_v43  ;;  %v2090_v46 = vadd.f32 %v1962_v18, %v1444_v61  ;;  %v5581_v36 = vadd.f32 %v7045_v63, %v5452_v19  ;;  %v6098_v53 = vmul.f32 %v7054_v22, %v149_v48 }
 0x56b   :  { %v3900_v1 = vmul.f32 %v7009_v16, %v3771_v55  ;;  %v4546_v23 = vmul.f32 %v7021_v35, %v4417_v26  ;;  %v5063_v5 = vmax.f32 %v4935_v34, 0.0  ;;  %v285_v27 = vmul.f32 %v6918_v4, %v150_v7 }
 0x56c   :  { %v6611_v60 = vadd.f32 %v6483_v52, %v5965_v0  ;;  %v2736_v44 = vadd.f32 %v2608_v28, %v2090_v46  ;;  %v5709_v39 = vmax.f32 %v5581_v36, 0.0  ;;  %v6227_v59 = vadd.f32 %v7059_v32, %v6098_v53 }
 0x56d   :  { %v5192_v2 = vmul.f32 %v7035_v51, %v5063_v5  ;;  %v414_v15 = vadd.f32 %v6922_v6, %v285_v27  ;;  %v931_v14 = vmul.f32 %v6937_v13, %v150_v7  ;;  %v1577_v48 = vmul.f32 %v6955_v25, %v150_v7 }
 0x56e   :  { %6739 = vst [vmem:[#allocation7 + $0x358] sm:$0xff] %v6611_v60  ;;  %v3382_v3 = vadd.f32 %v3254_v40, %v2736_v44  ;;  %v5838_v18 = vmul.f32 %v7048_v12, %v5709_v39  ;;  %v6355_v56 = vmax.f32 %v6227_v59, 0.0  ;;  %v2223_v11 = vmul.f32 %v6973_v38, %v150_v7 }
 0x56f   :  { %v542_v52 = vmax.f32 %v414_v15, 0.0  ;;  %v1060_v20 = vadd.f32 %v6945_v17, %v931_v14  ;;  %v1706_v49 = vadd.f32 %v6964_v30, %v1577_v48  ;;  %v2869_v29 = vmul.f32 %v6988_v50, %v150_v7  ;;  %v151_v14 = vld [vmem:[#allocation6 + $0x370] sm:$0xff] }
 0x570   :  { %v4028_v43 = vadd.f32 %v3900_v1, %v3382_v3  ;;  %v6484_v61 = vmul.f32 %v7061_v37, %v6355_v56  ;;  %v2352_v28 = vadd.f32 %v6979_v42, %v2223_v11  ;;  %v3515_v19 = vmul.f32 %v7001_v62, %v150_v7 }
 0x571   :  { %v671_v40 = vmul.f32 %v6930_v10, %v542_v52  ;;  %v1188_v55 = vmax.f32 %v1060_v20, 0.0  ;;  %v1834_v26 = vmax.f32 %v1706_v49, 0.0  ;;  %v2998_v34 = vadd.f32 %v6993_v54, %v2869_v29 }
 0x572   :  { %v4674_v0 = vadd.f32 %v4546_v23, %v4028_v43  ;;  %v2480_v46 = vmax.f32 %v2352_v28, 0.0  ;;  %v3644_v36 = vadd.f32 %v7007_v8, %v3515_v19  ;;  %v4161_v53 = vmul.f32 %v7013_v24, %v150_v7 }
 0x573   :  { %v799_v1 = vadd.f32 %v671_v40, %v6928_v9  ;;  %v1317_v5 = vmul.f32 %v6951_v21, %v1188_v55  ;;  %v1963_v27 = vmul.f32 %v6967_v33, %v1834_v26  ;;  %v3126_v60 = vmax.f32 %v2998_v34, 0.0 }
 0x574   :  { %v5320_v44 = vadd.f32 %v5192_v2, %v4674_v0  ;;  %v2609_v39 = vmul.f32 %v6982_v45, %v2480_v46  ;;  %v3772_v59 = vmax.f32 %v3644_v36, 0.0  ;;  %v4290_v15 = vadd.f32 %v7019_v31, %v4161_v53 }
 0x575   :  { %v1445_v23 = vadd.f32 %v1317_v5, %v799_v1  ;;  %v3255_v48 = vmul.f32 %v6995_v57, %v3126_v60  ;;  %v4807_v3 = vmul.f32 %v7026_v41, %v150_v7  ;;  %v5453_v56 = vmul.f32 %v7040_v58, %v150_v7 }
 0x576   :  { %v5966_v11 = vadd.f32 %v5838_v18, %v5320_v44  ;;  %v3901_v52 = vmul.f32 %v7009_v16, %v3772_v59  ;;  %v4418_v20 = vmax.f32 %v4290_v15, 0.0  ;;  %v6099_v49 = vmul.f32 %v7054_v22, %v150_v7 }
 0x577   :  { %v2091_v2 = vadd.f32 %v1963_v27, %v1445_v23  ;;  %v4936_v29 = vadd.f32 %v7032_v47, %v4807_v3  ;;  %v5582_v43 = vadd.f32 %v7045_v63, %v5453_v56  ;;  %v286_v28 = vmul.f32 %v6918_v4, %v151_v14 }
 0x578   :  { %v6612_v19 = vadd.f32 %v6484_v61, %v5966_v11  ;;  %v4547_v40 = vmul.f32 %v7021_v35, %v4418_v20  ;;  %v6228_v55 = vadd.f32 %v7059_v32, %v6099_v49  ;;  %v932_v26 = vmul.f32 %v6937_v13, %v151_v14 }
 0x579   :  { %v2737_v18 = vadd.f32 %v2609_v39, %v2091_v2  ;;  %v5064_v34 = vmax.f32 %v4936_v29, 0.0  ;;  %v5710_v0 = vmax.f32 %v5582_v43, 0.0  ;;  %v415_v46 = vadd.f32 %v6922_v6, %v286_v28 }
 0x57a   :  { %6740 = vst [vmem:[#allocation7 + $0x360] sm:$0xff] %v6612_v19  ;;  %v6356_v7 = vmax.f32 %v6228_v55, 0.0  ;;  %v1061_v36 = vadd.f32 %v6945_v17, %v932_v26  ;;  %v1578_v53 = vmul.f32 %v6955_v25, %v151_v14  ;;  %v2224_v1 = vmul.f32 %v6973_v38, %v151_v14 }
 0x57b   :  { %v3383_v61 = vadd.f32 %v3255_v48, %v2737_v18  ;;  %v5193_v5 = vmul.f32 %v7035_v51, %v5064_v34  ;;  %v5839_v27 = vmul.f32 %v7048_v12, %v5710_v0  ;;  %v543_v60 = vmax.f32 %v415_v46, 0.0 }
 0x57c   :  { %v6485_v44 = vmul.f32 %v7061_v37, %v6356_v7  ;;  %v1189_v39 = vmax.f32 %v1061_v36, 0.0  ;;  %v1707_v59 = vadd.f32 %v6964_v30, %v1578_v53  ;;  %v2353_v15 = vadd.f32 %v6979_v42, %v2224_v1 }
 0x57d   :  { %v4029_v23 = vadd.f32 %v3901_v52, %v3383_v61  ;;  %v672_v3 = vmul.f32 %v6930_v10, %v543_v60  ;;  %v2870_v56 = vmul.f32 %v6988_v50, %v151_v14  ;;  %v3516_v11 = vmul.f32 %v7001_v62, %v151_v14  ;;  %v152_v61 = vld [vmem:[#allocation6 + $0x378] sm:$0xff] }
 0x57e   :  { %v1318_v48 = vmul.f32 %v6951_v21, %v1189_v39  ;;  %v1835_v20 = vmax.f32 %v1707_v59, 0.0  ;;  %v2481_v49 = vmax.f32 %v2353_v15, 0.0  ;;  %v4162_v2 = vmul.f32 %v7013_v24, %v151_v14 }
 0x57f   :  { %v4675_v29 = vadd.f32 %v4547_v40, %v4029_v23  ;;  %v800_v43 = vadd.f32 %v672_v3, %v6928_v9  ;;  %v2999_v28 = vadd.f32 %v6993_v54, %v2870_v56  ;;  %v3645_v19 = vadd.f32 %v7007_v8, %v3516_v11 }
 0x580   :  { %v1964_v52 = vmul.f32 %v6967_v33, %v1835_v20  ;;  %v2610_v55 = vmul.f32 %v6982_v45, %v2481_v49  ;;  %v4291_v26 = vadd.f32 %v7019_v31, %v4162_v2  ;;  %v4808_v18 = vmul.f32 %v7026_v41, %v151_v14 }
 0x581   :  { %v5321_v34 = vadd.f32 %v5193_v5, %v4675_v29  ;;  %v1446_v0 = vadd.f32 %v1318_v48, %v800_v43  ;;  %v3127_v46 = vmax.f32 %v2999_v28, 0.0  ;;  %v3773_v7 = vmax.f32 %v3645_v19, 0.0 }
 0x582   :  { %v4419_v36 = vmax.f32 %v4291_v26, 0.0  ;;  %v4937_v40 = vadd.f32 %v7032_v47, %v4808_v18  ;;  %v5454_v53 = vmul.f32 %v7040_v58, %v151_v14  ;;  %v6100_v1 = vmul.f32 %v7054_v22, %v151_v14 }
 0x583   :  { %v5967_v60 = vadd.f32 %v5839_v27, %v5321_v34  ;;  %v2092_v39 = vadd.f32 %v1964_v52, %v1446_v0  ;;  %v3256_v59 = vmul.f32 %v6995_v57, %v3127_v46  ;;  %v3902_v15 = vmul.f32 %v7009_v16, %v3773_v7 }
 0x584   :  { %v4548_v23 = vmul.f32 %v7021_v35, %v4419_v36  ;;  %v5065_v5 = vmax.f32 %v4937_v40, 0.0  ;;  %v5583_v3 = vadd.f32 %v7045_v63, %v5454_v53  ;;  %v6229_v56 = vadd.f32 %v7059_v32, %v6100_v1 }
 0x585   :  { %v6613_v11 = vadd.f32 %v6485_v44, %v5967_v60  ;;  %v2738_v48 = vadd.f32 %v2610_v55, %v2092_v39  ;;  %v287_v20 = vmul.f32 %v6918_v4, %v152_v61  ;;  %v933_v14 = vmul.f32 %v6937_v13, %v152_v61 }
 0x586   :  { %v5194_v27 = vmul.f32 %v7035_v51, %v5065_v5  ;;  %v5711_v49 = vmax.f32 %v5583_v3, 0.0  ;;  %v6357_v2 = vmax.f32 %v6229_v56, 0.0  ;;  %v1579_v29 = vmul.f32 %v6955_v25, %v152_v61 }
 0x587   :  { %6741 = vst [vmem:[#allocation7 + $0x368] sm:$0xff] %v6613_v11  ;;  %v3384_v43 = vadd.f32 %v3256_v59, %v2738_v48  ;;  %v416_v28 = vadd.f32 %v6922_v6, %v287_v20  ;;  %v1062_v19 = vadd.f32 %v6945_v17, %v933_v14  ;;  %v2225_v52 = vmul.f32 %v6973_v38, %v152_v61 }
 0x588   :  { %v5840_v44 = vmul.f32 %v7048_v12, %v5711_v49  ;;  %v6486_v55 = vmul.f32 %v7061_v37, %v6357_v2  ;;  %v1708_v26 = vadd.f32 %v6964_v30, %v1579_v29  ;;  %v2871_v18 = vmul.f32 %v6988_v50, %v152_v61 }
 0x589   :  { %v4030_v34 = vadd.f32 %v3902_v15, %v3384_v43  ;;  %v544_v0 = vmax.f32 %v416_v28, 0.0  ;;  %v1190_v46 = vmax.f32 %v1062_v19, 0.0  ;;  %v2354_v7 = vadd.f32 %v6979_v42, %v2225_v52 }
 0x58a   :  { %v1836_v36 = vmax.f32 %v1708_v26, 0.0  ;;  %v3000_v40 = vadd.f32 %v6993_v54, %v2871_v18  ;;  %v3517_v53 = vmul.f32 %v7001_v62, %v152_v61  ;;  %v4163_v1 = vmul.f32 %v7013_v24, %v152_v61 }
 0x58b   :  { %v4676_v60 = vadd.f32 %v4548_v23, %v4030_v34  ;;  %v673_v39 = vmul.f32 %v6930_v10, %v544_v0  ;;  %v1319_v59 = vmul.f32 %v6951_v21, %v1190_v46  ;;  %v2482_v5 = vmax.f32 %v2354_v7, 0.0  ;;  %v153_v23 = vld [vmem:[#allocation6 + $0x380] sm:$0xff] }
 0x58c   :  { %v1965_v3 = vmul.f32 %v6967_v33, %v1836_v36  ;;  %v3128_v15 = vmax.f32 %v3000_v40, 0.0  ;;  %v3646_v56 = vadd.f32 %v7007_v8, %v3517_v53  ;;  %v4292_v11 = vadd.f32 %v7019_v31, %v4163_v1 }
 0x58d   :  { %v5322_v48 = vadd.f32 %v5194_v27, %v4676_v60  ;;  %v801_v20 = vadd.f32 %v673_v39, %v6928_v9  ;;  %v2611_v14 = vmul.f32 %v6982_v45, %v2482_v5  ;;  %v4809_v49 = vmul.f32 %v7026_v41, %v152_v61 }
 0x58e   :  { %v3257_v2 = vmul.f32 %v6995_v57, %v3128_v15  ;;  %v3774_v29 = vmax.f32 %v3646_v56, 0.0  ;;  %v4420_v43 = vmax.f32 %v4292_v11, 0.0  ;;  %v5455_v28 = vmul.f32 %v7040_v58, %v152_v61 }
 0x58f   :  { %v5968_v19 = vadd.f32 %v5840_v44, %v5322_v48  ;;  %v1447_v52 = vadd.f32 %v1319_v59, %v801_v20  ;;  %v4938_v26 = vadd.f32 %v7032_v47, %v4809_v49  ;;  %v6101_v18 = vmul.f32 %v7054_v22, %v152_v61 }
 0x590   :  { %v3903_v27 = vmul.f32 %v7009_v16, %v3774_v29  ;;  %v4549_v34 = vmul.f32 %v7021_v35, %v4420_v43  ;;  %v5584_v0 = vadd.f32 %v7045_v63, %v5455_v28  ;;  %v288_v46 = vmul.f32 %v6918_v4, %v153_v23 }
 0x591   :  { %v6614_v7 = vadd.f32 %v6486_v55, %v5968_v19  ;;  %v2093_v36 = vadd.f32 %v1965_v3, %v1447_v52  ;;  %v5066_v40 = vmax.f32 %v4938_v26, 0.0  ;;  %v6230_v53 = vadd.f32 %v7059_v32, %v6101_v18 }
 0x592   :  { %v5712_v1 = vmax.f32 %v5584_v0, 0.0  ;;  %v417_v44 = vadd.f32 %v6922_v6, %v288_v46  ;;  %v934_v60 = vmul.f32 %v6937_v13, %v153_v23  ;;  %v1580_v61 = vmul.f32 %v6955_v25, %v153_v23 }
 0x593   :  { %6742 = vst [vmem:[#allocation7 + $0x370] sm:$0xff] %v6614_v7  ;;  %v2739_v39 = vadd.f32 %v2611_v14, %v2093_v36  ;;  %v5195_v59 = vmul.f32 %v7035_v51, %v5066_v40  ;;  %v6358_v5 = vmax.f32 %v6230_v53, 0.0  ;;  %v2226_v15 = vmul.f32 %v6973_v38, %v153_v23 }
 0x594   :  { %v5841_v55 = vmul.f32 %v7048_v12, %v5712_v1  ;;  %v545_v3 = vmax.f32 %v417_v44, 0.0  ;;  %v1063_v56 = vadd.f32 %v6945_v17, %v934_v60  ;;  %v1709_v11 = vadd.f32 %v6964_v30, %v1580_v61 }
 0x595   :  { %v3385_v48 = vadd.f32 %v3257_v2, %v2739_v39  ;;  %v6487_v20 = vmul.f32 %v7061_v37, %v6358_v5  ;;  %v2355_v49 = vadd.f32 %v6979_v42, %v2226_v15  ;;  %v2872_v29 = vmul.f32 %v6988_v50, %v153_v23  ;;  %v154_v5 = vld [vmem:[#allocation6 + $0x388] sm:$0xff] }
 0x596   :  { %v674_v14 = vmul.f32 %v6930_v10, %v545_v3  ;;  %v1191_v43 = vmax.f32 %v1063_v56, 0.0  ;;  %v1837_v28 = vmax.f32 %v1709_v11, 0.0  ;;  %v3518_v19 = vmul.f32 %v7001_v62, %v153_v23 }
 0x597   :  { %v4031_v52 = vadd.f32 %v3903_v27, %v3385_v48  ;;  %v2483_v26 = vmax.f32 %v2355_v49, 0.0  ;;  %v3001_v18 = vadd.f32 %v6993_v54, %v2872_v29  ;;  %v4164_v0 = vmul.f32 %v7013_v24, %v153_v23 }
 0x598   :  { %v802_v2 = vadd.f32 %v674_v14, %v6928_v9  ;;  %v1320_v46 = vmul.f32 %v6951_v21, %v1191_v43  ;;  %v1966_v7 = vmul.f32 %v6967_v33, %v1837_v28  ;;  %v3647_v36 = vadd.f32 %v7007_v8, %v3518_v19 }
 0x599   :  { %v4677_v40 = vadd.f32 %v4549_v34, %v4031_v52  ;;  %v2612_v53 = vmul.f32 %v6982_v45, %v2483_v26  ;;  %v3129_v1 = vmax.f32 %v3001_v18, 0.0  ;;  %v4293_v44 = vadd.f32 %v7019_v31, %v4164_v0 }
 0x59a   :  { %v1448_v27 = vadd.f32 %v1320_v46, %v802_v2  ;;  %v3775_v60 = vmax.f32 %v3647_v36, 0.0  ;;  %v4810_v61 = vmul.f32 %v7026_v41, %v153_v23  ;;  %v5456_v39 = vmul.f32 %v7040_v58, %v153_v23 }
 0x59b   :  { %v5323_v15 = vadd.f32 %v5195_v59, %v4677_v40  ;;  %v3258_v3 = vmul.f32 %v6995_v57, %v3129_v1  ;;  %v4421_v56 = vmax.f32 %v4293_v44, 0.0  ;;  %v6102_v11 = vmul.f32 %v7054_v22, %v153_v23 }
 0x59c   :  { %v2094_v48 = vadd.f32 %v1966_v7, %v1448_v27  ;;  %v3904_v34 = vmul.f32 %v7009_v16, %v3775_v60  ;;  %v4939_v49 = vadd.f32 %v7032_v47, %v4810_v61  ;;  %v5585_v29 = vadd.f32 %v7045_v63, %v5456_v39 }
 0x59d   :  { %v5969_v14 = vadd.f32 %v5841_v55, %v5323_v15  ;;  %v4550_v43 = vmul.f32 %v7021_v35, %v4421_v56  ;;  %v6231_v28 = vadd.f32 %v7059_v32, %v6102_v11  ;;  %v289_v19 = vmul.f32 %v6918_v4, %v154_v5 }
 0x59e   :  { %v2740_v59 = vadd.f32 %v2612_v53, %v2094_v48  ;;  %v5067_v52 = vmax.f32 %v4939_v49, 0.0  ;;  %v5713_v26 = vmax.f32 %v5585_v29, 0.0  ;;  %v935_v18 = vmul.f32 %v6937_v13, %v154_v5 }
 0x59f   :  { %v6615_v23 = vadd.f32 %v6487_v20, %v5969_v14  ;;  %v6359_v0 = vmax.f32 %v6231_v28, 0.0  ;;  %v418_v2 = vadd.f32 %v6922_v6, %v289_v19  ;;  %v1581_v46 = vmul.f32 %v6955_v25, %v154_v5 }
 0x5a0   :  { %v3386_v7 = vadd.f32 %v3258_v3, %v2740_v59  ;;  %v5196_v55 = vmul.f32 %v7035_v51, %v5067_v52  ;;  %v5842_v36 = vmul.f32 %v7048_v12, %v5713_v26  ;;  %v1064_v40 = vadd.f32 %v6945_v17, %v935_v18 }
 0x5a1   :  { %6743 = vst [vmem:[#allocation7 + $0x378] sm:$0xff] %v6615_v23  ;;  %v6488_v53 = vmul.f32 %v7061_v37, %v6359_v0  ;;  %v546_v1 = vmax.f32 %v418_v2, 0.0  ;;  %v1710_v44 = vadd.f32 %v6964_v30, %v1581_v46  ;;  %v2227_v20 = vmul.f32 %v6973_v38, %v154_v5 }
 0x5a2   :  { %v4032_v27 = vadd.f32 %v3904_v34, %v3386_v7  ;;  %v1192_v60 = vmax.f32 %v1064_v40, 0.0  ;;  %v2873_v61 = vmul.f32 %v6988_v50, %v154_v5  ;;  %v3519_v39 = vmul.f32 %v7001_v62, %v154_v5  ;;  %v155_v7 = vld [vmem:[#allocation6 + $0x390] sm:$0xff] }
 0x5a3   :  { %v675_v15 = vmul.f32 %v6930_v10, %v546_v1  ;;  %v1838_v3 = vmax.f32 %v1710_v44, 0.0  ;;  %v2356_v56 = vadd.f32 %v6979_v42, %v2227_v20  ;;  %v4165_v11 = vmul.f32 %v7013_v24, %v154_v5 }
 0x5a4   :  { %v4678_v48 = vadd.f32 %v4550_v43, %v4032_v27  ;;  %v1321_v49 = vmul.f32 %v6951_v21, %v1192_v60  ;;  %v3002_v29 = vadd.f32 %v6993_v54, %v2873_v61  ;;  %v3648_v14 = vadd.f32 %v7007_v8, %v3519_v39 }
 0x5a5   :  { %v803_v34 = vadd.f32 %v675_v15, %v6928_v9  ;;  %v1967_v28 = vmul.f32 %v6967_v33, %v1838_v3  ;;  %v2484_v19 = vmax.f32 %v2356_v56, 0.0  ;;  %v4294_v59 = vadd.f32 %v7019_v31, %v4165_v11 }
 0x5a6   :  { %v5324_v52 = vadd.f32 %v5196_v55, %v4678_v48  ;;  %v3130_v26 = vmax.f32 %v3002_v29, 0.0  ;;  %v3776_v18 = vmax.f32 %v3648_v14, 0.0  ;;  %v4811_v23 = vmul.f32 %v7026_v41, %v154_v5 }
 0x5a7   :  { %v1449_v0 = vadd.f32 %v1321_v49, %v803_v34  ;;  %v2613_v43 = vmul.f32 %v6982_v45, %v2484_v19  ;;  %v4422_v2 = vmax.f32 %v4294_v59, 0.0  ;;  %v5457_v46 = vmul.f32 %v7040_v58, %v154_v5 }
 0x5a8   :  { %v5970_v40 = vadd.f32 %v5842_v36, %v5324_v52  ;;  %v3259_v1 = vmul.f32 %v6995_v57, %v3130_v26  ;;  %v3905_v44 = vmul.f32 %v7009_v16, %v3776_v18  ;;  %v4940_v20 = vadd.f32 %v7032_v47, %v4811_v23 }
 0x5a9   :  { %v2095_v27 = vadd.f32 %v1967_v28, %v1449_v0  ;;  %v4551_v55 = vmul.f32 %v7021_v35, %v4422_v2  ;;  %v5586_v60 = vadd.f32 %v7045_v63, %v5457_v46  ;;  %v6103_v61 = vmul.f32 %v7054_v22, %v154_v5 }
 0x5aa   :  { %v6616_v39 = vadd.f32 %v6488_v53, %v5970_v40  ;;  %v5068_v15 = vmax.f32 %v4940_v20, 0.0  ;;  %v290_v3 = vmul.f32 %v6918_v4, %v155_v7  ;;  %v936_v56 = vmul.f32 %v6937_v13, %v155_v7 }
 0x5ab   :  { %v2741_v36 = vadd.f32 %v2613_v43, %v2095_v27  ;;  %v5714_v11 = vmax.f32 %v5586_v60, 0.0  ;;  %v6232_v48 = vadd.f32 %v7059_v32, %v6103_v61  ;;  %v1582_v49 = vmul.f32 %v6955_v25, %v155_v7 }
 0x5ac   :  { %6744 = vst [vmem:[#allocation7 + $0x380] sm:$0xff] %v6616_v39  ;;  %v5197_v29 = vmul.f32 %v7035_v51, %v5068_v15  ;;  %v419_v14 = vadd.f32 %v6922_v6, %v290_v3  ;;  %v1065_v34 = vadd.f32 %v6945_v17, %v936_v56  ;;  %v2228_v5 = vmul.f32 %v6973_v38, %v155_v7 }
 0x5ad   :  { %v3387_v53 = vadd.f32 %v3259_v1, %v2741_v36  ;;  %v5843_v28 = vmul.f32 %v7048_v12, %v5714_v11  ;;  %v6360_v19 = vmax.f32 %v6232_v48, 0.0  ;;  %v1711_v59 = vadd.f32 %v6964_v30, %v1582_v49 }
 0x5ae   :  { %v547_v52 = vmax.f32 %v419_v14, 0.0  ;;  %v1193_v26 = vmax.f32 %v1065_v34, 0.0  ;;  %v2357_v18 = vadd.f32 %v6979_v42, %v2228_v5  ;;  %v2874_v23 = vmul.f32 %v6988_v50, %v155_v7 }
 0x5af   :  { %v4033_v0 = vadd.f32 %v3905_v44, %v3387_v53  ;;  %v6489_v43 = vmul.f32 %v7061_v37, %v6360_v19  ;;  %v1839_v2 = vmax.f32 %v1711_v59, 0.0  ;;  %v3520_v46 = vmul.f32 %v7001_v62, %v155_v7 }
 0x5b0   :  { %v676_v40 = vmul.f32 %v6930_v10, %v547_v52  ;;  %v1322_v1 = vmul.f32 %v6951_v21, %v1193_v26  ;;  %v2485_v20 = vmax.f32 %v2357_v18, 0.0  ;;  %v3003_v27 = vadd.f32 %v6993_v54, %v2874_v23 }
 0x5b1   :  { %v4679_v60 = vadd.f32 %v4551_v55, %v4033_v0  ;;  %v1968_v61 = vmul.f32 %v6967_v33, %v1839_v2  ;;  %v3649_v39 = vadd.f32 %v7007_v8, %v3520_v46  ;;  %v4166_v15 = vmul.f32 %v7013_v24, %v155_v7  ;;  %v156_v55 = vld [vmem:[#allocation6 + $0x398] sm:$0xff] }
 0x5b2   :  { %v804_v44 = vadd.f32 %v676_v40, %v6928_v9  ;;  %v2614_v3 = vmul.f32 %v6982_v45, %v2485_v20  ;;  %v3131_v56 = vmax.f32 %v3003_v27, 0.0  ;;  %v4812_v36 = vmul.f32 %v7026_v41, %v155_v7 }
 0x5b3   :  { %v5325_v11 = vadd.f32 %v5197_v29, %v4679_v60  ;;  %v3777_v48 = vmax.f32 %v3649_v39, 0.0  ;;  %v4295_v49 = vadd.f32 %v7019_v31, %v4166_v15  ;;  %v5458_v14 = vmul.f32 %v7040_v58, %v155_v7 }
 0x5b4   :  { %v1450_v34 = vadd.f32 %v1322_v1, %v804_v44  ;;  %v3260_v5 = vmul.f32 %v6995_v57, %v3131_v56  ;;  %v4941_v53 = vadd.f32 %v7032_v47, %v4812_v36  ;;  %v6104_v19 = vmul.f32 %v7054_v22, %v155_v7 }
 0x5b5   :  { %v5971_v59 = vadd.f32 %v5843_v28, %v5325_v11  ;;  %v3906_v52 = vmul.f32 %v7009_v16, %v3777_v48  ;;  %v4423_v26 = vmax.f32 %v4295_v49, 0.0  ;;  %v5587_v18 = vadd.f32 %v7045_v63, %v5458_v14 }
 0x5b6   :  { %v2096_v29 = vadd.f32 %v1968_v61, %v1450_v34  ;;  %v5069_v23 = vmax.f32 %v4941_v53, 0.0  ;;  %v6233_v0 = vadd.f32 %v7059_v32, %v6104_v19  ;;  %v291_v2 = vmul.f32 %v6918_v4, %v156_v55 }
 0x5b7   :  { %v6617_v46 = vadd.f32 %v6489_v43, %v5971_v59  ;;  %v4552_v40 = vmul.f32 %v7021_v35, %v4423_v26  ;;  %v5715_v1 = vmax.f32 %v5587_v18, 0.0  ;;  %v937_v20 = vmul.f32 %v6937_v13, %v156_v55 }
 0x5b8   :  { %v2742_v27 = vadd.f32 %v2614_v3, %v2096_v29  ;;  %v5198_v7 = vmul.f32 %v7035_v51, %v5069_v23  ;;  %v6361_v28 = vmax.f32 %v6233_v0, 0.0  ;;  %v420_v60 = vadd.f32 %v6922_v6, %v291_v2 }
 0x5b9   :  { %6745 = vst [vmem:[#allocation7 + $0x388] sm:$0xff] %v6617_v46  ;;  %v5844_v61 = vmul.f32 %v7048_v12, %v5715_v1  ;;  %v1066_v39 = vadd.f32 %v6945_v17, %v937_v20  ;;  %v1583_v15 = vmul.f32 %v6955_v25, %v156_v55  ;;  %v2229_v43 = vmul.f32 %v6973_v38, %v156_v55 }
 0x5ba   :  { %v3388_v44 = vadd.f32 %v3260_v5, %v2742_v27  ;;  %v6490_v56 = vmul.f32 %v7061_v37, %v6361_v28  ;;  %v548_v36 = vmax.f32 %v420_v60, 0.0  ;;  %v2875_v3 = vmul.f32 %v6988_v50, %v156_v55  ;;  %v157_v28 = vld [vmem:[#allocation6 + $0x3a0] sm:$0xff] }
 0x5bb   :  { %v1194_v11 = vmax.f32 %v1066_v39, 0.0  ;;  %v1712_v48 = vadd.f32 %v6964_v30, %v1583_v15  ;;  %v2358_v49 = vadd.f32 %v6979_v42, %v2229_v43  ;;  %v3521_v14 = vmul.f32 %v7001_v62, %v156_v55 }
 0x5bc   :  { %v4034_v34 = vadd.f32 %v3906_v52, %v3388_v44  ;;  %v677_v53 = vmul.f32 %v6930_v10, %v548_v36  ;;  %v3004_v19 = vadd.f32 %v6993_v54, %v2875_v3  ;;  %v4167_v59 = vmul.f32 %v7013_v24, %v156_v55 }
 0x5bd   :  { %v1323_v5 = vmul.f32 %v6951_v21, %v1194_v11  ;;  %v1840_v26 = vmax.f32 %v1712_v48, 0.0  ;;  %v2486_v18 = vmax.f32 %v2358_v49, 0.0  ;;  %v3650_v29 = vadd.f32 %v7007_v8, %v3521_v14 }
 0x5be   :  { %v4680_v23 = vadd.f32 %v4552_v40, %v4034_v34  ;;  %v805_v0 = vadd.f32 %v677_v53, %v6928_v9  ;;  %v3132_v2 = vmax.f32 %v3004_v19, 0.0  ;;  %v4296_v46 = vadd.f32 %v7019_v31, %v4167_v59 }
 0x5bf   :  { %v1969_v52 = vmul.f32 %v6967_v33, %v1840_v26  ;;  %v2615_v1 = vmul.f32 %v6982_v45, %v2486_v18  ;;  %v3778_v20 = vmax.f32 %v3650_v29, 0.0  ;;  %v4813_v27 = vmul.f32 %v7026_v41, %v156_v55 }
 0x5c0   :  { %v5326_v60 = vadd.f32 %v5198_v7, %v4680_v23  ;;  %v1451_v39 = vadd.f32 %v1323_v5, %v805_v0  ;;  %v3261_v15 = vmul.f32 %v6995_v57, %v3132_v2  ;;  %v4424_v43 = vmax.f32 %v4296_v46, 0.0 }
 0x5c1   :  { %v3907_v40 = vmul.f32 %v7009_v16, %v3778_v20  ;;  %v4942_v44 = vadd.f32 %v7032_v47, %v4813_v27  ;;  %v5459_v36 = vmul.f32 %v7040_v58, %v156_v55  ;;  %v6105_v3 = vmul.f32 %v7054_v22, %v156_v55 }
 0x5c2   :  { %v5972_v11 = vadd.f32 %v5844_v61, %v5326_v60  ;;  %v2097_v48 = vadd.f32 %v1969_v52, %v1451_v39  ;;  %v4553_v49 = vmul.f32 %v7021_v35, %v4424_v43  ;;  %v292_v14 = vmul.f32 %v6918_v4, %v157_v28 }
 0x5c3   :  { %v5070_v34 = vmax.f32 %v4942_v44, 0.0  ;;  %v5588_v7 = vadd.f32 %v7045_v63, %v5459_v36  ;;  %v6234_v53 = vadd.f32 %v7059_v32, %v6105_v3  ;;  %v938_v19 = vmul.f32 %v6937_v13, %v157_v28 }
 0x5c4   :  { %v6618_v59 = vadd.f32 %v6490_v56, %v5972_v11  ;;  %v2743_v5 = vadd.f32 %v2615_v1, %v2097_v48  ;;  %v421_v26 = vadd.f32 %v6922_v6, %v292_v14  ;;  %v1584_v18 = vmul.f32 %v6955_v25, %v157_v28 }
 0x5c5   :  { %v5199_v55 = vmul.f32 %v7035_v51, %v5070_v34  ;;  %v5716_v61 = vmax.f32 %v5588_v7, 0.0  ;;  %v6362_v29 = vmax.f32 %v6234_v53, 0.0  ;;  %v1067_v23 = vadd.f32 %v6945_v17, %v938_v19 }
 0x5c6   :  { %6746 = vst [vmem:[#allocation7 + $0x390] sm:$0xff] %v6618_v59  ;;  %v3389_v0 = vadd.f32 %v3261_v15, %v2743_v5  ;;  %v549_v2 = vmax.f32 %v421_v26, 0.0  ;;  %v1713_v46 = vadd.f32 %v6964_v30, %v1584_v18  ;;  %v2230_v52 = vmul.f32 %v6973_v38, %v157_v28 }
 0x5c7   :  { %v5845_v56 = vmul.f32 %v7048_v12, %v5716_v61  ;;  %v6491_v1 = vmul.f32 %v7061_v37, %v6362_v29  ;;  %v1195_v20 = vmax.f32 %v1067_v23, 0.0  ;;  %v2876_v27 = vmul.f32 %v6988_v50, %v157_v28  ;;  %v158_v29 = vld [vmem:[#allocation6 + $0x3a8] sm:$0xff] }
 0x5c8   :  { %v4035_v60 = vadd.f32 %v3907_v40, %v3389_v0  ;;  %v678_v39 = vmul.f32 %v6930_v10, %v549_v2  ;;  %v1841_v43 = vmax.f32 %v1713_v46, 0.0  ;;  %v2359_v44 = vadd.f32 %v6979_v42, %v2230_v52 }
 0x5c9   :  { %v1324_v15 = vmul.f32 %v6951_v21, %v1195_v20  ;;  %v3005_v36 = vadd.f32 %v6993_v54, %v2876_v27  ;;  %v3522_v3 = vmul.f32 %v7001_v62, %v157_v28  ;;  %v4168_v11 = vmul.f32 %v7013_v24, %v157_v28 }
 0x5ca   :  { %v4681_v48 = vadd.f32 %v4553_v49, %v4035_v60  ;;  %v806_v14 = vadd.f32 %v678_v39, %v6928_v9  ;;  %v1970_v34 = vmul.f32 %v6967_v33, %v1841_v43  ;;  %v2487_v7 = vmax.f32 %v2359_v44, 0.0 }
 0x5cb   :  { %v3133_v40 = vmax.f32 %v3005_v36, 0.0  ;;  %v3651_v53 = vadd.f32 %v7007_v8, %v3522_v3  ;;  %v4297_v19 = vadd.f32 %v7019_v31, %v4168_v11  ;;  %v4814_v59 = vmul.f32 %v7026_v41, %v157_v28 }
 0x5cc   :  { %v5327_v5 = vadd.f32 %v5199_v55, %v4681_v48  ;;  %v1452_v26 = vadd.f32 %v1324_v15, %v806_v14  ;;  %v2616_v18 = vmul.f32 %v6982_v45, %v2487_v7  ;;  %v5460_v61 = vmul.f32 %v7040_v58, %v157_v28 }
 0x5cd   :  { %v3262_v49 = vmul.f32 %v6995_v57, %v3133_v40  ;;  %v3779_v23 = vmax.f32 %v3651_v53, 0.0  ;;  %v4425_v0 = vmax.f32 %v4297_v19, 0.0  ;;  %v4943_v2 = vadd.f32 %v7032_v47, %v4814_v59 }
 0x5ce   :  { %v5973_v46 = vadd.f32 %v5845_v56, %v5327_v5  ;;  %v2098_v52 = vadd.f32 %v1970_v34, %v1452_v26  ;;  %v5589_v20 = vadd.f32 %v7045_v63, %v5460_v61  ;;  %v6106_v27 = vmul.f32 %v7054_v22, %v157_v28 }
 0x5cf   :  { %v3908_v55 = vmul.f32 %v7009_v16, %v3779_v23  ;;  %v4554_v60 = vmul.f32 %v7021_v35, %v4425_v0  ;;  %v5071_v39 = vmax.f32 %v4943_v2, 0.0  ;;  %v293_v43 = vmul.f32 %v6918_v4, %v158_v29 }
 0x5d0   :  { %v6619_v44 = vadd.f32 %v6491_v1, %v5973_v46  ;;  %v2744_v15 = vadd.f32 %v2616_v18, %v2098_v52  ;;  %v5717_v36 = vmax.f32 %v5589_v20, 0.0  ;;  %v6235_v3 = vadd.f32 %v7059_v32, %v6106_v27 }
 0x5d1   :  { %v5200_v11 = vmul.f32 %v7035_v51, %v5071_v39  ;;  %v422_v56 = vadd.f32 %v6922_v6, %v293_v43  ;;  %v939_v48 = vmul.f32 %v6937_v13, %v158_v29  ;;  %v1585_v28 = vmul.f32 %v6955_v25, %v158_v29 }
 0x5d2   :  { %6747 = vst [vmem:[#allocation7 + $0x398] sm:$0xff] %v6619_v44  ;;  %v3390_v14 = vadd.f32 %v3262_v49, %v2744_v15  ;;  %v5846_v34 = vmul.f32 %v7048_v12, %v5717_v36  ;;  %v6363_v7 = vmax.f32 %v6235_v3, 0.0  ;;  %v2231_v40 = vmul.f32 %v6973_v38, %v158_v29 }
 0x5d3   :  { %v550_v1 = vmax.f32 %v422_v56, 0.0  ;;  %v1068_v53 = vadd.f32 %v6945_v17, %v939_v48  ;;  %v1714_v19 = vadd.f32 %v6964_v30, %v1585_v28  ;;  %v2877_v59 = vmul.f32 %v6988_v50, %v158_v29  ;;  %v159_v48 = vld [vmem:[#allocation6 + $0x3b0] sm:$0xff] }
 0x5d4   :  { %v4036_v5 = vadd.f32 %v3908_v55, %v3390_v14  ;;  %v6492_v26 = vmul.f32 %v7061_v37, %v6363_v7  ;;  %v2360_v18 = vadd.f32 %v6979_v42, %v2231_v40  ;;  %v3523_v61 = vmul.f32 %v7001_v62, %v158_v29 }
 0x5d5   :  { %v679_v49 = vmul.f32 %v6930_v10, %v550_v1  ;;  %v1196_v23 = vmax.f32 %v1068_v53, 0.0  ;;  %v1842_v0 = vmax.f32 %v1714_v19, 0.0  ;;  %v3006_v2 = vadd.f32 %v6993_v54, %v2877_v59 }
 0x5d6   :  { %v4682_v46 = vadd.f32 %v4554_v60, %v4036_v5  ;;  %v2488_v52 = vmax.f32 %v2360_v18, 0.0  ;;  %v3652_v20 = vadd.f32 %v7007_v8, %v3523_v61  ;;  %v4169_v27 = vmul.f32 %v7013_v24, %v158_v29 }
 0x5d7   :  { %v807_v55 = vadd.f32 %v679_v49, %v6928_v9  ;;  %v1325_v39 = vmul.f32 %v6951_v21, %v1196_v23  ;;  %v1971_v43 = vmul.f32 %v6967_v33, %v1842_v0  ;;  %v3134_v44 = vmax.f32 %v3006_v2, 0.0 }
 0x5d8   :  { %v5328_v15 = vadd.f32 %v5200_v11, %v4682_v46  ;;  %v2617_v36 = vmul.f32 %v6982_v45, %v2488_v52  ;;  %v3780_v3 = vmax.f32 %v3652_v20, 0.0  ;;  %v4298_v56 = vadd.f32 %v7019_v31, %v4169_v27 }
 0x5d9   :  { %v1453_v60 = vadd.f32 %v1325_v39, %v807_v55  ;;  %v3263_v28 = vmul.f32 %v6995_v57, %v3134_v44  ;;  %v4815_v14 = vmul.f32 %v7026_v41, %v158_v29  ;;  %v5461_v7 = vmul.f32 %v7040_v58, %v158_v29 }
 0x5da   :  { %v5974_v40 = vadd.f32 %v5846_v34, %v5328_v15  ;;  %v3909_v1 = vmul.f32 %v7009_v16, %v3780_v3  ;;  %v4426_v53 = vmax.f32 %v4298_v56, 0.0  ;;  %v6107_v19 = vmul.f32 %v7054_v22, %v158_v29 }
 0x5db   :  { %v2099_v11 = vadd.f32 %v1971_v43, %v1453_v60  ;;  %v4944_v59 = vadd.f32 %v7032_v47, %v4815_v14  ;;  %v5590_v5 = vadd.f32 %v7045_v63, %v5461_v7  ;;  %v294_v18 = vmul.f32 %v6918_v4, %v159_v48 }
 0x5dc   :  { %v6620_v61 = vadd.f32 %v6492_v26, %v5974_v40  ;;  %v4555_v49 = vmul.f32 %v7021_v35, %v4426_v53  ;;  %v6236_v23 = vadd.f32 %v7059_v32, %v6107_v19  ;;  %v940_v0 = vmul.f32 %v6937_v13, %v159_v48 }
 0x5dd   :  { %v2745_v34 = vadd.f32 %v2617_v36, %v2099_v11  ;;  %v5072_v2 = vmax.f32 %v4944_v59, 0.0  ;;  %v5718_v46 = vmax.f32 %v5590_v5, 0.0  ;;  %v423_v52 = vadd.f32 %v6922_v6, %v294_v18 }
 0x5de   :  { %6748 = vst [vmem:[#allocation7 + $0x3a0] sm:$0xff] %v6620_v61  ;;  %v6364_v29 = vmax.f32 %v6236_v23, 0.0  ;;  %v1069_v20 = vadd.f32 %v6945_v17, %v940_v0  ;;  %v1586_v27 = vmul.f32 %v6955_v25, %v159_v48  ;;  %v2232_v55 = vmul.f32 %v6973_v38, %v159_v48 }
 0x5df   :  { %v3391_v26 = vadd.f32 %v3263_v28, %v2745_v34  ;;  %v5201_v39 = vmul.f32 %v7035_v51, %v5072_v2  ;;  %v5847_v43 = vmul.f32 %v7048_v12, %v5718_v46  ;;  %v551_v44 = vmax.f32 %v423_v52, 0.0 }
 0x5e0   :  { %v6493_v15 = vmul.f32 %v7061_v37, %v6364_v29  ;;  %v1197_v36 = vmax.f32 %v1069_v20, 0.0  ;;  %v1715_v3 = vadd.f32 %v6964_v30, %v1586_v27  ;;  %v2361_v56 = vadd.f32 %v6979_v42, %v2232_v55 }
 0x5e1   :  { %v4037_v60 = vadd.f32 %v3909_v1, %v3391_v26  ;;  %v680_v14 = vmul.f32 %v6930_v10, %v551_v44  ;;  %v2878_v7 = vmul.f32 %v6988_v50, %v159_v48  ;;  %v3524_v40 = vmul.f32 %v7001_v62, %v159_v48  ;;  %v160_v26 = vld [vmem:[#allocation6 + $0x3b8] sm:$0xff] }
 0x5e2   :  { %v1326_v28 = vmul.f32 %v6951_v21, %v1197_v36  ;;  %v1843_v53 = vmax.f32 %v1715_v3, 0.0  ;;  %v2489_v19 = vmax.f32 %v2361_v56, 0.0  ;;  %v4170_v11 = vmul.f32 %v7013_v24, %v159_v48 }
 0x5e3   :  { %v4683_v59 = vadd.f32 %v4555_v49, %v4037_v60  ;;  %v808_v5 = vadd.f32 %v680_v14, %v6928_v9  ;;  %v3007_v18 = vadd.f32 %v6993_v54, %v2878_v7  ;;  %v3653_v61 = vadd.f32 %v7007_v8, %v3524_v40 }
 0x5e4   :  { %v1972_v1 = vmul.f32 %v6967_v33, %v1843_v53  ;;  %v2618_v23 = vmul.f32 %v6982_v45, %v2489_v19  ;;  %v4299_v0 = vadd.f32 %v7019_v31, %v4170_v11  ;;  %v4816_v34 = vmul.f32 %v7026_v41, %v159_v48 }
 0x5e5   :  { %v5329_v2 = vadd.f32 %v5201_v39, %v4683_v59  ;;  %v1454_v46 = vadd.f32 %v1326_v28, %v808_v5  ;;  %v3135_v52 = vmax.f32 %v3007_v18, 0.0  ;;  %v3781_v29 = vmax.f32 %v3653_v61, 0.0 }
 0x5e6   :  { %v4427_v20 = vmax.f32 %v4299_v0, 0.0  ;;  %v4945_v49 = vadd.f32 %v7032_v47, %v4816_v34  ;;  %v5462_v27 = vmul.f32 %v7040_v58, %v159_v48  ;;  %v6108_v55 = vmul.f32 %v7054_v22, %v159_v48 }
 0x5e7   :  { %v5975_v44 = vadd.f32 %v5847_v43, %v5329_v2  ;;  %v2100_v36 = vadd.f32 %v1972_v1, %v1454_v46  ;;  %v3264_v3 = vmul.f32 %v6995_v57, %v3135_v52  ;;  %v3910_v56 = vmul.f32 %v7009_v16, %v3781_v29 }
 0x5e8   :  { %v4556_v60 = vmul.f32 %v7021_v35, %v4427_v20  ;;  %v5073_v39 = vmax.f32 %v4945_v49, 0.0  ;;  %v5591_v14 = vadd.f32 %v7045_v63, %v5462_v27  ;;  %v6237_v7 = vadd.f32 %v7059_v32, %v6108_v55 }
 0x5e9   :  { %v6621_v40 = vadd.f32 %v6493_v15, %v5975_v44  ;;  %v2746_v28 = vadd.f32 %v2618_v23, %v2100_v36  ;;  %v295_v53 = vmul.f32 %v6918_v4, %v160_v26  ;;  %v941_v48 = vmul.f32 %v6937_v13, %v160_v26 }
 0x5ea   :  { %v5202_v43 = vmul.f32 %v7035_v51, %v5073_v39  ;;  %v5719_v19 = vmax.f32 %v5591_v14, 0.0  ;;  %v6365_v11 = vmax.f32 %v6237_v7, 0.0  ;;  %v1587_v59 = vmul.f32 %v6955_v25, %v160_v26 }
 0x5eb   :  { %6749 = vst [vmem:[#allocation7 + $0x3a8] sm:$0xff] %v6621_v40  ;;  %v3392_v5 = vadd.f32 %v3264_v3, %v2746_v28  ;;  %v424_v18 = vadd.f32 %v6922_v6, %v295_v53  ;;  %v1070_v61 = vadd.f32 %v6945_v17, %v941_v48  ;;  %v2233_v1 = vmul.f32 %v6973_v38, %v160_v26 }
 0x5ec   :  { %v5848_v15 = vmul.f32 %v7048_v12, %v5719_v19  ;;  %v6494_v23 = vmul.f32 %v7061_v37, %v6365_v11  ;;  %v1716_v0 = vadd.f32 %v6964_v30, %v1587_v59  ;;  %v2879_v34 = vmul.f32 %v6988_v50, %v160_v26 }
 0x5ed   :  { %v4038_v2 = vadd.f32 %v3910_v56, %v3392_v5  ;;  %v552_v46 = vmax.f32 %v424_v18, 0.0  ;;  %v1198_v52 = vmax.f32 %v1070_v61, 0.0  ;;  %v2362_v29 = vadd.f32 %v6979_v42, %v2233_v1 }
 0x5ee   :  { %v1844_v20 = vmax.f32 %v1716_v0, 0.0  ;;  %v3008_v49 = vadd.f32 %v6993_v54, %v2879_v34  ;;  %v3525_v27 = vmul.f32 %v7001_v62, %v160_v26  ;;  %v4171_v55 = vmul.f32 %v7013_v24, %v160_v26 }
 0x5ef   :  { %v4684_v44 = vadd.f32 %v4556_v60, %v4038_v2  ;;  %v681_v36 = vmul.f32 %v6930_v10, %v552_v46  ;;  %v1327_v3 = vmul.f32 %v6951_v21, %v1198_v52  ;;  %v2490_v39 = vmax.f32 %v2362_v29, 0.0  ;;  %v161_v60 = vld [vmem:[#allocation6 + $0x3c0] sm:$0xff] }
 0x5f0   :  { %v1973_v14 = vmul.f32 %v6967_v33, %v1844_v20  ;;  %v3136_v56 = vmax.f32 %v3008_v49, 0.0  ;;  %v3654_v7 = vadd.f32 %v7007_v8, %v3525_v27  ;;  %v4300_v40 = vadd.f32 %v7019_v31, %v4171_v55 }
 0x5f1   :  { %v5330_v28 = vadd.f32 %v5202_v43, %v4684_v44  ;;  %v809_v53 = vadd.f32 %v681_v36, %v6928_v9  ;;  %v2619_v48 = vmul.f32 %v6982_v45, %v2490_v39  ;;  %v4817_v19 = vmul.f32 %v7026_v41, %v160_v26 }
 0x5f2   :  { %v3265_v11 = vmul.f32 %v6995_v57, %v3136_v56  ;;  %v3782_v59 = vmax.f32 %v3654_v7, 0.0  ;;  %v4428_v5 = vmax.f32 %v4300_v40, 0.0  ;;  %v5463_v18 = vmul.f32 %v7040_v58, %v160_v26 }
 0x5f3   :  { %v5976_v61 = vadd.f32 %v5848_v15, %v5330_v28  ;;  %v1455_v1 = vadd.f32 %v1327_v3, %v809_v53  ;;  %v4946_v0 = vadd.f32 %v7032_v47, %v4817_v19  ;;  %v6109_v34 = vmul.f32 %v7054_v22, %v160_v26 }
 0x5f4   :  { %v3911_v43 = vmul.f32 %v7009_v16, %v3782_v59  ;;  %v4557_v2 = vmul.f32 %v7021_v35, %v4428_v5  ;;  %v5592_v46 = vadd.f32 %v7045_v63, %v5463_v18  ;;  %v296_v52 = vmul.f32 %v6918_v4, %v161_v60 }
 0x5f5   :  { %v6622_v29 = vadd.f32 %v6494_v23, %v5976_v61  ;;  %v2101_v20 = vadd.f32 %v1973_v14, %v1455_v1  ;;  %v5074_v49 = vmax.f32 %v4946_v0, 0.0  ;;  %v6238_v27 = vadd.f32 %v7059_v32, %v6109_v34 }
 0x5f6   :  { %v5720_v55 = vmax.f32 %v5592_v46, 0.0  ;;  %v425_v15 = vadd.f32 %v6922_v6, %v296_v52  ;;  %v942_v44 = vmul.f32 %v6937_v13, %v161_v60  ;;  %v1588_v26 = vmul.f32 %v6955_v25, %v161_v60 }
 0x5f7   :  { %6750 = vst [vmem:[#allocation7 + $0x3b0] sm:$0xff] %v6622_v29  ;;  %v2747_v36 = vadd.f32 %v2619_v48, %v2101_v20  ;;  %v5203_v3 = vmul.f32 %v7035_v51, %v5074_v49  ;;  %v6366_v39 = vmax.f32 %v6238_v27, 0.0  ;;  %v2234_v56 = vmul.f32 %v6973_v38, %v161_v60 }
 0x5f8   :  { %v5849_v23 = vmul.f32 %v7048_v12, %v5720_v55  ;;  %v553_v14 = vmax.f32 %v425_v15, 0.0  ;;  %v1071_v7 = vadd.f32 %v6945_v17, %v942_v44  ;;  %v1717_v40 = vadd.f32 %v6964_v30, %v1588_v26 }
 0x5f9   :  { %v3393_v28 = vadd.f32 %v3265_v11, %v2747_v36  ;;  %v6495_v53 = vmul.f32 %v7061_v37, %v6366_v39  ;;  %v2363_v19 = vadd.f32 %v6979_v42, %v2234_v56  ;;  %v2880_v59 = vmul.f32 %v6988_v50, %v161_v60  ;;  %v162_v39 = vld [vmem:[#allocation6 + $0x3c8] sm:$0xff] }
 0x5fa   :  { %v682_v48 = vmul.f32 %v6930_v10, %v553_v14  ;;  %v1199_v5 = vmax.f32 %v1071_v7, 0.0  ;;  %v1845_v18 = vmax.f32 %v1717_v40, 0.0  ;;  %v3526_v61 = vmul.f32 %v7001_v62, %v161_v60 }
 0x5fb   :  { %v4039_v1 = vadd.f32 %v3911_v43, %v3393_v28  ;;  %v2491_v0 = vmax.f32 %v2363_v19, 0.0  ;;  %v3009_v34 = vadd.f32 %v6993_v54, %v2880_v59  ;;  %v4172_v46 = vmul.f32 %v7013_v24, %v161_v60 }
 0x5fc   :  { %v810_v11 = vadd.f32 %v682_v48, %v6928_v9  ;;  %v1328_v52 = vmul.f32 %v6951_v21, %v1199_v5  ;;  %v1974_v29 = vmul.f32 %v6967_v33, %v1845_v18  ;;  %v3655_v20 = vadd.f32 %v7007_v8, %v3526_v61 }
 0x5fd   :  { %v4685_v49 = vadd.f32 %v4557_v2, %v4039_v1  ;;  %v2620_v27 = vmul.f32 %v6982_v45, %v2491_v0  ;;  %v3137_v55 = vmax.f32 %v3009_v34, 0.0  ;;  %v4301_v15 = vadd.f32 %v7019_v31, %v4172_v46 }
 0x5fe   :  { %v1456_v43 = vadd.f32 %v1328_v52, %v810_v11  ;;  %v3783_v44 = vmax.f32 %v3655_v20, 0.0  ;;  %v4818_v26 = vmul.f32 %v7026_v41, %v161_v60  ;;  %v5464_v36 = vmul.f32 %v7040_v58, %v161_v60 }
 0x5ff   :  { %v5331_v56 = vadd.f32 %v5203_v3, %v4685_v49  ;;  %v3266_v14 = vmul.f32 %v6995_v57, %v3137_v55  ;;  %v4429_v7 = vmax.f32 %v4301_v15, 0.0  ;;  %v6110_v40 = vmul.f32 %v7054_v22, %v161_v60 }
 0x600   :  { %v2102_v28 = vadd.f32 %v1974_v29, %v1456_v43  ;;  %v3912_v2 = vmul.f32 %v7009_v16, %v3783_v44  ;;  %v4947_v19 = vadd.f32 %v7032_v47, %v4818_v26  ;;  %v5593_v59 = vadd.f32 %v7045_v63, %v5464_v36 }
 0x601   :  { %v5977_v48 = vadd.f32 %v5849_v23, %v5331_v56  ;;  %v4558_v5 = vmul.f32 %v7021_v35, %v4429_v7  ;;  %v6239_v18 = vadd.f32 %v7059_v32, %v6110_v40  ;;  %v297_v61 = vmul.f32 %v6918_v4, %v162_v39 }
 0x602   :  { %v2748_v3 = vadd.f32 %v2620_v27, %v2102_v28  ;;  %v5075_v1 = vmax.f32 %v4947_v19, 0.0  ;;  %v5721_v0 = vmax.f32 %v5593_v59, 0.0  ;;  %v943_v34 = vmul.f32 %v6937_v13, %v162_v39 }
 0x603   :  { %v6623_v60 = vadd.f32 %v6495_v53, %v5977_v48  ;;  %v6367_v46 = vmax.f32 %v6239_v18, 0.0  ;;  %v426_v11 = vadd.f32 %v6922_v6, %v297_v61  ;;  %v1589_v52 = vmul.f32 %v6955_v25, %v162_v39 }
 0x604   :  { %v3394_v29 = vadd.f32 %v3266_v14, %v2748_v3  ;;  %v5204_v23 = vmul.f32 %v7035_v51, %v5075_v1  ;;  %v5850_v20 = vmul.f32 %v7048_v12, %v5721_v0  ;;  %v1072_v49 = vadd.f32 %v6945_v17, %v943_v34 }
 0x605   :  { %6751 = vst [vmem:[#allocation7 + $0x3b8] sm:$0xff] %v6623_v60  ;;  %v6496_v27 = vmul.f32 %v7061_v37, %v6367_v46  ;;  %v554_v55 = vmax.f32 %v426_v11, 0.0  ;;  %v1718_v15 = vadd.f32 %v6964_v30, %v1589_v52  ;;  %v2235_v53 = vmul.f32 %v6973_v38, %v162_v39 }
 0x606   :  { %v4040_v43 = vadd.f32 %v3912_v2, %v3394_v29  ;;  %v1200_v44 = vmax.f32 %v1072_v49, 0.0  ;;  %v2881_v26 = vmul.f32 %v6988_v50, %v162_v39  ;;  %v3527_v36 = vmul.f32 %v7001_v62, %v162_v39  ;;  %v163_v29 = vld [vmem:[#allocation6 + $0x3d0] sm:$0xff] }
 0x607   :  { %v683_v56 = vmul.f32 %v6930_v10, %v554_v55  ;;  %v1846_v14 = vmax.f32 %v1718_v15, 0.0  ;;  %v2364_v7 = vadd.f32 %v6979_v42, %v2235_v53  ;;  %v4173_v40 = vmul.f32 %v7013_v24, %v162_v39 }
 0x608   :  { %v4686_v28 = vadd.f32 %v4558_v5, %v4040_v43  ;;  %v1329_v19 = vmul.f32 %v6951_v21, %v1200_v44  ;;  %v3010_v59 = vadd.f32 %v6993_v54, %v2881_v26  ;;  %v3656_v48 = vadd.f32 %v7007_v8, %v3527_v36 }
 0x609   :  { %v811_v2 = vadd.f32 %v683_v56, %v6928_v9  ;;  %v1975_v18 = vmul.f32 %v6967_v33, %v1846_v14  ;;  %v2492_v61 = vmax.f32 %v2364_v7, 0.0  ;;  %v4302_v3 = vadd.f32 %v7019_v31, %v4173_v40 }
 0x60a   :  { %v5332_v1 = vadd.f32 %v5204_v23, %v4686_v28  ;;  %v3138_v0 = vmax.f32 %v3010_v59, 0.0  ;;  %v3784_v34 = vmax.f32 %v3656_v48, 0.0  ;;  %v4819_v60 = vmul.f32 %v7026_v41, %v162_v39 }
 0x60b   :  { %v1457_v46 = vadd.f32 %v1329_v19, %v811_v2  ;;  %v2621_v5 = vmul.f32 %v6982_v45, %v2492_v61  ;;  %v4430_v11 = vmax.f32 %v4302_v3, 0.0  ;;  %v5465_v52 = vmul.f32 %v7040_v58, %v162_v39 }
 0x60c   :  { %v5978_v49 = vadd.f32 %v5850_v20, %v5332_v1  ;;  %v3267_v55 = vmul.f32 %v6995_v57, %v3138_v0  ;;  %v3913_v15 = vmul.f32 %v7009_v16, %v3784_v34  ;;  %v4948_v53 = vadd.f32 %v7032_v47, %v4819_v60 }
 0x60d   :  { %v2103_v43 = vadd.f32 %v1975_v18, %v1457_v46  ;;  %v4559_v23 = vmul.f32 %v7021_v35, %v4430_v11  ;;  %v5594_v44 = vadd.f32 %v7045_v63, %v5465_v52  ;;  %v6111_v26 = vmul.f32 %v7054_v22, %v162_v39 }
 0x60e   :  { %v6624_v36 = vadd.f32 %v6496_v27, %v5978_v49  ;;  %v5076_v56 = vmax.f32 %v4948_v53, 0.0  ;;  %v298_v14 = vmul.f32 %v6918_v4, %v163_v29  ;;  %v944_v7 = vmul.f32 %v6937_v13, %v163_v29 }
 0x60f   :  { %v2749_v20 = vadd.f32 %v2621_v5, %v2103_v43  ;;  %v5722_v40 = vmax.f32 %v5594_v44, 0.0  ;;  %v6240_v28 = vadd.f32 %v7059_v32, %v6111_v26  ;;  %v1590_v19 = vmul.f32 %v6955_v25, %v163_v29 }
 0x610   :  { %6752 = vst [vmem:[#allocation7 + $0x3c0] sm:$0xff] %v6624_v36  ;;  %v5205_v59 = vmul.f32 %v7035_v51, %v5076_v56  ;;  %v427_v48 = vadd.f32 %v6922_v6, %v298_v14  ;;  %v1073_v2 = vadd.f32 %v6945_v17, %v944_v7  ;;  %v2236_v39 = vmul.f32 %v6973_v38, %v163_v29 }
 0x611   :  { %v3395_v27 = vadd.f32 %v3267_v55, %v2749_v20  ;;  %v5851_v18 = vmul.f32 %v7048_v12, %v5722_v40  ;;  %v6368_v61 = vmax.f32 %v6240_v28, 0.0  ;;  %v1719_v3 = vadd.f32 %v6964_v30, %v1590_v19 }
 0x612   :  { %v555_v1 = vmax.f32 %v427_v48, 0.0  ;;  %v1201_v0 = vmax.f32 %v1073_v2, 0.0  ;;  %v2365_v34 = vadd.f32 %v6979_v42, %v2236_v39  ;;  %v2882_v60 = vmul.f32 %v6988_v50, %v163_v29 }
 0x613   :  { %v4041_v46 = vadd.f32 %v3913_v15, %v3395_v27  ;;  %v6497_v5 = vmul.f32 %v7061_v37, %v6368_v61  ;;  %v1847_v11 = vmax.f32 %v1719_v3, 0.0  ;;  %v3528_v52 = vmul.f32 %v7001_v62, %v163_v29 }
 0x614   :  { %v684_v49 = vmul.f32 %v6930_v10, %v555_v1  ;;  %v1330_v55 = vmul.f32 %v6951_v21, %v1201_v0  ;;  %v2493_v53 = vmax.f32 %v2365_v34, 0.0  ;;  %v3011_v43 = vadd.f32 %v6993_v54, %v2882_v60 }
 0x615   :  { %v4687_v44 = vadd.f32 %v4559_v23, %v4041_v46  ;;  %v1976_v26 = vmul.f32 %v6967_v33, %v1847_v11  ;;  %v3657_v36 = vadd.f32 %v7007_v8, %v3528_v52  ;;  %v4174_v56 = vmul.f32 %v7013_v24, %v163_v29  ;;  %v164_v23 = vld [vmem:[#allocation6 + $0x3d8] sm:$0xff] }
 0x616   :  { %v812_v15 = vadd.f32 %v684_v49, %v6928_v9  ;;  %v2622_v14 = vmul.f32 %v6982_v45, %v2493_v53  ;;  %v3139_v7 = vmax.f32 %v3011_v43, 0.0  ;;  %v4820_v20 = vmul.f32 %v7026_v41, %v163_v29 }
 0x617   :  { %v5333_v40 = vadd.f32 %v5205_v59, %v4687_v44  ;;  %v3785_v28 = vmax.f32 %v3657_v36, 0.0  ;;  %v4303_v19 = vadd.f32 %v7019_v31, %v4174_v56  ;;  %v5466_v48 = vmul.f32 %v7040_v58, %v163_v29 }
 0x618   :  { %v1458_v2 = vadd.f32 %v1330_v55, %v812_v15  ;;  %v3268_v39 = vmul.f32 %v6995_v57, %v3139_v7  ;;  %v4949_v27 = vadd.f32 %v7032_v47, %v4820_v20  ;;  %v6112_v61 = vmul.f32 %v7054_v22, %v163_v29 }
 0x619   :  { %v5979_v3 = vadd.f32 %v5851_v18, %v5333_v40  ;;  %v3914_v1 = vmul.f32 %v7009_v16, %v3785_v28  ;;  %v4431_v0 = vmax.f32 %v4303_v19, 0.0  ;;  %v5595_v34 = vadd.f32 %v7045_v63, %v5466_v48 }
 0x61a   :  { %v2104_v59 = vadd.f32 %v1976_v26, %v1458_v2  ;;  %v5077_v60 = vmax.f32 %v4949_v27, 0.0  ;;  %v6241_v46 = vadd.f32 %v7059_v32, %v6112_v61  ;;  %v299_v11 = vmul.f32 %v6918_v4, %v164_v23 }
 0x61b   :  { %v6625_v52 = vadd.f32 %v6497_v5, %v5979_v3  ;;  %v4560_v49 = vmul.f32 %v7021_v35, %v4431_v0  ;;  %v5723_v55 = vmax.f32 %v5595_v34, 0.0  ;;  %v945_v53 = vmul.f32 %v6937_v13, %v164_v23 }
 0x61c   :  { %v2750_v43 = vadd.f32 %v2622_v14, %v2104_v59  ;;  %v5206_v29 = vmul.f32 %v7035_v51, %v5077_v60  ;;  %v6369_v18 = vmax.f32 %v6241_v46, 0.0  ;;  %v428_v44 = vadd.f32 %v6922_v6, %v299_v11 }
 0x61d   :  { %6753 = vst [vmem:[#allocation7 + $0x3c8] sm:$0xff] %v6625_v52  ;;  %v5852_v26 = vmul.f32 %v7048_v12, %v5723_v55  ;;  %v1074_v36 = vadd.f32 %v6945_v17, %v945_v53  ;;  %v1591_v56 = vmul.f32 %v6955_v25, %v164_v23  ;;  %v2237_v5 = vmul.f32 %v6973_v38, %v164_v23 }
 0x61e   :  { %v3396_v15 = vadd.f32 %v3268_v39, %v2750_v43  ;;  %v6498_v7 = vmul.f32 %v7061_v37, %v6369_v18  ;;  %v556_v20 = vmax.f32 %v428_v44, 0.0  ;;  %v2883_v14 = vmul.f32 %v6988_v50, %v164_v23  ;;  %v165_v18 = vld [vmem:[#allocation6 + $0x3e0] sm:$0xff] }
 0x61f   :  { %v1202_v40 = vmax.f32 %v1074_v36, 0.0  ;;  %v1720_v28 = vadd.f32 %v6964_v30, %v1591_v56  ;;  %v2366_v19 = vadd.f32 %v6979_v42, %v2237_v5  ;;  %v3529_v48 = vmul.f32 %v7001_v62, %v164_v23 }
 0x620   :  { %v4042_v2 = vadd.f32 %v3914_v1, %v3396_v15  ;;  %v685_v27 = vmul.f32 %v6930_v10, %v556_v20  ;;  %v3012_v61 = vadd.f32 %v6993_v54, %v2883_v14  ;;  %v4175_v3 = vmul.f32 %v7013_v24, %v164_v23 }
 0x621   :  { %v1331_v39 = vmul.f32 %v6951_v21, %v1202_v40  ;;  %v1848_v0 = vmax.f32 %v1720_v28, 0.0  ;;  %v2494_v34 = vmax.f32 %v2366_v19, 0.0  ;;  %v3658_v59 = vadd.f32 %v7007_v8, %v3529_v48 }
 0x622   :  { %v4688_v60 = vadd.f32 %v4560_v49, %v4042_v2  ;;  %v813_v46 = vadd.f32 %v685_v27, %v6928_v9  ;;  %v3140_v11 = vmax.f32 %v3012_v61, 0.0  ;;  %v4304_v52 = vadd.f32 %v7019_v31, %v4175_v3 }
 0x623   :  { %v1977_v1 = vmul.f32 %v6967_v33, %v1848_v0  ;;  %v2623_v55 = vmul.f32 %v6982_v45, %v2494_v34  ;;  %v3786_v53 = vmax.f32 %v3658_v59, 0.0  ;;  %v4821_v43 = vmul.f32 %v7026_v41, %v164_v23 }
 0x624   :  { %v5334_v44 = vadd.f32 %v5206_v29, %v4688_v60  ;;  %v1459_v36 = vadd.f32 %v1331_v39, %v813_v46  ;;  %v3269_v56 = vmul.f32 %v6995_v57, %v3140_v11  ;;  %v4432_v5 = vmax.f32 %v4304_v52, 0.0 }
 0x625   :  { %v3915_v49 = vmul.f32 %v7009_v16, %v3786_v53  ;;  %v4950_v15 = vadd.f32 %v7032_v47, %v4821_v43  ;;  %v5467_v20 = vmul.f32 %v7040_v58, %v164_v23  ;;  %v6113_v14 = vmul.f32 %v7054_v22, %v164_v23 }
 0x626   :  { %v5980_v40 = vadd.f32 %v5852_v26, %v5334_v44  ;;  %v2105_v28 = vadd.f32 %v1977_v1, %v1459_v36  ;;  %v4561_v19 = vmul.f32 %v7021_v35, %v4432_v5  ;;  %v300_v48 = vmul.f32 %v6918_v4, %v165_v18 }
 0x627   :  { %v5078_v2 = vmax.f32 %v4950_v15, 0.0  ;;  %v5596_v29 = vadd.f32 %v7045_v63, %v5467_v20  ;;  %v6242_v27 = vadd.f32 %v7059_v32, %v6113_v14  ;;  %v946_v61 = vmul.f32 %v6937_v13, %v165_v18 }
 0x628   :  { %v6626_v3 = vadd.f32 %v6498_v7, %v5980_v40  ;;  %v2751_v39 = vadd.f32 %v2623_v55, %v2105_v28  ;;  %v429_v0 = vadd.f32 %v6922_v6, %v300_v48  ;;  %v1592_v34 = vmul.f32 %v6955_v25, %v165_v18 }
 0x629   :  { %v5207_v23 = vmul.f32 %v7035_v51, %v5078_v2  ;;  %v5724_v26 = vmax.f32 %v5596_v29, 0.0  ;;  %v6370_v59 = vmax.f32 %v6242_v27, 0.0  ;;  %v1075_v60 = vadd.f32 %v6945_v17, %v946_v61 }
 0x62a   :  { %6754 = vst [vmem:[#allocation7 + $0x3d0] sm:$0xff] %v6626_v3  ;;  %v3397_v46 = vadd.f32 %v3269_v56, %v2751_v39  ;;  %v557_v11 = vmax.f32 %v429_v0, 0.0  ;;  %v1721_v52 = vadd.f32 %v6964_v30, %v1592_v34  ;;  %v2238_v1 = vmul.f32 %v6973_v38, %v165_v18 }
 0x62b   :  { %v5853_v7 = vmul.f32 %v7048_v12, %v5724_v26  ;;  %v6499_v55 = vmul.f32 %v7061_v37, %v6370_v59  ;;  %v1203_v53 = vmax.f32 %v1075_v60, 0.0  ;;  %v2884_v43 = vmul.f32 %v6988_v50, %v165_v18  ;;  %v166_v59 = vld [vmem:[#allocation6 + $0x3e8] sm:$0xff] }
 0x62c   :  { %v4043_v44 = vadd.f32 %v3915_v49, %v3397_v46  ;;  %v686_v36 = vmul.f32 %v6930_v10, %v557_v11  ;;  %v1849_v5 = vmax.f32 %v1721_v52, 0.0  ;;  %v2367_v15 = vadd.f32 %v6979_v42, %v2238_v1 }
 0x62d   :  { %v1332_v56 = vmul.f32 %v6951_v21, %v1203_v53  ;;  %v3013_v20 = vadd.f32 %v6993_v54, %v2884_v43  ;;  %v3530_v14 = vmul.f32 %v7001_v62, %v165_v18  ;;  %v4176_v40 = vmul.f32 %v7013_v24, %v165_v18 }
 0x62e   :  { %v4689_v28 = vadd.f32 %v4561_v19, %v4043_v44  ;;  %v814_v48 = vadd.f32 %v686_v36, %v6928_v9  ;;  %v1978_v2 = vmul.f32 %v6967_v33, %v1849_v5  ;;  %v2495_v29 = vmax.f32 %v2367_v15, 0.0 }
 0x62f   :  { %v3141_v49 = vmax.f32 %v3013_v20, 0.0  ;;  %v3659_v27 = vadd.f32 %v7007_v8, %v3530_v14  ;;  %v4305_v61 = vadd.f32 %v7019_v31, %v4176_v40  ;;  %v4822_v3 = vmul.f32 %v7026_v41, %v165_v18 }
 0x630   :  { %v5335_v39 = vadd.f32 %v5207_v23, %v4689_v28  ;;  %v1460_v0 = vadd.f32 %v1332_v56, %v814_v48  ;;  %v2624_v34 = vmul.f32 %v6982_v45, %v2495_v29  ;;  %v5468_v26 = vmul.f32 %v7040_v58, %v165_v18 }
 0x631   :  { %v3270_v19 = vmul.f32 %v6995_v57, %v3141_v49  ;;  %v3787_v60 = vmax.f32 %v3659_v27, 0.0  ;;  %v4433_v46 = vmax.f32 %v4305_v61, 0.0  ;;  %v4951_v11 = vadd.f32 %v7032_v47, %v4822_v3 }
 0x632   :  { %v5981_v52 = vadd.f32 %v5853_v7, %v5335_v39  ;;  %v2106_v1 = vadd.f32 %v1978_v2, %v1460_v0  ;;  %v5597_v53 = vadd.f32 %v7045_v63, %v5468_v26  ;;  %v6114_v43 = vmul.f32 %v7054_v22, %v165_v18 }
 0x633   :  { %v3916_v23 = vmul.f32 %v7009_v16, %v3787_v60  ;;  %v4562_v44 = vmul.f32 %v7021_v35, %v4433_v46  ;;  %v5079_v36 = vmax.f32 %v4951_v11, 0.0  ;;  %v301_v5 = vmul.f32 %v6918_v4, %v166_v59 }
 0x634   :  { %v6627_v15 = vadd.f32 %v6499_v55, %v5981_v52  ;;  %v2752_v56 = vadd.f32 %v2624_v34, %v2106_v1  ;;  %v5725_v20 = vmax.f32 %v5597_v53, 0.0  ;;  %v6243_v14 = vadd.f32 %v7059_v32, %v6114_v43 }
 0x635   :  { %v5208_v40 = vmul.f32 %v7035_v51, %v5079_v36  ;;  %v430_v7 = vadd.f32 %v6922_v6, %v301_v5  ;;  %v947_v28 = vmul.f32 %v6937_v13, %v166_v59  ;;  %v1593_v18 = vmul.f32 %v6955_v25, %v166_v59 }
 0x636   :  { %6755 = vst [vmem:[#allocation7 + $0x3d8] sm:$0xff] %v6627_v15  ;;  %v3398_v48 = vadd.f32 %v3270_v19, %v2752_v56  ;;  %v5854_v2 = vmul.f32 %v7048_v12, %v5725_v20  ;;  %v6371_v29 = vmax.f32 %v6243_v14, 0.0  ;;  %v2239_v49 = vmul.f32 %v6973_v38, %v166_v59 }
 0x637   :  { %v558_v55 = vmax.f32 %v430_v7, 0.0  ;;  %v1076_v27 = vadd.f32 %v6945_v17, %v947_v28  ;;  %v1722_v61 = vadd.f32 %v6964_v30, %v1593_v18  ;;  %v2885_v3 = vmul.f32 %v6988_v50, %v166_v59  ;;  %v167_v28 = vld [vmem:[#allocation6 + $0x3f0] sm:$0xff] }
 0x638   :  { %v4044_v39 = vadd.f32 %v3916_v23, %v3398_v48  ;;  %v6500_v0 = vmul.f32 %v7061_v37, %v6371_v29  ;;  %v2368_v34 = vadd.f32 %v6979_v42, %v2239_v49  ;;  %v3531_v26 = vmul.f32 %v7001_v62, %v166_v59 }
 0x639   :  { %v687_v19 = vmul.f32 %v6930_v10, %v558_v55  ;;  %v1204_v60 = vmax.f32 %v1076_v27, 0.0  ;;  %v1850_v46 = vmax.f32 %v1722_v61, 0.0  ;;  %v3014_v11 = vadd.f32 %v6993_v54, %v2885_v3 }
 0x63a   :  { %v4690_v52 = vadd.f32 %v4562_v44, %v4044_v39  ;;  %v2496_v1 = vmax.f32 %v2368_v34, 0.0  ;;  %v3660_v53 = vadd.f32 %v7007_v8, %v3531_v26  ;;  %v4177_v43 = vmul.f32 %v7013_v24, %v166_v59 }
 0x63b   :  { %v815_v23 = vadd.f32 %v687_v19, %v6928_v9  ;;  %v1333_v36 = vmul.f32 %v6951_v21, %v1204_v60  ;;  %v1979_v5 = vmul.f32 %v6967_v33, %v1850_v46  ;;  %v3142_v15 = vmax.f32 %v3014_v11, 0.0 }
 0x63c   :  { %v5336_v56 = vadd.f32 %v5208_v40, %v4690_v52  ;;  %v2625_v20 = vmul.f32 %v6982_v45, %v2496_v1  ;;  %v3788_v14 = vmax.f32 %v3660_v53, 0.0  ;;  %v4306_v7 = vadd.f32 %v7019_v31, %v4177_v43 }
 0x63d   :  { %v1461_v44 = vadd.f32 %v1333_v36, %v815_v23  ;;  %v3271_v18 = vmul.f32 %v6995_v57, %v3142_v15  ;;  %v4823_v48 = vmul.f32 %v7026_v41, %v166_v59  ;;  %v5469_v29 = vmul.f32 %v7040_v58, %v166_v59 }
 0x63e   :  { %v5982_v49 = vadd.f32 %v5854_v2, %v5336_v56  ;;  %v3917_v55 = vmul.f32 %v7009_v16, %v3788_v14  ;;  %v4434_v27 = vmax.f32 %v4306_v7, 0.0  ;;  %v6115_v61 = vmul.f32 %v7054_v22, %v166_v59 }
 0x63f   :  { %v2107_v40 = vadd.f32 %v1979_v5, %v1461_v44  ;;  %v4952_v3 = vadd.f32 %v7032_v47, %v4823_v48  ;;  %v5598_v39 = vadd.f32 %v7045_v63, %v5469_v29  ;;  %v302_v34 = vmul.f32 %v6918_v4, %v167_v28 }
 0x640   :  { %v6628_v26 = vadd.f32 %v6500_v0, %v5982_v49  ;;  %v4563_v19 = vmul.f32 %v7021_v35, %v4434_v27  ;;  %v6244_v60 = vadd.f32 %v7059_v32, %v6115_v61  ;;  %v948_v46 = vmul.f32 %v6937_v13, %v167_v28 }
 0x641   :  { %v2753_v2 = vadd.f32 %v2625_v20, %v2107_v40  ;;  %v5080_v11 = vmax.f32 %v4952_v3, 0.0  ;;  %v5726_v52 = vmax.f32 %v5598_v39, 0.0  ;;  %v431_v1 = vadd.f32 %v6922_v6, %v302_v34 }
 0x642   :  { %6756 = vst [vmem:[#allocation7 + $0x3e0] sm:$0xff] %v6628_v26  ;;  %v6372_v59 = vmax.f32 %v6244_v60, 0.0  ;;  %v1077_v53 = vadd.f32 %v6945_v17, %v948_v46  ;;  %v1594_v43 = vmul.f32 %v6955_v25, %v167_v28  ;;  %v2240_v23 = vmul.f32 %v6973_v38, %v167_v28 }
 0x643   :  { %v3399_v0 = vadd.f32 %v3271_v18, %v2753_v2  ;;  %v5209_v36 = vmul.f32 %v7035_v51, %v5080_v11  ;;  %v5855_v5 = vmul.f32 %v7048_v12, %v5726_v52  ;;  %v559_v15 = vmax.f32 %v431_v1, 0.0 }
 0x644   :  { %v6501_v56 = vmul.f32 %v7061_v37, %v6372_v59  ;;  %v1205_v20 = vmax.f32 %v1077_v53, 0.0  ;;  %v1723_v14 = vadd.f32 %v6964_v30, %v1594_v43  ;;  %v2369_v7 = vadd.f32 %v6979_v42, %v2240_v23 }
 0x645   :  { %v4045_v44 = vadd.f32 %v3917_v55, %v3399_v0  ;;  %v688_v48 = vmul.f32 %v6930_v10, %v559_v15  ;;  %v2886_v29 = vmul.f32 %v6988_v50, %v167_v28  ;;  %v3532_v49 = vmul.f32 %v7001_v62, %v167_v28  ;;  %v168_v0 = vld [vmem:[#allocation6 + $0x3f8] sm:$0xff] }
 0x646   :  { %v1334_v18 = vmul.f32 %v6951_v21, %v1205_v20  ;;  %v1851_v27 = vmax.f32 %v1723_v14, 0.0  ;;  %v2497_v61 = vmax.f32 %v2369_v7, 0.0  ;;  %v4178_v40 = vmul.f32 %v7013_v24, %v167_v28 }
 0x647   :  { %v4691_v3 = vadd.f32 %v4563_v19, %v4045_v44  ;;  %v816_v39 = vadd.f32 %v688_v48, %v6928_v9  ;;  %v3015_v34 = vadd.f32 %v6993_v54, %v2886_v29  ;;  %v3661_v26 = vadd.f32 %v7007_v8, %v3532_v49 }
 0x648   :  { %v1980_v55 = vmul.f32 %v6967_v33, %v1851_v27  ;;  %v2626_v60 = vmul.f32 %v6982_v45, %v2497_v61  ;;  %v4307_v46 = vadd.f32 %v7019_v31, %v4178_v40  ;;  %v4824_v2 = vmul.f32 %v7026_v41, %v167_v28 }
 0x649   :  { %v5337_v11 = vadd.f32 %v5209_v36, %v4691_v3  ;;  %v1462_v52 = vadd.f32 %v1334_v18, %v816_v39  ;;  %v3143_v1 = vmax.f32 %v3015_v34, 0.0  ;;  %v3789_v59 = vmax.f32 %v3661_v26, 0.0 }
 0x64a   :  { %v4435_v53 = vmax.f32 %v4307_v46, 0.0  ;;  %v4953_v19 = vadd.f32 %v7032_v47, %v4824_v2  ;;  %v5470_v43 = vmul.f32 %v7040_v58, %v167_v28  ;;  %v6116_v23 = vmul.f32 %v7054_v22, %v167_v28 }
 0x64b   :  { %v5983_v15 = vadd.f32 %v5855_v5, %v5337_v11  ;;  %v2108_v20 = vadd.f32 %v1980_v55, %v1462_v52  ;;  %v3272_v14 = vmul.f32 %v6995_v57, %v3143_v1  ;;  %v3918_v7 = vmul.f32 %v7009_v16, %v3789_v59 }
 0x64c   :  { %v5081_v44 = vmax.f32 %v4953_v19, 0.0  ;;  %v5599_v36 = vadd.f32 %v7045_v63, %v5470_v43  ;;  %v6245_v48 = vadd.f32 %v7059_v32, %v6116_v23  ;;  %v303_v18 = vmul.f32 %v6918_v4, %v168_v0 }
 0x64d   :  { %v6629_v29 = vadd.f32 %v6501_v56, %v5983_v15  ;;  %v2754_v49 = vadd.f32 %v2626_v60, %v2108_v20  ;;  %v949_v27 = vmul.f32 %v6937_v13, %v168_v0  ;;  %v4564_v28 = vmul.f32 %v7021_v35, %v4435_v53 }
 0x64e   :  { %v5210_v5 = vmul.f32 %v7035_v51, %v5081_v44  ;;  %v5727_v61 = vmax.f32 %v5599_v36, 0.0  ;;  %v1595_v40 = vmul.f32 %v6955_v25, %v168_v0  ;;  %v432_v39 = vadd.f32 %v6922_v6, %v303_v18 }
 0x64f   :  { %6757 = vst [vmem:[#allocation7 + $0x3e8] sm:$0xff] %v6629_v29  ;;  %v3400_v3 = vadd.f32 %v3272_v14, %v2754_v49  ;;  %v1078_v34 = vadd.f32 %v6945_v17, %v949_v27  ;;  %v2241_v56 = vmul.f32 %v6973_v38, %v168_v0  ;;  %v6373_v4 = vmax.f32 %v6245_v48, 0.0 }
 0x650   :  { %v5856_v26 = vmul.f32 %v7048_v12, %v5727_v61  ;;  %v1724_v13 = vadd.f32 %v6964_v30, %v1595_v40  ;;  %v2887_v55 = vmul.f32 %v6988_v50, %v168_v0  ;;  %v560_v46 = vmax.f32 %v432_v39, 0.0 }
 0x651   :  { %v4046_v60 = vadd.f32 %v3918_v7, %v3400_v3  ;;  %v1206_v2 = vmax.f32 %v1078_v34, 0.0  ;;  %v2370_v25 = vadd.f32 %v6979_v42, %v2241_v56  ;;  %v3533_v6 = vmul.f32 %v7001_v62, %v168_v0 }
 0x652   :  { %v1852_v11 = vmax.f32 %v1724_v13, 0.0  ;;  %v3016_v52 = vadd.f32 %v6993_v54, %v2887_v55  ;;  %v4179_v17 = vmul.f32 %v7013_v24, %v168_v0  ;;  %v689_v1 = vmul.f32 %v6930_v10, %v560_v46 }
 0x653   :  { %v4692_v38 = vadd.f32 %v4564_v28, %v4046_v60  ;;  %v1335_v59 = vmul.f32 %v6951_v21, %v1206_v2  ;;  %v2498_v30 = vmax.f32 %v2370_v25, 0.0  ;;  %v6502_v50 = vmul.f32 %v7061_v37, %v6373_v4 }
 0x654   :  { %v1981_v53 = vmul.f32 %v6967_v33, %v1852_v11  ;;  %v3144_v19 = vmax.f32 %v3016_v52, 0.0  ;;  %v3662_v42 = vadd.f32 %v7007_v8, %v3533_v6  ;;  %v817_v54 = vadd.f32 %v689_v1, %v6928_v9 }
 0x655   :  { %v5338_v43 = vadd.f32 %v5210_v5, %v4692_v38  ;;  %v4308_v62 = vadd.f32 %v7019_v31, %v4179_v17  ;;  %v4825_v24 = vmul.f32 %v7026_v41, %v168_v0  ;;  %v2627_v23 = vmul.f32 %v6982_v45, %v2498_v30 }
 0x656   :  { %v3790_v10 = vmax.f32 %v3662_v42, 0.0  ;;  %v5471_v21 = vmul.f32 %v7040_v58, %v168_v0  ;;  %v1463_v20 = vadd.f32 %v1335_v59, %v817_v54  ;;  %v6117_v33 = vmul.f32 %v7054_v22, %v168_v0 }
 0x657   :  { %v5984_v15 = vadd.f32 %v5856_v26, %v5338_v43  ;;  %v4954_v14 = vadd.f32 %v7032_v47, %v4825_v24  ;;  %v3273_v8 = vmul.f32 %v6995_v57, %v3144_v19  ;;  %v4436_v9 = vmax.f32 %v4308_v62, 0.0 }
 0x658   :  { %v2109_v44 = vadd.f32 %v1981_v53, %v1463_v20  ;;  %v5600_v31 = vadd.f32 %v7045_v63, %v5471_v21  ;;  %v3919_v45 = vmul.f32 %v7009_v16, %v3790_v10  ;;  %v6246_v58 = vadd.f32 %v7059_v32, %v6117_v33 }
 0x659   :  { %v6630_v7 = vadd.f32 %v6502_v50, %v5984_v15  ;;  %v5082_v36 = vmax.f32 %v4954_v14, 0.0  ;;  %v4565_v29 = vmul.f32 %v7021_v35, %v4436_v9 }
 0x65a   :  { %v2755_v41 = vadd.f32 %v2627_v23, %v2109_v44  ;;  %v5728_v47 = vmax.f32 %v5600_v31, 0.0  ;;  %v6374_v57 = vmax.f32 %v6246_v58, 0.0 }
 0x65b   :  { %6758 = vst [vmem:[#allocation7 + $0x3f0] sm:$0xff] %v6630_v7  ;;  %v5211_v22 = vmul.f32 %v7035_v51, %v5082_v36 }
 0x65c   :  { %v3401_v48 = vadd.f32 %v3273_v8, %v2755_v41  ;;  %v5857_v18 = vmul.f32 %v7048_v12, %v5728_v47  ;;  %v6503_v63 = vmul.f32 %v7061_v37, %v6374_v57 }
 0x65e   :  { %v4047_v49 = vadd.f32 %v3919_v45, %v3401_v48 }
 0x660   :  { %v4693_v0 = vadd.f32 %v4565_v29, %v4047_v49 }
 0x662   :  { %v5339_v27 = vadd.f32 %v5211_v22, %v4693_v0 }
 0x664   :  { %v5985_v16 = vadd.f32 %v5857_v18, %v5339_v27 }
 0x666   :  { %v6631_v32 = vadd.f32 %v6503_v63, %v5985_v16 }
 0x668   :  { %6759 = vst [vmem:[#allocation7 + $0x3f8] sm:$0xff] %v6631_v32 }
 0x669   :  { %6772 = dma.vmem_to_hbm [thread:$0]  %s6765_s22, 16384, %s6767_s25, [#allocation4], %s6883_s18, %s6883_s18, %s6884_s19  }
 0x66a   :  { %6879 = dma.done.wait [#allocation4], 16384  }
 0x66b   :  { %6880 = vsyncadd [#allocation4], 4294950912 }
 0x66c   :  { %6777 = vsyncpa [#allocation3], 1 }
 0x66d   :  { %6778 = vsyncpa [#allocation4], 1 }
 0x66e   :  { %6779 = vsyncpa [#allocation5], 1 }

</bundles_post_ra>
